<compile_context>
chip_gen: v7x
topology: tpu7x:2x2x1
jax: 0.10.0
libtpu: 0.0.40
codegen_flags: <defaults>
</compile_context>

<pallas_src>
import functools

import jax
import jax.numpy as jnp
from jax import lax
from jax.experimental import pallas as pl
from jax.experimental.pallas import tpu as pltpu

EPS = 1e-5          # nn.BatchNorm3d default eps
NEG_SLOPE = 0.01    # nn.LeakyReLU default negative_slope
_PAD5 = ((0, 0), (1, 1), (1, 1), (1, 1), (0, 0))


# ---------------------------------------------------------------------------
# small in-kernel helpers
# ---------------------------------------------------------------------------
def _leaky(y):
    return jnp.where(y >= 0, y, NEG_SLOPE * y)


def _im2col27(slices, H, W):
    """slices: 3 arrays (H+2, W+2, Cin) in dz order -> (H*W, 27*Cin) (taps folded
    into the contraction dim so the conv is a single MXU matmul)."""
    parts = []
    for a in slices:                       # dz = 0, 1, 2
        for dy in range(3):
            for dx in range(3):
                parts.append(a[dy:dy + H, dx:dx + W, :])
    cols = jnp.concatenate(parts, axis=-1)          # (H, W, 27*Cin)
    return cols.reshape(H * W, cols.shape[-1])


def _stats(y):
    """Per-channel partial (sum, sum-of-squares) of a (rows, C) tile -> (2, C)."""
    return jnp.concatenate([y.sum(axis=0, keepdims=True),
                            (y * y).sum(axis=0, keepdims=True)], axis=0)


# ---------------------------------------------------------------------------
# Pallas kernels
# ---------------------------------------------------------------------------
def _conv12_kernel(s0_ref, s1_ref, s2_ref, w2_ref, b2_ref, w1_ref, b1_ref,
                   r2_ref, st2_ref, r1_ref, st1_ref, *, H, W):
    """conv2 (3x3x3, pad=1) + conv1 (1x1x1) fused in one pass over x.

    Inputs are three D-slices of the zero-padded bf16 input; outputs are the raw
    (conv + bias) results plus per-tile BN partial statistics."""
    Hp, Wp, cin = s0_ref.shape[2], s0_ref.shape[3], s0_ref.shape[4]
    slices = [s_ref[...].reshape(Hp, Wp, cin).astype(jnp.bfloat16)
              for s_ref in (s0_ref, s1_ref, s2_ref)]
    cols = _im2col27(slices, H, W)                                  # (H*W, 27*Cin)
    y2 = jnp.dot(cols, w2_ref[...],
                 preferred_element_type=jnp.float32) + b2_ref[...]  # (H*W, o2)
    # conv1 taps the un-padded center slice (== x[n, d]).
    center = slices[1][1:H + 1, 1:W + 1, :].reshape(H * W, cin)
    y1 = jnp.dot(center, w1_ref[...],
                 preferred_element_type=jnp.float32) + b1_ref[...]  # (H*W, o1)
    r2_ref[...] = y2.reshape(r2_ref.shape)
    r1_ref[...] = y1.reshape(r1_ref.shape)
    st2_ref[...] = _stats(y2).reshape(st2_ref.shape)
    st1_ref[...] = _stats(y1).reshape(st1_ref.shape)


def _conv_act_kernel(s0_ref, s1_ref, s2_ref, w_ref, b_ref, sc_ref, sh_ref,
                     r_ref, st_ref, *, H, W, D):
    """3x3x3 conv (pad=1) whose input is the *raw* output of the previous conv:
    the producer's BatchNorm+LeakyReLU is fused here as a per-channel affine + act,
    with the zero-padding border re-imposed by a mask (PyTorch pads after the act)."""
    Hp, Wp, cin = s0_ref.shape[2], s0_ref.shape[3], s0_ref.shape[4]
    d = pl.program_id(1)
    ih = lax.broadcasted_iota(jnp.int32, (Hp, Wp), 0)
    iw = lax.broadcasted_iota(jnp.int32, (Hp, Wp), 1)
    mask_hw = ((ih > 0) & (ih < H + 1) & (iw > 0) & (iw < W + 1)
               ).astype(jnp.float32)[:, :, None]
    sc = sc_ref[...].reshape(1, 1, cin)
    sh = sh_ref[...].reshape(1, 1, cin)
    slices = []
    for dz, s_ref in enumerate((s0_ref, s1_ref, s2_ref)):
        a = _leaky(s_ref[...].reshape(Hp, Wp, cin) * sc + sh) * mask_hw
        pd = d + dz                                    # index in the padded D axis
        dvalid = jnp.where((pd > 0) & (pd < D + 1),
                           jnp.float32(1.0), jnp.float32(0.0))
        slices.append((a * dvalid).astype(jnp.bfloat16))
    cols = _im2col27(slices, H, W)
    y = jnp.dot(cols, w_ref[...],
                preferred_element_type=jnp.float32) + b_ref[...]
    r_ref[...] = y.reshape(r_ref.shape)
    st_ref[...] = _stats(y).reshape(st_ref.shape)


def _combine_kernel(r1_ref, r2_ref, r3_ref, r4_ref,
                    s1_ref, t1_ref, s2_ref, t2_ref,
                    s3_ref, t3_ref, s4_ref, t4_ref,
                    z_ref, st_ref, *, H, W):
    """z = act(bn1(raw1)) + concat([act(bn2(raw2)), act(bn3(raw3)), act(bn4(raw4))]),
    plus partial statistics of z for the final BatchNorm (self.norm)."""
    rows = H * W

    def act(r_ref, s_ref, t_ref):
        c = r_ref.shape[-1]
        return _leaky(r_ref[...].reshape(rows, c) * s_ref[...] + t_ref[...])

    z = act(r1_ref, s1_ref, t1_ref) + jnp.concatenate(
        [act(r2_ref, s2_ref, t2_ref),
         act(r3_ref, s3_ref, t3_ref),
         act(r4_ref, s4_ref, t4_ref)], axis=-1)
    z_ref[...] = z.reshape(z_ref.shape)
    st_ref[...] = _stats(z).reshape(st_ref.shape)


def _bn_act_kernel(z_ref, s_ref, t_ref, o_ref, *, H, W):
    """Final BatchNorm (as a precomputed per-channel affine) + LeakyReLU."""
    c = z_ref.shape[-1]
    y = z_ref[...].reshape(H * W, c) * s_ref[...] + t_ref[...]
    o_ref[...] = _leaky(y).reshape(o_ref.shape)


# ---------------------------------------------------------------------------
# BlockSpec helpers / pallas_call wrappers
# ---------------------------------------------------------------------------
def _cp():
    return pltpu.CompilerParams(
        dimension_semantics=("parallel", "parallel"),
        vmem_limit_bytes=32 * 1024 * 1024)


def _act_spec(H, W, C):
    return pl.BlockSpec((1, 1, H, W, C), lambda n, d: (n, d, 0, 0, 0))


def _st_spec(C):
    return pl.BlockSpec((1, 1, 2, C), lambda n, d: (n, d, 0, 0))


def _full_spec(shape):
    nd = len(shape)
    return pl.BlockSpec(shape, lambda n, d: (0,) * nd)


def _halo_specs(Hp, Wp, C):
    def mk(dz):
        return pl.BlockSpec((1, 1, Hp, Wp, C), lambda n, d: (n, d + dz, 0, 0, 0))
    return [mk(0), mk(1), mk(2)]


def _conv12_call(x_pad, w2, b2, w1, b1, N, D, H, W):
    cin = x_pad.shape[-1]
    o2, o1 = w2.shape[-1], w1.shape[-1]
    in_specs = _halo_specs(H + 2, W + 2, cin) + [
        _full_spec(w2.shape), _full_spec(b2.shape),
        _full_spec(w1.shape), _full_spec(b1.shape)]
    out_shape = (jax.ShapeDtypeStruct((N, D, H, W, o2), jnp.float32),
                 jax.ShapeDtypeStruct((N, D, 2, o2), jnp.float32),
                 jax.ShapeDtypeStruct((N, D, H, W, o1), jnp.float32),
                 jax.ShapeDtypeStruct((N, D, 2, o1), jnp.float32))
    out_specs = (_act_spec(H, W, o2), _st_spec(o2),
                 _act_spec(H, W, o1), _st_spec(o1))
    kern = functools.partial(_conv12_kernel, H=H, W=W)
    return pl.pallas_call(kern, grid=(N, D), in_specs=in_specs,
                          out_specs=out_specs, out_shape=out_shape,
                          compiler_params=_cp())(x_pad, x_pad, x_pad, w2, b2, w1, b1)


def _conv_act_call(r_pad, w, b, sc, sh, N, D, H, W):
    cin = r_pad.shape[-1]
    co = w.shape[-1]
    in_specs = _halo_specs(H + 2, W + 2, cin) + [
        _full_spec(w.shape), _full_spec(b.shape),
        _full_spec(sc.shape), _full_spec(sh.shape)]
    out_shape = (jax.ShapeDtypeStruct((N, D, H, W, co), jnp.float32),
                 jax.ShapeDtypeStruct((N, D, 2, co), jnp.float32))
    out_specs = (_act_spec(H, W, co), _st_spec(co))
    kern = functools.partial(_conv_act_kernel, H=H, W=W, D=D)
    return pl.pallas_call(kern, grid=(N, D), in_specs=in_specs,
                          out_specs=out_specs, out_shape=out_shape,
                          compiler_params=_cp())(r_pad, r_pad, r_pad, w, b, sc, sh)


def _combine_call(r1, r2, r3, r4, affines, N, D, H, W):
    chans = (r1.shape[-1], r2.shape[-1], r3.shape[-1], r4.shape[-1])
    o1 = chans[0]
    in_specs = [_act_spec(H, W, c) for c in chans]
    for c in chans:
        in_specs += [_full_spec((1, c)), _full_spec((1, c))]
    out_shape = (jax.ShapeDtypeStruct((N, D, H, W, o1), jnp.float32),
                 jax.ShapeDtypeStruct((N, D, 2, o1), jnp.float32))
    out_specs = (_act_spec(H, W, o1), _st_spec(o1))
    kern = functools.partial(_combine_kernel, H=H, W=W)
    return pl.pallas_call(kern, grid=(N, D), in_specs=in_specs,
                          out_specs=out_specs, out_shape=out_shape,
                          compiler_params=_cp())(r1, r2, r3, r4, *affines)


def _bn_act_call(z, sc, sh, N, D, H, W):
    c = z.shape[-1]
    in_specs = [_act_spec(H, W, c), _full_spec(sc.shape), _full_spec(sh.shape)]
    out_shape = jax.ShapeDtypeStruct((N, D, H, W, c), jnp.float32)
    kern = functools.partial(_bn_act_kernel, H=H, W=W)
    return pl.pallas_call(kern, grid=(N, D), in_specs=in_specs,
                          out_specs=_act_spec(H, W, c), out_shape=out_shape,
                          compiler_params=_cp())(z, sc, sh)


# ---------------------------------------------------------------------------
# parameter packing and two-pass BN finalization
# ---------------------------------------------------------------------------
def _pack_3x3(w):      # torch Conv3d weight (Cout, Cin, 3, 3, 3) -> (27*Cin, Cout) bf16
    cout, cin = w.shape[0], w.shape[1]
    return jnp.transpose(w, (2, 3, 4, 1, 0)).reshape(27 * cin, cout).astype(jnp.bfloat16)


def _pack_1x1(w):      # (Cout, Cin, 1, 1, 1) -> (Cin, Cout) bf16
    cout, cin = w.shape[0], w.shape[1]
    return jnp.transpose(w.reshape(cout, cin), (1, 0)).astype(jnp.bfloat16)


def _bn_affine(partial_stats, gamma, beta, count):
    """Reduce per-tile (sum, sumsq) partials -> per-channel BN scale/shift
    (training-mode batch statistics, biased variance)."""
    s = partial_stats.sum(axis=(0, 1))                    # (2, C)
    mean = s[0] / count
    var = jnp.maximum(s[1] / count - mean * mean, 0.0)
    scale = gamma.reshape(-1) * lax.rsqrt(var + EPS)
    shift = beta.reshape(-1) - mean * scale
    return scale.reshape(1, -1), shift.reshape(1, -1)


# ---------------------------------------------------------------------------
# ConvBlock_3D forward (Pallas)
# ---------------------------------------------------------------------------
@jax.jit
def convblock3d_forward(params, x):
    N, D, H, W, _ = x.shape
    count = float(N * D * H * W)

    w1 = _pack_1x1(params['w1']); b1 = params['b1'].reshape(1, -1)
    w2 = _pack_3x3(params['w2']); b2 = params['b2'].reshape(1, -1)
    w3 = _pack_3x3(params['w3']); b3 = params['b3'].reshape(1, -1)
    w4 = _pack_3x3(params['w4']); b4 = params['b4'].reshape(1, -1)

    # conv1 (1x1x1) + conv2 (3x3x3, pad=1) in a single pass over x.
    x_pad = jnp.pad(x.astype(jnp.bfloat16), _PAD5)
    r2, st2, r1, st1 = _conv12_call(x_pad, w2, b2, w1, b1, N, D, H, W)
    s1, t1 = _bn_affine(st1, params['g1'], params['bt1'], count)
    s2, t2 = _bn_affine(st2, params['g2'], params['bt2'], count)

    # conv3 consumes BN2+LeakyReLU(raw2); that affine+act is fused into its kernel.
    r3, st3 = _conv_act_call(jnp.pad(r2, _PAD5), w3, b3, s2, t2, N, D, H, W)
    s3, t3 = _bn_affine(st3, params['g3'], params['bt3'], count)

    # conv4 consumes BN3+LeakyReLU(raw3).
    r4, st4 = _conv_act_call(jnp.pad(r3, _PAD5), w4, b4, s3, t3, N, D, H, W)
    s4, t4 = _bn_affine(st4, params['g4'], params['bt4'], count)

    # shortcut + concat([out1, out2, out3]) with all four BN+act applied in-kernel,
    # then the final BatchNorm(+act) using the two-pass statistics.
    z, st5 = _combine_call(r1, r2, r3, r4,
                           (s1, t1, s2, t2, s3, t3, s4, t4), N, D, H, W)
    s5, t5 = _bn_affine(st5, params['gn'], params['btn'], count)
    return _bn_act_call(z, s5, t5, N, D, H, W)


# ---------------------------------------------------------------------------
# deterministic synthetic parameters (torch layouts)
# ---------------------------------------------------------------------------
def init_params(key, in_channels, out_channels):
    o1 = out_channels
    o2 = int(out_channels * 0.167)
    o3 = int(out_channels * 0.333)
    o4 = o1 - o2 - o3
    ks = jax.random.split(key, 18)

    def rnd(k, shape, scale=0.1):
        return scale * jax.random.normal(k, shape, jnp.float32)

    return {
        'w1': rnd(ks[0], (o1, in_channels, 1, 1, 1)), 'b1': rnd(ks[1], (o1,)),
        'g1': 1.0 + rnd(ks[2], (1, o1)), 'bt1': rnd(ks[3], (1, o1)),
        'w2': rnd(ks[4], (o2, in_channels, 3, 3, 3)), 'b2': rnd(ks[5], (o2,)),
        'g2': 1.0 + rnd(ks[6], (1, o2)), 'bt2': rnd(ks[7], (1, o2)),
        'w3': rnd(ks[8], (o3, o2, 3, 3, 3)), 'b3': rnd(ks[9], (o3,)),
        'g3': 1.0 + rnd(ks[10], (1, o3)), 'bt3': rnd(ks[11], (1, o3)),
        'w4': rnd(ks[12], (o4, o3, 3, 3, 3)), 'b4': rnd(ks[13], (o4,)),
        'g4': 1.0 + rnd(ks[14], (1, o4)), 'bt4': rnd(ks[15], (1, o4)),
        'gn': 1.0 + rnd(ks[16], (1, o1)), 'btn': rnd(ks[17], (1, o1)),
    }


# ---------------------------------------------------------------------------
# pure-JAX reference (same bf16-input / f32-accumulate precision as the kernels)
# ---------------------------------------------------------------------------
def _ref_conv3d(x, w_torch, b, pad):
    w_dhwio = jnp.transpose(w_torch, (2, 3, 4, 1, 0)).astype(jnp.bfloat16)
    y = lax.conv_general_dilated(
        x.astype(jnp.bfloat16), w_dhwio, window_strides=(1, 1, 1),
        padding=[(pad, pad)] * 3,
        dimension_numbers=('NDHWC', 'DHWIO', 'NDHWC'),
        preferred_element_type=jnp.float32)
    return y + b.reshape(1, 1, 1, 1, -1)


def _ref_bn_act(y, gamma, beta):
    m = jnp.mean(y, axis=(0, 1, 2, 3), keepdims=True)
    v = jnp.mean((y - m) ** 2, axis=(0, 1, 2, 3), keepdims=True)   # biased variance
    yn = (y - m) * lax.rsqrt(v + EPS) * gamma.reshape(1, 1, 1, 1, -1) \
        + beta.reshape(1, 1, 1, 1, -1)
    return jnp.where(yn >= 0, yn, NEG_SLOPE * yn)


@jax.jit
def convblock3d_reference(params, x):
    shortcut = _ref_bn_act(_ref_conv3d(x, params['w1'], params['b1'], 0),
                           params['g1'], params['bt1'])
    out1 = _ref_bn_act(_ref_conv3d(x, params['w2'], params['b2'], 1),
                       params['g2'], params['bt2'])
    out2 = _ref_bn_act(_ref_conv3d(out1, params['w3'], params['b3'], 1),
                       params['g3'], params['bt3'])
    out3 = _ref_bn_act(_ref_conv3d(out2, params['w4'], params['b4'], 1),
                       params['g4'], params['bt4'])
    c = jnp.concatenate([out1, out2, out3], axis=-1)
    return _ref_bn_act(shortcut + c, params['gn'], params['btn'])


# ---------------------------------------------------------------------------
if __name__ == "__main__":
    key = jax.random.PRNGKey(0)
    N, Cin, Cout = 2, 4, 16
    D = H = W = 8

    kx, kp = jax.random.split(key)
    x = jax.random.normal(kx, (N, D, H, W, Cin), jnp.float32)   # NDHWC
    params = init_params(kp, Cin, Cout)

    out = jax.block_until_ready(convblock3d_forward(params, x))
    assert out.shape == (N, D, H, W, Cout), out.shape
    assert bool(jnp.all(jnp.isfinite(out)))

    ref = jax.block_until_ready(convblock3d_reference(params, x))
    max_err = float(jnp.max(jnp.abs(out - ref)))
    assert max_err < 2e-2, f"mismatch vs reference: {max_err}"

    print("KERNEL_OK")
</pallas_src>

<mosaic_0001>
module attributes {stable_mosaic.version = 11 : i64} {
  func.func @_conv12_kernel(%arg0: i32, %arg1: i32, %arg2: memref<1x1x10x10x4xbf16, #tpu.memory_space<vmem>>, %arg3: memref<1x1x10x10x4xbf16, #tpu.memory_space<vmem>>, %arg4: memref<1x1x10x10x4xbf16, #tpu.memory_space<vmem>>, %arg5: memref<108x2xbf16, #tpu.memory_space<vmem>>, %arg6: memref<1x2xf32, #tpu.memory_space<vmem>>, %arg7: memref<4x16xbf16, #tpu.memory_space<vmem>>, %arg8: memref<1x16xf32, #tpu.memory_space<vmem>>, %arg9: memref<1x1x8x8x2xf32, #tpu.memory_space<vmem>>, %arg10: memref<1x1x2x2xf32, #tpu.memory_space<vmem>>, %arg11: memref<1x1x8x8x16xf32, #tpu.memory_space<vmem>>, %arg12: memref<1x1x2x16xf32, #tpu.memory_space<vmem>>) attributes {dimension_semantics = [#tpu.dimension_semantics<parallel>, #tpu.dimension_semantics<parallel>], iteration_bounds = array<i64: 2, 8>, scalar_prefetch = 0 : i64, scratch_operands = 0 : i64, tpu.core_type = #tpu.core_type<tc>, window_params = [{transform_indices = @transform_0, window_bounds = array<i64: 1, 1, 10, 10, 4>}, {transform_indices = @transform_1, window_bounds = array<i64: 1, 1, 10, 10, 4>}, {transform_indices = @transform_2, window_bounds = array<i64: 1, 1, 10, 10, 4>}, {pipeline_mode = #tpu.pipeline_mode<synchronous>, transform_indices = @transform_3, window_bounds = array<i64: 108, 2>}, {pipeline_mode = #tpu.pipeline_mode<synchronous>, transform_indices = @transform_4, window_bounds = array<i64: 1, 2>}, {pipeline_mode = #tpu.pipeline_mode<synchronous>, transform_indices = @transform_5, window_bounds = array<i64: 4, 16>}, {pipeline_mode = #tpu.pipeline_mode<synchronous>, transform_indices = @transform_6, window_bounds = array<i64: 1, 16>}, {transform_indices = @transform_7, window_bounds = array<i64: 1, 1, 8, 8, 2>}, {transform_indices = @transform_8, window_bounds = array<i64: 1, 1, 2, 2>}, {transform_indices = @transform_9, window_bounds = array<i64: 1, 1, 8, 8, 16>}, {transform_indices = @transform_10, window_bounds = array<i64: 1, 1, 2, 16>}]} {
    %c0 = arith.constant 0 : index
    %c0_0 = arith.constant 0 : index
    %c0_1 = arith.constant 0 : index
    %c0_2 = arith.constant 0 : index
    %c0_3 = arith.constant 0 : index
    %0 = vector.load %arg2[%c0, %c0_0, %c0_1, %c0_2, %c0_3] : memref<1x1x10x10x4xbf16, #tpu.memory_space<vmem>>, vector<1x1x10x10x4xbf16>
    %1 = vector.shape_cast %0 : vector<1x1x10x10x4xbf16> to vector<10x10x4xbf16>
    %c0_4 = arith.constant 0 : index
    %c0_5 = arith.constant 0 : index
    %c0_6 = arith.constant 0 : index
    %c0_7 = arith.constant 0 : index
    %c0_8 = arith.constant 0 : index
    %2 = vector.load %arg3[%c0_4, %c0_5, %c0_6, %c0_7, %c0_8] : memref<1x1x10x10x4xbf16, #tpu.memory_space<vmem>>, vector<1x1x10x10x4xbf16>
    %3 = vector.shape_cast %2 : vector<1x1x10x10x4xbf16> to vector<10x10x4xbf16>
    %c0_9 = arith.constant 0 : index
    %c0_10 = arith.constant 0 : index
    %c0_11 = arith.constant 0 : index
    %c0_12 = arith.constant 0 : index
    %c0_13 = arith.constant 0 : index
    %4 = vector.load %arg4[%c0_9, %c0_10, %c0_11, %c0_12, %c0_13] : memref<1x1x10x10x4xbf16, #tpu.memory_space<vmem>>, vector<1x1x10x10x4xbf16>
    %5 = vector.shape_cast %4 : vector<1x1x10x10x4xbf16> to vector<10x10x4xbf16>
    %6 = vector.extract_strided_slice %1 {offsets = [0, 0, 0], sizes = [8, 8, 4], strides = [1, 1, 1]} : vector<10x10x4xbf16> to vector<8x8x4xbf16>
    %7 = vector.extract_strided_slice %1 {offsets = [0, 1, 0], sizes = [8, 8, 4], strides = [1, 1, 1]} : vector<10x10x4xbf16> to vector<8x8x4xbf16>
    %8 = vector.extract_strided_slice %1 {offsets = [0, 2, 0], sizes = [8, 8, 4], strides = [1, 1, 1]} : vector<10x10x4xbf16> to vector<8x8x4xbf16>
    %9 = vector.extract_strided_slice %1 {offsets = [1, 0, 0], sizes = [8, 8, 4], strides = [1, 1, 1]} : vector<10x10x4xbf16> to vector<8x8x4xbf16>
    %10 = vector.extract_strided_slice %1 {offsets = [1, 1, 0], sizes = [8, 8, 4], strides = [1, 1, 1]} : vector<10x10x4xbf16> to vector<8x8x4xbf16>
    %11 = vector.extract_strided_slice %1 {offsets = [1, 2, 0], sizes = [8, 8, 4], strides = [1, 1, 1]} : vector<10x10x4xbf16> to vector<8x8x4xbf16>
    %12 = vector.extract_strided_slice %1 {offsets = [2, 0, 0], sizes = [8, 8, 4], strides = [1, 1, 1]} : vector<10x10x4xbf16> to vector<8x8x4xbf16>
    %13 = vector.extract_strided_slice %1 {offsets = [2, 1, 0], sizes = [8, 8, 4], strides = [1, 1, 1]} : vector<10x10x4xbf16> to vector<8x8x4xbf16>
    %14 = vector.extract_strided_slice %1 {offsets = [2, 2, 0], sizes = [8, 8, 4], strides = [1, 1, 1]} : vector<10x10x4xbf16> to vector<8x8x4xbf16>
    %15 = vector.extract_strided_slice %3 {offsets = [0, 0, 0], sizes = [8, 8, 4], strides = [1, 1, 1]} : vector<10x10x4xbf16> to vector<8x8x4xbf16>
    %16 = vector.extract_strided_slice %3 {offsets = [0, 1, 0], sizes = [8, 8, 4], strides = [1, 1, 1]} : vector<10x10x4xbf16> to vector<8x8x4xbf16>
    %17 = vector.extract_strided_slice %3 {offsets = [0, 2, 0], sizes = [8, 8, 4], strides = [1, 1, 1]} : vector<10x10x4xbf16> to vector<8x8x4xbf16>
    %18 = vector.extract_strided_slice %3 {offsets = [1, 0, 0], sizes = [8, 8, 4], strides = [1, 1, 1]} : vector<10x10x4xbf16> to vector<8x8x4xbf16>
    %19 = vector.extract_strided_slice %3 {offsets = [1, 1, 0], sizes = [8, 8, 4], strides = [1, 1, 1]} : vector<10x10x4xbf16> to vector<8x8x4xbf16>
    %20 = vector.extract_strided_slice %3 {offsets = [1, 2, 0], sizes = [8, 8, 4], strides = [1, 1, 1]} : vector<10x10x4xbf16> to vector<8x8x4xbf16>
    %21 = vector.extract_strided_slice %3 {offsets = [2, 0, 0], sizes = [8, 8, 4], strides = [1, 1, 1]} : vector<10x10x4xbf16> to vector<8x8x4xbf16>
    %22 = vector.extract_strided_slice %3 {offsets = [2, 1, 0], sizes = [8, 8, 4], strides = [1, 1, 1]} : vector<10x10x4xbf16> to vector<8x8x4xbf16>
    %23 = vector.extract_strided_slice %3 {offsets = [2, 2, 0], sizes = [8, 8, 4], strides = [1, 1, 1]} : vector<10x10x4xbf16> to vector<8x8x4xbf16>
    %24 = vector.extract_strided_slice %5 {offsets = [0, 0, 0], sizes = [8, 8, 4], strides = [1, 1, 1]} : vector<10x10x4xbf16> to vector<8x8x4xbf16>
    %25 = vector.extract_strided_slice %5 {offsets = [0, 1, 0], sizes = [8, 8, 4], strides = [1, 1, 1]} : vector<10x10x4xbf16> to vector<8x8x4xbf16>
    %26 = vector.extract_strided_slice %5 {offsets = [0, 2, 0], sizes = [8, 8, 4], strides = [1, 1, 1]} : vector<10x10x4xbf16> to vector<8x8x4xbf16>
    %27 = vector.extract_strided_slice %5 {offsets = [1, 0, 0], sizes = [8, 8, 4], strides = [1, 1, 1]} : vector<10x10x4xbf16> to vector<8x8x4xbf16>
    %28 = vector.extract_strided_slice %5 {offsets = [1, 1, 0], sizes = [8, 8, 4], strides = [1, 1, 1]} : vector<10x10x4xbf16> to vector<8x8x4xbf16>
    %29 = vector.extract_strided_slice %5 {offsets = [1, 2, 0], sizes = [8, 8, 4], strides = [1, 1, 1]} : vector<10x10x4xbf16> to vector<8x8x4xbf16>
    %30 = vector.extract_strided_slice %5 {offsets = [2, 0, 0], sizes = [8, 8, 4], strides = [1, 1, 1]} : vector<10x10x4xbf16> to vector<8x8x4xbf16>
    %31 = vector.extract_strided_slice %5 {offsets = [2, 1, 0], sizes = [8, 8, 4], strides = [1, 1, 1]} : vector<10x10x4xbf16> to vector<8x8x4xbf16>
    %32 = vector.extract_strided_slice %5 {offsets = [2, 2, 0], sizes = [8, 8, 4], strides = [1, 1, 1]} : vector<10x10x4xbf16> to vector<8x8x4xbf16>
    %33 = tpu.concatenate %6, %7, %8, %9, %10, %11, %12, %13, %14, %15, %16, %17, %18, %19, %20, %21 in 2 : vector<8x8x4xbf16>, vector<8x8x4xbf16>, vector<8x8x4xbf16>, vector<8x8x4xbf16>, vector<8x8x4xbf16>, vector<8x8x4xbf16>, vector<8x8x4xbf16>, vector<8x8x4xbf16>, vector<8x8x4xbf16>, vector<8x8x4xbf16>, vector<8x8x4xbf16>, vector<8x8x4xbf16>, vector<8x8x4xbf16>, vector<8x8x4xbf16>, vector<8x8x4xbf16>, vector<8x8x4xbf16> -> vector<8x8x64xbf16>
    %34 = tpu.concatenate %22, %23, %24, %25, %26, %27, %28, %29, %30, %31, %32 in 2 : vector<8x8x4xbf16>, vector<8x8x4xbf16>, vector<8x8x4xbf16>, vector<8x8x4xbf16>, vector<8x8x4xbf16>, vector<8x8x4xbf16>, vector<8x8x4xbf16>, vector<8x8x4xbf16>, vector<8x8x4xbf16>, vector<8x8x4xbf16>, vector<8x8x4xbf16> -> vector<8x8x44xbf16>
    %35 = tpu.concatenate %33, %34 in 2 : vector<8x8x64xbf16>, vector<8x8x44xbf16> -> vector<8x8x108xbf16>
    %36 = vector.shape_cast %35 : vector<8x8x108xbf16> to vector<64x108xbf16>
    %c0_14 = arith.constant 0 : index
    %c0_15 = arith.constant 0 : index
    %37 = vector.load %arg5[%c0_14, %c0_15] : memref<108x2xbf16, #tpu.memory_space<vmem>>, vector<108x2xbf16>
    %cst = arith.constant dense<0.000000e+00> : vector<64x2xf32>
    %38 = tpu.matmul %36, %37, %cst {dimension_numbers = #tpu.dot_dimension_numbers<[1], [0], [0], [1], [0, 0, 1, 1], [], []>} : vector<64x108xbf16>, vector<108x2xbf16>, vector<64x2xf32> -> vector<64x2xf32>
    %c0_16 = arith.constant 0 : index
    %c0_17 = arith.constant 0 : index
    %39 = vector.load %arg6[%c0_16, %c0_17] : memref<1x2xf32, #tpu.memory_space<vmem>>, vector<1x2xf32>
    %40 = vector.broadcast %39 : vector<1x2xf32> to vector<64x2xf32>
    %41 = arith.addf %38, %40 : vector<64x2xf32>
    %42 = vector.extract_strided_slice %3 {offsets = [1, 1, 0], sizes = [8, 8, 4], strides = [1, 1, 1]} : vector<10x10x4xbf16> to vector<8x8x4xbf16>
    %43 = vector.shape_cast %42 : vector<8x8x4xbf16> to vector<64x4xbf16>
    %c0_18 = arith.constant 0 : index
    %c0_19 = arith.constant 0 : index
    %44 = vector.load %arg7[%c0_18, %c0_19] : memref<4x16xbf16, #tpu.memory_space<vmem>>, vector<4x16xbf16>
    %cst_20 = arith.constant dense<0.000000e+00> : vector<64x16xf32>
    %45 = tpu.matmul %43, %44, %cst_20 {dimension_numbers = #tpu.dot_dimension_numbers<[1], [0], [0], [1], [0, 0, 1, 1], [], []>} : vector<64x4xbf16>, vector<4x16xbf16>, vector<64x16xf32> -> vector<64x16xf32>
    %c0_21 = arith.constant 0 : index
    %c0_22 = arith.constant 0 : index
    %46 = vector.load %arg8[%c0_21, %c0_22] : memref<1x16xf32, #tpu.memory_space<vmem>>, vector<1x16xf32>
    %47 = vector.broadcast %46 : vector<1x16xf32> to vector<64x16xf32>
    %48 = arith.addf %45, %47 : vector<64x16xf32>
    %49 = vector.shape_cast %41 : vector<64x2xf32> to vector<1x1x8x8x2xf32>
    %c0_23 = arith.constant 0 : index
    %c0_24 = arith.constant 0 : index
    %c0_25 = arith.constant 0 : index
    %c0_26 = arith.constant 0 : index
    %c0_27 = arith.constant 0 : index
    %50 = vector.load %arg9[%c0_23, %c0_24, %c0_25, %c0_26, %c0_27] : memref<1x1x8x8x2xf32, #tpu.memory_space<vmem>>, vector<1x1x8x8x2xf32>
    tpu.vector_store %arg9[%c0_23, %c0_24, %c0_25, %c0_26, %c0_27], %49 {strides = array<i32>} : memref<1x1x8x8x2xf32, #tpu.memory_space<vmem>>, vector<1x1x8x8x2xf32>,
    %51 = vector.shape_cast %48 : vector<64x16xf32> to vector<1x1x8x8x16xf32>
    %c0_28 = arith.constant 0 : index
    %c0_29 = arith.constant 0 : index
    %c0_30 = arith.constant 0 : index
    %c0_31 = arith.constant 0 : index
    %c0_32 = arith.constant 0 : index
    %52 = vector.load %arg11[%c0_28, %c0_29, %c0_30, %c0_31, %c0_32] : memref<1x1x8x8x16xf32, #tpu.memory_space<vmem>>, vector<1x1x8x8x16xf32>
    tpu.vector_store %arg11[%c0_28, %c0_29, %c0_30, %c0_31, %c0_32], %51 {strides = array<i32>} : memref<1x1x8x8x16xf32, #tpu.memory_space<vmem>>, vector<1x1x8x8x16xf32>,
    %cst_33 = arith.constant dense<0.000000e+00> : vector<2xf32>
    %53 = vector.multi_reduction <add>, %41, %cst_33 [0] : vector<64x2xf32> to vector<2xf32>
    %54 = vector.shape_cast %53 : vector<2xf32> to vector<1x2xf32>
    %55 = arith.mulf %41, %41 : vector<64x2xf32>
    %cst_34 = arith.constant dense<0.000000e+00> : vector<2xf32>
    %56 = vector.multi_reduction <add>, %55, %cst_34 [0] : vector<64x2xf32> to vector<2xf32>
    %57 = vector.shape_cast %56 : vector<2xf32> to vector<1x2xf32>
    %58 = tpu.concatenate %54, %57 in 0 : vector<1x2xf32>, vector<1x2xf32> -> vector<2x2xf32>
    %59 = vector.shape_cast %58 : vector<2x2xf32> to vector<1x1x2x2xf32>
    %c0_35 = arith.constant 0 : index
    %c0_36 = arith.constant 0 : index
    %c0_37 = arith.constant 0 : index
    %c0_38 = arith.constant 0 : index
    %60 = vector.load %arg10[%c0_35, %c0_36, %c0_37, %c0_38] : memref<1x1x2x2xf32, #tpu.memory_space<vmem>>, vector<1x1x2x2xf32>
    tpu.vector_store %arg10[%c0_35, %c0_36, %c0_37, %c0_38], %59 {strides = array<i32>} : memref<1x1x2x2xf32, #tpu.memory_space<vmem>>, vector<1x1x2x2xf32>,
    %cst_39 = arith.constant dense<0.000000e+00> : vector<16xf32>
    %61 = vector.multi_reduction <add>, %48, %cst_39 [0] : vector<64x16xf32> to vector<16xf32>
    %62 = vector.shape_cast %61 : vector<16xf32> to vector<1x16xf32>
    %63 = arith.mulf %48, %48 : vector<64x16xf32>
    %cst_40 = arith.constant dense<0.000000e+00> : vector<16xf32>
    %64 = vector.multi_reduction <add>, %63, %cst_40 [0] : vector<64x16xf32> to vector<16xf32>
    %65 = vector.shape_cast %64 : vector<16xf32> to vector<1x16xf32>
    %66 = tpu.concatenate %62, %65 in 0 : vector<1x16xf32>, vector<1x16xf32> -> vector<2x16xf32>
    %67 = vector.shape_cast %66 : vector<2x16xf32> to vector<1x1x2x16xf32>
    %c0_41 = arith.constant 0 : index
    %c0_42 = arith.constant 0 : index
    %c0_43 = arith.constant 0 : index
    %c0_44 = arith.constant 0 : index
    %68 = vector.load %arg12[%c0_41, %c0_42, %c0_43, %c0_44] : memref<1x1x2x16xf32, #tpu.memory_space<vmem>>, vector<1x1x2x16xf32>
    tpu.vector_store %arg12[%c0_41, %c0_42, %c0_43, %c0_44], %67 {strides = array<i32>} : memref<1x1x2x16xf32, #tpu.memory_space<vmem>>, vector<1x1x2x16xf32>,
    return
  }
  func.func @transform_0(%arg0: i32, %arg1: i32) -> (i32, i32, i32, i32, i32) {
    %c0_i32 = arith.constant 0 : i32
    %0 = arith.addi %arg1, %c0_i32 : i32
    %c0_i32_0 = arith.constant 0 : i32
    %c0_i32_1 = arith.constant 0 : i32
    %c0_i32_2 = arith.constant 0 : i32
    %c0_i32_3 = arith.constant 0 : i32
    return %arg0, %0, %c0_i32_0, %c0_i32_1, %c0_i32_2 : i32, i32, i32, i32, i32
  }
  func.func @transform_1(%arg0: i32, %arg1: i32) -> (i32, i32, i32, i32, i32) {
    %c1_i32 = arith.constant 1 : i32
    %0 = arith.addi %arg1, %c1_i32 : i32
    %c0_i32 = arith.constant 0 : i32
    %c0_i32_0 = arith.constant 0 : i32
    %c0_i32_1 = arith.constant 0 : i32
    %c0_i32_2 = arith.constant 0 : i32
    return %arg0, %0, %c0_i32, %c0_i32_0, %c0_i32_1 : i32, i32, i32, i32, i32
  }
  func.func @transform_2(%arg0: i32, %arg1: i32) -> (i32, i32, i32, i32, i32) {
    %c2_i32 = arith.constant 2 : i32
    %0 = arith.addi %arg1, %c2_i32 : i32
    %c0_i32 = arith.constant 0 : i32
    %c0_i32_0 = arith.constant 0 : i32
    %c0_i32_1 = arith.constant 0 : i32
    %c0_i32_2 = arith.constant 0 : i32
    return %arg0, %0, %c0_i32, %c0_i32_0, %c0_i32_1 : i32, i32, i32, i32, i32
  }
  func.func @transform_3(%arg0: i32, %arg1: i32) -> (i32, i32) {
    %c0_i32 = arith.constant 0 : i32
    %c0_i32_0 = arith.constant 0 : i32
    %c0_i32_1 = arith.constant 0 : i32
    return %c0_i32, %c0_i32_0 : i32, i32
  }
  func.func @transform_4(%arg0: i32, %arg1: i32) -> (i32, i32) {
    %c0_i32 = arith.constant 0 : i32
    %c0_i32_0 = arith.constant 0 : i32
    %c0_i32_1 = arith.constant 0 : i32
    return %c0_i32, %c0_i32_0 : i32, i32
  }
  func.func @transform_5(%arg0: i32, %arg1: i32) -> (i32, i32) {
    %c0_i32 = arith.constant 0 : i32
    %c0_i32_0 = arith.constant 0 : i32
    %c0_i32_1 = arith.constant 0 : i32
    return %c0_i32, %c0_i32_0 : i32, i32
  }
  func.func @transform_6(%arg0: i32, %arg1: i32) -> (i32, i32) {
    %c0_i32 = arith.constant 0 : i32
    %c0_i32_0 = arith.constant 0 : i32
    %c0_i32_1 = arith.constant 0 : i32
    return %c0_i32, %c0_i32_0 : i32, i32
  }
  func.func @transform_7(%arg0: i32, %arg1: i32) -> (i32, i32, i32, i32, i32) {
    %c0_i32 = arith.constant 0 : i32
    %c0_i32_0 = arith.constant 0 : i32
    %c0_i32_1 = arith.constant 0 : i32
    %c0_i32_2 = arith.constant 0 : i32
    return %arg0, %arg1, %c0_i32, %c0_i32_0, %c0_i32_1 : i32, i32, i32, i32, i32
  }
  func.func @transform_8(%arg0: i32, %arg1: i32) -> (i32, i32, i32, i32) {
    %c0_i32 = arith.constant 0 : i32
    %c0_i32_0 = arith.constant 0 : i32
    %c0_i32_1 = arith.constant 0 : i32
    return %arg0, %arg1, %c0_i32, %c0_i32_0 : i32, i32, i32, i32
  }
  func.func @transform_9(%arg0: i32, %arg1: i32) -> (i32, i32, i32, i32, i32) {
    %c0_i32 = arith.constant 0 : i32
    %c0_i32_0 = arith.constant 0 : i32
    %c0_i32_1 = arith.constant 0 : i32
    %c0_i32_2 = arith.constant 0 : i32
    return %arg0, %arg1, %c0_i32, %c0_i32_0, %c0_i32_1 : i32, i32, i32, i32, i32
  }
  func.func @transform_10(%arg0: i32, %arg1: i32) -> (i32, i32, i32, i32) {
    %c0_i32 = arith.constant 0 : i32
    %c0_i32_0 = arith.constant 0 : i32
    %c0_i32_1 = arith.constant 0 : i32
    return %arg0, %arg1, %c0_i32, %c0_i32_0 : i32, i32, i32, i32
  }
}

module attributes {stable_mosaic.version = 11 : i64} {
  func.func @_conv_act_kernel(%arg0: i32, %arg1: i32, %arg2: memref<1x1x10x10x2xf32, #tpu.memory_space<vmem>>, %arg3: memref<1x1x10x10x2xf32, #tpu.memory_space<vmem>>, %arg4: memref<1x1x10x10x2xf32, #tpu.memory_space<vmem>>, %arg5: memref<54x5xbf16, #tpu.memory_space<vmem>>, %arg6: memref<1x5xf32, #tpu.memory_space<vmem>>, %arg7: memref<1x2xf32, #tpu.memory_space<vmem>>, %arg8: memref<1x2xf32, #tpu.memory_space<vmem>>, %arg9: memref<1x1x8x8x5xf32, #tpu.memory_space<vmem>>, %arg10: memref<1x1x2x5xf32, #tpu.memory_space<vmem>>) attributes {dimension_semantics = [#tpu.dimension_semantics<parallel>, #tpu.dimension_semantics<parallel>], iteration_bounds = array<i64: 2, 8>, scalar_prefetch = 0 : i64, scratch_operands = 0 : i64, tpu.core_type = #tpu.core_type<tc>, window_params = [{transform_indices = @transform_0, window_bounds = array<i64: 1, 1, 10, 10, 2>}, {transform_indices = @transform_1, window_bounds = array<i64: 1, 1, 10, 10, 2>}, {transform_indices = @transform_2, window_bounds = array<i64: 1, 1, 10, 10, 2>}, {pipeline_mode = #tpu.pipeline_mode<synchronous>, transform_indices = @transform_3, window_bounds = array<i64: 54, 5>}, {pipeline_mode = #tpu.pipeline_mode<synchronous>, transform_indices = @transform_4, window_bounds = array<i64: 1, 5>}, {pipeline_mode = #tpu.pipeline_mode<synchronous>, transform_indices = @transform_5, window_bounds = array<i64: 1, 2>}, {pipeline_mode = #tpu.pipeline_mode<synchronous>, transform_indices = @transform_6, window_bounds = array<i64: 1, 2>}, {transform_indices = @transform_7, window_bounds = array<i64: 1, 1, 8, 8, 5>}, {transform_indices = @transform_8, window_bounds = array<i64: 1, 1, 2, 5>}]} {
    %0 = tpu.iota {dimensions = array<i32: 0>} : vector<10x10xi32>
    %1 = tpu.iota {dimensions = array<i32: 1>} : vector<10x10xi32>
    %c0_i32 = arith.constant 0 : i32
    %2 = vector.broadcast %c0_i32 : i32 to vector<10x10xi32>
    %3 = arith.cmpi sgt, %0, %2 : vector<10x10xi32>
    %c9_i32 = arith.constant 9 : i32
    %4 = vector.broadcast %c9_i32 : i32 to vector<10x10xi32>
    %5 = arith.cmpi slt, %0, %4 : vector<10x10xi32>
    %6 = arith.andi %3, %5 : vector<10x10xi1>
    %c0_i32_0 = arith.constant 0 : i32
    %7 = vector.broadcast %c0_i32_0 : i32 to vector<10x10xi32>
    %8 = arith.cmpi sgt, %1, %7 : vector<10x10xi32>
    %9 = arith.andi %6, %8 : vector<10x10xi1>
    %c9_i32_1 = arith.constant 9 : i32
    %10 = vector.broadcast %c9_i32_1 : i32 to vector<10x10xi32>
    %11 = arith.cmpi slt, %1, %10 : vector<10x10xi32>
    %12 = arith.andi %9, %11 : vector<10x10xi1>
    %13 = arith.extui %12 : vector<10x10xi1> to vector<10x10xi32>
    %14 = arith.sitofp %13 : vector<10x10xi32> to vector<10x10xf32>
    %15 = vector.shape_cast %14 : vector<10x10xf32> to vector<10x10x1xf32>
    %c0 = arith.constant 0 : index
    %c0_2 = arith.constant 0 : index
    %16 = vector.load %arg7[%c0, %c0_2] : memref<1x2xf32, #tpu.memory_space<vmem>>, vector<1x2xf32>
    %17 = vector.shape_cast %16 : vector<1x2xf32> to vector<1x1x2xf32>
    %c0_3 = arith.constant 0 : index
    %c0_4 = arith.constant 0 : index
    %18 = vector.load %arg8[%c0_3, %c0_4] : memref<1x2xf32, #tpu.memory_space<vmem>>, vector<1x2xf32>
    %19 = vector.shape_cast %18 : vector<1x2xf32> to vector<1x1x2xf32>
    %c0_5 = arith.constant 0 : index
    %c0_6 = arith.constant 0 : index
    %c0_7 = arith.constant 0 : index
    %c0_8 = arith.constant 0 : index
    %c0_9 = arith.constant 0 : index
    %20 = vector.load %arg2[%c0_5, %c0_6, %c0_7, %c0_8, %c0_9] : memref<1x1x10x10x2xf32, #tpu.memory_space<vmem>>, vector<1x1x10x10x2xf32>
    %21 = vector.shape_cast %20 : vector<1x1x10x10x2xf32> to vector<10x10x2xf32>
    %22 = vector.broadcast %17 : vector<1x1x2xf32> to vector<10x10x2xf32>
    %23 = arith.mulf %21, %22 : vector<10x10x2xf32>
    %24 = vector.broadcast %19 : vector<1x1x2xf32> to vector<10x10x2xf32>
    %25 = arith.addf %23, %24 : vector<10x10x2xf32>
    %cst = arith.constant 0.000000e+00 : f32
    %26 = vector.broadcast %cst : f32 to vector<10x10x2xf32>
    %27 = arith.cmpf oge, %25, %26 : vector<10x10x2xf32>
    %cst_10 = arith.constant 0.00999999977 : f32
    %28 = vector.broadcast %cst_10 : f32 to vector<10x10x2xf32>
    %29 = arith.mulf %28, %25 : vector<10x10x2xf32>
    %30 = arith.select %27, %25, %29 : vector<10x10x2xi1>, vector<10x10x2xf32>
    %31 = vector.broadcast %15 : vector<10x10x1xf32> to vector<10x10x2xf32>
    %32 = arith.mulf %30, %31 : vector<10x10x2xf32>
    %c0_i32_11 = arith.constant 0 : i32
    %33 = arith.addi %arg1, %c0_i32_11 : i32
    %c0_i32_12 = arith.constant 0 : i32
    %34 = arith.cmpi sgt, %33, %c0_i32_12 : i32
    %c9_i32_13 = arith.constant 9 : i32
    %35 = arith.cmpi slt, %33, %c9_i32_13 : i32
    %36 = arith.andi %34, %35 : i1
    %cst_14 = arith.constant 1.000000e+00 : f32
    %cst_15 = arith.constant 0.000000e+00 : f32
    %37 = arith.select %36, %cst_14, %cst_15 : f32
    %38 = vector.broadcast %37 : f32 to vector<10x10x2xf32>
    %39 = arith.mulf %32, %38 : vector<10x10x2xf32>
    %40 = arith.truncf %39 : vector<10x10x2xf32> to vector<10x10x2xbf16>
    %c0_16 = arith.constant 0 : index
    %c0_17 = arith.constant 0 : index
    %c0_18 = arith.constant 0 : index
    %c0_19 = arith.constant 0 : index
    %c0_20 = arith.constant 0 : index
    %41 = vector.load %arg3[%c0_16, %c0_17, %c0_18, %c0_19, %c0_20] : memref<1x1x10x10x2xf32, #tpu.memory_space<vmem>>, vector<1x1x10x10x2xf32>
    %42 = vector.shape_cast %41 : vector<1x1x10x10x2xf32> to vector<10x10x2xf32>
    %43 = vector.broadcast %17 : vector<1x1x2xf32> to vector<10x10x2xf32>
    %44 = arith.mulf %42, %43 : vector<10x10x2xf32>
    %45 = vector.broadcast %19 : vector<1x1x2xf32> to vector<10x10x2xf32>
    %46 = arith.addf %44, %45 : vector<10x10x2xf32>
    %cst_21 = arith.constant 0.000000e+00 : f32
    %47 = vector.broadcast %cst_21 : f32 to vector<10x10x2xf32>
    %48 = arith.cmpf oge, %46, %47 : vector<10x10x2xf32>
    %cst_22 = arith.constant 0.00999999977 : f32
    %49 = vector.broadcast %cst_22 : f32 to vector<10x10x2xf32>
    %50 = arith.mulf %49, %46 : vector<10x10x2xf32>
    %51 = arith.select %48, %46, %50 : vector<10x10x2xi1>, vector<10x10x2xf32>
    %52 = vector.broadcast %15 : vector<10x10x1xf32> to vector<10x10x2xf32>
    %53 = arith.mulf %51, %52 : vector<10x10x2xf32>
    %c1_i32 = arith.constant 1 : i32
    %54 = arith.addi %arg1, %c1_i32 : i32
    %c0_i32_23 = arith.constant 0 : i32
    %55 = arith.cmpi sgt, %54, %c0_i32_23 : i32
    %c9_i32_24 = arith.constant 9 : i32
    %56 = arith.cmpi slt, %54, %c9_i32_24 : i32
    %57 = arith.andi %55, %56 : i1
    %cst_25 = arith.constant 1.000000e+00 : f32
    %cst_26 = arith.constant 0.000000e+00 : f32
    %58 = arith.select %57, %cst_25, %cst_26 : f32
    %59 = vector.broadcast %58 : f32 to vector<10x10x2xf32>
    %60 = arith.mulf %53, %59 : vector<10x10x2xf32>
    %61 = arith.truncf %60 : vector<10x10x2xf32> to vector<10x10x2xbf16>
    %c0_27 = arith.constant 0 : index
    %c0_28 = arith.constant 0 : index
    %c0_29 = arith.constant 0 : index
    %c0_30 = arith.constant 0 : index
    %c0_31 = arith.constant 0 : index
    %62 = vector.load %arg4[%c0_27, %c0_28, %c0_29, %c0_30, %c0_31] : memref<1x1x10x10x2xf32, #tpu.memory_space<vmem>>, vector<1x1x10x10x2xf32>
    %63 = vector.shape_cast %62 : vector<1x1x10x10x2xf32> to vector<10x10x2xf32>
    %64 = vector.broadcast %17 : vector<1x1x2xf32> to vector<10x10x2xf32>
    %65 = arith.mulf %63, %64 : vector<10x10x2xf32>
    %66 = vector.broadcast %19 : vector<1x1x2xf32> to vector<10x10x2xf32>
    %67 = arith.addf %65, %66 : vector<10x10x2xf32>
    %cst_32 = arith.constant 0.000000e+00 : f32
    %68 = vector.broadcast %cst_32 : f32 to vector<10x10x2xf32>
    %69 = arith.cmpf oge, %67, %68 : vector<10x10x2xf32>
    %cst_33 = arith.constant 0.00999999977 : f32
    %70 = vector.broadcast %cst_33 : f32 to vector<10x10x2xf32>
    %71 = arith.mulf %70, %67 : vector<10x10x2xf32>
    %72 = arith.select %69, %67, %71 : vector<10x10x2xi1>, vector<10x10x2xf32>
    %73 = vector.broadcast %15 : vector<10x10x1xf32> to vector<10x10x2xf32>
    %74 = arith.mulf %72, %73 : vector<10x10x2xf32>
    %c2_i32 = arith.constant 2 : i32
    %75 = arith.addi %arg1, %c2_i32 : i32
    %c0_i32_34 = arith.constant 0 : i32
    %76 = arith.cmpi sgt, %75, %c0_i32_34 : i32
    %c9_i32_35 = arith.constant 9 : i32
    %77 = arith.cmpi slt, %75, %c9_i32_35 : i32
    %78 = arith.andi %76, %77 : i1
    %cst_36 = arith.constant 1.000000e+00 : f32
    %cst_37 = arith.constant 0.000000e+00 : f32
    %79 = arith.select %78, %cst_36, %cst_37 : f32
    %80 = vector.broadcast %79 : f32 to vector<10x10x2xf32>
    %81 = arith.mulf %74, %80 : vector<10x10x2xf32>
    %82 = arith.truncf %81 : vector<10x10x2xf32> to vector<10x10x2xbf16>
    %83 = vector.extract_strided_slice %40 {offsets = [0, 0, 0], sizes = [8, 8, 2], strides = [1, 1, 1]} : vector<10x10x2xbf16> to vector<8x8x2xbf16>
    %84 = vector.extract_strided_slice %40 {offsets = [0, 1, 0], sizes = [8, 8, 2], strides = [1, 1, 1]} : vector<10x10x2xbf16> to vector<8x8x2xbf16>
    %85 = vector.extract_strided_slice %40 {offsets = [0, 2, 0], sizes = [8, 8, 2], strides = [1, 1, 1]} : vector<10x10x2xbf16> to vector<8x8x2xbf16>
    %86 = vector.extract_strided_slice %40 {offsets = [1, 0, 0], sizes = [8, 8, 2], strides = [1, 1, 1]} : vector<10x10x2xbf16> to vector<8x8x2xbf16>
    %87 = vector.extract_strided_slice %40 {offsets = [1, 1, 0], sizes = [8, 8, 2], strides = [1, 1, 1]} : vector<10x10x2xbf16> to vector<8x8x2xbf16>
    %88 = vector.extract_strided_slice %40 {offsets = [1, 2, 0], sizes = [8, 8, 2], strides = [1, 1, 1]} : vector<10x10x2xbf16> to vector<8x8x2xbf16>
    %89 = vector.extract_strided_slice %40 {offsets = [2, 0, 0], sizes = [8, 8, 2], strides = [1, 1, 1]} : vector<10x10x2xbf16> to vector<8x8x2xbf16>
    %90 = vector.extract_strided_slice %40 {offsets = [2, 1, 0], sizes = [8, 8, 2], strides = [1, 1, 1]} : vector<10x10x2xbf16> to vector<8x8x2xbf16>
    %91 = vector.extract_strided_slice %40 {offsets = [2, 2, 0], sizes = [8, 8, 2], strides = [1, 1, 1]} : vector<10x10x2xbf16> to vector<8x8x2xbf16>
    %92 = vector.extract_strided_slice %61 {offsets = [0, 0, 0], sizes = [8, 8, 2], strides = [1, 1, 1]} : vector<10x10x2xbf16> to vector<8x8x2xbf16>
    %93 = vector.extract_strided_slice %61 {offsets = [0, 1, 0], sizes = [8, 8, 2], strides = [1, 1, 1]} : vector<10x10x2xbf16> to vector<8x8x2xbf16>
    %94 = vector.extract_strided_slice %61 {offsets = [0, 2, 0], sizes = [8, 8, 2], strides = [1, 1, 1]} : vector<10x10x2xbf16> to vector<8x8x2xbf16>
    %95 = vector.extract_strided_slice %61 {offsets = [1, 0, 0], sizes = [8, 8, 2], strides = [1, 1, 1]} : vector<10x10x2xbf16> to vector<8x8x2xbf16>
    %96 = vector.extract_strided_slice %61 {offsets = [1, 1, 0], sizes = [8, 8, 2], strides = [1, 1, 1]} : vector<10x10x2xbf16> to vector<8x8x2xbf16>
    %97 = vector.extract_strided_slice %61 {offsets = [1, 2, 0], sizes = [8, 8, 2], strides = [1, 1, 1]} : vector<10x10x2xbf16> to vector<8x8x2xbf16>
    %98 = vector.extract_strided_slice %61 {offsets = [2, 0, 0], sizes = [8, 8, 2], strides = [1, 1, 1]} : vector<10x10x2xbf16> to vector<8x8x2xbf16>
    %99 = vector.extract_strided_slice %61 {offsets = [2, 1, 0], sizes = [8, 8, 2], strides = [1, 1, 1]} : vector<10x10x2xbf16> to vector<8x8x2xbf16>
    %100 = vector.extract_strided_slice %61 {offsets = [2, 2, 0], sizes = [8, 8, 2], strides = [1, 1, 1]} : vector<10x10x2xbf16> to vector<8x8x2xbf16>
    %101 = vector.extract_strided_slice %82 {offsets = [0, 0, 0], sizes = [8, 8, 2], strides = [1, 1, 1]} : vector<10x10x2xbf16> to vector<8x8x2xbf16>
    %102 = vector.extract_strided_slice %82 {offsets = [0, 1, 0], sizes = [8, 8, 2], strides = [1, 1, 1]} : vector<10x10x2xbf16> to vector<8x8x2xbf16>
    %103 = vector.extract_strided_slice %82 {offsets = [0, 2, 0], sizes = [8, 8, 2], strides = [1, 1, 1]} : vector<10x10x2xbf16> to vector<8x8x2xbf16>
    %104 = vector.extract_strided_slice %82 {offsets = [1, 0, 0], sizes = [8, 8, 2], strides = [1, 1, 1]} : vector<10x10x2xbf16> to vector<8x8x2xbf16>
    %105 = vector.extract_strided_slice %82 {offsets = [1, 1, 0], sizes = [8, 8, 2], strides = [1, 1, 1]} : vector<10x10x2xbf16> to vector<8x8x2xbf16>
    %106 = vector.extract_strided_slice %82 {offsets = [1, 2, 0], sizes = [8, 8, 2], strides = [1, 1, 1]} : vector<10x10x2xbf16> to vector<8x8x2xbf16>
    %107 = vector.extract_strided_slice %82 {offsets = [2, 0, 0], sizes = [8, 8, 2], strides = [1, 1, 1]} : vector<10x10x2xbf16> to vector<8x8x2xbf16>
    %108 = vector.extract_strided_slice %82 {offsets = [2, 1, 0], sizes = [8, 8, 2], strides = [1, 1, 1]} : vector<10x10x2xbf16> to vector<8x8x2xbf16>
    %109 = vector.extract_strided_slice %82 {offsets = [2, 2, 0], sizes = [8, 8, 2], strides = [1, 1, 1]} : vector<10x10x2xbf16> to vector<8x8x2xbf16>
    %110 = tpu.concatenate %83, %84, %85, %86, %87, %88, %89, %90, %91, %92, %93, %94, %95, %96, %97, %98 in 2 : vector<8x8x2xbf16>, vector<8x8x2xbf16>, vector<8x8x2xbf16>, vector<8x8x2xbf16>, vector<8x8x2xbf16>, vector<8x8x2xbf16>, vector<8x8x2xbf16>, vector<8x8x2xbf16>, vector<8x8x2xbf16>, vector<8x8x2xbf16>, vector<8x8x2xbf16>, vector<8x8x2xbf16>, vector<8x8x2xbf16>, vector<8x8x2xbf16>, vector<8x8x2xbf16>, vector<8x8x2xbf16> -> vector<8x8x32xbf16>
    %111 = tpu.concatenate %99, %100, %101, %102, %103, %104, %105, %106, %107, %108, %109 in 2 : vector<8x8x2xbf16>, vector<8x8x2xbf16>, vector<8x8x2xbf16>, vector<8x8x2xbf16>, vector<8x8x2xbf16>, vector<8x8x2xbf16>, vector<8x8x2xbf16>, vector<8x8x2xbf16>, vector<8x8x2xbf16>, vector<8x8x2xbf16>, vector<8x8x2xbf16> -> vector<8x8x22xbf16>
    %112 = tpu.concatenate %110, %111 in 2 : vector<8x8x32xbf16>, vector<8x8x22xbf16> -> vector<8x8x54xbf16>
    %113 = vector.shape_cast %112 : vector<8x8x54xbf16> to vector<64x54xbf16>
    %c0_38 = arith.constant 0 : index
    %c0_39 = arith.constant 0 : index
    %114 = vector.load %arg5[%c0_38, %c0_39] : memref<54x5xbf16, #tpu.memory_space<vmem>>, vector<54x5xbf16>
    %cst_40 = arith.constant dense<0.000000e+00> : vector<64x5xf32>
    %115 = tpu.matmul %113, %114, %cst_40 {dimension_numbers = #tpu.dot_dimension_numbers<[1], [0], [0], [1], [0, 0, 1, 1], [], []>} : vector<64x54xbf16>, vector<54x5xbf16>, vector<64x5xf32> -> vector<64x5xf32>
    %c0_41 = arith.constant 0 : index
    %c0_42 = arith.constant 0 : index
    %116 = vector.load %arg6[%c0_41, %c0_42] : memref<1x5xf32, #tpu.memory_space<vmem>>, vector<1x5xf32>
    %117 = vector.broadcast %116 : vector<1x5xf32> to vector<64x5xf32>
    %118 = arith.addf %115, %117 : vector<64x5xf32>
    %119 = vector.shape_cast %118 : vector<64x5xf32> to vector<1x1x8x8x5xf32>
    %c0_43 = arith.constant 0 : index
    %c0_44 = arith.constant 0 : index
    %c0_45 = arith.constant 0 : index
    %c0_46 = arith.constant 0 : index
    %c0_47 = arith.constant 0 : index
    %120 = vector.load %arg9[%c0_43, %c0_44, %c0_45, %c0_46, %c0_47] : memref<1x1x8x8x5xf32, #tpu.memory_space<vmem>>, vector<1x1x8x8x5xf32>
    tpu.vector_store %arg9[%c0_43, %c0_44, %c0_45, %c0_46, %c0_47], %119 {strides = array<i32>} : memref<1x1x8x8x5xf32, #tpu.memory_space<vmem>>, vector<1x1x8x8x5xf32>,
    %cst_48 = arith.constant dense<0.000000e+00> : vector<5xf32>
    %121 = vector.multi_reduction <add>, %118, %cst_48 [0] : vector<64x5xf32> to vector<5xf32>
    %122 = vector.shape_cast %121 : vector<5xf32> to vector<1x5xf32>
    %123 = arith.mulf %118, %118 : vector<64x5xf32>
    %cst_49 = arith.constant dense<0.000000e+00> : vector<5xf32>
    %124 = vector.multi_reduction <add>, %123, %cst_49 [0] : vector<64x5xf32> to vector<5xf32>
    %125 = vector.shape_cast %124 : vector<5xf32> to vector<1x5xf32>
    %126 = tpu.concatenate %122, %125 in 0 : vector<1x5xf32>, vector<1x5xf32> -> vector<2x5xf32>
    %127 = vector.shape_cast %126 : vector<2x5xf32> to vector<1x1x2x5xf32>
    %c0_50 = arith.constant 0 : index
    %c0_51 = arith.constant 0 : index
    %c0_52 = arith.constant 0 : index
    %c0_53 = arith.constant 0 : index
    %128 = vector.load %arg10[%c0_50, %c0_51, %c0_52, %c0_53] : memref<1x1x2x5xf32, #tpu.memory_space<vmem>>, vector<1x1x2x5xf32>
    tpu.vector_store %arg10[%c0_50, %c0_51, %c0_52, %c0_53], %127 {strides = array<i32>} : memref<1x1x2x5xf32, #tpu.memory_space<vmem>>, vector<1x1x2x5xf32>,
    return
  }
  func.func @transform_0(%arg0: i32, %arg1: i32) -> (i32, i32, i32, i32, i32) {
    %c0_i32 = arith.constant 0 : i32
    %0 = arith.addi %arg1, %c0_i32 : i32
    %c0_i32_0 = arith.constant 0 : i32
    %c0_i32_1 = arith.constant 0 : i32
    %c0_i32_2 = arith.constant 0 : i32
    %c0_i32_3 = arith.constant 0 : i32
    return %arg0, %0, %c0_i32_0, %c0_i32_1, %c0_i32_2 : i32, i32, i32, i32, i32
  }
  func.func @transform_1(%arg0: i32, %arg1: i32) -> (i32, i32, i32, i32, i32) {
    %c1_i32 = arith.constant 1 : i32
    %0 = arith.addi %arg1, %c1_i32 : i32
    %c0_i32 = arith.constant 0 : i32
    %c0_i32_0 = arith.constant 0 : i32
    %c0_i32_1 = arith.constant 0 : i32
    %c0_i32_2 = arith.constant 0 : i32
    return %arg0, %0, %c0_i32, %c0_i32_0, %c0_i32_1 : i32, i32, i32, i32, i32
  }
  func.func @transform_2(%arg0: i32, %arg1: i32) -> (i32, i32, i32, i32, i32) {
    %c2_i32 = arith.constant 2 : i32
    %0 = arith.addi %arg1, %c2_i32 : i32
    %c0_i32 = arith.constant 0 : i32
    %c0_i32_0 = arith.constant 0 : i32
    %c0_i32_1 = arith.constant 0 : i32
    %c0_i32_2 = arith.constant 0 : i32
    return %arg0, %0, %c0_i32, %c0_i32_0, %c0_i32_1 : i32, i32, i32, i32, i32
  }
  func.func @transform_3(%arg0: i32, %arg1: i32) -> (i32, i32) {
    %c0_i32 = arith.constant 0 : i32
    %c0_i32_0 = arith.constant 0 : i32
    %c0_i32_1 = arith.constant 0 : i32
    return %c0_i32, %c0_i32_0 : i32, i32
  }
  func.func @transform_4(%arg0: i32, %arg1: i32) -> (i32, i32) {
    %c0_i32 = arith.constant 0 : i32
    %c0_i32_0 = arith.constant 0 : i32
    %c0_i32_1 = arith.constant 0 : i32
    return %c0_i32, %c0_i32_0 : i32, i32
  }
  func.func @transform_5(%arg0: i32, %arg1: i32) -> (i32, i32) {
    %c0_i32 = arith.constant 0 : i32
    %c0_i32_0 = arith.constant 0 : i32
    %c0_i32_1 = arith.constant 0 : i32
    return %c0_i32, %c0_i32_0 : i32, i32
  }
  func.func @transform_6(%arg0: i32, %arg1: i32) -> (i32, i32) {
    %c0_i32 = arith.constant 0 : i32
    %c0_i32_0 = arith.constant 0 : i32
    %c0_i32_1 = arith.constant 0 : i32
    return %c0_i32, %c0_i32_0 : i32, i32
  }
  func.func @transform_7(%arg0: i32, %arg1: i32) -> (i32, i32, i32, i32, i32) {
    %c0_i32 = arith.constant 0 : i32
    %c0_i32_0 = arith.constant 0 : i32
    %c0_i32_1 = arith.constant 0 : i32
    %c0_i32_2 = arith.constant 0 : i32
    return %arg0, %arg1, %c0_i32, %c0_i32_0, %c0_i32_1 : i32, i32, i32, i32, i32
  }
  func.func @transform_8(%arg0: i32, %arg1: i32) -> (i32, i32, i32, i32) {
    %c0_i32 = arith.constant 0 : i32
    %c0_i32_0 = arith.constant 0 : i32
    %c0_i32_1 = arith.constant 0 : i32
    return %arg0, %arg1, %c0_i32, %c0_i32_0 : i32, i32, i32, i32
  }
}

module attributes {stable_mosaic.version = 11 : i64} {
  func.func @_conv_act_kernel(%arg0: i32, %arg1: i32, %arg2: memref<1x1x10x10x5xf32, #tpu.memory_space<vmem>>, %arg3: memref<1x1x10x10x5xf32, #tpu.memory_space<vmem>>, %arg4: memref<1x1x10x10x5xf32, #tpu.memory_space<vmem>>, %arg5: memref<135x9xbf16, #tpu.memory_space<vmem>>, %arg6: memref<1x9xf32, #tpu.memory_space<vmem>>, %arg7: memref<1x5xf32, #tpu.memory_space<vmem>>, %arg8: memref<1x5xf32, #tpu.memory_space<vmem>>, %arg9: memref<1x1x8x8x9xf32, #tpu.memory_space<vmem>>, %arg10: memref<1x1x2x9xf32, #tpu.memory_space<vmem>>) attributes {dimension_semantics = [#tpu.dimension_semantics<parallel>, #tpu.dimension_semantics<parallel>], iteration_bounds = array<i64: 2, 8>, scalar_prefetch = 0 : i64, scratch_operands = 0 : i64, tpu.core_type = #tpu.core_type<tc>, window_params = [{transform_indices = @transform_0, window_bounds = array<i64: 1, 1, 10, 10, 5>}, {transform_indices = @transform_1, window_bounds = array<i64: 1, 1, 10, 10, 5>}, {transform_indices = @transform_2, window_bounds = array<i64: 1, 1, 10, 10, 5>}, {pipeline_mode = #tpu.pipeline_mode<synchronous>, transform_indices = @transform_3, window_bounds = array<i64: 135, 9>}, {pipeline_mode = #tpu.pipeline_mode<synchronous>, transform_indices = @transform_4, window_bounds = array<i64: 1, 9>}, {pipeline_mode = #tpu.pipeline_mode<synchronous>, transform_indices = @transform_5, window_bounds = array<i64: 1, 5>}, {pipeline_mode = #tpu.pipeline_mode<synchronous>, transform_indices = @transform_6, window_bounds = array<i64: 1, 5>}, {transform_indices = @transform_7, window_bounds = array<i64: 1, 1, 8, 8, 9>}, {transform_indices = @transform_8, window_bounds = array<i64: 1, 1, 2, 9>}]} {
    %0 = tpu.iota {dimensions = array<i32: 0>} : vector<10x10xi32>
    %1 = tpu.iota {dimensions = array<i32: 1>} : vector<10x10xi32>
    %c0_i32 = arith.constant 0 : i32
    %2 = vector.broadcast %c0_i32 : i32 to vector<10x10xi32>
    %3 = arith.cmpi sgt, %0, %2 : vector<10x10xi32>
    %c9_i32 = arith.constant 9 : i32
    %4 = vector.broadcast %c9_i32 : i32 to vector<10x10xi32>
    %5 = arith.cmpi slt, %0, %4 : vector<10x10xi32>
    %6 = arith.andi %3, %5 : vector<10x10xi1>
    %c0_i32_0 = arith.constant 0 : i32
    %7 = vector.broadcast %c0_i32_0 : i32 to vector<10x10xi32>
    %8 = arith.cmpi sgt, %1, %7 : vector<10x10xi32>
    %9 = arith.andi %6, %8 : vector<10x10xi1>
    %c9_i32_1 = arith.constant 9 : i32
    %10 = vector.broadcast %c9_i32_1 : i32 to vector<10x10xi32>
    %11 = arith.cmpi slt, %1, %10 : vector<10x10xi32>
    %12 = arith.andi %9, %11 : vector<10x10xi1>
    %13 = arith.extui %12 : vector<10x10xi1> to vector<10x10xi32>
    %14 = arith.sitofp %13 : vector<10x10xi32> to vector<10x10xf32>
    %15 = vector.shape_cast %14 : vector<10x10xf32> to vector<10x10x1xf32>
    %c0 = arith.constant 0 : index
    %c0_2 = arith.constant 0 : index
    %16 = vector.load %arg7[%c0, %c0_2] : memref<1x5xf32, #tpu.memory_space<vmem>>, vector<1x5xf32>
    %17 = vector.shape_cast %16 : vector<1x5xf32> to vector<1x1x5xf32>
    %c0_3 = arith.constant 0 : index
    %c0_4 = arith.constant 0 : index
    %18 = vector.load %arg8[%c0_3, %c0_4] : memref<1x5xf32, #tpu.memory_space<vmem>>, vector<1x5xf32>
    %19 = vector.shape_cast %18 : vector<1x5xf32> to vector<1x1x5xf32>
    %c0_5 = arith.constant 0 : index
    %c0_6 = arith.constant 0 : index
    %c0_7 = arith.constant 0 : index
    %c0_8 = arith.constant 0 : index
    %c0_9 = arith.constant 0 : index
    %20 = vector.load %arg2[%c0_5, %c0_6, %c0_7, %c0_8, %c0_9] : memref<1x1x10x10x5xf32, #tpu.memory_space<vmem>>, vector<1x1x10x10x5xf32>
    %21 = vector.shape_cast %20 : vector<1x1x10x10x5xf32> to vector<10x10x5xf32>
    %22 = vector.broadcast %17 : vector<1x1x5xf32> to vector<10x10x5xf32>
    %23 = arith.mulf %21, %22 : vector<10x10x5xf32>
    %24 = vector.broadcast %19 : vector<1x1x5xf32> to vector<10x10x5xf32>
    %25 = arith.addf %23, %24 : vector<10x10x5xf32>
    %cst = arith.constant 0.000000e+00 : f32
    %26 = vector.broadcast %cst : f32 to vector<10x10x5xf32>
    %27 = arith.cmpf oge, %25, %26 : vector<10x10x5xf32>
    %cst_10 = arith.constant 0.00999999977 : f32
    %28 = vector.broadcast %cst_10 : f32 to vector<10x10x5xf32>
    %29 = arith.mulf %28, %25 : vector<10x10x5xf32>
    %30 = arith.select %27, %25, %29 : vector<10x10x5xi1>, vector<10x10x5xf32>
    %31 = vector.broadcast %15 : vector<10x10x1xf32> to vector<10x10x5xf32>
    %32 = arith.mulf %30, %31 : vector<10x10x5xf32>
    %c0_i32_11 = arith.constant 0 : i32
    %33 = arith.addi %arg1, %c0_i32_11 : i32
    %c0_i32_12 = arith.constant 0 : i32
    %34 = arith.cmpi sgt, %33, %c0_i32_12 : i32
    %c9_i32_13 = arith.constant 9 : i32
    %35 = arith.cmpi slt, %33, %c9_i32_13 : i32
    %36 = arith.andi %34, %35 : i1
    %cst_14 = arith.constant 1.000000e+00 : f32
    %cst_15 = arith.constant 0.000000e+00 : f32
    %37 = arith.select %36, %cst_14, %cst_15 : f32
    %38 = vector.broadcast %37 : f32 to vector<10x10x5xf32>
    %39 = arith.mulf %32, %38 : vector<10x10x5xf32>
    %40 = arith.truncf %39 : vector<10x10x5xf32> to vector<10x10x5xbf16>
    %c0_16 = arith.constant 0 : index
    %c0_17 = arith.constant 0 : index
    %c0_18 = arith.constant 0 : index
    %c0_19 = arith.constant 0 : index
    %c0_20 = arith.constant 0 : index
    %41 = vector.load %arg3[%c0_16, %c0_17, %c0_18, %c0_19, %c0_20] : memref<1x1x10x10x5xf32, #tpu.memory_space<vmem>>, vector<1x1x10x10x5xf32>
    %42 = vector.shape_cast %41 : vector<1x1x10x10x5xf32> to vector<10x10x5xf32>
    %43 = vector.broadcast %17 : vector<1x1x5xf32> to vector<10x10x5xf32>
    %44 = arith.mulf %42, %43 : vector<10x10x5xf32>
    %45 = vector.broadcast %19 : vector<1x1x5xf32> to vector<10x10x5xf32>
    %46 = arith.addf %44, %45 : vector<10x10x5xf32>
    %cst_21 = arith.constant 0.000000e+00 : f32
    %47 = vector.broadcast %cst_21 : f32 to vector<10x10x5xf32>
    %48 = arith.cmpf oge, %46, %47 : vector<10x10x5xf32>
    %cst_22 = arith.constant 0.00999999977 : f32
    %49 = vector.broadcast %cst_22 : f32 to vector<10x10x5xf32>
    %50 = arith.mulf %49, %46 : vector<10x10x5xf32>
    %51 = arith.select %48, %46, %50 : vector<10x10x5xi1>, vector<10x10x5xf32>
    %52 = vector.broadcast %15 : vector<10x10x1xf32> to vector<10x10x5xf32>
    %53 = arith.mulf %51, %52 : vector<10x10x5xf32>
    %c1_i32 = arith.constant 1 : i32
    %54 = arith.addi %arg1, %c1_i32 : i32
    %c0_i32_23 = arith.constant 0 : i32
    %55 = arith.cmpi sgt, %54, %c0_i32_23 : i32
    %c9_i32_24 = arith.constant 9 : i32
    %56 = arith.cmpi slt, %54, %c9_i32_24 : i32
    %57 = arith.andi %55, %56 : i1
    %cst_25 = arith.constant 1.000000e+00 : f32
    %cst_26 = arith.constant 0.000000e+00 : f32
    %58 = arith.select %57, %cst_25, %cst_26 : f32
    %59 = vector.broadcast %58 : f32 to vector<10x10x5xf32>
    %60 = arith.mulf %53, %59 : vector<10x10x5xf32>
    %61 = arith.truncf %60 : vector<10x10x5xf32> to vector<10x10x5xbf16>
    %c0_27 = arith.constant 0 : index
    %c0_28 = arith.constant 0 : index
    %c0_29 = arith.constant 0 : index
    %c0_30 = arith.constant 0 : index
    %c0_31 = arith.constant 0 : index
    %62 = vector.load %arg4[%c0_27, %c0_28, %c0_29, %c0_30, %c0_31] : memref<1x1x10x10x5xf32, #tpu.memory_space<vmem>>, vector<1x1x10x10x5xf32>
    %63 = vector.shape_cast %62 : vector<1x1x10x10x5xf32> to vector<10x10x5xf32>
    %64 = vector.broadcast %17 : vector<1x1x5xf32> to vector<10x10x5xf32>
    %65 = arith.mulf %63, %64 : vector<10x10x5xf32>
    %66 = vector.broadcast %19 : vector<1x1x5xf32> to vector<10x10x5xf32>
    %67 = arith.addf %65, %66 : vector<10x10x5xf32>
    %cst_32 = arith.constant 0.000000e+00 : f32
    %68 = vector.broadcast %cst_32 : f32 to vector<10x10x5xf32>
    %69 = arith.cmpf oge, %67, %68 : vector<10x10x5xf32>
    %cst_33 = arith.constant 0.00999999977 : f32
    %70 = vector.broadcast %cst_33 : f32 to vector<10x10x5xf32>
    %71 = arith.mulf %70, %67 : vector<10x10x5xf32>
    %72 = arith.select %69, %67, %71 : vector<10x10x5xi1>, vector<10x10x5xf32>
    %73 = vector.broadcast %15 : vector<10x10x1xf32> to vector<10x10x5xf32>
    %74 = arith.mulf %72, %73 : vector<10x10x5xf32>
    %c2_i32 = arith.constant 2 : i32
    %75 = arith.addi %arg1, %c2_i32 : i32
    %c0_i32_34 = arith.constant 0 : i32
    %76 = arith.cmpi sgt, %75, %c0_i32_34 : i32
    %c9_i32_35 = arith.constant 9 : i32
    %77 = arith.cmpi slt, %75, %c9_i32_35 : i32
    %78 = arith.andi %76, %77 : i1
    %cst_36 = arith.constant 1.000000e+00 : f32
    %cst_37 = arith.constant 0.000000e+00 : f32
    %79 = arith.select %78, %cst_36, %cst_37 : f32
    %80 = vector.broadcast %79 : f32 to vector<10x10x5xf32>
    %81 = arith.mulf %74, %80 : vector<10x10x5xf32>
    %82 = arith.truncf %81 : vector<10x10x5xf32> to vector<10x10x5xbf16>
    %83 = vector.extract_strided_slice %40 {offsets = [0, 0, 0], sizes = [8, 8, 5], strides = [1, 1, 1]} : vector<10x10x5xbf16> to vector<8x8x5xbf16>
    %84 = vector.extract_strided_slice %40 {offsets = [0, 1, 0], sizes = [8, 8, 5], strides = [1, 1, 1]} : vector<10x10x5xbf16> to vector<8x8x5xbf16>
    %85 = vector.extract_strided_slice %40 {offsets = [0, 2, 0], sizes = [8, 8, 5], strides = [1, 1, 1]} : vector<10x10x5xbf16> to vector<8x8x5xbf16>
    %86 = vector.extract_strided_slice %40 {offsets = [1, 0, 0], sizes = [8, 8, 5], strides = [1, 1, 1]} : vector<10x10x5xbf16> to vector<8x8x5xbf16>
    %87 = vector.extract_strided_slice %40 {offsets = [1, 1, 0], sizes = [8, 8, 5], strides = [1, 1, 1]} : vector<10x10x5xbf16> to vector<8x8x5xbf16>
    %88 = vector.extract_strided_slice %40 {offsets = [1, 2, 0], sizes = [8, 8, 5], strides = [1, 1, 1]} : vector<10x10x5xbf16> to vector<8x8x5xbf16>
    %89 = vector.extract_strided_slice %40 {offsets = [2, 0, 0], sizes = [8, 8, 5], strides = [1, 1, 1]} : vector<10x10x5xbf16> to vector<8x8x5xbf16>
    %90 = vector.extract_strided_slice %40 {offsets = [2, 1, 0], sizes = [8, 8, 5], strides = [1, 1, 1]} : vector<10x10x5xbf16> to vector<8x8x5xbf16>
    %91 = vector.extract_strided_slice %40 {offsets = [2, 2, 0], sizes = [8, 8, 5], strides = [1, 1, 1]} : vector<10x10x5xbf16> to vector<8x8x5xbf16>
    %92 = vector.extract_strided_slice %61 {offsets = [0, 0, 0], sizes = [8, 8, 5], strides = [1, 1, 1]} : vector<10x10x5xbf16> to vector<8x8x5xbf16>
    %93 = vector.extract_strided_slice %61 {offsets = [0, 1, 0], sizes = [8, 8, 5], strides = [1, 1, 1]} : vector<10x10x5xbf16> to vector<8x8x5xbf16>
    %94 = vector.extract_strided_slice %61 {offsets = [0, 2, 0], sizes = [8, 8, 5], strides = [1, 1, 1]} : vector<10x10x5xbf16> to vector<8x8x5xbf16>
    %95 = vector.extract_strided_slice %61 {offsets = [1, 0, 0], sizes = [8, 8, 5], strides = [1, 1, 1]} : vector<10x10x5xbf16> to vector<8x8x5xbf16>
    %96 = vector.extract_strided_slice %61 {offsets = [1, 1, 0], sizes = [8, 8, 5], strides = [1, 1, 1]} : vector<10x10x5xbf16> to vector<8x8x5xbf16>
    %97 = vector.extract_strided_slice %61 {offsets = [1, 2, 0], sizes = [8, 8, 5], strides = [1, 1, 1]} : vector<10x10x5xbf16> to vector<8x8x5xbf16>
    %98 = vector.extract_strided_slice %61 {offsets = [2, 0, 0], sizes = [8, 8, 5], strides = [1, 1, 1]} : vector<10x10x5xbf16> to vector<8x8x5xbf16>
    %99 = vector.extract_strided_slice %61 {offsets = [2, 1, 0], sizes = [8, 8, 5], strides = [1, 1, 1]} : vector<10x10x5xbf16> to vector<8x8x5xbf16>
    %100 = vector.extract_strided_slice %61 {offsets = [2, 2, 0], sizes = [8, 8, 5], strides = [1, 1, 1]} : vector<10x10x5xbf16> to vector<8x8x5xbf16>
    %101 = vector.extract_strided_slice %82 {offsets = [0, 0, 0], sizes = [8, 8, 5], strides = [1, 1, 1]} : vector<10x10x5xbf16> to vector<8x8x5xbf16>
    %102 = vector.extract_strided_slice %82 {offsets = [0, 1, 0], sizes = [8, 8, 5], strides = [1, 1, 1]} : vector<10x10x5xbf16> to vector<8x8x5xbf16>
    %103 = vector.extract_strided_slice %82 {offsets = [0, 2, 0], sizes = [8, 8, 5], strides = [1, 1, 1]} : vector<10x10x5xbf16> to vector<8x8x5xbf16>
    %104 = vector.extract_strided_slice %82 {offsets = [1, 0, 0], sizes = [8, 8, 5], strides = [1, 1, 1]} : vector<10x10x5xbf16> to vector<8x8x5xbf16>
    %105 = vector.extract_strided_slice %82 {offsets = [1, 1, 0], sizes = [8, 8, 5], strides = [1, 1, 1]} : vector<10x10x5xbf16> to vector<8x8x5xbf16>
    %106 = vector.extract_strided_slice %82 {offsets = [1, 2, 0], sizes = [8, 8, 5], strides = [1, 1, 1]} : vector<10x10x5xbf16> to vector<8x8x5xbf16>
    %107 = vector.extract_strided_slice %82 {offsets = [2, 0, 0], sizes = [8, 8, 5], strides = [1, 1, 1]} : vector<10x10x5xbf16> to vector<8x8x5xbf16>
    %108 = vector.extract_strided_slice %82 {offsets = [2, 1, 0], sizes = [8, 8, 5], strides = [1, 1, 1]} : vector<10x10x5xbf16> to vector<8x8x5xbf16>
    %109 = vector.extract_strided_slice %82 {offsets = [2, 2, 0], sizes = [8, 8, 5], strides = [1, 1, 1]} : vector<10x10x5xbf16> to vector<8x8x5xbf16>
    %110 = tpu.concatenate %83, %84, %85, %86, %87, %88, %89, %90, %91, %92, %93, %94, %95, %96, %97, %98 in 2 : vector<8x8x5xbf16>, vector<8x8x5xbf16>, vector<8x8x5xbf16>, vector<8x8x5xbf16>, vector<8x8x5xbf16>, vector<8x8x5xbf16>, vector<8x8x5xbf16>, vector<8x8x5xbf16>, vector<8x8x5xbf16>, vector<8x8x5xbf16>, vector<8x8x5xbf16>, vector<8x8x5xbf16>, vector<8x8x5xbf16>, vector<8x8x5xbf16>, vector<8x8x5xbf16>, vector<8x8x5xbf16> -> vector<8x8x80xbf16>
    %111 = tpu.concatenate %99, %100, %101, %102, %103, %104, %105, %106, %107, %108, %109 in 2 : vector<8x8x5xbf16>, vector<8x8x5xbf16>, vector<8x8x5xbf16>, vector<8x8x5xbf16>, vector<8x8x5xbf16>, vector<8x8x5xbf16>, vector<8x8x5xbf16>, vector<8x8x5xbf16>, vector<8x8x5xbf16>, vector<8x8x5xbf16>, vector<8x8x5xbf16> -> vector<8x8x55xbf16>
    %112 = tpu.concatenate %110, %111 in 2 : vector<8x8x80xbf16>, vector<8x8x55xbf16> -> vector<8x8x135xbf16>
    %113 = vector.shape_cast %112 : vector<8x8x135xbf16> to vector<64x135xbf16>
    %c0_38 = arith.constant 0 : index
    %c0_39 = arith.constant 0 : index
    %114 = vector.load %arg5[%c0_38, %c0_39] : memref<135x9xbf16, #tpu.memory_space<vmem>>, vector<135x9xbf16>
    %cst_40 = arith.constant dense<0.000000e+00> : vector<64x9xf32>
    %115 = tpu.matmul %113, %114, %cst_40 {dimension_numbers = #tpu.dot_dimension_numbers<[1], [0], [0], [1], [0, 0, 1, 1], [], []>} : vector<64x135xbf16>, vector<135x9xbf16>, vector<64x9xf32> -> vector<64x9xf32>
    %c0_41 = arith.constant 0 : index
    %c0_42 = arith.constant 0 : index
    %116 = vector.load %arg6[%c0_41, %c0_42] : memref<1x9xf32, #tpu.memory_space<vmem>>, vector<1x9xf32>
    %117 = vector.broadcast %116 : vector<1x9xf32> to vector<64x9xf32>
    %118 = arith.addf %115, %117 : vector<64x9xf32>
    %119 = vector.shape_cast %118 : vector<64x9xf32> to vector<1x1x8x8x9xf32>
    %c0_43 = arith.constant 0 : index
    %c0_44 = arith.constant 0 : index
    %c0_45 = arith.constant 0 : index
    %c0_46 = arith.constant 0 : index
    %c0_47 = arith.constant 0 : index
    %120 = vector.load %arg9[%c0_43, %c0_44, %c0_45, %c0_46, %c0_47] : memref<1x1x8x8x9xf32, #tpu.memory_space<vmem>>, vector<1x1x8x8x9xf32>
    tpu.vector_store %arg9[%c0_43, %c0_44, %c0_45, %c0_46, %c0_47], %119 {strides = array<i32>} : memref<1x1x8x8x9xf32, #tpu.memory_space<vmem>>, vector<1x1x8x8x9xf32>,
    %cst_48 = arith.constant dense<0.000000e+00> : vector<9xf32>
    %121 = vector.multi_reduction <add>, %118, %cst_48 [0] : vector<64x9xf32> to vector<9xf32>
    %122 = vector.shape_cast %121 : vector<9xf32> to vector<1x9xf32>
    %123 = arith.mulf %118, %118 : vector<64x9xf32>
    %cst_49 = arith.constant dense<0.000000e+00> : vector<9xf32>
    %124 = vector.multi_reduction <add>, %123, %cst_49 [0] : vector<64x9xf32> to vector<9xf32>
    %125 = vector.shape_cast %124 : vector<9xf32> to vector<1x9xf32>
    %126 = tpu.concatenate %122, %125 in 0 : vector<1x9xf32>, vector<1x9xf32> -> vector<2x9xf32>
    %127 = vector.shape_cast %126 : vector<2x9xf32> to vector<1x1x2x9xf32>
    %c0_50 = arith.constant 0 : index
    %c0_51 = arith.constant 0 : index
    %c0_52 = arith.constant 0 : index
    %c0_53 = arith.constant 0 : index
    %128 = vector.load %arg10[%c0_50, %c0_51, %c0_52, %c0_53] : memref<1x1x2x9xf32, #tpu.memory_space<vmem>>, vector<1x1x2x9xf32>
    tpu.vector_store %arg10[%c0_50, %c0_51, %c0_52, %c0_53], %127 {strides = array<i32>} : memref<1x1x2x9xf32, #tpu.memory_space<vmem>>, vector<1x1x2x9xf32>,
    return
  }
  func.func @transform_0(%arg0: i32, %arg1: i32) -> (i32, i32, i32, i32, i32) {
    %c0_i32 = arith.constant 0 : i32
    %0 = arith.addi %arg1, %c0_i32 : i32
    %c0_i32_0 = arith.constant 0 : i32
    %c0_i32_1 = arith.constant 0 : i32
    %c0_i32_2 = arith.constant 0 : i32
    %c0_i32_3 = arith.constant 0 : i32
    return %arg0, %0, %c0_i32_0, %c0_i32_1, %c0_i32_2 : i32, i32, i32, i32, i32
  }
  func.func @transform_1(%arg0: i32, %arg1: i32) -> (i32, i32, i32, i32, i32) {
    %c1_i32 = arith.constant 1 : i32
    %0 = arith.addi %arg1, %c1_i32 : i32
    %c0_i32 = arith.constant 0 : i32
    %c0_i32_0 = arith.constant 0 : i32
    %c0_i32_1 = arith.constant 0 : i32
    %c0_i32_2 = arith.constant 0 : i32
    return %arg0, %0, %c0_i32, %c0_i32_0, %c0_i32_1 : i32, i32, i32, i32, i32
  }
  func.func @transform_2(%arg0: i32, %arg1: i32) -> (i32, i32, i32, i32, i32) {
    %c2_i32 = arith.constant 2 : i32
    %0 = arith.addi %arg1, %c2_i32 : i32
    %c0_i32 = arith.constant 0 : i32
    %c0_i32_0 = arith.constant 0 : i32
    %c0_i32_1 = arith.constant 0 : i32
    %c0_i32_2 = arith.constant 0 : i32
    return %arg0, %0, %c0_i32, %c0_i32_0, %c0_i32_1 : i32, i32, i32, i32, i32
  }
  func.func @transform_3(%arg0: i32, %arg1: i32) -> (i32, i32) {
    %c0_i32 = arith.constant 0 : i32
    %c0_i32_0 = arith.constant 0 : i32
    %c0_i32_1 = arith.constant 0 : i32
    return %c0_i32, %c0_i32_0 : i32, i32
  }
  func.func @transform_4(%arg0: i32, %arg1: i32) -> (i32, i32) {
    %c0_i32 = arith.constant 0 : i32
    %c0_i32_0 = arith.constant 0 : i32
    %c0_i32_1 = arith.constant 0 : i32
    return %c0_i32, %c0_i32_0 : i32, i32
  }
  func.func @transform_5(%arg0: i32, %arg1: i32) -> (i32, i32) {
    %c0_i32 = arith.constant 0 : i32
    %c0_i32_0 = arith.constant 0 : i32
    %c0_i32_1 = arith.constant 0 : i32
    return %c0_i32, %c0_i32_0 : i32, i32
  }
  func.func @transform_6(%arg0: i32, %arg1: i32) -> (i32, i32) {
    %c0_i32 = arith.constant 0 : i32
    %c0_i32_0 = arith.constant 0 : i32
    %c0_i32_1 = arith.constant 0 : i32
    return %c0_i32, %c0_i32_0 : i32, i32
  }
  func.func @transform_7(%arg0: i32, %arg1: i32) -> (i32, i32, i32, i32, i32) {
    %c0_i32 = arith.constant 0 : i32
    %c0_i32_0 = arith.constant 0 : i32
    %c0_i32_1 = arith.constant 0 : i32
    %c0_i32_2 = arith.constant 0 : i32
    return %arg0, %arg1, %c0_i32, %c0_i32_0, %c0_i32_1 : i32, i32, i32, i32, i32
  }
  func.func @transform_8(%arg0: i32, %arg1: i32) -> (i32, i32, i32, i32) {
    %c0_i32 = arith.constant 0 : i32
    %c0_i32_0 = arith.constant 0 : i32
    %c0_i32_1 = arith.constant 0 : i32
    return %arg0, %arg1, %c0_i32, %c0_i32_0 : i32, i32, i32, i32
  }
}

module attributes {stable_mosaic.version = 11 : i64} {
  func.func @_combine_kernel(%arg0: i32, %arg1: i32, %arg2: memref<1x1x8x8x16xf32, #tpu.memory_space<vmem>>, %arg3: memref<1x1x8x8x2xf32, #tpu.memory_space<vmem>>, %arg4: memref<1x1x8x8x5xf32, #tpu.memory_space<vmem>>, %arg5: memref<1x1x8x8x9xf32, #tpu.memory_space<vmem>>, %arg6: memref<1x16xf32, #tpu.memory_space<vmem>>, %arg7: memref<1x16xf32, #tpu.memory_space<vmem>>, %arg8: memref<1x2xf32, #tpu.memory_space<vmem>>, %arg9: memref<1x2xf32, #tpu.memory_space<vmem>>, %arg10: memref<1x5xf32, #tpu.memory_space<vmem>>, %arg11: memref<1x5xf32, #tpu.memory_space<vmem>>, %arg12: memref<1x9xf32, #tpu.memory_space<vmem>>, %arg13: memref<1x9xf32, #tpu.memory_space<vmem>>, %arg14: memref<1x1x8x8x16xf32, #tpu.memory_space<vmem>>, %arg15: memref<1x1x2x16xf32, #tpu.memory_space<vmem>>) attributes {dimension_semantics = [#tpu.dimension_semantics<parallel>, #tpu.dimension_semantics<parallel>], iteration_bounds = array<i64: 2, 8>, scalar_prefetch = 0 : i64, scratch_operands = 0 : i64, tpu.core_type = #tpu.core_type<tc>, window_params = [{transform_indices = @transform_0, window_bounds = array<i64: 1, 1, 8, 8, 16>}, {transform_indices = @transform_1, window_bounds = array<i64: 1, 1, 8, 8, 2>}, {transform_indices = @transform_2, window_bounds = array<i64: 1, 1, 8, 8, 5>}, {transform_indices = @transform_3, window_bounds = array<i64: 1, 1, 8, 8, 9>}, {pipeline_mode = #tpu.pipeline_mode<synchronous>, transform_indices = @transform_4, window_bounds = array<i64: 1, 16>}, {pipeline_mode = #tpu.pipeline_mode<synchronous>, transform_indices = @transform_5, window_bounds = array<i64: 1, 16>}, {pipeline_mode = #tpu.pipeline_mode<synchronous>, transform_indices = @transform_6, window_bounds = array<i64: 1, 2>}, {pipeline_mode = #tpu.pipeline_mode<synchronous>, transform_indices = @transform_7, window_bounds = array<i64: 1, 2>}, {pipeline_mode = #tpu.pipeline_mode<synchronous>, transform_indices = @transform_8, window_bounds = array<i64: 1, 5>}, {pipeline_mode = #tpu.pipeline_mode<synchronous>, transform_indices = @transform_9, window_bounds = array<i64: 1, 5>}, {pipeline_mode = #tpu.pipeline_mode<synchronous>, transform_indices = @transform_10, window_bounds = array<i64: 1, 9>}, {pipeline_mode = #tpu.pipeline_mode<synchronous>, transform_indices = @transform_11, window_bounds = array<i64: 1, 9>}, {transform_indices = @transform_12, window_bounds = array<i64: 1, 1, 8, 8, 16>}, {transform_indices = @transform_13, window_bounds = array<i64: 1, 1, 2, 16>}]} {
    %c0 = arith.constant 0 : index
    %c0_0 = arith.constant 0 : index
    %c0_1 = arith.constant 0 : index
    %c0_2 = arith.constant 0 : index
    %c0_3 = arith.constant 0 : index
    %0 = vector.load %arg2[%c0, %c0_0, %c0_1, %c0_2, %c0_3] : memref<1x1x8x8x16xf32, #tpu.memory_space<vmem>>, vector<1x1x8x8x16xf32>
    %1 = vector.shape_cast %0 : vector<1x1x8x8x16xf32> to vector<64x16xf32>
    %c0_4 = arith.constant 0 : index
    %c0_5 = arith.constant 0 : index
    %2 = vector.load %arg6[%c0_4, %c0_5] : memref<1x16xf32, #tpu.memory_space<vmem>>, vector<1x16xf32>
    %3 = vector.broadcast %2 : vector<1x16xf32> to vector<64x16xf32>
    %4 = arith.mulf %1, %3 : vector<64x16xf32>
    %c0_6 = arith.constant 0 : index
    %c0_7 = arith.constant 0 : index
    %5 = vector.load %arg7[%c0_6, %c0_7] : memref<1x16xf32, #tpu.memory_space<vmem>>, vector<1x16xf32>
    %6 = vector.broadcast %5 : vector<1x16xf32> to vector<64x16xf32>
    %7 = arith.addf %4, %6 : vector<64x16xf32>
    %cst = arith.constant 0.000000e+00 : f32
    %8 = vector.broadcast %cst : f32 to vector<64x16xf32>
    %9 = arith.cmpf oge, %7, %8 : vector<64x16xf32>
    %cst_8 = arith.constant 0.00999999977 : f32
    %10 = vector.broadcast %cst_8 : f32 to vector<64x16xf32>
    %11 = arith.mulf %10, %7 : vector<64x16xf32>
    %12 = arith.select %9, %7, %11 : vector<64x16xi1>, vector<64x16xf32>
    %c0_9 = arith.constant 0 : index
    %c0_10 = arith.constant 0 : index
    %c0_11 = arith.constant 0 : index
    %c0_12 = arith.constant 0 : index
    %c0_13 = arith.constant 0 : index
    %13 = vector.load %arg3[%c0_9, %c0_10, %c0_11, %c0_12, %c0_13] : memref<1x1x8x8x2xf32, #tpu.memory_space<vmem>>, vector<1x1x8x8x2xf32>
    %14 = vector.shape_cast %13 : vector<1x1x8x8x2xf32> to vector<64x2xf32>
    %c0_14 = arith.constant 0 : index
    %c0_15 = arith.constant 0 : index
    %15 = vector.load %arg8[%c0_14, %c0_15] : memref<1x2xf32, #tpu.memory_space<vmem>>, vector<1x2xf32>
    %16 = vector.broadcast %15 : vector<1x2xf32> to vector<64x2xf32>
    %17 = arith.mulf %14, %16 : vector<64x2xf32>
    %c0_16 = arith.constant 0 : index
    %c0_17 = arith.constant 0 : index
    %18 = vector.load %arg9[%c0_16, %c0_17] : memref<1x2xf32, #tpu.memory_space<vmem>>, vector<1x2xf32>
    %19 = vector.broadcast %18 : vector<1x2xf32> to vector<64x2xf32>
    %20 = arith.addf %17, %19 : vector<64x2xf32>
    %cst_18 = arith.constant 0.000000e+00 : f32
    %21 = vector.broadcast %cst_18 : f32 to vector<64x2xf32>
    %22 = arith.cmpf oge, %20, %21 : vector<64x2xf32>
    %cst_19 = arith.constant 0.00999999977 : f32
    %23 = vector.broadcast %cst_19 : f32 to vector<64x2xf32>
    %24 = arith.mulf %23, %20 : vector<64x2xf32>
    %25 = arith.select %22, %20, %24 : vector<64x2xi1>, vector<64x2xf32>
    %c0_20 = arith.constant 0 : index
    %c0_21 = arith.constant 0 : index
    %c0_22 = arith.constant 0 : index
    %c0_23 = arith.constant 0 : index
    %c0_24 = arith.constant 0 : index
    %26 = vector.load %arg4[%c0_20, %c0_21, %c0_22, %c0_23, %c0_24] : memref<1x1x8x8x5xf32, #tpu.memory_space<vmem>>, vector<1x1x8x8x5xf32>
    %27 = vector.shape_cast %26 : vector<1x1x8x8x5xf32> to vector<64x5xf32>
    %c0_25 = arith.constant 0 : index
    %c0_26 = arith.constant 0 : index
    %28 = vector.load %arg10[%c0_25, %c0_26] : memref<1x5xf32, #tpu.memory_space<vmem>>, vector<1x5xf32>
    %29 = vector.broadcast %28 : vector<1x5xf32> to vector<64x5xf32>
    %30 = arith.mulf %27, %29 : vector<64x5xf32>
    %c0_27 = arith.constant 0 : index
    %c0_28 = arith.constant 0 : index
    %31 = vector.load %arg11[%c0_27, %c0_28] : memref<1x5xf32, #tpu.memory_space<vmem>>, vector<1x5xf32>
    %32 = vector.broadcast %31 : vector<1x5xf32> to vector<64x5xf32>
    %33 = arith.addf %30, %32 : vector<64x5xf32>
    %cst_29 = arith.constant 0.000000e+00 : f32
    %34 = vector.broadcast %cst_29 : f32 to vector<64x5xf32>
    %35 = arith.cmpf oge, %33, %34 : vector<64x5xf32>
    %cst_30 = arith.constant 0.00999999977 : f32
    %36 = vector.broadcast %cst_30 : f32 to vector<64x5xf32>
    %37 = arith.mulf %36, %33 : vector<64x5xf32>
    %38 = arith.select %35, %33, %37 : vector<64x5xi1>, vector<64x5xf32>
    %c0_31 = arith.constant 0 : index
    %c0_32 = arith.constant 0 : index
    %c0_33 = arith.constant 0 : index
    %c0_34 = arith.constant 0 : index
    %c0_35 = arith.constant 0 : index
    %39 = vector.load %arg5[%c0_31, %c0_32, %c0_33, %c0_34, %c0_35] : memref<1x1x8x8x9xf32, #tpu.memory_space<vmem>>, vector<1x1x8x8x9xf32>
    %40 = vector.shape_cast %39 : vector<1x1x8x8x9xf32> to vector<64x9xf32>
    %c0_36 = arith.constant 0 : index
    %c0_37 = arith.constant 0 : index
    %41 = vector.load %arg12[%c0_36, %c0_37] : memref<1x9xf32, #tpu.memory_space<vmem>>, vector<1x9xf32>
    %42 = vector.broadcast %41 : vector<1x9xf32> to vector<64x9xf32>
    %43 = arith.mulf %40, %42 : vector<64x9xf32>
    %c0_38 = arith.constant 0 : index
    %c0_39 = arith.constant 0 : index
    %44 = vector.load %arg13[%c0_38, %c0_39] : memref<1x9xf32, #tpu.memory_space<vmem>>, vector<1x9xf32>
    %45 = vector.broadcast %44 : vector<1x9xf32> to vector<64x9xf32>
    %46 = arith.addf %43, %45 : vector<64x9xf32>
    %cst_40 = arith.constant 0.000000e+00 : f32
    %47 = vector.broadcast %cst_40 : f32 to vector<64x9xf32>
    %48 = arith.cmpf oge, %46, %47 : vector<64x9xf32>
    %cst_41 = arith.constant 0.00999999977 : f32
    %49 = vector.broadcast %cst_41 : f32 to vector<64x9xf32>
    %50 = arith.mulf %49, %46 : vector<64x9xf32>
    %51 = arith.select %48, %46, %50 : vector<64x9xi1>, vector<64x9xf32>
    %52 = tpu.concatenate %25, %38, %51 in 1 : vector<64x2xf32>, vector<64x5xf32>, vector<64x9xf32> -> vector<64x16xf32>
    %53 = arith.addf %12, %52 : vector<64x16xf32>
    %54 = vector.shape_cast %53 : vector<64x16xf32> to vector<1x1x8x8x16xf32>
    %c0_42 = arith.constant 0 : index
    %c0_43 = arith.constant 0 : index
    %c0_44 = arith.constant 0 : index
    %c0_45 = arith.constant 0 : index
    %c0_46 = arith.constant 0 : index
    %55 = vector.load %arg14[%c0_42, %c0_43, %c0_44, %c0_45, %c0_46] : memref<1x1x8x8x16xf32, #tpu.memory_space<vmem>>, vector<1x1x8x8x16xf32>
    tpu.vector_store %arg14[%c0_42, %c0_43, %c0_44, %c0_45, %c0_46], %54 {strides = array<i32>} : memref<1x1x8x8x16xf32, #tpu.memory_space<vmem>>, vector<1x1x8x8x16xf32>,
    %cst_47 = arith.constant dense<0.000000e+00> : vector<16xf32>
    %56 = vector.multi_reduction <add>, %53, %cst_47 [0] : vector<64x16xf32> to vector<16xf32>
    %57 = vector.shape_cast %56 : vector<16xf32> to vector<1x16xf32>
    %58 = arith.mulf %53, %53 : vector<64x16xf32>
    %cst_48 = arith.constant dense<0.000000e+00> : vector<16xf32>
    %59 = vector.multi_reduction <add>, %58, %cst_48 [0] : vector<64x16xf32> to vector<16xf32>
    %60 = vector.shape_cast %59 : vector<16xf32> to vector<1x16xf32>
    %61 = tpu.concatenate %57, %60 in 0 : vector<1x16xf32>, vector<1x16xf32> -> vector<2x16xf32>
    %62 = vector.shape_cast %61 : vector<2x16xf32> to vector<1x1x2x16xf32>
    %c0_49 = arith.constant 0 : index
    %c0_50 = arith.constant 0 : index
    %c0_51 = arith.constant 0 : index
    %c0_52 = arith.constant 0 : index
    %63 = vector.load %arg15[%c0_49, %c0_50, %c0_51, %c0_52] : memref<1x1x2x16xf32, #tpu.memory_space<vmem>>, vector<1x1x2x16xf32>
    tpu.vector_store %arg15[%c0_49, %c0_50, %c0_51, %c0_52], %62 {strides = array<i32>} : memref<1x1x2x16xf32, #tpu.memory_space<vmem>>, vector<1x1x2x16xf32>,
    return
  }
  func.func @transform_0(%arg0: i32, %arg1: i32) -> (i32, i32, i32, i32, i32) {
    %c0_i32 = arith.constant 0 : i32
    %c0_i32_0 = arith.constant 0 : i32
    %c0_i32_1 = arith.constant 0 : i32
    %c0_i32_2 = arith.constant 0 : i32
    return %arg0, %arg1, %c0_i32, %c0_i32_0, %c0_i32_1 : i32, i32, i32, i32, i32
  }
  func.func @transform_1(%arg0: i32, %arg1: i32) -> (i32, i32, i32, i32, i32) {
    %c0_i32 = arith.constant 0 : i32
    %c0_i32_0 = arith.constant 0 : i32
    %c0_i32_1 = arith.constant 0 : i32
    %c0_i32_2 = arith.constant 0 : i32
    return %arg0, %arg1, %c0_i32, %c0_i32_0, %c0_i32_1 : i32, i32, i32, i32, i32
  }
  func.func @transform_2(%arg0: i32, %arg1: i32) -> (i32, i32, i32, i32, i32) {
    %c0_i32 = arith.constant 0 : i32
    %c0_i32_0 = arith.constant 0 : i32
    %c0_i32_1 = arith.constant 0 : i32
    %c0_i32_2 = arith.constant 0 : i32
    return %arg0, %arg1, %c0_i32, %c0_i32_0, %c0_i32_1 : i32, i32, i32, i32, i32
  }
  func.func @transform_3(%arg0: i32, %arg1: i32) -> (i32, i32, i32, i32, i32) {
    %c0_i32 = arith.constant 0 : i32
    %c0_i32_0 = arith.constant 0 : i32
    %c0_i32_1 = arith.constant 0 : i32
    %c0_i32_2 = arith.constant 0 : i32
    return %arg0, %arg1, %c0_i32, %c0_i32_0, %c0_i32_1 : i32, i32, i32, i32, i32
  }
  func.func @transform_4(%arg0: i32, %arg1: i32) -> (i32, i32) {
    %c0_i32 = arith.constant 0 : i32
    %c0_i32_0 = arith.constant 0 : i32
    %c0_i32_1 = arith.constant 0 : i32
    return %c0_i32, %c0_i32_0 : i32, i32
  }
  func.func @transform_5(%arg0: i32, %arg1: i32) -> (i32, i32) {
    %c0_i32 = arith.constant 0 : i32
    %c0_i32_0 = arith.constant 0 : i32
    %c0_i32_1 = arith.constant 0 : i32
    return %c0_i32, %c0_i32_0 : i32, i32
  }
  func.func @transform_6(%arg0: i32, %arg1: i32) -> (i32, i32) {
    %c0_i32 = arith.constant 0 : i32
    %c0_i32_0 = arith.constant 0 : i32
    %c0_i32_1 = arith.constant 0 : i32
    return %c0_i32, %c0_i32_0 : i32, i32
  }
  func.func @transform_7(%arg0: i32, %arg1: i32) -> (i32, i32) {
    %c0_i32 = arith.constant 0 : i32
    %c0_i32_0 = arith.constant 0 : i32
    %c0_i32_1 = arith.constant 0 : i32
    return %c0_i32, %c0_i32_0 : i32, i32
  }
  func.func @transform_8(%arg0: i32, %arg1: i32) -> (i32, i32) {
    %c0_i32 = arith.constant 0 : i32
    %c0_i32_0 = arith.constant 0 : i32
    %c0_i32_1 = arith.constant 0 : i32
    return %c0_i32, %c0_i32_0 : i32, i32
  }
  func.func @transform_9(%arg0: i32, %arg1: i32) -> (i32, i32) {
    %c0_i32 = arith.constant 0 : i32
    %c0_i32_0 = arith.constant 0 : i32
    %c0_i32_1 = arith.constant 0 : i32
    return %c0_i32, %c0_i32_0 : i32, i32
  }
  func.func @transform_10(%arg0: i32, %arg1: i32) -> (i32, i32) {
    %c0_i32 = arith.constant 0 : i32
    %c0_i32_0 = arith.constant 0 : i32
    %c0_i32_1 = arith.constant 0 : i32
    return %c0_i32, %c0_i32_0 : i32, i32
  }
  func.func @transform_11(%arg0: i32, %arg1: i32) -> (i32, i32) {
    %c0_i32 = arith.constant 0 : i32
    %c0_i32_0 = arith.constant 0 : i32
    %c0_i32_1 = arith.constant 0 : i32
    return %c0_i32, %c0_i32_0 : i32, i32
  }
  func.func @transform_12(%arg0: i32, %arg1: i32) -> (i32, i32, i32, i32, i32) {
    %c0_i32 = arith.constant 0 : i32
    %c0_i32_0 = arith.constant 0 : i32
    %c0_i32_1 = arith.constant 0 : i32
    %c0_i32_2 = arith.constant 0 : i32
    return %arg0, %arg1, %c0_i32, %c0_i32_0, %c0_i32_1 : i32, i32, i32, i32, i32
  }
  func.func @transform_13(%arg0: i32, %arg1: i32) -> (i32, i32, i32, i32) {
    %c0_i32 = arith.constant 0 : i32
    %c0_i32_0 = arith.constant 0 : i32
    %c0_i32_1 = arith.constant 0 : i32
    return %arg0, %arg1, %c0_i32, %c0_i32_0 : i32, i32, i32, i32
  }
}

module attributes {stable_mosaic.version = 11 : i64} {
  func.func @_bn_act_kernel(%arg0: i32, %arg1: i32, %arg2: memref<1x1x8x8x16xf32, #tpu.memory_space<vmem>>, %arg3: memref<1x16xf32, #tpu.memory_space<vmem>>, %arg4: memref<1x16xf32, #tpu.memory_space<vmem>>, %arg5: memref<1x1x8x8x16xf32, #tpu.memory_space<vmem>>) attributes {dimension_semantics = [#tpu.dimension_semantics<parallel>, #tpu.dimension_semantics<parallel>], iteration_bounds = array<i64: 2, 8>, scalar_prefetch = 0 : i64, scratch_operands = 0 : i64, tpu.core_type = #tpu.core_type<tc>, window_params = [{transform_indices = @transform_0, window_bounds = array<i64: 1, 1, 8, 8, 16>}, {pipeline_mode = #tpu.pipeline_mode<synchronous>, transform_indices = @transform_1, window_bounds = array<i64: 1, 16>}, {pipeline_mode = #tpu.pipeline_mode<synchronous>, transform_indices = @transform_2, window_bounds = array<i64: 1, 16>}, {transform_indices = @transform_3, window_bounds = array<i64: 1, 1, 8, 8, 16>}]} {
    %c0 = arith.constant 0 : index
    %c0_0 = arith.constant 0 : index
    %c0_1 = arith.constant 0 : index
    %c0_2 = arith.constant 0 : index
    %c0_3 = arith.constant 0 : index
    %0 = vector.load %arg2[%c0, %c0_0, %c0_1, %c0_2, %c0_3] : memref<1x1x8x8x16xf32, #tpu.memory_space<vmem>>, vector<1x1x8x8x16xf32>
    %1 = vector.shape_cast %0 : vector<1x1x8x8x16xf32> to vector<64x16xf32>
    %c0_4 = arith.constant 0 : index
    %c0_5 = arith.constant 0 : index
    %2 = vector.load %arg3[%c0_4, %c0_5] : memref<1x16xf32, #tpu.memory_space<vmem>>, vector<1x16xf32>
    %3 = vector.broadcast %2 : vector<1x16xf32> to vector<64x16xf32>
    %4 = arith.mulf %1, %3 : vector<64x16xf32>
    %c0_6 = arith.constant 0 : index
    %c0_7 = arith.constant 0 : index
    %5 = vector.load %arg4[%c0_6, %c0_7] : memref<1x16xf32, #tpu.memory_space<vmem>>, vector<1x16xf32>
    %6 = vector.broadcast %5 : vector<1x16xf32> to vector<64x16xf32>
    %7 = arith.addf %4, %6 : vector<64x16xf32>
    %cst = arith.constant 0.000000e+00 : f32
    %8 = vector.broadcast %cst : f32 to vector<64x16xf32>
    %9 = arith.cmpf oge, %7, %8 : vector<64x16xf32>
    %cst_8 = arith.constant 0.00999999977 : f32
    %10 = vector.broadcast %cst_8 : f32 to vector<64x16xf32>
    %11 = arith.mulf %10, %7 : vector<64x16xf32>
    %12 = arith.select %9, %7, %11 : vector<64x16xi1>, vector<64x16xf32>
    %13 = vector.shape_cast %12 : vector<64x16xf32> to vector<1x1x8x8x16xf32>
    %c0_9 = arith.constant 0 : index
    %c0_10 = arith.constant 0 : index
    %c0_11 = arith.constant 0 : index
    %c0_12 = arith.constant 0 : index
    %c0_13 = arith.constant 0 : index
    %14 = vector.load %arg5[%c0_9, %c0_10, %c0_11, %c0_12, %c0_13] : memref<1x1x8x8x16xf32, #tpu.memory_space<vmem>>, vector<1x1x8x8x16xf32>
    tpu.vector_store %arg5[%c0_9, %c0_10, %c0_11, %c0_12, %c0_13], %13 {strides = array<i32>} : memref<1x1x8x8x16xf32, #tpu.memory_space<vmem>>, vector<1x1x8x8x16xf32>,
    return
  }
  func.func @transform_0(%arg0: i32, %arg1: i32) -> (i32, i32, i32, i32, i32) {
    %c0_i32 = arith.constant 0 : i32
    %c0_i32_0 = arith.constant 0 : i32
    %c0_i32_1 = arith.constant 0 : i32
    %c0_i32_2 = arith.constant 0 : i32
    return %arg0, %arg1, %c0_i32, %c0_i32_0, %c0_i32_1 : i32, i32, i32, i32, i32
  }
  func.func @transform_1(%arg0: i32, %arg1: i32) -> (i32, i32) {
    %c0_i32 = arith.constant 0 : i32
    %c0_i32_0 = arith.constant 0 : i32
    %c0_i32_1 = arith.constant 0 : i32
    return %c0_i32, %c0_i32_0 : i32, i32
  }
  func.func @transform_2(%arg0: i32, %arg1: i32) -> (i32, i32) {
    %c0_i32 = arith.constant 0 : i32
    %c0_i32_0 = arith.constant 0 : i32
    %c0_i32_1 = arith.constant 0 : i32
    return %c0_i32, %c0_i32_0 : i32, i32
  }
  func.func @transform_3(%arg0: i32, %arg1: i32) -> (i32, i32, i32, i32, i32) {
    %c0_i32 = arith.constant 0 : i32
    %c0_i32_0 = arith.constant 0 : i32
    %c0_i32_1 = arith.constant 0 : i32
    %c0_i32_2 = arith.constant 0 : i32
    return %arg0, %arg1, %c0_i32, %c0_i32_0, %c0_i32_1 : i32, i32, i32, i32, i32
  }
}

</mosaic_0001>

<bundles_post_ra>
// kernel: convblock3d_forward.5
= control target key start
LH: loop header
LB: loop body
LE: loop exit
PB: predicated region body
PF: predicated region fallthrough
CT: control target
= control target key end

     0   :  { %s3186_s13 = smov 0   ;;  %s3188_s14 = smov 0   ;;  %s4808_s0 = inlined_call_operand.vmem [shape: bf16[2,10,10,10,4], index: 0, kind: input, shape index: {}, may-alias: {0,1,2}]   ;;  %s4809_s1 = inlined_call_operand.vmem [shape: bf16[2,10,10,10,4], index: 1, kind: input, shape index: {}, may-alias: {0,1,2}]   ;;  %s4810_s2 = inlined_call_operand.vmem [shape: bf16[2,10,10,10,4], index: 2, kind: input, shape index: {}, may-alias: {0,1,2}]   ;;  %s4811_s3 = inlined_call_operand.vmem [shape: bf16[108,2], index: 3, kind: input, shape index: {}]   ;;  %s4812_s4 = inlined_call_operand.vmem [shape: f32[1,2], index: 4, kind: input, shape index: {}]   ;;  %s4813_s5 = inlined_call_operand.vmem [shape: bf16[4,16], index: 5, kind: input, shape index: {}]   ;;  %s4814_s6 = inlined_call_operand.vmem [shape: f32[1,16], index: 6, kind: input, shape index: {}]   ;;  %s4815_s7 = inlined_call_operand.vmem [shape: f32[2,8,8,8,2], index: 7, kind: output, shape index: {0}]   ;;  %s4816_s8 = inlined_call_operand.vmem [shape: f32[2,8,2,2], index: 8, kind: output, shape index: {1}]   ;;  %s4817_s9 = inlined_call_operand.vmem [shape: f32[2,8,8,8,16], index: 9, kind: output, shape index: {2}]   ;;  %s4818_s10 = inlined_call_operand.vmem [shape: f32[2,8,2,16], index: 10, kind: output, shape index: {3}]  }
   0x1   :  { %s3190_s15 = smov 0   ;;  %s3192_s16 = smov 0  }
   0x2   :  { %s3194_s17 = smov 0  }
   0x3 LB: > { %s30_s18 = sadd.s32 1, %s3105_s15  ;;  %s33_s19 = sadd.s32 1, %s3109_s16  ;;  %s3113_s17 = sphi %s3194_s17, %s21_s17   ;;  %s3109_s16 = sphi %s3192_s16, %s4999_s16   ;;  %s3105_s15 = sphi %s3190_s15, %s4998_s15   ;;  %s3101_s14 = sphi %s3188_s14, %s4997_s14   ;;  %s3097_s13 = sphi %s3186_s13, %s4996_s13  }
   0x4   : > { %p31_p0 = scmp.ge.s32.totalorder %s30_s18, 8  ;;  %p2776_p1 = scmp.ge.s32.totalorder %s3113_s17, 1 }
   0x5   : > { %p385_p2 = scmp.lt.s32.totalorder %s3113_s17, 17 }
   0x6   : > { %s5001_s18 = smov (%p31_p0, %s30_s18), 0  ;;  %s5003_s19 = smov (!%p31_p0, %s33_s19), %s3109_s16 }
   0x7   : > { %p386_p3 = pnand %p2776_p1, %p385_p2  ;;  %p35_p4 = scmp.ge.s32.totalorder %s5003_s19, 2 }
   0x9   : > { %s5005_s19 = smov (%p35_p4, %s5003_s19), 0  ;;  %389 = sbr.rel (%p386_p3) target bundleno = 803 (0x323), region = 48 }
  0x10   : > { %p476_p5 = scmp.lt.s32.totalorder %s3101_s14, 1  ;;  %p478_p6 = scmp.lt.s32.totalorder %s3097_s13, 9  ;;  %vm1110_vm0 = vcmask 31744   ;;  %vm1135_vm1 = vcmask 64512   ;;  %vm1152_vm2 = vcmask 97280   ;;  %vm1169_vm3 = vcmask 130048  }
  0x11   : > { %s485_s23 = sadd.s32 1, %s3097_s13  ;;  %s496_s30 = sadd.s32 2, %s3097_s13  ;;  %vm1186_vm4 = vcmask 162816   ;;  %vm1203_vm5 = vcmask 195584   ;;  %vm1220_vm6 = vcmask 228352   ;;  %vm1237_vm7 = vcmask 261120  }
  0x12   : > { %s5007_s14 = smov (!%p476_p5, %s3101_s14), 1  ;;  %p3227_p7 = scmp.lt.s32.totalorder %s485_s23, 9  ;;  %vm1254_vm8 = vcmask 293888   ;;  %vm1271_vm9 = vcmask 326656   ;;  %vm2079_vm10 = vcmask 1045504   ;;  %vm1288_vm11 = vcmask 359424  }
  0x13   : > { %s479_s20 = scalar_select %p478_p6, %s3097_s13, 9  ;;  %vm2148_vm12 = vsmask.f32 3328  ;;  %vm2149_vm13 = vsmask.f32 7440  ;;  %vm2295_vm14 = vcmask 1041408  }
  0x14   : > { %s3223_s21 = smul.u32 200, %s5007_s14  ;;  %p3269_p8 = scmp.lt.s32.totalorder %s496_s30, 9  ;;  %vm4411_vm15 = vmor %vm2148_vm12, %vm2149_vm13 }
  0x15   : > { %s2926_s22 = smul.u32 20, %s479_s20  ;;  %s5009_s23 = smov (!%p3227_p7, %s485_s23), 9 }
  0x16   : > { %s3115_s12 = smov 8   ;;  %s2928_s20 = smul.u32 20, %s5009_s23 }
  0x17   : > { %s482_s24 = sadd.s32 %s3223_s21, %s2926_s22  ;;  %s5011_s30 = smov (!%p3269_p8, %s496_s30), 9 }
  0x18   : > { %s2777_s25 = sshll.u32 %s482_s24, 2  ;;  %s3116_s22 = smov 4  }
  0x19   : > { %s3234_s29 = scalar_lea.vmem %s4808_s0, %s2777_s25  ;;  %s492_s24 = sadd.s32 %s2928_s20, %s3223_s21 }
  0x1a   : > { %v3238_v0 = vld [vmem:[%s3234_s29 + $0x8] sm:$0xf]  ;;  %v545_v1 = vld [vmem:[%s3234_s29 + $0xc] sm:$0x1]  ;;  %v542_v2 = vld [vmem:[%s3234_s29] sm:$0xf] }
  0x1b   : > { %v3243_v3 = vcombine.low %v3238_v0, %v545_v1  ;;  %v543_v4 = vld [vmem:[%s3234_s29 + $0x4] sm:$0x1]  ;;  %v3247_v5 = vld [vmem:[%s3234_s29 + $0x10] sm:$0xf]  ;;  %v547_v6 = vld [vmem:[%s3234_s29 + $0x14] sm:$0x1] }
  0x1c   : > { %v2790_v7 = vcombine.low %v542_v2, %v543_v4  ;;  %v3251_v8 = vcombine.low %v3247_v5, %v547_v6  ;;  %v3254_v9 = vld [vmem:[%s3234_s29 + $0x18] sm:$0xf]  ;;  %v549_v10 = vld [vmem:[%s3234_s29 + $0x1c] sm:$0x1]  ;;  %v3258_v11 = vld [vmem:[%s3234_s29 + $0x28] sm:$0xf] }
  0x1d   : > { %v4819_v12 = vrot.slane %v3243_v3, 1  ;;  %v3262_v13 = vcombine.low %v3254_v9, %v549_v10  ;;  %v650_v14 = vshrl.u32 %v3243_v3, 16  ;;  %v652_v15 = vshll.u32 %v3243_v3, 16  ;;  %v553_v16 = vld [vmem:[%s3234_s29 + $0x2c] sm:$0x1]  ;;  %s2778_s23 = sshll.u32 %s492_s24, 2 }
  0x1e   : > { %v714_v17 = vrot.slane %v2790_v7, 1  ;;  %v657_v18 = vshrl.u32 %v3251_v8, 16  ;;  %v659_v19 = vshll.u32 %v3251_v8, 16  ;;  %v3276_v20 = vld [vmem:[%s3234_s29 + $0x20] sm:$0xf]  ;;  %v643_v21 = vshrl.u32 %v2790_v7, 16  ;;  %s3327_s28 = scalar_lea.vmem %s4809_s1, %s2778_s23 }
  0x1f   : > { %724 = vrot.lane.b32.xlu1 %v4819_v12, %s3115_s12  ;;  %v645_v22 = vshll.u32 %v2790_v7, 16  ;;  %v664_v23 = vshrl.u32 %v3262_v13, 16  ;;  %v666_v24 = vshll.u32 %v3262_v13, 16  ;;  %v551_v25 = vld [vmem:[%s3234_s29 + $0x24] sm:$0x1]  ;;  %v654_v27 = vrot.slane %v652_v15, 1 }
  0x20   : > { %722 = vrot.lane.b32.xlu0 %v714_v17, %s3115_s12  ;;  %v661_v26 = vrot.slane %v659_v19, 1  ;;  %v2795_v28 = vcombine.low %v3258_v11, %v553_v16  ;;  %v2794_v29 = vcombine.low %v3276_v20, %v551_v25  ;;  %v3292_v30 = vld [vmem:[%s3234_s29 + $0x38] sm:$0xf]  ;;  %v557_v31 = vld [vmem:[%s3234_s29 + $0x3c] sm:$0x1]  ;;  %s2929_s25 = smul.u32 20, %s5011_s30 }
  0x21   : > { %v647_v32 = vrot.slane %v645_v22, 1  ;;  %v668_v33 = vrot.slane %v666_v24, 1  ;;  %v2797_v34 = vcombine.low %v3292_v30, %v557_v31  ;;  %v3297_v35 = vld [vmem:[%s3234_s29 + $0x30] sm:$0xf]  ;;  %v555_v36 = vld [vmem:[%s3234_s29 + $0x34] sm:$0x1]  ;;  %v3314_v46 = vor.u32 %v654_v27, %v650_v14 }
  0x22   : > { %v3300_v37 = vor.u32 %v661_v26, %v657_v18  ;;  %v680_v38 = vshll.u32 %v2795_v28, 16  ;;  %v678_v40 = vshrl.u32 %v2795_v28, 16  ;;  %v673_v41 = vshll.u32 %v2794_v29, 16  ;;  %s503_s30 = sadd.s32 %s2929_s25, %s3223_s21  ;;  %v3339_v58 = vld [vmem:[%s3327_s28 + $0x10] sm:$0xf]  ;;  %s3117_s23 = smov 12  }
  0x23   : > { %v648_v39 = vor.u32 %v647_v32, %v643_v21  ;;  %v3309_v42 = vor.u32 %v668_v33, %v664_v23  ;;  %v694_v44 = vshll.u32 %v2797_v34, 16  ;;  %v2796_v45 = vcombine.low %v3297_v35, %v555_v36  ;;  %v567_v59 = vld [vmem:[%s3327_s28 + $0x14] sm:$0x1]  ;;  %s2779_s11 = sshll.u32 %s503_s30, 2  ;;  %v3356_v63 = vld [vmem:[%s3327_s28 + $0x20] sm:$0xf] }
  0x24   : > { %702 = vrot.lane.b32.xlu1 %v3300_v37, %s3116_s22  ;;  %v682_v43 = vrot.slane %v680_v38, 1  ;;  %v671_v47 = vshrl.u32 %v2794_v29, 16  ;;  %v675_v48 = vrot.slane %v673_v41, 1  ;;  %v692_v51 = vshrl.u32 %v2797_v34, 16  ;;  %v571_v1 = vld [vmem:[%s3327_s28 + $0x24] sm:$0x1]  ;;  %s3366_s24 = scalar_lea.vmem %s4810_s2, %s2779_s11 }
  0x25   : > { %698 = vrot.lane.b32.xlu0 %v648_v39, %s3116_s22  ;;  %v687_v49 = vshll.u32 %v2796_v45, 16  ;;  %v696_v52 = vrot.slane %v694_v44, 1  ;;  %v685_v54 = vshrl.u32 %v2796_v45, 16  ;;  %v3345_v60 = vrot.slane %v3262_v13, 1  ;;  %v3360_v2 = vld [vmem:[%s3327_s28 + $0x18] sm:$0xf] }
  0x26   : > { %v3318_v50 = vor.u32 %v682_v43, %v678_v40  ;;  %v3322_v53 = vor.u32 %v675_v48, %v671_v47  ;;  %v3348_v61 = vcombine.low %v3339_v58, %v567_v59  ;;  %v3353_v62 = vrot.slane %v3251_v8, 1  ;;  %v569_v4 = vld [vmem:[%s3327_s28 + $0x1c] sm:$0x1]  ;;  %v582_v14 = vld [vmem:[%s3366_s24] sm:$0xf]  ;;  %s3118_s25 = smov 16  }
  0x27   : > { %v689_v55 = vrot.slane %v687_v49, 1  ;;  %v3331_v56 = vor.u32 %v696_v52, %v692_v51  ;;  %v3370_v6 = vrot.slane %v2795_v28, 1  ;;  %v3374_v8 = vcombine.low %v3356_v63, %v571_v1  ;;  %v572_v15 = vld [vmem:[%s3327_s28 + $0x28] sm:$0xf]  ;;  %v573_v16 = vld [vmem:[%s3327_s28 + $0x2c] sm:$0x1] }
  0x28   : > { %704 = vrot.lane.b32.xlu1 %v3309_v42, %s3116_s22  ;;  %v950_v7 = vshll.u32 %v3348_v61, 16  ;;  %v3378_v10 = vrot.slane %v2794_v29, 1  ;;  %v3381_v13 = vcombine.low %v3360_v2, %v569_v4  ;;  %v3386_v17 = vrot.slane %v2797_v34, 1  ;;  %v586_v26 = vld [vmem:[%s3366_s24 + $0x10] sm:$0xf]  ;;  %s3119_s26 = smov 20  }
  0x29   : > { %700 = vrot.lane.b32.xlu0 %v3314_v46, %s3116_s22  ;;  %v3336_v57 = vor.u32 %v689_v55, %v685_v54  ;;  %v948_v18 = vshrl.u32 %v3348_v61, 16  ;;  %v964_v21 = vshll.u32 %v3374_v8, 16  ;;  %v2829_v22 = vcombine.low %v582_v14, %v582_v14  ;;  %v584_v27 = vld [vmem:[%s3366_s24 + $0x8] sm:$0xf]  ;;  %s3120_s27 = smov 24   ;;  %s3121_s30 = smov 28  }
  0x2a   : > { %v952_v19 = vrot.slane %v950_v7, 1  ;;  %v3394_v23 = vrot.slane %v2796_v45, 1  ;;  %v957_v24 = vshll.u32 %v3381_v13, 16  ;;  %v3397_v25 = vcombine.low %v572_v15, %v573_v16  ;;  %v583_v16 = vld [vmem:[%s3366_s24 + $0x4] sm:$0x1]  ;;  %s3122_s11 = smov 32  }
  0x2b   : > { %v2798_v28 = vcombine.low %v3238_v0, %v3238_v0  ;;  %v962_v29 = vshrl.u32 %v3374_v8, 16  ;;  %v966_v32 = vrot.slane %v964_v21, 1  ;;  %v1424_v33 = vshrl.u32 %v2829_v22, 16  ;;  %v588_v0 = vld [vmem:[%s3366_s24 + $0x18] sm:$0xf]  ;;  %s3123_s21 = smov 36  }
  0x2c   : > { %708 = vrot.lane.b32.xlu1 %v3318_v50, %s3116_s22  ;;  %v3406_v31 = vor.u32 %v952_v19, %v948_v18  ;;  %v2831_v34 = vcombine.low %v586_v26, %v586_v26  ;;  %v955_v36 = vshrl.u32 %v3381_v13, 16  ;;  %v959_v38 = vrot.slane %v957_v24, 1  ;;  %s3124_s20 = smov 40   ;;  %p509_p9 = scmp.lt.s32.totalorder %s3097_s13, 7 }
  0x2d   : > { %706 = vrot.lane.b32.xlu0 %v3322_v53, %s3116_s22  ;;  %v971_v39 = vshll.u32 %v3397_v25, 16  ;;  %v2830_v40 = vcombine.low %v584_v27, %v584_v27  ;;  %v1427_v41 = vshll.u32 %v2829_v22, 16  ;;  %v3415_v43 = vor.u32 %v966_v32, %v962_v29  ;;  %v585_v29 = vld [vmem:[%s3366_s24 + $0xc] sm:$0x1] }
  0x2e   : > { %v1426_v44 = vrot.slane %v1424_v33, 7  ;;  %v969_v45 = vshrl.u32 %v3397_v25, 16  ;;  %v1438_v47 = vshrl.u32 %v2831_v34, 16  ;;  %v3419_v48 = vor.u32 %v959_v38, %v955_v36  ;;  %v589_v38 = vld [vmem:[%s3366_s24 + $0x1c] sm:$0x1]  ;;  %s5013_s13 = smov (!%p509_p9, %s3097_s13), 7 }
  0x2f   : > { %v973_v49 = vrot.slane %v971_v39, 1  ;;  %v1431_v51 = vshrl.u32 %v2830_v40, 16  ;;  %v2832_v52 = vcombine.low %v588_v0, %v588_v0  ;;  %v1441_v59 = vshll.u32 %v2831_v34, 16 }
  0x30   : > { %712 = vrot.lane.b32.xlu1 %v3331_v56, %s3116_s22  ;;  %v1429_v54 = vor.u32 %v1427_v41, %v1426_v44  ;;  %v1440_v55 = vrot.slane %v1438_v47, 7  ;;  %v1434_v7 = vshll.u32 %v2830_v40, 16  ;;  %v2837_v24 = vcombine.low %v582_v14, %v583_v16 }
  0x31   : > { %710 = vrot.lane.b32.xlu0 %v3336_v57, %s3116_s22  ;;  %v3425_v1 = vor.u32 %v973_v49, %v969_v45  ;;  %v1433_v4 = vrot.slane %v1431_v51, 7  ;;  %v1445_v15 = vshrl.u32 %v2832_v52, 16  ;;  %v1448_v22 = vshll.u32 %v2832_v52, 16  ;;  %v590_v52 = vld [vmem:[%s3366_s24 + $0x20] sm:$0xf] }
  0x32   : > { %v3429_v18 = vor.u32 %v1441_v59, %v1440_v55  ;;  %v1538_v32 = vshll.u32 %v2837_v24, 16  ;;  %v2838_v36 = vcombine.low %v584_v27, %v585_v29  ;;  %v1536_v39 = vshrl.u32 %v2837_v24, 16 }
  0x33   : > { %4846 = vst [vmem:[#allocation2_spill] sm:$0xff] %v3425_v1  ;;  %v1436_v19 = vor.u32 %v1434_v7, %v1433_v4  ;;  %v1447_v21 = vrot.slane %v1445_v15, 7  ;;  %v3447_v44 = vcombine.low %v588_v0, %v589_v38  ;;  %v2833_v4 = vcombine.low %v590_v52, %v590_v52 }
  0x34   : > { %728 = vrot.lane.b32.xlu1 %v3345_v60, %s3115_s12  ;;  %v1540_v40 = vrot.slane %v1538_v32, 1  ;;  %v1545_v41 = vshll.u32 %v2838_v36, 16  ;;  %v1543_v47 = vshrl.u32 %v2838_v36, 16 }
  0x35   : > { %726 = vrot.lane.b32.xlu0 %v3353_v62, %s3115_s12  ;;  %v3438_v33 = vor.u32 %v1448_v22, %v1447_v21  ;;  %v1559_v51 = vshll.u32 %v3447_v44, 16  ;;  %v1557_v55 = vshrl.u32 %v3447_v44, 16  ;;  %v1452_v15 = vshrl.u32 %v2833_v4, 16 }
  0x36   : > { %v1547_v49 = vrot.slane %v1545_v41, 1  ;;  %v1455_v21 = vshll.u32 %v2833_v4, 16 }
  0x37   : > { %v1561_v59 = vrot.slane %v1559_v51, 1  ;;  %v1454_v16 = vrot.slane %v1452_v15, 7 }
  0x38   : > { %732 = vrot.lane.b32.xlu1 %v3370_v6, %s3115_s12  ;;  %v1548_v0 = vor.u32 %v1547_v49, %v1543_v47 }
  0x39   : > { %730 = vrot.lane.b32.xlu0 %v3378_v10, %s3115_s12  ;;  %v3464_v7 = vor.u32 %v1561_v59, %v1557_v55  ;;  %v3473_v22 = vor.u32 %v1455_v21, %v1454_v16  ;;  %v579_v55 = vld [vmem:[%s3327_s28 + $0x44] sm:$0x1] }
  0x3c   : > { %736 = vrot.lane.b32.xlu1 %v3386_v17, %s3115_s12 }
  0x3d   : > { %734 = vrot.lane.b32.xlu0 %v3394_v23, %s3115_s12 }
  0x40   : > { %1383 = vrot.lane.b32.xlu1 %v3406_v31, %s3116_s22 }
  0x41   : > { %748 = vrot.lane.b32.xlu0 %v2798_v28, %s3117_s23  ;;  %v587_v28 = vld [vmem:[%s3366_s24 + $0x14] sm:$0x1] }
  0x42   : > { %v3440_v34 = vcombine.low %v586_v26, %v587_v28  ;;  %v1541_v26 = vor.u32 %v1540_v40, %v1536_v39  ;;  %v575_v28 = vld [vmem:[%s3327_s28 + $0x34] sm:$0x1]  ;;  %v577_v39 = vld [vmem:[%s3327_s28 + $0x3c] sm:$0x1] }
  0x44   : > { %1387 = vrot.lane.b32.xlu1 %v3415_v43, %s3116_s22  ;;  %v1552_v14 = vshll.u32 %v3440_v34, 16  ;;  %v1550_v27 = vshrl.u32 %v3440_v34, 16 }
  0x45   : > { %1385 = vrot.lane.b32.xlu0 %v3419_v48, %s3116_s22 }
  0x46   : > { %v1554_v45 = vrot.slane %v1552_v14, 1 }
  0x48   : > { %1479 = vrot.lane.b32.xlu1 %v1429_v54, %s3115_s12  ;;  %v3456_v54 = vor.u32 %v1554_v45, %v1550_v27  ;;  %v592_v27 = vld [vmem:[%s3366_s24 + $0x28] sm:$0xf] }
  0x49   : > { %1389 = vrot.lane.b32.xlu0 %v3425_v1, %s3116_s22 }
  0x4c   : > { %1483 = vrot.lane.b32.xlu1 %v3429_v18, %s3115_s12 }
  0x4d   : > { %1481 = vrot.lane.b32.xlu0 %v1436_v19, %s3115_s12 }
  0x50   : > { %1519 = vrot.lane.b32.xlu1 %v2837_v24, %s3117_s23  ;;  %v591_v24 = vld [vmem:[%s3366_s24 + $0x24] sm:$0x1] }
  0x51   : > { %1485 = vrot.lane.b32.xlu0 %v3438_v33, %s3115_s12  ;;  %v3481_v29 = vcombine.low %v590_v52, %v591_v24  ;;  %v2834_v52 = vcombine.low %v592_v27, %v592_v27  ;;  %v580_v24 = vld [vmem:[%s3327_s28 + $0x48] sm:$0xf] }
  0x53   : > { %v1566_v38 = vshll.u32 %v3481_v29, 16  ;;  %v1564_v14 = vshrl.u32 %v3481_v29, 16  ;;  %v1459_v21 = vshrl.u32 %v2834_v52, 16 }
  0x54   : > { %1523 = vrot.lane.b32.xlu1 %v3440_v34, %s3117_s23 }
  0x55   : > { %1521 = vrot.lane.b32.xlu0 %v2838_v36, %s3117_s23  ;;  %v1568_v41 = vrot.slane %v1566_v38, 1  ;;  %v1461_v38 = vrot.slane %v1459_v21, 7  ;;  %v593_v21 = vld [vmem:[%s3366_s24 + $0x2c] sm:$0x1] }
  0x57   : > { %v3505_v49 = vor.u32 %v1568_v41, %v1564_v14 }
  0x58   : > { %1591 = vrot.lane.b32.xlu1 %v1541_v26, %s3118_s25 }
  0x59   : > { %1525 = vrot.lane.b32.xlu0 %v3447_v44, %s3117_s23 }
  0x5c   : > { %1595 = vrot.lane.b32.xlu1 %v3456_v54, %s3118_s25 }
  0x5d   : > { %1593 = vrot.lane.b32.xlu0 %v1548_v0, %s3118_s25 }
  0x60   : > { %1617 = vrot.lane.b32.xlu1 %v1436_v19, %s3119_s26  ;;  %v574_v19 = vld [vmem:[%s3327_s28 + $0x30] sm:$0xf] }
  0x61   : > { %1597 = vrot.lane.b32.xlu0 %v3464_v7, %s3118_s25  ;;  %v3485_v32 = vcombine.low %v574_v19, %v575_v28  ;;  %v581_v19 = vld [vmem:[%s3327_s28 + $0x4c] sm:$0x1] }
  0x63   : > { %4847 = vst [vmem:[#allocation3_spill] sm:$0xff] %v3485_v32  ;;  %v978_v40 = vshll.u32 %v3485_v32, 16  ;;  %v976_v45 = vshrl.u32 %v3485_v32, 16 }
  0x64   : > { %1621 = vrot.lane.b32.xlu1 %v3438_v33, %s3119_s26 }
  0x65   : > { %1619 = vrot.lane.b32.xlu0 %v3429_v18, %s3119_s26  ;;  %v980_v47 = vrot.slane %v978_v40, 1 }
  0x67   : > { %v3512_v59 = vor.u32 %v980_v47, %v976_v45 }
  0x68   : > { %1636 = vrot.lane.b32.xlu1 %v2838_v36, %s3120_s27  ;;  %v576_v36 = vld [vmem:[%s3327_s28 + $0x38] sm:$0xf] }
  0x69   : > { %1623 = vrot.lane.b32.xlu0 %v3473_v22, %s3119_s26  ;;  %v3497_v26 = vcombine.low %v576_v36, %v577_v39  ;;  %4849 = vst [vmem:[#allocation5_spill] sm:$0xff] %v3512_v59  ;;  %v1462_v36 = vshll.u32 %v2834_v52, 16  ;;  %v3528_v39 = vcombine.low %v580_v24, %v581_v19  ;;  %v594_v52 = vld [vmem:[%s3366_s24 + $0x30] sm:$0xf] }
  0x6b   : > { %4848 = vst [vmem:[#allocation4_spill] sm:$0xff] %v3497_v26  ;;  %v985_v51 = vshll.u32 %v3497_v26, 16  ;;  %v983_v15 = vshrl.u32 %v3497_v26, 16  ;;  %4852 = vst [vmem:[#allocation8_spill] sm:$0xff] %v3528_v39  ;;  %v3535_v41 = vor.u32 %v1462_v36, %v1461_v38  ;;  %v1377_v47 = vshrl.u32 %v3528_v39, 16 }
  0x6c   : > { %1640 = vrot.lane.b32.xlu1 %v3447_v44, %s3120_s27 }
  0x6d   : > { %1638 = vrot.lane.b32.xlu0 %v3440_v34, %s3120_s27  ;;  %v987_v16 = vrot.slane %v985_v51, 1 }
  0x70   : > { %1659 = vrot.lane.b32.xlu1 %v1548_v0, %s3121_s30  ;;  %v578_v0 = vld [vmem:[%s3327_s28 + $0x40] sm:$0xf] }
  0x71   : > { %1642 = vrot.lane.b32.xlu0 %v3481_v29, %s3120_s27  ;;  %v3514_v4 = vcombine.low %v578_v0, %v579_v55  ;;  %v2835_v0 = vcombine.low %v594_v52, %v594_v52 }
  0x73   : > { %4850 = vst [vmem:[#allocation6_spill] sm:$0xff] %v3514_v4  ;;  %v1054_v28 = vshll.u32 %v3514_v4, 16  ;;  %v1052_v40 = vshrl.u32 %v3514_v4, 16  ;;  %v1469_v19 = vshll.u32 %v2835_v0, 16 }
  0x74   : > { %1663 = vrot.lane.b32.xlu1 %v3464_v7, %s3121_s30 }
  0x75   : > { %1661 = vrot.lane.b32.xlu0 %v3456_v54, %s3121_s30  ;;  %v1056_v14 = vrot.slane %v1054_v28, 1  ;;  %v3557_v28 = vcombine.low %v592_v27, %v593_v21 }
  0x77   : > { %v3540_v45 = vor.u32 %v1056_v14, %v1052_v40 }
  0x78   : > { %1685 = vrot.lane.b32.xlu1 %v3429_v18, %s3122_s11  ;;  %v3526_v18 = vor.u32 %v987_v16, %v983_v15  ;;  %v596_v15 = vld [vmem:[%s3366_s24 + $0x38] sm:$0xf] }
  0x79   : > { %1665 = vrot.lane.b32.xlu0 %v3505_v49, %s3121_s30  ;;  %4853 = vst [vmem:[#allocation9_spill] sm:$0xff] %v3540_v45  ;;  %v2836_v16 = vcombine.low %v596_v15, %v596_v15 }
  0x7a   : > { %4851 = vst [vmem:[#allocation7_spill] sm:$0xff] %v3526_v18 }
  0x7b   : > { %v1473_v38 = vshrl.u32 %v2836_v16, 16  ;;  %v1476_v40 = vshll.u32 %v2836_v16, 16 }
  0x7c   : > { %1391 = vrot.lane.b32.xlu1 %v3512_v59, %s3116_s22  ;;  %v598_v59 = vld [vmem:[%s3366_s24 + $0x40] sm:$0xf] }
  0x7d   : > { %1687 = vrot.lane.b32.xlu0 %v3438_v33, %s3122_s11  ;;  %v1379_v33 = vshll.u32 %v3528_v39, 16  ;;  %v1475_v27 = vrot.slane %v1473_v38, 7 }
  0x7f   : > { %v1381_v51 = vrot.slane %v1379_v33, 1 }
  0x80   : > { %1689 = vrot.lane.b32.xlu1 %v3473_v22, %s3122_s11 }
  0x81   : > { %1393 = vrot.lane.b32.xlu0 %v3526_v18, %s3116_s22  ;;  %v1382_v55 = vor.u32 %v1381_v51, %v1377_v47  ;;  %v3579_v47 = vor.u32 %v1476_v40, %v1475_v27 }
  0x84   : > { %1704 = vrot.lane.b32.xlu1 %v3440_v34, %s3123_s21  ;;  %v1466_v34 = vshrl.u32 %v2835_v0, 16  ;;  %v595_v0 = vld [vmem:[%s3366_s24 + $0x34] sm:$0x1] }
  0x85   : > { %1691 = vrot.lane.b32.xlu0 %v3535_v41, %s3122_s11  ;;  %v3592_v21 = vcombine.low %v594_v52, %v595_v0 }
  0x86   : > { %v1468_v24 = vrot.slane %v1466_v34, 7  ;;  %v1571_v34 = vshrl.u32 %v3557_v28, 16 }
  0x87   : > { %v1580_v38 = vshll.u32 %v3592_v21, 16 }
  0x88   : > { %1395 = vrot.lane.b32.xlu1 %v3540_v45, %s3116_s22  ;;  %v3567_v36 = vor.u32 %v1469_v19, %v1468_v24  ;;  %v597_v19 = vld [vmem:[%s3366_s24 + $0x3c] sm:$0x1] }
  0x89   : > { %1706 = vrot.lane.b32.xlu0 %v3447_v44, %s3123_s21  ;;  %v3606_v40 = vcombine.low %v596_v15, %v597_v19  ;;  %v1582_v0 = vrot.slane %v1580_v38, 1  ;;  %v2845_v38 = vcombine.low %v598_v59, %v598_v59 }
  0x8b   : > { %v1587_v12 = vshll.u32 %v3606_v40, 16  ;;  %v1614_v26 = vshll.u32 %v2845_v38, 16 }
  0x8c   : > { %1487 = vrot.lane.b32.xlu1 %v3473_v22, %s3115_s12 }
  0x8d   : > { %1397 = vrot.lane.b32.xlu0 %v1382_v55, %s3116_s22  ;;  %v1589_v19 = vrot.slane %v1587_v12, 1  ;;  %s4842_s22 = smov 48  }
  0x90   : > { %1708 = vrot.lane.b32.xlu1 %v3481_v29, %s3123_s21 }
  0x91   : > { %1489 = vrot.lane.b32.xlu0 %v3535_v41, %s3115_s12  ;;  %v3561_v44 = vpop.permute.xlu1 %724 }
  0x92   : > { %4854 = vst [vmem:[#allocation10_spill] sm:$0xff] %v3561_v44  ;;  %v3563_v22 = vpop.permute.xlu0 %722 }
  0x94   : > { %1727 = vrot.lane.b32.xlu1 %v3456_v54, %s3124_s20  ;;  %v1573_v54 = vshll.u32 %v3557_v28, 16 }
  0x95   : > { %1710 = vrot.lane.b32.xlu0 %v3557_v28, %s3123_s21 }
  0x96   : > { %v3571_v14 = vpop.permute.xlu1 %702  ;;  %v1575_v16 = vrot.slane %v1573_v54, 1  ;;  %v1578_v54 = vshrl.u32 %v3592_v21, 16 }
  0x97   : > { %v3573_v33 = vpop.permute.xlu0 %698 }
  0x98   : > { %1491 = vrot.lane.b32.xlu1 %v3567_v36, %s3115_s12  ;;  %v3622_v15 = vor.u32 %v1582_v0, %v1578_v54 }
  0x99   : > { %1729 = vrot.lane.b32.xlu0 %v3464_v7, %s3124_s20 }
  0x9a   : > { %v3582_v51 = vpop.permute.xlu1 %704 }
  0x9b   : > { %4855 = vst [vmem:[#allocation11_spill] sm:$0xff] %v3582_v51  ;;  %v3585_v55 = vpop.permute.xlu0 %700 }
  0x9c   : > { %4856 = vst [vmem:[#allocation12_spill] sm:$0xff] %v3585_v55  ;;  %1527 = vrot.lane.b32.xlu1 %v3481_v29, %s3117_s23  ;;  %v1576_v29 = vor.u32 %v1575_v16, %v1571_v34  ;;  %v1585_v16 = vshrl.u32 %v3606_v40, 16 }
  0x9d   : > { %1493 = vrot.lane.b32.xlu0 %v3579_v47, %s3115_s12  ;;  %s3125_s12 = smov 44  }
  0x9e   : > { %v3594_v7 = vpop.permute.xlu1 %708  ;;  %v3634_v4 = vor.u32 %v1589_v19, %v1585_v16 }
  0x9f   : > { %4857 = vst [vmem:[#allocation13_spill] sm:$0xff] %v3594_v7  ;;  %v3596_v24 = vpop.permute.xlu0 %706 }
  0xa0   : > { %4858 = vst [vmem:[#allocation14_spill] sm:$0xff] %v3596_v24  ;;  %1731 = vrot.lane.b32.xlu1 %v3505_v49, %s3124_s20 }
  0xa1   : > { %1529 = vrot.lane.b32.xlu0 %v3557_v28, %s3117_s23 }
  0xa2   : > { %v3604_v27 = vpop.permute.xlu1 %712 }
  0xa3   : > { %4859 = vst [vmem:[#allocation15_spill] sm:$0xff] %v3604_v27  ;;  %v3608_v52 = vpop.permute.xlu0 %710 }
  0xa4   : > { %4860 = vst [vmem:[#allocation16_spill] sm:$0xff] %v3608_v52  ;;  %1531 = vrot.lane.b32.xlu1 %v3592_v21, %s3117_s23 }
  0xa5   : > { %1733 = vrot.lane.b32.xlu0 %v1576_v29, %s3124_s20 }
  0xa6   : > { %v3615_v45 = vpop.permute.xlu1 %728 }
  0xa7   : > { %4861 = vst [vmem:[#allocation17_spill] sm:$0xff] %v3615_v45  ;;  %v3618_v34 = vpop.permute.xlu0 %726 }
  0xa8   : > { %4862 = vst [vmem:[#allocation18_spill] sm:$0xff] %v3618_v34  ;;  %1599 = vrot.lane.b32.xlu1 %v3505_v49, %s3118_s25  ;;  %v1611_v49 = vshrl.u32 %v2845_v38, 16  ;;  %v599_v38 = vld [vmem:[%s3366_s24 + $0x44] sm:$0x1] }
  0xa9   : > { %1533 = vrot.lane.b32.xlu0 %v3606_v40, %s3117_s23 }
  0xaa   : > { %v3627_v39 = vpop.permute.xlu1 %732  ;;  %v1613_v12 = vrot.slane %v1611_v49, 7 }
  0xab   : > { %4863 = vst [vmem:[#allocation19_spill] sm:$0xff] %v3627_v39  ;;  %v3629_v18 = vpop.permute.xlu0 %730  ;;  %v600_v39 = vld [vmem:[%s3366_s24 + $0x48] sm:$0xf] }
  0xac   : > { %4864 = vst [vmem:[#allocation20_spill] sm:$0xff] %v3629_v18  ;;  %1603 = vrot.lane.b32.xlu1 %v3622_v15, %s3118_s25  ;;  %v1616_v16 = vor.u32 %v1614_v26, %v1613_v12  ;;  %v2847_v24 = vcombine.low %v600_v39, %v600_v39 }
  0xad   : > { %1601 = vrot.lane.b32.xlu0 %v1576_v29, %s3118_s25 }
  0xae   : > { %v3636_v54 = vpop.permute.xlu1 %736  ;;  %v1679_v1 = vshrl.u32 %v2847_v24, 16 }
  0xaf   : > { %4865 = vst [vmem:[#allocation21_spill] sm:$0xff] %v3636_v54  ;;  %v3638_v0 = vpop.permute.xlu0 %734  ;;  %v2846_v54 = vcombine.low %v598_v59, %v599_v38 }
  0xb0   : > { %4866 = vst [vmem:[#allocation22_spill] sm:$0xff] %v3638_v0  ;;  %1625 = vrot.lane.b32.xlu1 %v3535_v41, %s3119_s26 }
  0xb1   : > { %1605 = vrot.lane.b32.xlu0 %v3634_v4, %s3118_s25  ;;  %v1655_v26 = vshll.u32 %v2846_v54, 16 }
  0xb2   : > { %v3644_v32 = vpop.permute.xlu1 %1383 }
  0xb3   : > { %v3646_v18 = vpop.permute.xlu0 %748  ;;  %v1657_v27 = vrot.slane %v1655_v26, 1  ;;  %v1681_v26 = vrot.slane %v1679_v1, 7 }
  0xb4   : > { %4867 = vst [vmem:[#allocation23_spill] sm:$0xff] %v3646_v18  ;;  %1629 = vrot.lane.b32.xlu1 %v3579_v47, %s3119_s26  ;;  %v1682_v18 = vshll.u32 %v2847_v24, 16 }
  0xb5   : > { %1627 = vrot.lane.b32.xlu0 %v3567_v36, %s3119_s26 }
  0xb6   : > { %v3652_v19 = vpop.permute.xlu1 %1387 }
  0xb7   : > { %v3654_v41 = vpop.permute.xlu0 %1385 }
  0xb8   : > { %1644 = vrot.lane.b32.xlu1 %v3557_v28, %s3120_s27  ;;  %v1653_v28 = vshrl.u32 %v2846_v54, 16 }
  0xb9   : > { %1631 = vrot.lane.b32.xlu0 %v1616_v16, %s3119_s26 }
  0xba   : > { %v3660_v49 = vpop.permute.xlu1 %1479  ;;  %v1658_v7 = vor.u32 %v1657_v27, %v1653_v28  ;;  %v1684_v27 = vor.u32 %v1682_v18, %v1681_v26 }
  0xbb   : > { %v3662_v0 = vpop.permute.xlu0 %1389 }
  0xbc   : > { %1648 = vrot.lane.b32.xlu1 %v3606_v40, %s3120_s27 }
  0xbd   : > { %1646 = vrot.lane.b32.xlu0 %v3592_v21, %s3120_s27 }
  0xbe   : > { %v3668_v12 = vpop.permute.xlu1 %1483 }
  0xbf   : > { %v3671_v52 = vpop.permute.xlu0 %1481 }
  0xc0   : > { %1667 = vrot.lane.b32.xlu1 %v1576_v29, %s3121_s30 }
  0xc1   : > { %1650 = vrot.lane.b32.xlu0 %v2846_v54, %s3120_s27 }
  0xc2   : > { %v3675_v59 = vpop.permute.xlu1 %1519 }
  0xc3   : > { %v3677_v38 = vpop.permute.xlu0 %1485 }
  0xc4   : > { %1671 = vrot.lane.b32.xlu1 %v3634_v4, %s3121_s30 }
  0xc5   : > { %1669 = vrot.lane.b32.xlu0 %v3622_v15, %s3121_s30 }
  0xc6   : > { %v3683_v44 = vpop.permute.xlu1 %1523 }
  0xc7   : > { %v3685_v29 = vpop.permute.xlu0 %1521 }
  0xc8   : > { %1693 = vrot.lane.b32.xlu1 %v3567_v36, %s3122_s11  ;;  %v601_v36 = vld [vmem:[%s3366_s24 + $0x4c] sm:$0x1]  ;;  %s4840_s24 = smov 52  }
  0xc9   : > { %1673 = vrot.lane.b32.xlu0 %v1658_v7, %s3121_s30  ;;  %v2848_v51 = vcombine.low %v600_v39, %v601_v36 }
  0xca   : > { %v3690_v34 = vpop.permute.xlu1 %1591 }
  0xcb   : > { %v3692_v45 = vpop.permute.xlu0 %1525  ;;  %v1723_v18 = vshll.u32 %v2848_v51, 16 }
  0xcc   : > { %1697 = vrot.lane.b32.xlu1 %v1616_v16, %s3122_s11 }
  0xcd   : > { %1695 = vrot.lane.b32.xlu0 %v3579_v47, %s3122_s11  ;;  %v1725_v26 = vrot.slane %v1723_v18, 1 }
  0xce   : > { %v3697_v28 = vpop.permute.xlu1 %1595 }
  0xcf   : > { %v3699_v55 = vpop.permute.xlu0 %1593 }
  0xd0   : > { %1712 = vrot.lane.b32.xlu1 %v3592_v21, %s3123_s21  ;;  %v1721_v21 = vshrl.u32 %v2848_v51, 16 }
  0xd1   : > { %1699 = vrot.lane.b32.xlu0 %v1684_v27, %s3122_s11 }
  0xd2   : > { %v3705_v1 = vpop.permute.xlu1 %1617 }
  0xd3   : > { %v3707_v24 = vpop.permute.xlu0 %1597 }
  0xd4   : > { %1716 = vrot.lane.b32.xlu1 %v2846_v54, %s3123_s21  ;;  %v1726_v54 = vor.u32 %v1725_v26, %v1721_v21 }
  0xd5   : > { %1714 = vrot.lane.b32.xlu0 %v3606_v40, %s3123_s21  ;;  %v2799_v40 = vcombine.low %v3247_v5, %v3247_v5 }
  0xd6   : > { %v3712_v47 = vpop.permute.xlu1 %1621 }
  0xd7   : > { %4868 = vst [vmem:[#allocation24_spill] sm:$0xff] %v3712_v47  ;;  %v3714_v16 = vpop.permute.xlu0 %1619 }
  0xd8   : > { %1735 = vrot.lane.b32.xlu1 %v3622_v15, %s3124_s20 }
  0xd9   : > { %1718 = vrot.lane.b32.xlu0 %v2848_v51, %s3123_s21  ;;  %v2801_v51 = vcombine.low %v3276_v20, %v3276_v20 }
  0xda   : > { %v3719_v27 = vpop.permute.xlu1 %1636 }
  0xdb   : > { %v3721_v39 = vpop.permute.xlu0 %1623 }
  0xdc   : > { %4869 = vst [vmem:[#allocation25_spill] sm:$0xff] %v3721_v39  ;;  %1739 = vrot.lane.b32.xlu1 %v1658_v7, %s3124_s20  ;;  %v2800_v7 = vcombine.low %v3254_v9, %v3254_v9 }
  0xdd   : > { %1737 = vrot.lane.b32.xlu0 %v3634_v4, %s3124_s20 }
  0xde   : > { %v3728_v36 = vpop.permute.xlu1 %1640 }
  0xdf   : > { %4870 = vst [vmem:[#allocation26_spill] sm:$0xff] %v3728_v36  ;;  %v3730_v15 = vpop.permute.xlu0 %1638 }
  0xe0   : > { %750 = vrot.lane.b32.xlu1 %v2799_v40, %s3117_s23 }
  0xe1   : > { %1741 = vrot.lane.b32.xlu0 %v1726_v54, %s3124_s20 }
  0xe2   : > { %v3738_v18 = vpop.permute.xlu1 %1659 }
  0xe3   : > { %v3740_v5 = vpop.permute.xlu0 %1642 }
  0xe4   : > { %4871 = vst [vmem:[#allocation27_spill] sm:$0xff] %v3740_v5  ;;  %754 = vrot.lane.b32.xlu1 %v2801_v51, %s3117_s23 }
  0xe5   : > { %752 = vrot.lane.b32.xlu0 %v2800_v7, %s3117_s23 }
  0xe6   : > { %v3744_v4 = vpop.permute.xlu1 %1663 }
  0xe7   : > { %4872 = vst [vmem:[#allocation28_spill] sm:$0xff] %v3744_v4  ;;  %v3746_v21 = vpop.permute.xlu0 %1661 }
  0xe8   : > { %776 = vrot.lane.b32.xlu1 %v3300_v37, %s3118_s25 }
  0xe9   : > { %774 = vrot.lane.b32.xlu0 %v3314_v46, %s3118_s25  ;;  %v4875_v46 = vrot.slane %v3243_v3, 1  ;;  %v2802_v3 = vcombine.low %v3258_v11, %v3258_v11 }
  0xea   : > { %v3752_v20 = vpop.permute.xlu1 %1685 }
  0xeb   : > { %v3754_v9 = vpop.permute.xlu0 %1665 }
  0xec   : > { %4873 = vst [vmem:[#allocation29_spill] sm:$0xff] %v3754_v9  ;;  %780 = vrot.lane.b32.xlu1 %v3322_v53, %s3118_s25 }
  0xed   : > { %778 = vrot.lane.b32.xlu0 %v3309_v42, %s3118_s25 }
  0xee   : > { %v3760_v26 = vpop.permute.xlu1 %1391 }
  0xef   : > { %4874 = vst [vmem:[#allocation30_spill] sm:$0xff] %v3760_v26  ;;  %v3762_v54 = vpop.permute.xlu0 %1687 }
  0xf0   : > { %793 = vrot.lane.b32.xlu1 %v3353_v62, %s3119_s26 }
  0xf1   : > { %791 = vrot.lane.b32.xlu0 %v4875_v46, %s3119_s26 }
  0xf2   : > { %v3769_v4 = vpop.permute.xlu1 %1689 }
  0xf3   : > { %4876 = vst [vmem:[#allocation31_spill] sm:$0xff] %v3769_v4  ;;  %v3771_v9 = vpop.permute.xlu0 %1393 }
  0xf4   : > { %4877 = vst [vmem:[#allocation32_spill] sm:$0xff] %v3771_v9  ;;  %797 = vrot.lane.b32.xlu1 %v3378_v10, %s3119_s26 }
  0xf5   : > { %795 = vrot.lane.b32.xlu0 %v3345_v60, %s3119_s26 }
  0xf6   : > { %v3777_v26 = vpop.permute.xlu1 %1704 }
  0xf7   : > { %v3779_v5 = vpop.permute.xlu0 %1691 }
  0xf8   : > { %4878 = vst [vmem:[#allocation33_spill] sm:$0xff] %v3779_v5  ;;  %812 = vrot.lane.b32.xlu1 %v2800_v7, %s3120_s27 }
  0xf9   : > { %810 = vrot.lane.b32.xlu0 %v2799_v40, %s3120_s27 }
  0xfa   : > { %v3785_v46 = vpop.permute.xlu1 %1395 }
  0xfb   : > { %4879 = vst [vmem:[#allocation34_spill] sm:$0xff] %v3785_v46  ;;  %v3787_v9 = vpop.permute.xlu0 %1706 }
  0xfc   : > { %816 = vrot.lane.b32.xlu1 %v2802_v3, %s3120_s27 }
  0xfd   : > { %814 = vrot.lane.b32.xlu0 %v2801_v51, %s3120_s27  ;;  %v3808_v51 = vld [vmem:[%s3327_s28 + $0xc] sm:$0x1] }
  0xfe   : > { %v3791_v5 = vpop.permute.xlu1 %1487  ;;  %4884 = vst [vmem:[#allocation39_spill] sm:$0xff] %v3808_v51 }
  0xff   : > { %4880 = vst [vmem:[#allocation35_spill] sm:$0xff] %v3791_v5  ;;  %v3793_v4 = vpop.permute.xlu0 %1397 }
 0x100   : > { %4881 = vst [vmem:[#allocation36_spill] sm:$0xff] %v3793_v4  ;;  %838 = vrot.lane.b32.xlu1 %v3309_v42, %s3121_s30  ;;  %v563_v4 = vld [vmem:[%s3327_s28 + $0x4] sm:$0x1]  ;;  %v3816_v42 = vld [vmem:[%s3327_s28 + $0x8] sm:$0xf] }
 0x101   : > { %836 = vrot.lane.b32.xlu0 %v3300_v37, %s3121_s30  ;;  %4886 = vst [vmem:[#allocation41_spill] sm:$0xff] %v3816_v42  ;;  %v562_v37 = vld [vmem:[%s3327_s28] sm:$0xf] }
 0x102   : > { %v3799_v11 = vpop.permute.xlu1 %1708 }
 0x103   : > { %4882 = vst [vmem:[#allocation37_spill] sm:$0xff] %v3799_v11  ;;  %v3801_v40 = vpop.permute.xlu0 %1489 }
 0x104   : > { %4883 = vst [vmem:[#allocation38_spill] sm:$0xff] %v3801_v40  ;;  %842 = vrot.lane.b32.xlu1 %v3318_v50, %s3121_s30  ;;  %v3823_v40 = vcombine.low %v3816_v42, %v3808_v51  ;;  %v2809_v51 = vcombine.low %v562_v37, %v562_v37 }
 0x105   : > { %840 = vrot.lane.b32.xlu0 %v3322_v53, %s3121_s30  ;;  %v2817_v53 = vcombine.low %v562_v37, %v563_v4 }
 0x106   : > { %v3810_v7 = vpop.permute.xlu1 %1727 }
 0x107   : > { %v3813_v5 = vpop.permute.xlu0 %1710  ;;  %v936_v36 = vshll.u32 %v2817_v53, 16  ;;  %v934_v37 = vshrl.u32 %v2817_v53, 16 }
 0x108   : > { %4885 = vst [vmem:[#allocation40_spill] sm:$0xff] %v3813_v5  ;;  %855 = vrot.lane.b32.xlu1 %v3345_v60, %s3122_s11  ;;  %v3835_v5 = vcombine.low %v3816_v42, %v3816_v42  ;;  %v943_v60 = vshll.u32 %v3823_v40, 16  ;;  %v941_v42 = vshrl.u32 %v3823_v40, 16 }
 0x109   : > { %853 = vrot.lane.b32.xlu0 %v3353_v62, %s3122_s11 }
 0x10a   : > { %v3827_v46 = vpop.permute.xlu1 %1491  ;;  %v945_v39 = vrot.slane %v943_v60, 1 }
 0x10b   : > { %4887 = vst [vmem:[#allocation42_spill] sm:$0xff] %v3827_v46  ;;  %v3829_v11 = vpop.permute.xlu0 %1729  ;;  %v3848_v46 = vcombine.low %v3360_v2, %v3360_v2 }
 0x10c   : > { %859 = vrot.lane.b32.xlu1 %v3370_v6, %s3122_s11  ;;  %v3862_v2 = vor.u32 %v945_v39, %v941_v42 }
 0x10d   : > { %857 = vrot.lane.b32.xlu0 %v3378_v10, %s3122_s11  ;;  %v3854_v10 = vcombine.low %v3339_v58, %v3339_v58 }
 0x10e   : > { %v3840_v62 = vpop.permute.xlu1 %1527 }
 0x10f   : > { %4888 = vst [vmem:[#allocation43_spill] sm:$0xff] %v3840_v62  ;;  %v3842_v4 = vpop.permute.xlu0 %1493  ;;  %v938_v62 = vrot.slane %v936_v36, 1  ;;  %v3874_v36 = vcombine.low %v3297_v35, %v3297_v35  ;;  %v4837_v35 = vrot.slane %v3823_v40, 1 }
 0x110   : > { %4889 = vst [vmem:[#allocation44_spill] sm:$0xff] %v3842_v4  ;;  %895 = vrot.lane.b32.xlu1 %v3835_v5, %s3123_s21 }
 0x111   : > { %893 = vrot.lane.b32.xlu0 %v2809_v51, %s3123_s21  ;;  %v939_v60 = vor.u32 %v938_v62, %v934_v37 }
 0x112   : > { %v3856_v47 = vpop.permute.xlu1 %1731 }
 0x113   : > { %4890 = vst [vmem:[#allocation45_spill] sm:$0xff] %v3856_v47  ;;  %v3858_v4 = vpop.permute.xlu0 %1529 }
 0x114   : > { %4891 = vst [vmem:[#allocation46_spill] sm:$0xff] %v3858_v4  ;;  %899 = vrot.lane.b32.xlu1 %v3848_v46, %s3123_s21 }
 0x115   : > { %897 = vrot.lane.b32.xlu0 %v3854_v10, %s3123_s21 }
 0x116   : > { %v3866_v51 = vpop.permute.xlu1 %1531 }
 0x117   : > { %4892 = vst [vmem:[#allocation47_spill] sm:$0xff] %v3866_v51  ;;  %v3868_v58 = vpop.permute.xlu0 %1733 }
 0x118   : > { %991 = vrot.lane.b32.xlu1 %v3862_v2, %s3124_s20 }
 0x119   : > { %989 = vrot.lane.b32.xlu0 %v939_v60, %s3124_s20  ;;  %v1005_v60 = vrot.slane %v2817_v53, 1 }
 0x11a   : > { %v3877_v39 = vpop.permute.xlu1 %1599 }
 0x11b   : > { %4893 = vst [vmem:[#allocation48_spill] sm:$0xff] %v3877_v39  ;;  %v3879_v42 = vpop.permute.xlu0 %1533 }
 0x11c   : > { %4894 = vst [vmem:[#allocation49_spill] sm:$0xff] %v3879_v42  ;;  %758 = vrot.lane.b32.xlu1 %v3874_v36, %s3117_s23  ;;  %v558_v42 = vld [vmem:[%s3234_s29 + $0x40] sm:$0xf] }
 0x11d   : > { %756 = vrot.lane.b32.xlu0 %v2802_v3, %s3117_s23  ;;  %v3901_v3 = vcombine.low %v558_v42, %v558_v42 }
 0x11e   : > { %v3884_v62 = vpop.permute.xlu1 %1603 }
 0x11f   : > { %4895 = vst [vmem:[#allocation50_spill] sm:$0xff] %v3884_v62  ;;  %v3886_v37 = vpop.permute.xlu0 %1601  ;;  %v2804_v62 = vcombine.low %v3292_v30, %v3292_v30  ;;  %v4838_v30 = vrot.slane %v3381_v13, 1 }
 0x120   : > { %4896 = vst [vmem:[#allocation51_spill] sm:$0xff] %v3886_v37  ;;  %995 = vrot.lane.b32.xlu1 %v3419_v48, %s3124_s20  ;;  %v559_v37 = vld [vmem:[%s3234_s29 + $0x44] sm:$0x1] }
 0x121   : > { %993 = vrot.lane.b32.xlu0 %v3406_v31, %s3124_s20 }
 0x122   : > { %v3894_v39 = vpop.permute.xlu1 %1625 }
 0x123   : > { %4897 = vst [vmem:[#allocation52_spill] sm:$0xff] %v3894_v39  ;;  %v3896_v51 = vpop.permute.xlu0 %1605  ;;  %v3911_v39 = vcombine.low %v558_v42, %v559_v37  ;;  %v1007_v42 = vrot.slane %v3348_v61, 1 }
 0x124   : > { %4898 = vst [vmem:[#allocation53_spill] sm:$0xff] %v3896_v51  ;;  %1015 = vrot.lane.b32.xlu1 %v4837_v35, %s3125_s12 }
 0x125   : > { %1013 = vrot.lane.b32.xlu0 %v1005_v60, %s3125_s12  ;;  %v770_v60 = vshll.u32 %v3911_v39, 16 }
 0x126   : > { %v3907_v4 = vpop.permute.xlu1 %1629 }
 0x127   : > { %4899 = vst [vmem:[#allocation54_spill] sm:$0xff] %v3907_v4  ;;  %v3909_v53 = vpop.permute.xlu0 %1627 }
 0x128   : > { %4900 = vst [vmem:[#allocation55_spill] sm:$0xff] %v3909_v53  ;;  %762 = vrot.lane.b32.xlu1 %v3901_v3, %s3117_s23 }
 0x129   : > { %760 = vrot.lane.b32.xlu0 %v2804_v62, %s3117_s23  ;;  %s3128_s23 = smov 56  }
 0x12a   : > { %v3916_v35 = vpop.permute.xlu1 %1644 }
 0x12b   : > { %4901 = vst [vmem:[#allocation56_spill] sm:$0xff] %v3916_v35  ;;  %v3918_v51 = vpop.permute.xlu0 %1631  ;;  %v772_v35 = vrot.slane %v770_v60, 1 }
 0x12c   : > { %4902 = vst [vmem:[#allocation57_spill] sm:$0xff] %v3918_v51  ;;  %784 = vrot.lane.b32.xlu1 %v3336_v57, %s3118_s25  ;;  %v768_v51 = vshrl.u32 %v3911_v39, 16 }
 0x12d   : > { %782 = vrot.lane.b32.xlu0 %v3318_v50, %s3118_s25 }
 0x12e   : > { %v3927_v37 = vpop.permute.xlu1 %1648  ;;  %v3942_v50 = vor.u32 %v772_v35, %v768_v51 }
 0x12f   : > { %4903 = vst [vmem:[#allocation58_spill] sm:$0xff] %v3927_v37  ;;  %v3929_v4 = vpop.permute.xlu0 %1646 }
 0x130   : > { %1019 = vrot.lane.b32.xlu1 %v4838_v30, %s3125_s12 }
 0x131   : > { %1017 = vrot.lane.b32.xlu0 %v1007_v42, %s3125_s12 }
 0x132   : > { %v3936_v53 = vpop.permute.xlu1 %1667 }
 0x133   : > { %v3938_v47 = vpop.permute.xlu0 %1650 }
 0x134   : > { %4904 = vst [vmem:[#allocation59_spill] sm:$0xff] %v3938_v47  ;;  %1034 = vrot.lane.b32.xlu1 %v3854_v10, %s4842_s22 }
 0x135   : > { %1032 = vrot.lane.b32.xlu0 %v3835_v5, %s4842_s22  ;;  %v3962_v5 = vcombine.low %v3356_v63, %v3356_v63  ;;  %v4839_v63 = vrot.slane %v3911_v39, 1 }
 0x136   : > { %v3946_v37 = vpop.permute.xlu1 %1671 }
 0x137   : > { %4905 = vst [vmem:[#allocation60_spill] sm:$0xff] %v3946_v37  ;;  %v3948_v30 = vpop.permute.xlu0 %1669 }
 0x138   : > { %788 = vrot.lane.b32.xlu1 %v3942_v50, %s3118_s25 }
 0x139   : > { %786 = vrot.lane.b32.xlu0 %v3331_v56, %s3118_s25 }
 0x13a   : > { %v3954_v60 = vpop.permute.xlu1 %1693 }
 0x13b   : > { %v3956_v47 = vpop.permute.xlu0 %1673 }
 0x13c   : > { %4906 = vst [vmem:[#allocation61_spill] sm:$0xff] %v3956_v47  ;;  %801 = vrot.lane.b32.xlu1 %v3394_v23, %s3119_s26 }
 0x13d   : > { %799 = vrot.lane.b32.xlu0 %v3370_v6, %s3119_s26 }
 0x13e   : > { %v3966_v51 = vpop.permute.xlu1 %1697 }
 0x13f   : > { %4907 = vst [vmem:[#allocation62_spill] sm:$0xff] %v3966_v51  ;;  %v3968_v35 = vpop.permute.xlu0 %1695 }
 0x140   : > { %1038 = vrot.lane.b32.xlu1 %v3962_v5, %s4842_s22 }
 0x141   : > { %1036 = vrot.lane.b32.xlu0 %v3848_v46, %s4842_s22  ;;  %s3130_s22 = smov 64  }
 0x142   : > { %v3974_v37 = vpop.permute.xlu1 %1712 }
 0x143   : > { %4908 = vst [vmem:[#allocation63_spill] sm:$0xff] %v3974_v37  ;;  %v3976_v47 = vpop.permute.xlu0 %1699 }
 0x144   : > { %4909 = vst [vmem:[#allocation64_spill] sm:$0xff] %v3976_v47  ;;  %1060 = vrot.lane.b32.xlu1 %v3406_v31, %s4840_s24 }
 0x145   : > { %1058 = vrot.lane.b32.xlu0 %v3862_v2, %s4840_s24 }
 0x146   : > { %v3983_v6 = vpop.permute.xlu1 %1716 }
 0x147   : > { %4910 = vst [vmem:[#allocation65_spill] sm:$0xff] %v3983_v6  ;;  %v3985_v51 = vpop.permute.xlu0 %1714 }
 0x148   : > { %4911 = vst [vmem:[#allocation66_spill] sm:$0xff] %v3985_v51  ;;  %805 = vrot.lane.b32.xlu1 %v4839_v63, %s3119_s26  ;;  %v560_v63 = vld [vmem:[%s3234_s29 + $0x48] sm:$0xf] }
 0x149   : > { %803 = vrot.lane.b32.xlu0 %v3386_v17, %s3119_s26 }
 0x14a   : > { %v3992_v47 = vpop.permute.xlu1 %1735 }
 0x14b   : > { %4912 = vst [vmem:[#allocation67_spill] sm:$0xff] %v3992_v47  ;;  %v3994_v31 = vpop.permute.xlu0 %1718 }
 0x14c   : > { %4913 = vst [vmem:[#allocation68_spill] sm:$0xff] %v3994_v31  ;;  %820 = vrot.lane.b32.xlu1 %v2804_v62, %s3120_s27  ;;  %v2807_v62 = vcombine.low %v560_v63, %v560_v63 }
 0x14d   : > { %818 = vrot.lane.b32.xlu0 %v3874_v36, %s3120_s27  ;;  %v4917_v36 = vrot.slane %v3823_v40, 1 }
 0x14e   : > { %v3999_v2 = vpop.permute.xlu1 %1739 }
 0x14f   : > { %4914 = vst [vmem:[#allocation69_spill] sm:$0xff] %v3999_v2  ;;  %v4001_v6 = vpop.permute.xlu0 %1737  ;;  %v561_v2 = vld [vmem:[%s3234_s29 + $0x4c] sm:$0x1] }
 0x150   : > { %4915 = vst [vmem:[#allocation70_spill] sm:$0xff] %v4001_v6  ;;  %1064 = vrot.lane.b32.xlu1 %v3415_v43, %s4840_s24  ;;  %v4021_v37 = vcombine.low %v560_v63, %v561_v2 }
 0x151   : > { %1062 = vrot.lane.b32.xlu0 %v3419_v48, %s4840_s24  ;;  %v3045_v48 = vld [vmem:[%s4811_s3] sm:$0xff]   ;;  %s3129_s24 = smov 60  }
 0x152   : > { %v4008_v51 = vpop.permute.xlu1 %750  ;;  %2892 = vmatprep.subr.bf16.mxu0 %v3045_v48  ;;  %v832_v2 = vshll.u32 %v4021_v37, 16 }
 0x153   : > { %v4010_v47 = vpop.permute.xlu0 %1741  ;;  %2893 = vmatpush3.bf16.msra.mxu0 %v3045_v48 }
 0x154   : > { %4916 = vst [vmem:[#allocation71_spill] sm:$0xff] %v4010_v47  ;;  %1077 = vrot.lane.b32.xlu1 %v1007_v42, %s3128_s23  ;;  %v4918_v47 = vrot.slane %v3374_v8, 1 }
 0x155   : > { %1075 = vrot.lane.b32.xlu0 %v4917_v36, %s3128_s23 }
 0x156   : > { %v4017_v31 = vpop.permute.xlu1 %754 }
 0x157   : > { %v4019_v6 = vpop.permute.xlu0 %752 }
 0x158   : > { %824 = vrot.lane.b32.xlu1 %v2807_v62, %s3120_s27  ;;  %v3046_v62 = vld [vmem:[%s4811_s3 + $0x8] sm:$0xff]  }
 0x159   : > { %822 = vrot.lane.b32.xlu0 %v3901_v3, %s3120_s27  ;;  %v1746_v3 = vsel %vm1110_vm0, %v3381_v13, %v3654_v41  ;;  %2894 = vmatprep.subr.bf16.mxu0 %v3046_v62 }
 0x15a   : > { %v4029_v42 = vpop.permute.xlu1 %776  ;;  %v1762_v48 = vsel %vm1135_vm1, %v1746_v3, %v3671_v52  ;;  %2895 = vmatpush3.bf16.msra.mxu0 %v3046_v62  ;;  %v3047_v52 = vld [vmem:[%s4811_s3 + $0x10] sm:$0xff]  }
 0x15b   : > { %v4031_v40 = vpop.permute.xlu0 %774  ;;  %v1778_v41 = vsel %vm1152_vm2, %v1762_v48, %v3685_v29  ;;  %v4919_v29 = vrot.slane %v3381_v13, 1  ;;  %2896 = vmatprep.subr.bf16.mxu0 %v3047_v52 }
 0x15c   : > { %846 = vrot.lane.b32.xlu1 %v3331_v56, %s3121_s30  ;;  %v1744_v56 = vsel %vm1110_vm0, %v3348_v61, %v3644_v32  ;;  %v830_v61 = vshrl.u32 %v4021_v37, 16  ;;  %v834_v32 = vrot.slane %v832_v2, 1 }
 0x15d   : > { %844 = vrot.lane.b32.xlu0 %v3336_v57, %s3121_s30  ;;  %v1760_v57 = vsel %vm1135_vm1, %v1744_v56, %v3660_v49  ;;  %v1794_v49 = vsel %vm1169_vm3, %v1778_v41, %v3699_v55 }
 0x15e   : > { %v4045_v36 = vpop.permute.xlu1 %780  ;;  %v1776_v62 = vsel %vm1152_vm2, %v1760_v57, %v3675_v59  ;;  %v1810_v2 = vsel %vm1186_vm4, %v1794_v49, %v3714_v16  ;;  %2897 = vmatpush3.bf16.msra.mxu0 %v3047_v52  ;;  %v835_v16 = vor.u32 %v834_v32, %v830_v61  ;;  %v3054_v49 = vld [vmem:[%s3234_s29 + $0x10] sm:$0xf] }
 0x15f   : > { %v4052_v63 = vpop.permute.xlu0 %778  ;;  %v1826_v55 = vsel %vm1203_vm5, %v1810_v2, %v3730_v15  ;;  %v4920_v2 = vld [vmem:[#allocation11_spill] sm:$0xff] }
 0x160   : > { %1081 = vrot.lane.b32.xlu1 %v4918_v47, %s3128_s23  ;;  %v1792_v47 = vsel %vm1169_vm3, %v1776_v62, %v3690_v34  ;;  %v1842_v34 = vsel %vm1220_vm6, %v1826_v55, %v3746_v21  ;;  %v4143_v62 = vld [vmem:[%s3327_s28 + $0x28] sm:$0xf]  ;;  %v4921_v55 = vld [vmem:[#allocation24_spill] sm:$0xff] }
 0x161   : > { %1079 = vrot.lane.b32.xlu0 %v4919_v29, %s3128_s23  ;;  %v1808_v59 = vsel %vm1186_vm4, %v1792_v47, %v3705_v1  ;;  %v3048_v1 = vld [vmem:[%s4811_s3 + $0x18] sm:$0xff]  }
 0x162   : > { %v4076_v3 = vpop.permute.xlu1 %793  ;;  %v1824_v13 = vsel %vm1203_vm5, %v1808_v59, %v3719_v27  ;;  %v1858_v27 = vsel %vm1237_vm7, %v1842_v34, %v3762_v54  ;;  %2898 = vmatprep.subr.bf16.mxu0 %v3048_v1  ;;  %v3055_v47 = vld [vmem:[%s3234_s29 + $0x18] sm:$0xf] }
 0x163   : > { %v4082_v56 = vpop.permute.xlu0 %791  ;;  %v1840_v15 = vsel %vm1220_vm6, %v1824_v13, %v3738_v18  ;;  %2899 = vmatpush3.bf16.msra.mxu0 %v3048_v1  ;;  %v1122_v59 = vsel %vm1110_vm0, %v3055_v47, %v4920_v2  ;;  %v4923_v1 = vld [vmem:[#allocation12_spill] sm:$0xff] }
 0x164   : > { %1096 = vrot.lane.b32.xlu1 %v3848_v46, %s3129_s24  ;;  %v1856_v21 = vsel %vm1237_vm7, %v1840_v15, %v3752_v20  ;;  %v1874_v46 = vsel %vm1254_vm8, %v1858_v27, %v3787_v9  ;;  %v3049_v20 = vld [vmem:[%s4811_s3 + $0x20] sm:$0xff]   ;;  %v4925_v27 = vld [vmem:[#allocation27_spill] sm:$0xff]  ;;  %v4933_v2 = vld [vmem:[#allocation40_spill] sm:$0xff] }
 0x165   : > { %1094 = vrot.lane.b32.xlu0 %v3854_v10, %s3129_s24  ;;  %v1872_v18 = vsel %vm1254_vm8, %v1856_v21, %v3777_v26  ;;  %v1890_v57 = vsel %vm1271_vm9, %v1874_v46, %v3829_v11  ;;  %v3052_v9 = vld [vmem:[%s3234_s29] sm:$0xf]  ;;  %v1748_v11 = vsel %vm1110_vm0, %v3374_v8, %v3652_v19  ;;  %2900 = vmatprep.subr.bf16.mxu0 %v3049_v20 }
 0x166   : > { %v4103_v48 = vpop.permute.xlu1 %797  ;;  %v1888_v10 = vsel %vm1271_vm9, %v1872_v18, %v3810_v7  ;;  %v1113_v26 = vsel %vm1110_vm0, %v3052_v9, %v3573_v33  ;;  %v1750_v7 = vsel %vm1110_vm0, %v3397_v25, %v3662_v0  ;;  %v1911_v41 = vshll.u32 %v1890_v57, 16  ;;  %v4924_v15 = vld [vmem:[#allocation26_spill] sm:$0xff] }
 0x167   : > { %v4109_v54 = vpop.permute.xlu0 %795  ;;  %v1766_v32 = vsel %vm1135_vm1, %v1750_v7, %v3677_v38  ;;  %v1905_v33 = vshll.u32 %v1888_v10, 16  ;;  %2901 = vmatpush3.bf16.msra.mxu0 %v3049_v20  ;;  %v3050_v38 = vld [vmem:[%s4811_s3 + $0x28] sm:$0xff]   ;;  %v4926_v20 = vld [vmem:[#allocation28_spill] sm:$0xff]  ;;  %v1909_v7 = vshrl.u32 %v1890_v57, 16  ;;  %v4931_v57 = vld [vmem:[#allocation18_spill] sm:$0xff] }
 0x168   : > { %850 = vrot.lane.b32.xlu1 %v835_v16, %s3121_s30  ;;  %v1782_v0 = vsel %vm1152_vm2, %v1766_v32, %v3692_v45  ;;  %v1137_v45 = vsel %vm1135_vm1, %v1113_v26, %v3563_v22  ;;  %v1913_v22 = vrot.slane %v1911_v41, 1  ;;  %2902 = vmatprep.subr.bf16.mxu0 %v3050_v38  ;;  %v4927_v26 = vld [vmem:[#allocation29_spill] sm:$0xff]  ;;  %v3051_v41 = vld [vmem:[%s4811_s3 + $0x30] sm:$0x3f]  }
 0x169   : > { %848 = vrot.lane.b32.xlu0 %v3942_v50, %s3121_s30  ;;  %v1764_v50 = vsel %vm1135_vm1, %v1748_v11, %v3668_v12  ;;  %v4147_v12 = vcombine.low %v4143_v62, %v4143_v62  ;;  %v1798_v29 = vsel %vm1169_vm3, %v1782_v0, %v3707_v24  ;;  %v1907_v46 = vrot.slane %v1905_v33, 1  ;;  %v4929_v33 = vld [vmem:[#allocation31_spill] sm:$0xff]  ;;  %v4930_v0 = vld [vmem:[#allocation33_spill] sm:$0xff] }
 0x16a   : > { %v4128_v61 = vpop.permute.xlu1 %812  ;;  %v1780_v19 = vsel %vm1152_vm2, %v1764_v50, %v3683_v44  ;;  %v1119_v44 = vsel %vm1110_vm0, %v3054_v49, %v3571_v14  ;;  %v4922_v14 = vld [vmem:[#allocation25_spill] sm:$0xff]  ;;  %v1903_v49 = vshrl.u32 %v1888_v10, 16 }
 0x16b   : > { %v4134_v52 = vpop.permute.xlu0 %810  ;;  %v1814_v34 = vsel %vm1186_vm4, %v1798_v29, %v4922_v14  ;;  %2903 = vmatpush3.bf16.msra.mxu0 %v3050_v38  ;;  %v4928_v50 = vld [vmem:[#allocation17_spill] sm:$0xff] }
 0x16c   : > { %863 = vrot.lane.b32.xlu1 %v3386_v17, %s3122_s11  ;;  %v1796_v17 = vsel %vm1169_vm3, %v1780_v19, %v3697_v28  ;;  %v3056_v28 = vld [vmem:[%s3234_s29 + $0x8] sm:$0xf]  ;;  %v1830_v21 = vsel %vm1203_vm5, %v1814_v34, %v4925_v27  ;;  %v1143_v32 = vsel %vm1135_vm1, %v1122_v59, %v4928_v50  ;;  %v4932_v29 = vld [vmem:[#allocation37_spill] sm:$0xff]  ;;  %v1914_v59 = vor.u32 %v1913_v22, %v1909_v7 }
 0x16d   : > { %861 = vrot.lane.b32.xlu0 %v3394_v23, %s3122_s11  ;;  %v1812_v13 = vsel %vm1186_vm4, %v1796_v17, %v4921_v55  ;;  %v1116_v24 = vsel %vm1110_vm0, %v3056_v28, %v4923_v1  ;;  %v1846_v11 = vsel %vm1220_vm6, %v1830_v21, %v4927_v26  ;;  %v1141_v17 = vsel %vm1135_vm1, %v1119_v44, %v4931_v57  ;;  %v4934_v1 = vld [vmem:[#allocation45_spill] sm:$0xff]  ;;  %v4935_v27 = vld [vmem:[#allocation23_spill] sm:$0xff]  ;;  %v4936_v21 = vld [vmem:[#allocation10_spill] sm:$0xff] }
 0x16e   : > { %v817_v16 = vpop.permute.xlu1 %816  ;;  %v1828_v23 = vsel %vm1203_vm5, %v1812_v13, %v4924_v15  ;;  %v1862_v38 = vsel %vm1237_vm7, %v1846_v11, %v4930_v0  ;;  %2924 = vmatprep.subr.msk.bf16.mxu0 %vm2079_vm10, %v3051_v41  ;;  %v1908_v14 = vor.u32 %v1907_v46, %v1903_v49  ;;  %v1160_v34 = vsel %vm1152_vm2, %v1143_v32, %v4017_v31 }
 0x16f   : > { %v815_v18 = vpop.permute.xlu0 %814  ;;  %v1844_v9 = vsel %vm1220_vm6, %v1828_v23, %v4926_v20  ;;  %v1878_v55 = vsel %vm1254_vm8, %v1862_v38, %v4933_v2  ;;  %v2081_v44 = vsel %vm2079_vm10, %v3051_v41, 0  ;;  %v1158_v23 = vsel %vm1152_vm2, %v1141_v17, %v4019_v6  ;;  %v4259_v2 = vld [vmem:[%s3327_s28 + $0x38] sm:$0xf] }
 0x170   : > { %1100 = vrot.lane.b32.xlu1 %v4147_v12, %s3129_s24  ;;  %v1860_v19 = vsel %vm1237_vm7, %v1844_v9, %v4929_v33  ;;  %v1894_v10 = vsel %vm1271_vm9, %v1878_v55, %v3868_v58  ;;  %v1177_v22 = vsel %vm1169_vm3, %v1160_v34, %v4045_v36  ;;  %v852_v58 = vrot.slane %v4021_v37, 1  ;;  %2905 = vmatpush3.bf16.msra.mxu0 %v2081_v44 }
 0x171   : > { %1098 = vrot.lane.b32.xlu0 %v3962_v5, %s3129_s24  ;;  %v1876_v47 = vsel %vm1254_vm8, %v1860_v19, %v4932_v29  ;;  %v1154_v31 = vsel %vm1152_vm2, %v1137_v45, %v4935_v27  ;;  %v1139_v46 = vsel %vm1135_vm1, %v1116_v24, %v4936_v21  ;;  %v1175_v20 = vsel %vm1169_vm3, %v1158_v23, %v4052_v63  ;;  %v4938_v23 = vld [vmem:[#allocation2_spill] sm:$0xff] }
 0x172   : > { %v839_v13 = vpop.permute.xlu1 %838  ;;  %v1892_v15 = vsel %vm1271_vm9, %v1876_v47, %v4934_v1  ;;  %v1194_v6 = vsel %vm1186_vm4, %v1177_v22, %v4103_v48  ;;  %v1923_v36 = vshll.u32 %v1894_v10, 16  ;;  %v1156_v9 = vsel %vm1152_vm2, %v1139_v46, %v4008_v51  ;;  %v3059_v22 = vld [vmem:[%s3234_s29 + $0x28] sm:$0xf]  ;;  %v4940_v21 = vld [vmem:[#allocation14_spill] sm:$0xff] }
 0x173   : > { %v837_v28 = vpop.permute.xlu0 %836  ;;  %v1192_v37 = vsel %vm1186_vm4, %v1175_v20, %v4109_v54  ;;  %v1211_v45 = vsel %vm1203_vm5, %v1194_v6, %v817_v16  ;;  %v1917_v11 = vshll.u32 %v1892_v15, 16  ;;  %v1173_v24 = vsel %vm1169_vm3, %v1156_v9, %v4029_v42  ;;  %v3061_v20 = vld [vmem:[%s3234_s29 + $0x38] sm:$0xf]  ;;  %v4941_v6 = vld [vmem:[#allocation15_spill] sm:$0xff]  ;;  %v3062_v9 = vld [vmem:[%s3234_s29 + $0x30] sm:$0xf] }
 0x174   : > { %1953 = vrot.lane.b32.xlu1 %v1914_v59, %s3130_s22  ;;  %v1209_v63 = vsel %vm1203_vm5, %v1192_v37, %v815_v18  ;;  %v1171_v41 = vsel %vm1169_vm3, %v1154_v31, %v4031_v40  ;;  %v1190_v51 = vsel %vm1186_vm4, %v1173_v24, %v4076_v3  ;;  %v4937_v18 = vrot.slane %v3911_v39, 1  ;;  %v3060_v31 = vld [vmem:[%s3234_s29 + $0x20] sm:$0xf]  ;;  %v4942_v37 = vld [vmem:[#allocation16_spill] sm:$0xff]  ;;  %s2783_s29 = sshll.u32 %s5007_s14, 3 }
 0x175   : > { %1951 = vrot.lane.b32.xlu0 %v1908_v14, %s3130_s22  ;;  %v1188_v16 = vsel %vm1186_vm4, %v1171_v41, %v4082_v56  ;;  %v1207_v42 = vsel %vm1203_vm5, %v1190_v51, %v4128_v61  ;;  %v1925_v50 = vrot.slane %v1923_v36, 1  ;;  %v1919_v33 = vrot.slane %v1917_v11, 1  ;;  %v4944_v24 = vld [vmem:[#allocation20_spill] sm:$0xff]  ;;  %v4946_v51 = vld [vmem:[#allocation22_spill] sm:$0xff] }
 0x176   : > { %v843_v26 = vpop.permute.xlu1 %842  ;;  %v1205_v40 = vsel %vm1203_vm5, %v1188_v16, %v4134_v52  ;;  %v1224_v3 = vsel %vm1220_vm6, %v1207_v42, %v839_v13  ;;  %v1921_v61 = vshrl.u32 %v1894_v10, 16  ;;  %v1915_v39 = vshrl.u32 %v1892_v15, 16  ;;  %v4948_v16 = vld [vmem:[#allocation3_spill] sm:$0xff] }
 0x177   : > { %v1228_v48 = vsel %vm1220_vm6, %v1211_v45, %v843_v26  ;;  %v841_v7 = vpop.permute.xlu0 %840  ;;  %v1222_v19 = vsel %vm1220_vm6, %v1205_v40, %v837_v28  ;;  %v4263_v55 = vcombine.low %v4259_v2, %v4259_v2  ;;  %v1125_v46 = vsel %vm1110_vm0, %v3060_v31, %v4940_v21  ;;  %v4943_v26 = vld [vmem:[#allocation19_spill] sm:$0xff] }
 0x178   : > { %v1226_v54 = vsel %vm1220_vm6, %v1209_v63, %v841_v7  ;;  %867 = vrot.lane.b32.xlu1 %v852_v58, %s3122_s11  ;;  %v1926_v52 = vor.u32 %v1925_v50, %v1921_v61  ;;  %v1920_v57 = vor.u32 %v1919_v33, %v1915_v39  ;;  %v4939_v58 = vld [vmem:[#allocation13_spill] sm:$0xff]  ;;  %v1134_v36 = vsel %vm1110_vm0, %v3061_v20, %v4941_v6  ;;  %v4950_v50 = vld [vmem:[#allocation4_spill] sm:$0xff]  ;;  %v4951_v33 = vld [vmem:[#allocation34_spill] sm:$0xff] }
 0x179   : > { %865 = vrot.lane.b32.xlu0 %v4937_v18, %s3122_s11  ;;  %v1128_v27 = vsel %vm1110_vm0, %v3059_v22, %v4939_v58  ;;  %v1131_v45 = vsel %vm1110_vm0, %v3062_v9, %v4942_v37  ;;  %v4305_v63 = vsel %vm1135_vm1, %v1125_v46, %v4944_v24  ;;  %v4949_v18 = vld [vmem:[#allocation32_spill] sm:$0xff]  ;;  %v4954_v39 = vld [vmem:[#allocation7_spill] sm:$0xff]  ;;  %v4962_v58 = vld [vmem:[#allocation46_spill] sm:$0xff]  ;;  %v1012_v21 = vrot.slane %v4950_v50, 1  ;;  %s4736_s11 = sadd.s32 %s2783_s29, %s5013_s13 }
 0x17a   : > { %v856_v32 = vpop.permute.xlu1 %855  ;;  %v4301_v11 = vsel %vm1135_vm1, %v1128_v27, %v4943_v26  ;;  %v1754_v40 = vsel %vm1110_vm0, %v4950_v50, %v4949_v18  ;;  %v1011_v46 = vrot.slane %v4948_v16, 1  ;;  %v4963_v20 = vld [vmem:[#allocation47_spill] sm:$0xff]  ;;  %v4965_v24 = vld [vmem:[#allocation49_spill] sm:$0xff] }
 0x17b   : > { %v1241_v56 = vsel %vm1237_vm7, %v1224_v3, %v856_v32  ;;  %v854_v0 = vpop.permute.xlu0 %853 }
 0x17c   : > { %v1239_v38 = vsel %vm1237_vm7, %v1222_v19, %v854_v0  ;;  %903 = vrot.lane.b32.xlu1 %v4147_v12, %s3123_s21  ;;  %v4952_v19 = vld [vmem:[#allocation6_spill] sm:$0xff]  ;;  %v4953_v0 = vld [vmem:[#allocation35_spill] sm:$0xff] }
 0x17d   : > { %901 = vrot.lane.b32.xlu0 %v3962_v5, %s3123_s21  ;;  %v4267_v5 = vld [vmem:[%s3327_s28 + $0x30] sm:$0xf] }
 0x17e   : > { %v860_v49 = vpop.permute.xlu1 %859  ;;  %v4271_v59 = vcombine.low %v4267_v5, %v4267_v5 }
 0x17f   : > { %v1245_v17 = vsel %vm1237_vm7, %v1228_v48, %v860_v49  ;;  %v858_v29 = vpop.permute.xlu0 %857  ;;  %v4945_v48 = vld [vmem:[#allocation21_spill] sm:$0xff]  ;;  %v4955_v49 = vld [vmem:[#allocation36_spill] sm:$0xff] }
 0x180   : > { %v1243_v47 = vsel %vm1237_vm7, %v1226_v54, %v858_v29  ;;  %1957 = vrot.lane.b32.xlu1 %v1926_v52, %s3130_s22  ;;  %v4309_v7 = vsel %vm1135_vm1, %v1134_v36, %v4945_v48  ;;  %v4947_v54 = vld [vmem:[#allocation30_spill] sm:$0xff]  ;;  %v1010_v52 = vrot.slane %v3397_v25, 1  ;;  %v4964_v36 = vld [vmem:[#allocation48_spill] sm:$0xff] }
 0x181   : > { %1955 = vrot.lane.b32.xlu0 %v1920_v57, %s3130_s22  ;;  %v1752_v42 = vsel %vm1110_vm0, %v4948_v16, %v4947_v54  ;;  %v4956_v57 = vld [vmem:[#allocation8_spill] sm:$0xff]  ;;  %v4957_v29 = vld [vmem:[#allocation38_spill] sm:$0xff]  ;;  %v4983_v16 = vld [vmem:[#allocation63_spill] sm:$0xff] }
 0x182   : > { %v896_v13 = vpop.permute.xlu1 %895  ;;  %v1768_v61 = vsel %vm1135_vm1, %v1752_v42, %v4953_v0  ;;  %v3064_v42 = vld [vmem:[%s3327_s28 + $0x10] sm:$0xf] }
 0x183   : > { %v1258_v14 = vsel %vm1254_vm8, %v1241_v56, %v896_v13  ;;  %v894_v10 = vpop.permute.xlu0 %893  ;;  %v1756_v56 = vsel %vm1110_vm0, %v4952_v19, %v4951_v33  ;;  %v4958_v13 = vld [vmem:[#allocation42_spill] sm:$0xff]  ;;  %v2166_v18 = vshrl.u32 %v3064_v42, 16  ;;  %v3065_v33 = vld [vmem:[%s3327_s28 + $0x18] sm:$0xf] }
 0x184   : > { %v1256_v34 = vsel %vm1254_vm8, %v1239_v38, %v894_v10  ;;  %907 = vrot.lane.b32.xlu1 %v4263_v55, %s3123_s21  ;;  %v4959_v10 = vld [vmem:[#allocation43_spill] sm:$0xff]  ;;  %v2183_v0 = vshll.u32 %v3065_v33, 16 }
 0x185   : > { %905 = vrot.lane.b32.xlu0 %v4271_v59, %s3123_s21  ;;  %s4971_s21 = smov 48  }
 0x186   : > { %v900_v28 = vpop.permute.xlu1 %899 }
 0x187   : > { %v1262_v44 = vsel %vm1254_vm8, %v1245_v17, %v900_v28  ;;  %v898_v1 = vpop.permute.xlu0 %897  ;;  %v1758_v17 = vsel %vm1110_vm0, %v4956_v57, %v4955_v49  ;;  %v4960_v28 = vld [vmem:[#allocation5_spill] sm:$0xff] }
 0x188   : > { %v4281_v15 = vsel %vm1254_vm8, %v1243_v47, %v898_v1  ;;  %999 = vrot.lane.b32.xlu1 %v4938_v23, %s3124_s20  ;;  %v1770_v47 = vsel %vm1135_vm1, %v1754_v40, %v4957_v29  ;;  %v4961_v1 = vld [vmem:[#allocation44_spill] sm:$0xff]  ;;  %v4967_v40 = vrot.slane %v3374_v8, 1 }
 0x189   : > { %997 = vrot.lane.b32.xlu0 %v3415_v43, %s3124_s20  ;;  %v4313_v43 = vsel %vm1135_vm1, %v1131_v45, %v4946_v51  ;;  %v1774_v22 = vsel %vm1135_vm1, %v1758_v17, %v4961_v1  ;;  %v4350_v27 = vsel %vm1152_vm2, %v1770_v47, %v4962_v58  ;;  %v4367_v45 = vld [vmem:[%s3327_s28 + $0x40] sm:$0xf]  ;;  %v2168_v47 = vrot.slane %v2166_v18, 4 }
 0x18a   : > { %v992_v41 = vpop.permute.xlu1 %991  ;;  %v4371_v26 = vcombine.low %v4367_v45, %v4367_v45  ;;  %v4375_v48 = vsel %vm1152_vm2, %v1774_v22, %v4965_v24  ;;  %v2185_v1 = vrot.slane %v2183_v0, 5  ;;  %v3067_v24 = vld [vmem:[%s3327_s28 + $0x14] sm:$0x1]  ;;  %v2263_v0 = vld [vmem:[%s4813_s5] sm:$0x3] }
 0x18b   : > { %v4322_v3 = vsel %vm1271_vm9, %v1258_v14, %v992_v41  ;;  %v990_v32 = vpop.permute.xlu0 %989  ;;  %v1772_v14 = vsel %vm1135_vm1, %v1756_v56, %v4958_v13  ;;  %v4966_v41 = vld [vmem:[#allocation41_spill] sm:$0xff]  ;;  %v2180_v56 = vshrl.u32 %v3065_v33, 16  ;;  %2925 = vmatprep.subr.msk.bf16.mxu1 %vm2295_vm14, %v2263_v0  ;;  %vm1322_vm1 = vcmask 424960  }
 0x18c   : > { %v4330_v38 = vsel %vm1271_vm9, %v1256_v34, %v990_v32  ;;  %1003 = vrot.lane.b32.xlu1 %v4954_v39, %s3124_s20  ;;  %v1784_v34 = vsel %vm1152_vm2, %v1768_v61, %v4959_v10  ;;  %v4358_v6 = vsel %vm1152_vm2, %v1772_v14, %v4963_v20  ;;  %v2152_v51 = vshrl.u32 %v4966_v41, 16  ;;  %v3066_v61 = vld [vmem:[%s3327_s28 + $0x20] sm:$0xf]  ;;  %v4968_v20 = vld [vmem:[#allocation39_spill] sm:$0xff] }
 0x18d   : > { %1001 = vrot.lane.b32.xlu0 %v4960_v28, %s3124_s20  ;;  %v4362_v9 = vsel %vm1169_vm3, %v1784_v34, %v4964_v36  ;;  %v2155_v54 = vshll.u32 %v4966_v41, 16  ;;  %v2169_v32 = vshll.u32 %v3064_v42, 16  ;;  %v2194_v49 = vshrl.u32 %v3066_v61, 16  ;;  %s4972_s20 = smov 52  }
 0x18e   : > { %v4352_v31 = vpop.permute.xlu1 %758  ;;  %v2154_v17 = vrot.slane %v2152_v51, 4  ;;  %v2197_v13 = vshll.u32 %v3066_v61, 16  ;;  %v2182_v8 = vrot.slane %v2180_v56, 4  ;;  %v2161_v36 = vshll.u32 %v4968_v20, 16 }
 0x18f   : > { %v4364_v37 = vpop.permute.xlu0 %756  ;;  %v2157_v29 = vrot.slane %v2155_v54, 5  ;;  %v2171_v34 = vrot.slane %v2169_v32, 5  ;;  %v2175_v41 = vshll.u32 %v3067_v24, 16  ;;  %v3068_v54 = vld [vmem:[%s3327_s28 + $0x1c] sm:$0x1]  ;;  %v2196_v18 = vrot.slane %v2194_v49, 4 }
 0x190   : > { %1023 = vrot.lane.b32.xlu1 %v1010_v52, %s3125_s12  ;;  %v2186_v51 = vor.u32 %v2185_v1, %v2182_v8  ;;  %v2189_v42 = vshll.u32 %v3068_v54, 16  ;;  %v2163_v32 = vrot.slane %v2161_v36, 5  ;;  %v2199_v8 = vrot.slane %v2197_v13, 5 }
 0x191   : > { %1021 = vrot.lane.b32.xlu0 %v4967_v40, %s3125_s12  ;;  %v2158_v58 = vor.u32 %v2157_v29, %v2154_v17  ;;  %v2208_v36 = vshrl.u32 %v4143_v62, 16  ;;  %v2211_v24 = vshll.u32 %v4143_v62, 16  ;;  %v1162_v13 = vsel %vm1152_vm2, %v4305_v63, %v4364_v37 }
 0x192   : > { %v996_v57 = vpop.permute.xlu1 %995 }
 0x193   : > { %v4389_v14 = vsel %vm1271_vm9, %v1262_v44, %v996_v57  ;;  %v994_v10 = vpop.permute.xlu0 %993  ;;  %v2172_v44 = vor.u32 %v2171_v34, %v2168_v47  ;;  %v2159_v40 = vrot.slane %v2158_v58, 4  ;;  %v2177_v57 = vrot.slane %v2175_v41, 5 }
 0x194   : > { %v4393_v22 = vsel %vm1271_vm9, %v4281_v15, %v994_v10  ;;  %1027 = vrot.lane.b32.xlu1 %v1012_v21, %s3125_s12  ;;  %v2187_v47 = vrot.slane %v2186_v51, 4  ;;  %v2191_v34 = vrot.slane %v2189_v42, 5  ;;  %v2222_v41 = vshrl.u32 %v4267_v5, 16 }
 0x195   : > { %1025 = vrot.lane.b32.xlu0 %v1011_v46, %s3125_s12  ;;  %v2173_v49 = vrot.slane %v2172_v44, 4  ;;  %v2164_v29 = vsel %vm4411_vm15, %v2159_v40, %v2163_v32  ;;  %v2200_v51 = vor.u32 %v2199_v8, %v2196_v18  ;;  %v2210_v42 = vrot.slane %v2208_v36, 4  ;;  %v3071_v40 = vld [vmem:[%s3327_s28 + $0x34] sm:$0x1]  ;;  %s2781_s12 = sshll.u32 %s5007_s14, 6 }
 0x196   : > { %v1016_v15 = vpop.permute.xlu1 %1015  ;;  %v2192_v62 = vsel %vm4411_vm15, %v2187_v47, %v2191_v34  ;;  %v2224_v37 = vrot.slane %v2222_v41, 4  ;;  %v2225_v18 = vshll.u32 %v4267_v5, 16  ;;  %v2231_v32 = vshll.u32 %v3071_v40, 16 }
 0x197   : > { %v4406_v33 = vsel %vm1288_vm11, %v4322_v3, %v1016_v15  ;;  %v1014_v56 = vpop.permute.xlu0 %1013  ;;  %v2297_v3 = vsel %vm2295_vm14, %v2263_v0, 0  ;;  %v2178_v10 = vsel %vm4411_vm15, %v2173_v49, %v2177_v57  ;;  %v2213_v15 = vrot.slane %v2211_v24, 5  ;;  %v3072_v24 = vld [vmem:[%s3327_s28 + $0x3c] sm:$0x1] }
 0x198   : > { %v4417_v17 = vsel %vm1288_vm11, %v4330_v38, %v1014_v56  ;;  %1042 = vrot.lane.b32.xlu1 %v4271_v59, %s4971_s21  ;;  %2915 = vmatpush3.bf16.msra.mxu1 %v2297_v3  ;;  %v3069_v38 = vld [vmem:[%s3327_s28 + $0x24] sm:$0x1]  ;;  %v2866_v20 = vcombine.low %v2164_v29, %v2178_v10  ;;  %v2201_v63 = vrot.slane %v2200_v51, 4  ;;  %v2236_v57 = vshrl.u32 %v4259_v2, 16 }
 0x199   : > { %1040 = vrot.lane.b32.xlu0 %v4147_v12, %s4971_s21  ;;  %v2203_v1 = vshll.u32 %v3069_v38, 16  ;;  %v1164_v12 = vsel %vm1152_vm2, %v4301_v11, %v4352_v31  ;;  %v3070_v11 = vld [vmem:[%s3327_s28 + $0x2c] sm:$0x1]  ;;  %v2214_v0 = vor.u32 %v2213_v15, %v2210_v42  ;;  %v2239_v3 = vshll.u32 %v4259_v2, 16  ;;  %v4973_v51 = vld [vmem:[#allocation50_spill] sm:$0xff] }
 0x19a   : > { %v4428_v58 = vpop.permute.xlu1 %762  ;;  %2916 = vmatprep.mubr.msk.bf16.mxu1 %vm1110_vm0, %v2866_v20  ;;  %v2217_v31 = vshll.u32 %v3070_v11, 16  ;;  %v2227_v34 = vrot.slane %v2225_v18, 5  ;;  %v2233_v8 = vrot.slane %v2231_v32, 5  ;;  %v2238_v20 = vrot.slane %v2236_v57, 4  ;;  %v4975_v18 = vld [vmem:[#allocation9_spill] sm:$0xff] }
 0x19b   : > { %v4439_v44 = vpop.permute.xlu0 %760  ;;  %v2205_v54 = vrot.slane %v2203_v1, 5  ;;  %v2215_v1 = vrot.slane %v2214_v0, 4  ;;  %v2241_v36 = vrot.slane %v2239_v3, 5  ;;  %v2245_v41 = vshll.u32 %v3072_v24, 16  ;;  %v4977_v0 = vld [vmem:[#allocation53_spill] sm:$0xff]  ;;  %v4978_v3 = vld [vmem:[#allocation55_spill] sm:$0xff] }
 0x19c   : > { %1046 = vrot.lane.b32.xlu1 %v4371_v26, %s4971_s21  ;;  %v2219_v49 = vrot.slane %v2217_v31, 5  ;;  %v2228_v2 = vor.u32 %v2227_v34, %v2224_v37  ;;  %v2253_v42 = vshll.u32 %v4367_v45, 16  ;;  %v1166_v25 = vsel %vm1152_vm2, %v4313_v43, %v4439_v44  ;;  %v4990_v44 = vld [vmem:[#allocation64_spill] sm:$0xff] }
 0x19d   : > { %1044 = vrot.lane.b32.xlu0 %v4263_v55, %s4971_s21  ;;  %v2206_v10 = vsel %vm4411_vm15, %v2201_v63, %v2205_v54  ;;  %v4974_v54 = vld [vmem:[#allocation51_spill] sm:$0xff]  ;;  %v2242_v37 = vor.u32 %v2241_v36, %v2238_v20  ;;  %s2784_s21 = sshll.u32 %s4736_s11, 1 }
 0x19e   : > { %v785_v56 = vpop.permute.xlu1 %784  ;;  %v2867_v38 = vcombine.low %v2192_v62, %v2206_v10  ;;  %v2220_v63 = vsel %vm4411_vm15, %v2215_v1, %v2219_v49  ;;  %v2255_v32 = vrot.slane %v2253_v42, 5  ;;  %v1806_v49 = vsel %vm1169_vm3, %v4375_v48, %v4977_v0  ;;  %v4992_v0 = vld [vmem:[#allocation68_spill] sm:$0xff]  ;;  %s540_s14 = scalar_lea.vmem %s4818_s10, %s2784_s21  ;;  %s523_s27 = scalar_lea.vmem %s4816_s8, %s2784_s21 }
 0x19f   : > { %v4454_v29 = vsel %vm1169_vm3, %v1164_v12, %v785_v56  ;;  %v783_v47 = vpop.permute.xlu0 %782  ;;  %v2250_v12 = vshrl.u32 %v4367_v45, 16  ;;  %v2247_v45 = vrot.slane %v2245_v41, 5  ;;  %v4976_v56 = vld [vmem:[#allocation52_spill] sm:$0xff]  ;;  %v2243_v57 = vrot.slane %v2242_v37, 4 }
 0x1a0   : > { %v4459_v5 = vsel %vm1169_vm3, %v1162_v13, %v783_v47  ;;  %1068 = vrot.lane.b32.xlu1 %v4960_v28, %s4972_s20  ;;  %v1804_v13 = vsel %vm1169_vm3, %v4358_v6, %v4973_v51  ;;  %v1802_v28 = vsel %vm1169_vm3, %v4350_v27, %v4974_v54  ;;  %2917 = vmatmul.mubr.msk.bf16.vlgmr.msra.gmra.mrb[0].mxu1 %vm1110_vm0, %v2867_v38  ;;  %v2229_v6 = vrot.slane %v2228_v2, 4  ;;  %v4980_v2 = vld [vmem:[#allocation57_spill] sm:$0xff]  ;;  %v4981_v51 = vld [vmem:[#allocation54_spill] sm:$0xff] }
 0x1a1   : > { %1066 = vrot.lane.b32.xlu0 %v4938_v23, %s4972_s20  ;;  %v3073_v23 = vld [vmem:[%s3327_s28 + $0x44] sm:$0x1]  ;;  %v2252_v40 = vrot.slane %v2250_v12, 4  ;;  %v1818_v47 = vsel %vm1186_vm4, %v1802_v28, %v4978_v3  ;;  %v1822_v48 = vsel %vm1186_vm4, %v1806_v49, %v4980_v2  ;;  %v2248_v12 = vsel %vm4411_vm15, %v2243_v57, %v2247_v45  ;;  %v4993_v3 = vld [vmem:[#allocation65_spill] sm:$0xff] }
 0x1a2   : > { %v1020_v62 = vpop.permute.xlu1 %1019  ;;  %v2259_v15 = vshll.u32 %v3073_v23, 16  ;;  %v1820_v54 = vsel %vm1186_vm4, %v1804_v13, %v4981_v51  ;;  %v1168_v13 = vsel %vm1152_vm2, %v4309_v7, %v4428_v58  ;;  %v4988_v58 = vld [vmem:[#allocation67_spill] sm:$0xff]  ;;  %vm1339_vm2 = vcmask 457728  }
 0x1a3   : > { %v4478_v11 = vsel %vm1288_vm11, %v4389_v14, %v1020_v62  ;;  %v1018_v31 = vpop.permute.xlu0 %1017  ;;  %v1816_v14 = vsel %vm1186_vm4, %v4362_v9, %v4976_v56  ;;  %v2256_v38 = vor.u32 %v2255_v32, %v2252_v40  ;;  %v4979_v9 = vld [vmem:[#allocation56_spill] sm:$0xff]  ;;  %v4984_v62 = vld [vmem:[#allocation66_spill] sm:$0xff] }
 0x1a4   : > { %v4484_v27 = vsel %vm1288_vm11, %v4393_v22, %v1018_v31  ;;  %1072 = vrot.lane.b32.xlu1 %v4975_v18, %s4972_s20  ;;  %v2234_v22 = vsel %vm4411_vm15, %v2229_v6, %v2233_v8  ;;  %v2261_v1 = vrot.slane %v2259_v15, 5  ;;  %v1832_v20 = vsel %vm1203_vm5, %v1816_v14, %v4979_v9  ;;  %v4985_v15 = vld [vmem:[#allocation70_spill] sm:$0xff]  ;;  %v4987_v18 = vld [vmem:[#allocation61_spill] sm:$0xff]  ;;  %v4989_v40 = vld [vmem:[#allocation60_spill] sm:$0xff] }
 0x1a5   : > { %1070 = vrot.lane.b32.xlu0 %v4954_v39, %s4972_s20  ;;  %v2868_v34 = vcombine.low %v2220_v63, %v2234_v22  ;;  %v1834_v39 = vsel %vm1203_vm5, %v1818_v47, %v3929_v4  ;;  %v1074_v8 = vrot.slane %v4952_v19, 1  ;;  %v1848_v24 = vsel %vm1220_vm6, %v1832_v20, %v3936_v53  ;;  %v4982_v19 = vld [vmem:[#allocation59_spill] sm:$0xff]  ;;  %v4986_v6 = vld [vmem:[#allocation58_spill] sm:$0xff]  ;;  %v4995_v9 = vld [vmem:[#allocation69_spill] sm:$0xff] }
 0x1a6   : > { %v4500_v10 = vpop.permute.xlu1 %1034  ;;  %v1850_v41 = vsel %vm1220_vm6, %v1834_v39, %v3948_v30  ;;  %v2257_v4 = vrot.slane %v2256_v38, 4  ;;  %v1838_v28 = vsel %vm1203_vm5, %v1822_v48, %v4982_v19  ;;  %v1864_v53 = vsel %vm1237_vm7, %v1848_v24, %v3954_v60  ;;  %v4991_v56 = vld [vmem:[#allocation62_spill] sm:$0xff]  ;;  %v4994_v38 = vld [vmem:[#allocation71_spill] sm:$0xff] }
 0x1a7   : > { %v4508_v36 = vpop.permute.xlu0 %1032  ;;  %2920 = vmatprep.mubr.msk.bf16.mxu1 %vm1110_vm0, %v2868_v34  ;;  %v1866_v30 = vsel %vm1237_vm7, %v1850_v41, %v3968_v35  ;;  %v1836_v37 = vsel %vm1203_vm5, %v1820_v54, %v4986_v6  ;;  %v1854_v7 = vsel %vm1220_vm6, %v1838_v28, %v4987_v18  ;;  %v3074_v48 = vld [vmem:[%s3327_s28 + $0x48] sm:$0xf]  ;;  %s2780_s28 = sshll.u32 %s5013_s13, 3 }
 0x1a8   : > { %1085 = vrot.lane.b32.xlu1 %v1011_v46, %s3128_s23  ;;  %v1880_v46 = vsel %vm1254_vm8, %v1864_v53, %v4983_v16  ;;  %v1882_v42 = vsel %vm1254_vm8, %v1866_v30, %v4984_v62  ;;  %v2262_v60 = vsel %vm4411_vm15, %v2257_v4, %v2261_v1  ;;  %v1852_v43 = vsel %vm1220_vm6, %v1836_v37, %v4989_v40 }
 0x1a9   : > { %1083 = vrot.lane.b32.xlu0 %v1010_v52, %s3128_s23  ;;  %v1898_v35 = vsel %vm1271_vm9, %v1882_v42, %v4985_v15  ;;  %v2869_v63 = vcombine.low %v2248_v12, %v2262_v60  ;;  %v1896_v61 = vsel %vm1271_vm9, %v1880_v46, %v4988_v58  ;;  %v1870_v32 = vsel %vm1237_vm7, %v1854_v7, %v4990_v44 }
 0x1aa   : > { %v789_v23 = vpop.permute.xlu1 %788  ;;  %v1868_v14 = vsel %vm1237_vm7, %v1852_v43, %v4991_v56  ;;  %v1886_v49 = vsel %vm1254_vm8, %v1870_v32, %v4992_v0  ;;  %v1935_v22 = vshll.u32 %v1898_v35, 16  ;;  %v1929_v34 = vshll.u32 %v1896_v61, 16 }
 0x1ab   : > { %v1185_v52 = vsel %vm1169_vm3, %v1168_v13, %v789_v23  ;;  %v787_v31 = vpop.permute.xlu0 %786  ;;  %2921 = vmatmul.mubr.msk.bf16.gmra.mrb[4].mxu1 %vm1110_vm0, %v2869_v63  ;;  %v1884_v47 = vsel %vm1254_vm8, %v1868_v14, %v4993_v3  ;;  %v1902_v1 = vsel %vm1271_vm9, %v1886_v49, %v4994_v38  ;;  %v2827_v39 = vcombine.low %v3074_v48, %v3074_v48 }
 0x1ac   : > { %v1183_v45 = vsel %vm1169_vm3, %v1166_v25, %v787_v31  ;;  %1089 = vrot.lane.b32.xlu1 %v1074_v8, %s3128_s23  ;;  %v1900_v20 = vsel %vm1271_vm9, %v1884_v47, %v4995_v9  ;;  %v1937_v8 = vrot.slane %v1935_v22, 1  ;;  %v1947_v24 = vshll.u32 %v1902_v1, 16 }
 0x1ad   : > { %1087 = vrot.lane.b32.xlu0 %v1012_v21, %s3128_s23  ;;  %v1941_v12 = vshll.u32 %v1900_v20, 16  ;;  %v1933_v51 = vshrl.u32 %v1898_v35, 16  ;;  %v1945_v30 = vshrl.u32 %v1902_v1, 16  ;;  %v1939_v16 = vshrl.u32 %v1900_v20, 16  ;;  %s4689_s23 = sadd.s32 %s2781_s12, %s2780_s28 }
 0x1ae   : > { %v802_v57 = vpop.permute.xlu1 %801  ;;  %v1949_v54 = vrot.slane %v1947_v24, 1  ;;  %vm1305_vm0 = vcmask 392192  }
 0x1af   : > { %v1198_v50 = vsel %vm1186_vm4, %v4454_v29, %v802_v57  ;;  %v800_v21 = vpop.permute.xlu0 %799  ;;  %v1931_v29 = vrot.slane %v1929_v34, 1  ;;  %v1307_v9 = vsel %vm1305_vm0, %v4417_v17, %v4508_v36 }
 0x1b0   : > { %v1196_v2 = vsel %vm1186_vm4, %v4459_v5, %v800_v21  ;;  %1104 = vrot.lane.b32.xlu1 %v4263_v55, %s3129_s24  ;;  %v1927_v5 = vshrl.u32 %v1896_v61, 16  ;;  %v1938_v55 = vor.u32 %v1937_v8, %v1933_v51  ;;  %v1950_v46 = vor.u32 %v1949_v54, %v1945_v30 }
 0x1b1   : > { %1102 = vrot.lane.b32.xlu0 %v4271_v59, %s3129_s24  ;;  %v1943_v59 = vrot.slane %v1941_v12, 1 }
 0x1b2   : > { %v4582_v41 = vpop.permute.xlu1 %1038  ;;  %v1932_v28 = vor.u32 %v1931_v29, %v1927_v5 }
 0x1b3   : > { %v4584_v4 = vpop.permute.xlu0 %1036  ;;  %v1944_v42 = vor.u32 %v1943_v59, %v1939_v16 }
 0x1b4   : > { %1108 = vrot.lane.b32.xlu1 %v2827_v39, %s3129_s24 }
 0x1b5   : > { %1106 = vrot.lane.b32.xlu0 %v4371_v26, %s3129_s24  ;;  %s2782_s24 = sshll.u32 %s4689_s23, 3 }
 0x1b6   : > { %v1061_v19 = vpop.permute.xlu1 %1060  ;;  %s4753_s26 = scalar_lea.vmem %s4815_s7, %s2782_s24 }
 0x1b7   : > { %v1059_v53 = vpop.permute.xlu0 %1058 }
 0x1b8   : > { %1961 = vrot.lane.b32.xlu1 %v1938_v55, %s3130_s22  ;;  %v1313_v55 = vsel %vm1305_vm0, %v4478_v11, %v4582_v41 }
 0x1b9   : > { %1959 = vrot.lane.b32.xlu0 %v1932_v28, %s3130_s22 }
 0x1ba   : > { %v806_v62 = vpop.permute.xlu1 %805 }
 0x1bb   : > { %v1202_v13 = vsel %vm1186_vm4, %v1185_v52, %v806_v62  ;;  %v804_v23 = vpop.permute.xlu0 %803 }
 0x1bc   : > { %v1200_v26 = vsel %vm1186_vm4, %v1183_v45, %v804_v23  ;;  %1965 = vrot.lane.b32.xlu1 %v1950_v46, %s3130_s22  ;;  %vm1356_vm4 = vcmask 490496  }
 0x1bd   : > { %1963 = vrot.lane.b32.xlu0 %v1944_v42, %s3130_s22  ;;  %s4700_s22 = scalar_lea.vmem %s4817_s9, %s2782_s24 }
 0x1be   : > { %v821_v60 = vpop.permute.xlu1 %820 }
 0x1bf   : > { %v1215_v15 = vsel %vm1203_vm5, %v1198_v50, %v821_v60  ;;  %v819_v35 = vpop.permute.xlu0 %818  ;;  %v1309_v50 = vsel %vm1305_vm0, %v4406_v33, %v4500_v10 }
 0x1c0   : > { %v1213_v25 = vsel %vm1203_vm5, %v1196_v2, %v819_v35  ;;  %v1326_v20 = vsel %vm1322_vm1, %v1309_v50, %v1061_v19  ;;  %v1324_v2 = vsel %vm1322_vm1, %v1307_v9, %v1059_v53  ;;  %v1311_v19 = vsel %vm1305_vm0, %v4484_v27, %v4584_v4 }
 0x1c2   : > { %v1065_v31 = vpop.permute.xlu1 %1064 }
 0x1c3   : > { %v1063_v63 = vpop.permute.xlu0 %1062  ;;  %v1330_v28 = vsel %vm1322_vm1, %v1313_v55, %v1065_v31 }
 0x1c4   : > { %v1328_v59 = vsel %vm1322_vm1, %v1311_v19, %v1063_v63 }
 0x1c6   : > { %v1078_v6 = vpop.permute.xlu1 %1077 }
 0x1c7   : > { %v1076_v37 = vpop.permute.xlu0 %1075  ;;  %v1343_v48 = vsel %vm1339_vm2, %v1326_v20, %v1078_v6 }
 0x1c8   : > { %v1341_v39 = vsel %vm1339_vm2, %v1324_v2, %v1076_v37 }
 0x1ca   : > { %v825_v18 = vpop.permute.xlu1 %824 }
 0x1cb   : > { %v1219_v52 = vsel %vm1203_vm5, %v1202_v13, %v825_v18  ;;  %v823_v7 = vpop.permute.xlu0 %822 }
 0x1cc   : > { %v1217_v58 = vsel %vm1203_vm5, %v1200_v26, %v823_v7  ;;  %vm1967_vm5 = vcmask 523264  }
 0x1ce   : > { %v847_v61 = vpop.permute.xlu1 %846 }
 0x1cf   : > { %v1232_v45 = vsel %vm1220_vm6, %v1215_v15, %v847_v61  ;;  %v845_v40 = vpop.permute.xlu0 %844 }
 0x1d0   : > { %v1230_v43 = vsel %vm1220_vm6, %v1213_v25, %v845_v40 }
 0x1d2   : > { %v1082_v44 = vpop.permute.xlu1 %1081 }
 0x1d3   : > { %v1080_v32 = vpop.permute.xlu0 %1079  ;;  %v1347_v53 = vsel %vm1339_vm2, %v1330_v28, %v1082_v44 }
 0x1d4   : > { %v1345_v30 = vsel %vm1339_vm2, %v1328_v59, %v1080_v32 }
 0x1d6   : > { %v1097_v56 = vpop.permute.xlu1 %1096 }
 0x1d7   : > { %v1095_v14 = vpop.permute.xlu0 %1094  ;;  %v1360_v8 = vsel %vm1356_vm4, %v1343_v48, %v1097_v56 }
 0x1d8   : > { %v1358_v33 = vsel %vm1356_vm4, %v1341_v39, %v1095_v14 }
 0x1da   : > { %v851_v0 = vpop.permute.xlu1 %850 }
 0x1db   : > { %v4602_v49 = vsel %vm1220_vm6, %v1219_v52, %v851_v0  ;;  %v849_v22 = vpop.permute.xlu0 %848 }
 0x1dc   : > { %v4605_v57 = vsel %vm1220_vm6, %v1217_v58, %v849_v22  ;;  %vm2066_vm6 = vcmask 883712  }
 0x1de   : > { %v864_v3 = vpop.permute.xlu1 %863 }
 0x1df   : > { %v4608_v47 = vsel %vm1237_vm7, %v1232_v45, %v864_v3  ;;  %v862_v34 = vpop.permute.xlu0 %861 }
 0x1e0   : > { %v4611_v38 = vsel %vm1237_vm7, %v1230_v43, %v862_v34 }
 0x1e2   : > { %v1101_v1 = vpop.permute.xlu1 %1100 }
 0x1e3   : > { %v1099_v21 = vpop.permute.xlu0 %1098  ;;  %v1364_v16 = vsel %vm1356_vm4, %v1347_v53, %v1101_v1 }
 0x1e4   : > { %v1362_v62 = vsel %vm1356_vm4, %v1345_v30, %v1099_v21 }
 0x1e6   : > { %v1954_v24 = vpop.permute.xlu1 %1953 }
 0x1e7   : > { %v1971_v10 = vsel %vm1967_vm5, %v1360_v8, %v1954_v24  ;;  %v1952_v29 = vpop.permute.xlu0 %1951 }
 0x1e8   : > { %v1969_v12 = vsel %vm1967_vm5, %v1358_v33, %v1952_v29 }
 0x1e9   : > { %v2850_v17 = vcombine.low %v1969_v12, %v1971_v10 }
 0x1ea   : > { %v868_v36 = vpop.permute.xlu1 %867 }
 0x1eb   : > { %2906 = vmatprep.mubr.msk.bf16.mxu0 %vm2066_vm6, %v2850_v17  ;;  %v866_v51 = vpop.permute.xlu0 %865  ;;  %v1253_v21 = vsel %vm1237_vm7, %v4602_v49, %v868_v36 }
 0x1ee   : > { %v904_v5 = vpop.permute.xlu1 %903 }
 0x1ef   : > { %v902_v54 = vpop.permute.xlu0 %901  ;;  %v1266_v0 = vsel %vm1254_vm8, %v4608_v47, %v904_v5  ;;  %v1251_v47 = vsel %vm1237_vm7, %v4605_v57, %v866_v51  ;;  %vm2486_vm7 = vcmask 123904  }
 0x1f0   : > { %v1264_v22 = vsel %vm1254_vm8, %v4611_v38, %v902_v54 }
 0x1f2   : > { %v1958_v46 = vpop.permute.xlu1 %1957 }
 0x1f3   : > { %v1975_v11 = vsel %vm1967_vm5, %v1364_v16, %v1958_v46  ;;  %v1956_v41 = vpop.permute.xlu0 %1955 }
 0x1f4   : > { %v1973_v42 = vsel %vm1967_vm5, %v1362_v62, %v1956_v41 }
 0x1f5   : > { %v2851_v13 = vcombine.low %v1973_v42, %v1975_v11 }
 0x1f6   : > { %v908_v27 = vpop.permute.xlu1 %907 }
 0x1f7   : > { %2907 = vmatmul.mubr.msk.bf16.vlgmr.msra.gmra.mrb[0].mxu0 %vm2066_vm6, %v2851_v13  ;;  %v906_v4 = vpop.permute.xlu0 %905  ;;  %v1270_v38 = vsel %vm1254_vm8, %v1253_v21, %v908_v27 }
 0x1f8   : > { %v1268_v8 = vsel %vm1254_vm8, %v1251_v47, %v906_v4  ;;  %vm2364_vm8 = vcmask 15360  }
 0x1fa   : > { %v1000_v23 = vpop.permute.xlu1 %999 }
 0x1fb   : > { %v998_v26 = vpop.permute.xlu0 %997  ;;  %v1283_v3 = vsel %vm1271_vm9, %v1266_v0, %v1000_v23  ;;  %v2865_v23 = vld [vmem:[%s4814_s6] ss:$0 sm:$0xff] }
 0x1fc   : > { %v1281_v34 = vsel %vm1271_vm9, %v1264_v22, %v998_v26 }
 0x1fe   : > { %v1004_v60 = vpop.permute.xlu1 %1003 }
 0x1ff   : > { %v1002_v15 = vpop.permute.xlu0 %1001  ;;  %v1287_v24 = vsel %vm1271_vm9, %v1270_v38, %v1004_v60 }
 0x200   : > { %v1285_v10 = vsel %vm1271_vm9, %v1268_v8, %v1002_v15  ;;  %vm2433_vm9 = vcmask 9216  }
 0x202   : > { %v1024_v35 = vpop.permute.xlu1 %1023 }
 0x203   : > { %v1022_v25 = vpop.permute.xlu0 %1021  ;;  %v1300_v1 = vsel %vm1288_vm11, %v1283_v3, %v1024_v35 }
 0x204   : > { %v1298_v9 = vsel %vm1288_vm11, %v1281_v34, %v1022_v25 }
 0x206   : > { %v1028_v31 = vpop.permute.xlu1 %1027 }
 0x207   : > { %v1026_v63 = vpop.permute.xlu0 %1025  ;;  %v1304_v29 = vsel %vm1288_vm11, %v1287_v24, %v1028_v31 }
 0x208   : > { %v1302_v36 = vsel %vm1288_vm11, %v1285_v10, %v1026_v63 }
 0x20a   : > { %v1043_v6 = vpop.permute.xlu1 %1042 }
 0x20b   : > { %v1041_v37 = vpop.permute.xlu0 %1040  ;;  %v1317_v20 = vsel %vm1305_vm0, %v1300_v1, %v1043_v6 }
 0x20c   : > { %v1315_v48 = vsel %vm1305_vm0, %v1298_v9, %v1041_v37 }
 0x20e   : > { %v1047_v18 = vpop.permute.xlu1 %1046 }
 0x20f   : > { %v1045_v52 = vpop.permute.xlu0 %1044  ;;  %v1321_v51 = vsel %vm1305_vm0, %v1304_v29, %v1047_v18 }
 0x210   : > { %v1319_v19 = vsel %vm1305_vm0, %v1302_v36, %v1045_v52 }
 0x212   : > { %v1069_v7 = vpop.permute.xlu1 %1068 }
 0x213   : > { %v1067_v58 = vpop.permute.xlu0 %1066  ;;  %v1334_v39 = vsel %vm1322_vm1, %v1317_v20, %v1069_v7 }
 0x214   : > { %v1332_v49 = vsel %vm1322_vm1, %v1315_v48, %v1067_v58 }
 0x216   : > { %v1073_v61 = vpop.permute.xlu1 %1072 }
 0x217   : > { %v1071_v45 = vpop.permute.xlu0 %1070  ;;  %v1338_v28 = vsel %vm1322_vm1, %v1321_v51, %v1073_v61 }
 0x218   : > { %v1336_v53 = vsel %vm1322_vm1, %v1319_v19, %v1071_v45 }
 0x21a   : > { %v1086_v40 = vpop.permute.xlu1 %1085 }
 0x21b   : > { %v1084_v43 = vpop.permute.xlu0 %1083  ;;  %v1351_v33 = vsel %vm1339_vm2, %v1334_v39, %v1086_v40 }
 0x21c   : > { %v1349_v57 = vsel %vm1339_vm2, %v1332_v49, %v1084_v43 }
 0x21e   : > { %v1090_v44 = vpop.permute.xlu1 %1089 }
 0x21f   : > { %v1088_v32 = vpop.permute.xlu0 %1087  ;;  %v1355_v30 = vsel %vm1339_vm2, %v1338_v28, %v1090_v44 }
 0x220   : > { %v1353_v46 = vsel %vm1339_vm2, %v1336_v53, %v1088_v32 }
 0x222   : > { %v1105_v56 = vpop.permute.xlu1 %1104 }
 0x223   : > { %v1103_v14 = vpop.permute.xlu0 %1102  ;;  %v1368_v12 = vsel %vm1356_vm4, %v1351_v33, %v1105_v56 }
 0x224   : > { %v1366_v5 = vsel %vm1356_vm4, %v1349_v57, %v1103_v14 }
 0x226   : > { %v1109_v50 = vpop.permute.xlu1 %1108 }
 0x227   : > { %v1107_v2 = vpop.permute.xlu0 %1106  ;;  %v1372_v62 = vsel %vm1356_vm4, %v1355_v30, %v1109_v50 }
 0x228   : > { %v1370_v41 = vsel %vm1356_vm4, %v1353_v46, %v1107_v2 }
 0x22a   : > { %v1962_v17 = vpop.permute.xlu1 %1961 }
 0x22b   : > { %v1979_v55 = vsel %vm1967_vm5, %v1368_v12, %v1962_v17  ;;  %v1960_v54 = vpop.permute.xlu0 %1959 }
 0x22c   : > { %v1977_v59 = vsel %vm1967_vm5, %v1366_v5, %v1960_v54 }
 0x22d   : > { %v2852_v16 = vcombine.low %v1977_v59, %v1979_v55 }
 0x22e   : > { %v1966_v11 = vpop.permute.xlu1 %1965 }
 0x22f   : > { %v1983_v42 = vsel %vm1967_vm5, %v1372_v62, %v1966_v11  ;;  %2910 = vmatprep.mubr.msk.bf16.mxu0 %vm2066_vm6, %v2852_v16  ;;  %v1964_v13 = vpop.permute.xlu0 %1963 }
 0x230   : > { %v1981_v27 = vsel %vm1967_vm5, %v1370_v41, %v1964_v13 }
 0x231   : > { %v2853_v4 = vcombine.low %v1981_v27, %v1983_v42 }
 0x233   : > { %2911 = vmatmul.mubr.msk.bf16.gmra.mrb[4].mxu0 %vm2066_vm6, %v2853_v4 }
 0x273   : > { %v2918_v26 = vpop.f32.mrb[0].mxu1 }
 0x274   : > { %v2342_v60 = vadd.f32 %v2918_v26, %v2865_v23  ;;  %v2333_v15 = vpop.f32.mrb[1].mxu1 }
 0x275   : > { %v2334_v35 = vadd.f32 %v2865_v23, %v2333_v15  ;;  %v2919_v25 = vpop.f32.mrb[2].mxu1 }
 0x276   : > { %2375 = vst.msk [vmem:[%s4700_s22 + $0x10] sm:$0xff] %vm1169_vm3, %v2342_v60  ;;  %v2345_v31 = vadd.f32 %v2919_v25, %v2865_v23  ;;  %v2336_v63 = vpop.f32.mrb[3].mxu1  ;;  %v2458_v6 = vmul.f32 %v2342_v60, %v2342_v60  ;;  %v2438_v7 = vsel %vm1169_vm3, %v2342_v60, 0.0 }
 0x277   : > { %2373 = vst.msk [vmem:[%s4700_s22] sm:$0xff] %vm1169_vm3, %v2334_v35  ;;  %v2435_v37 = vsel %vm1169_vm3, %v2334_v35, 0.0  ;;  %v2456_v18 = vmul.f32 %v2334_v35, %v2334_v35  ;;  %v2337_v52 = vadd.f32 %v2865_v23, %v2336_v63  ;;  %v2849_v35 = vld [vmem:[%s4812_s4] ss:$0 sm:$0xff] }
 0x278   : > { %2376 = vst.msk [vmem:[%s4700_s22 + $0x18] sm:$0xff] %vm1169_vm3, %v2345_v31  ;;  %v2459_v61 = vmul.f32 %v2345_v31, %v2345_v31  ;;  %v2467_v44 = vsel %vm1169_vm3, %v2458_v6, 0.0  ;;  %v2440_v32 = vsel %vm1169_vm3, %v2345_v31, 0.0 }
 0x279   : > { %v2464_v58 = vsel %vm1169_vm3, %v2456_v18, 0.0  ;;  %2374 = vst.msk [vmem:[%s4700_s22 + $0x8] sm:$0xff] %vm1169_vm3, %v2337_v52  ;;  %v2436_v45 = vsel %vm1169_vm3, %v2337_v52, 0.0  ;;  %v2457_v40 = vmul.f32 %v2337_v52, %v2337_v52 }
 0x27a   : > { %v2437_v43 = vadd.f32 %v2436_v45, %v2435_v37  ;;  %v2469_v22 = vsel %vm1169_vm3, %v2459_v61, 0.0 }
 0x27b   : > { %v2465_v56 = vsel %vm1169_vm3, %v2457_v40, 0.0 }
 0x27c   : > { %v2439_v14 = vadd.f32 %v2438_v7, %v2437_v43  ;;  %v2466_v0 = vadd.f32 %v2465_v56, %v2464_v58 }
 0x27e   : > { %v2468_v3 = vadd.f32 %v2467_v44, %v2466_v0  ;;  %v2922_v34 = vpop.f32.mrb[4].mxu1  ;;  %v2441_v1 = vadd.f32 %v2440_v32, %v2439_v14 }
 0x27f   : > { %v2358_v50 = vadd.f32 %v2922_v34, %v2865_v23  ;;  %v2349_v21 = vpop.f32.mrb[5].mxu1 }
 0x280   : > { %v2350_v9 = vadd.f32 %v2865_v23, %v2349_v21  ;;  %v2470_v20 = vadd.f32 %v2469_v22, %v2468_v3  ;;  %v2923_v2 = vpop.f32.mrb[6].mxu1 }
 0x281   : > { %2379 = vst.msk [vmem:[%s4700_s22 + $0x30] sm:$0xff] %vm1169_vm3, %v2358_v50  ;;  %v2361_v47 = vadd.f32 %v2923_v2, %v2865_v23  ;;  %v2352_v38 = vpop.f32.mrb[7].mxu1  ;;  %v2462_v48 = vmul.f32 %v2358_v50, %v2358_v50  ;;  %v2446_v49 = vsel %vm1169_vm3, %v2358_v50, 0.0 }
 0x282   : > { %2377 = vst.msk [vmem:[%s4700_s22 + $0x20] sm:$0xff] %vm1169_vm3, %v2350_v9  ;;  %v2442_v39 = vsel %vm1169_vm3, %v2350_v9, 0.0  ;;  %v2460_v8 = vmul.f32 %v2350_v9, %v2350_v9  ;;  %v2353_v24 = vadd.f32 %v2865_v23, %v2352_v38 }
 0x283   : > { %v2443_v33 = vadd.f32 %v2442_v39, %v2441_v1  ;;  %2380 = vst.msk [vmem:[%s4700_s22 + $0x38] sm:$0xff] %vm1169_vm3, %v2361_v47  ;;  %v2463_v29 = vmul.f32 %v2361_v47, %v2361_v47  ;;  %v2475_v51 = vsel %vm1169_vm3, %v2462_v48, 0.0  ;;  %v2448_v5 = vsel %vm1169_vm3, %v2361_v47, 0.0 }
 0x284   : > { %v2471_v10 = vsel %vm1169_vm3, %v2460_v8, 0.0  ;;  %2378 = vst.msk [vmem:[%s4700_s22 + $0x28] sm:$0xff] %vm1169_vm3, %v2353_v24  ;;  %v2444_v57 = vsel %vm1169_vm3, %v2353_v24, 0.0  ;;  %v2461_v12 = vmul.f32 %v2353_v24, %v2353_v24 }
 0x285   : > { %v2472_v17 = vadd.f32 %v2471_v10, %v2470_v20  ;;  %v2445_v36 = vadd.f32 %v2444_v57, %v2443_v33  ;;  %v2477_v28 = vsel %vm1169_vm3, %v2463_v29, 0.0 }
 0x286   : > { %v2473_v55 = vsel %vm1169_vm3, %v2461_v12, 0.0  ;;  %vm2431_vm3 = vcmask 1040384  }
 0x287   : > { %v2447_v54 = vadd.f32 %v2446_v49, %v2445_v36  ;;  %v2474_v19 = vadd.f32 %v2473_v55, %v2472_v17 }
 0x289   : > { %v2449_v59 = vadd.f32 %v2448_v5, %v2447_v54  ;;  %v2476_v53 = vadd.f32 %v2475_v51, %v2474_v19 }
 0x28b   : > { %v2450_v30 = vrot.slane %v2449_v59, 4  ;;  %v2478_v16 = vadd.f32 %v2477_v28, %v2476_v53 }
 0x28d   : > { %v2451_v46 = vadd.f32 %v2450_v30, %v2449_v59  ;;  %v2479_v62 = vrot.slane %v2478_v16, 4 }
 0x28f   : > { %v2452_v11 = vrot.slane %v2451_v46, 2  ;;  %v2480_v41 = vadd.f32 %v2479_v62, %v2478_v16 }
 0x291   : > { %v2453_v42 = vadd.f32 %v2452_v11, %v2451_v46  ;;  %v2481_v13 = vrot.slane %v2480_v41, 2 }
 0x293   : > { %v2454_v27 = vrot.slane %v2453_v42, 1  ;;  %v2482_v4 = vadd.f32 %v2481_v13, %v2480_v41 }
 0x295   : > { %v2455_v23 = vadd.f32 %v2454_v27, %v2453_v42  ;;  %v2483_v26 = vrot.slane %v2482_v4, 1 }
 0x297   : > { %v2484_v60 = vadd.f32 %v2483_v26, %v2482_v4 }
 0x299   : > { %v2485_v15 = vsel %vm2431_vm3, %v2455_v23, %v2484_v60 }
 0x29a   : > { %2487 = vst.msk [vmem:[%s540_s14] sm:$0x3] %vm2486_vm7, %v2485_v15 }
 0x2ca   : > { %v2908_v25 = vpop.f32.mrb[0].mxu0 }
 0x2cb   : > { %v2126_v31 = vadd.f32 %v2908_v25, %v2849_v35  ;;  %v2117_v63 = vpop.f32.mrb[1].mxu0 }
 0x2cc   : > { %v2118_v6 = vadd.f32 %v2849_v35, %v2117_v63  ;;  %v2909_v37 = vpop.f32.mrb[2].mxu0 }
 0x2cd   : > { %2367 = vst.msk [vmem:[%s4753_s26 + $0x10] sm:$0xff] %vm2364_vm8, %v2126_v31  ;;  %v2129_v18 = vadd.f32 %v2909_v37, %v2849_v35  ;;  %v2120_v52 = vpop.f32.mrb[3].mxu0  ;;  %v2404_v61 = vmul.f32 %v2126_v31, %v2126_v31  ;;  %v2384_v32 = vsel %vm2364_vm8, %v2126_v31, 0.0 }
 0x2ce   : > { %2365 = vst.msk [vmem:[%s4753_s26] sm:$0xff] %vm2364_vm8, %v2118_v6  ;;  %v2402_v7 = vmul.f32 %v2118_v6, %v2118_v6  ;;  %v2121_v58 = vadd.f32 %v2849_v35, %v2120_v52  ;;  %v2381_v45 = vsel %vm2364_vm8, %v2118_v6, 0.0 }
 0x2cf   : > { %2368 = vst.msk [vmem:[%s4753_s26 + $0x18] sm:$0xff] %vm2364_vm8, %v2129_v18  ;;  %v2405_v14 = vmul.f32 %v2129_v18, %v2129_v18  ;;  %v2413_v34 = vsel %vm2364_vm8, %v2404_v61, 0.0  ;;  %v2386_v1 = vsel %vm2364_vm8, %v2129_v18, 0.0 }
 0x2d0   : > { %2366 = vst.msk [vmem:[%s4753_s26 + $0x8] sm:$0xff] %vm2364_vm8, %v2121_v58  ;;  %v2382_v40 = vsel %vm2364_vm8, %v2121_v58, 0.0  ;;  %v2403_v43 = vmul.f32 %v2121_v58, %v2121_v58  ;;  %v2410_v56 = vsel %vm2364_vm8, %v2402_v7, 0.0 }
 0x2d1   : > { %v2383_v44 = vadd.f32 %v2382_v40, %v2381_v45  ;;  %v2415_v9 = vsel %vm2364_vm8, %v2405_v14, 0.0 }
 0x2d2   : > { %v2411_v0 = vsel %vm2364_vm8, %v2403_v43, 0.0 }
 0x2d3   : > { %v2385_v22 = vadd.f32 %v2384_v32, %v2383_v44  ;;  %v2412_v3 = vadd.f32 %v2411_v0, %v2410_v56 }
 0x2d5   : > { %v2414_v50 = vadd.f32 %v2413_v34, %v2412_v3  ;;  %v2387_v21 = vadd.f32 %v2386_v1, %v2385_v22 }
 0x2d7   : > { %v2416_v20 = vadd.f32 %v2415_v9, %v2414_v50 }
 0x306   : > { %v2912_v2 = vpop.f32.mrb[4].mxu0 }
 0x307   : > { %v2142_v47 = vadd.f32 %v2912_v2, %v2849_v35  ;;  %v2133_v38 = vpop.f32.mrb[5].mxu0 }
 0x308   : > { %v2134_v48 = vadd.f32 %v2849_v35, %v2133_v38  ;;  %v2913_v39 = vpop.f32.mrb[6].mxu0 }
 0x309   : > { %2371 = vst.msk [vmem:[%s4753_s26 + $0x30] sm:$0xff] %vm2364_vm8, %v2142_v47  ;;  %v2145_v8 = vadd.f32 %v2913_v39, %v2849_v35  ;;  %v2136_v24 = vpop.f32.mrb[7].mxu0  ;;  %v2408_v57 = vmul.f32 %v2142_v47, %v2142_v47  ;;  %v2392_v55 = vsel %vm2364_vm8, %v2142_v47, 0.0 }
 0x30a   : > { %2369 = vst.msk [vmem:[%s4753_s26 + $0x20] sm:$0xff] %vm2364_vm8, %v2134_v48  ;;  %v2388_v49 = vsel %vm2364_vm8, %v2134_v48, 0.0  ;;  %v2406_v33 = vmul.f32 %v2134_v48, %v2134_v48  ;;  %v2137_v10 = vadd.f32 %v2849_v35, %v2136_v24 }
 0x30b   : > { %v2389_v29 = vadd.f32 %v2388_v49, %v2387_v21  ;;  %2372 = vst.msk [vmem:[%s4753_s26 + $0x38] sm:$0xff] %vm2364_vm8, %v2145_v8  ;;  %v2409_v54 = vmul.f32 %v2145_v8, %v2145_v8  ;;  %v2421_v53 = vsel %vm2364_vm8, %v2408_v57, 0.0  ;;  %v2394_v30 = vsel %vm2364_vm8, %v2145_v8, 0.0 }
 0x30c   : > { %v2417_v12 = vsel %vm2364_vm8, %v2406_v33, 0.0  ;;  %2370 = vst.msk [vmem:[%s4753_s26 + $0x28] sm:$0xff] %vm2364_vm8, %v2137_v10  ;;  %v2390_v17 = vsel %vm2364_vm8, %v2137_v10, 0.0  ;;  %v2407_v36 = vmul.f32 %v2137_v10, %v2137_v10 }
 0x30d   : > { %v2418_v51 = vadd.f32 %v2417_v12, %v2416_v20  ;;  %v2391_v5 = vadd.f32 %v2390_v17, %v2389_v29  ;;  %v2423_v62 = vsel %vm2364_vm8, %v2409_v54, 0.0 }
 0x30e   : > { %v2419_v19 = vsel %vm2364_vm8, %v2407_v36, 0.0 }
 0x30f   : > { %v2393_v28 = vadd.f32 %v2392_v55, %v2391_v5  ;;  %v2420_v59 = vadd.f32 %v2419_v19, %v2418_v51 }
 0x311   : > { %v2395_v16 = vadd.f32 %v2394_v30, %v2393_v28  ;;  %v2422_v46 = vadd.f32 %v2421_v53, %v2420_v59 }
 0x313   : > { %v2396_v11 = vrot.slane %v2395_v16, 4  ;;  %v2424_v41 = vadd.f32 %v2423_v62, %v2422_v46 }
 0x315   : > { %v2397_v42 = vadd.f32 %v2396_v11, %v2395_v16  ;;  %v2425_v13 = vrot.slane %v2424_v41, 4 }
 0x317   : > { %v2398_v27 = vrot.slane %v2397_v42, 2  ;;  %v2426_v4 = vadd.f32 %v2425_v13, %v2424_v41 }
 0x319   : > { %v2399_v23 = vadd.f32 %v2398_v27, %v2397_v42  ;;  %v2427_v26 = vrot.slane %v2426_v4, 2 }
 0x31b   : > { %v2400_v60 = vrot.slane %v2399_v23, 1  ;;  %v2428_v15 = vadd.f32 %v2427_v26, %v2426_v4 }
 0x31d   : > { %v2429_v35 = vrot.slane %v2428_v15, 1  ;;  %v2401_v25 = vadd.f32 %v2400_v60, %v2399_v23 }
 0x31f   : > { %v2430_v31 = vadd.f32 %v2429_v35, %v2428_v15 }
 0x321   : > { %v2432_v63 = vsel %vm2431_vm3, %v2401_v25, %v2430_v31 }
 0x322   : > { %2434 = vst.msk [vmem:[%s523_s27] sm:$0x3] %vm2433_vm9, %v2432_v63 }
 0x323 PF: > { %s21_s17 = sadd.s32 1, %s3113_s17   ;;  %s4996_s13 = smov %s3105_s15 }
 0x324   : > { %p18_p10 = scmp.ge.s32.totalorder %s21_s17, 18   ;;  %s4997_s14 = smov %s3109_s16 }
 0x325   : > { %s4998_s15 = smov %s5001_s18  ;;  %s4999_s16 = smov %s5005_s19 }
 0x326   :  { %20 = sbr.rel (!%p18_p10) target bundleno = 3 (0x3), region = 120 }

// kernel: convblock3d_forward.6
= control target key start
LH: loop header
LB: loop body
LE: loop exit
PB: predicated region body
PF: predicated region fallthrough
CT: control target
= control target key end

     0   :  { %s2918_s27 = smov 0   ;;  %s2920_s28 = smov 0   ;;  %s4764_s0 = inlined_call_operand.vmem [shape: f32[2,10,10,10,2], index: 0, kind: input, shape index: {}, may-alias: {0,1,2}]   ;;  %s4765_s1 = inlined_call_operand.vmem [shape: f32[2,10,10,10,2], index: 1, kind: input, shape index: {}, may-alias: {0,1,2}]   ;;  %s4766_s2 = inlined_call_operand.vmem [shape: f32[2,10,10,10,2], index: 2, kind: input, shape index: {}, may-alias: {0,1,2}]   ;;  %s4767_s3 = inlined_call_operand.vmem [shape: bf16[54,5], index: 3, kind: input, shape index: {}]   ;;  %s4768_s4 = inlined_call_operand.vmem [shape: f32[1,5], index: 4, kind: input, shape index: {}]   ;;  %s4769_s5 = inlined_call_operand.vmem [shape: f32[1,2], index: 5, kind: input, shape index: {}]   ;;  %s4770_s6 = inlined_call_operand.vmem [shape: f32[1,2], index: 6, kind: input, shape index: {}]   ;;  %s4771_s7 = inlined_call_operand.vmem [shape: f32[2,8,8,8,5], index: 7, kind: output, shape index: {0}]   ;;  %s4772_s8 = inlined_call_operand.vmem [shape: f32[2,8,2,5], index: 8, kind: output, shape index: {1}]  }
   0x1   :  { %s2922_s29 = smov 0   ;;  %s2924_s30 = smov 0  }
   0x2   :  { %s2926_s9 = smov 0  }
   0x3 LB: > { %s28_s10 = sadd.s32 1, %s2846_s29  ;;  %s31_s11 = sadd.s32 1, %s2850_s30  ;;  %s2854_s9 = sphi %s2926_s9, %s19_s9   ;;  %s2850_s30 = sphi %s2924_s30, %s5006_s30   ;;  %s2846_s29 = sphi %s2922_s29, %s5005_s29   ;;  %s2842_s28 = sphi %s2920_s28, %s5004_s28   ;;  %s2838_s27 = sphi %s2918_s27, %s5003_s27  }
   0x4   : > { %p29_p0 = scmp.ge.s32.totalorder %s28_s10, 8  ;;  %p2684_p1 = scmp.ge.s32.totalorder %s2854_s9, 1 }
   0x5   : > { %p327_p2 = scmp.lt.s32.totalorder %s2854_s9, 17 }
   0x6   : > { %s5008_s10 = smov (%p29_p0, %s28_s10), 0  ;;  %s5010_s11 = smov (!%p29_p0, %s31_s11), %s2850_s30 }
   0x7   : > { %4821 = sst [smem:[#allocation2_spill]] %s5008_s10  ;;  %p328_p3 = pnand %p2684_p1, %p327_p2 }
   0x8   : > { %p33_p4 = scmp.ge.s32.totalorder %s5010_s11, 2 }
   0x9   : > { %331 = sbr.rel (%p328_p3) target bundleno = 929 (0x3a1), region = 48 }
   0xa   : > { %s5012_s11 = smov (%p33_p4, %s5010_s11), 0 }
   0xb   : > { %4822 = sst [smem:[#allocation3_spill]] %s5012_s11 }
  0x10   : > { %v446_v0 = vlaneseq  ;;  %v2856_v5 = vmov 0.0   ;;  %p397_p5 = scmp.lt.s32.totalorder %s2842_s28, 1  ;;  %p399_p6 = scmp.lt.s32.totalorder %s2838_s27, 9  ;;  %v2987_v25 = vld [vmem:[%s4769_s5] ss:$0 sm:$0xff] }
  0x11   : > { %s2959_s12 = sadd.s32 1, %s2838_s27  ;;  %s2970_s15 = sadd.s32 2, %s2838_s27  ;;  %v3001_v29 = vld [vmem:[%s4770_s6] ss:$0 sm:$0xff] }
  0x12   : > { %v447_v1 = vshrl.u32 %v446_v0, 7  ;;  %v450_v2 = vand.u32 127, %v446_v0  ;;  %s5014_s28 = smov (!%p397_p5, %s2842_s28), 1  ;;  %p409_p7 = scmp.lt.s32.totalorder %s2959_s12, 9 }
  0x13   : > { %s400_s13 = scalar_select %p399_p6, %s2838_s27, 9 }
  0x14   : > { %vm451_vm0 = vcmp.gt.s32.totalorder %v447_v1, 0  ;;  %vm457_vm1 = vcmp.gt.s32.totalorder %v450_v2, 0  ;;  %vm460_vm2 = vcmp.lt.s32.totalorder %v450_v2, 9  ;;  %v491_v3 = vsub.s32 2, %v447_v1  ;;  %s2750_s14 = smul.u32 200, %s5014_s28  ;;  %p420_p8 = scmp.lt.s32.totalorder %s2970_s15, 9 }
  0x15   : > { %vm458_vm3 = vmand %vm451_vm0, %vm457_vm1  ;;  %v469_v4 = vsub.s32 0, %v447_v1  ;;  %v502_v9 = vsub.s32 3, %v447_v1  ;;  %v480_v11 = vsub.s32 1, %v447_v1  ;;  %v513_v13 = vsub.s32 4, %v447_v1  ;;  %s2749_s16 = smul.u32 20, %s400_s13  ;;  %p731_p9 = scmp.gt.s32.totalorder %s2838_s27, 0 }
  0x16   : > { %vm461_vm4 = vmand %vm458_vm3, %vm460_vm2  ;;  %v524_v15 = vsub.s32 5, %v447_v1  ;;  %v448_v16 = vadd.s32 8, %v447_v1  ;;  %v535_v18 = vsub.s32 6, %v447_v1  ;;  %v546_v20 = vsub.s32 7, %v447_v1  ;;  %s410_s17 = scalar_select %p409_p7, %s2959_s12, 9 }
  0x17   : > { %v2693_v6 = vsel %vm461_vm4, 1.0, %v2856_v5  ;;  %s403_s18 = sadd.s32 %s2750_s14, %s2749_s16  ;;  %p908_p10 = scmp.gt.s32.totalorder %s2959_s12, 0 }
  0x18   : > { %v492_v7 = vrot.slane %v2693_v6, %v491_v3  ;;  %v470_v8 = vrot.slane %v2693_v6, %v469_v4  ;;  %v503_v10 = vrot.slane %v2693_v6, %v502_v9  ;;  %v481_v12 = vrot.slane %v2693_v6, %v480_v11  ;;  %s2751_s19 = smul.u32 20, %s410_s17  ;;  %s2685_s21 = sshll.u32 %s403_s18, 3 }
  0x19   : > { %v514_v14 = vrot.slane %v2693_v6, %v513_v13  ;;  %v525_v17 = vrot.slane %v2693_v6, %v524_v15  ;;  %vm454_vm5 = vcmp.lt.s32.totalorder %v448_v16, 9  ;;  %v536_v19 = vrot.slane %v2693_v6, %v535_v18  ;;  %s421_s20 = scalar_select %p420_p8, %s2970_s15, 9 }
  0x1a   : > { %494 = vbcast.lane.b32.xlu1 %v492_v7, 256  ;;  %472 = vbcast.lane.b32.xlu0 %v470_v8, 256  ;;  %vm459_vm6 = vmand %vm454_vm5, %vm457_vm1  ;;  %v547_v21 = vrot.slane %v2693_v6, %v546_v20  ;;  %s413_s22 = sadd.s32 %s2751_s19, %s2750_s14  ;;  %s2982_s26 = scalar_lea.vmem %s4764_s0, %s2685_s21 }
  0x1b   : > { %vm462_vm7 = vmand %vm459_vm6, %vm460_vm2  ;;  %s2752_s23 = smul.u32 20, %s421_s20  ;;  %s2686_s13 = sshll.u32 %s413_s22, 3  ;;  %v583_v26 = vld [vmem:[%s2982_s26 + $0x20] sm:$0xff]  ;;  %v584_v30 = vld [vmem:[%s2982_s26 + $0x28] sm:$0x3] }
  0x1c   : > { %v2694_v22 = vsel %vm462_vm7, 1.0, %v2856_v5  ;;  %s2994_s19 = scalar_lea.vmem %s4765_s1, %s2686_s13  ;;  %v579_v27 = vld [vmem:[%s2982_s26] sm:$0xff]  ;;  %v609_v28 = vmul.f32 %v2987_v25, %v583_v26  ;;  %p3014_p11 = pnand %p731_p9, %p399_p6  ;;  %v610_v35 = vmul.f32 %v2987_v25, %v584_v30  ;;  %v580_v36 = vld [vmem:[%s2982_s26 + $0x8] sm:$0x3]  ;;  %v586_v50 = vld [vmem:[%s2982_s26 + $0x38] sm:$0x3] }
  0x1d   : > { %v558_v23 = vrot.slane %v2694_v22, %v469_v4  ;;  %v569_v24 = vrot.slane %v2694_v22, %v480_v11  ;;  %s424_s16 = sadd.s32 %s2752_s23, %s2750_s14  ;;  %v771_v31 = vld [vmem:[%s2994_s19 + $0x20] sm:$0xff]  ;;  %v605_v32 = vmul.f32 %v2987_v25, %v579_v27  ;;  %v772_v33 = vld [vmem:[%s2994_s19 + $0x28] sm:$0x3]  ;;  %p1085_p12 = scmp.gt.s32.totalorder %s2970_s15, 0  ;;  %v606_v41 = vmul.f32 %v2987_v25, %v580_v36  ;;  %v585_v62 = vld [vmem:[%s2982_s26 + $0x30] sm:$0xff] }
  0x1e   : > { %498 = vbcast.lane.b32.xlu1 %v492_v7, 264  ;;  %476 = vbcast.lane.b32.xlu0 %v470_v8, 264  ;;  %s2687_s20 = sshll.u32 %s424_s16, 3  ;;  %v635_v34 = vadd.f32 %v3001_v29, %v609_v28  ;;  %v791_v37 = vmul.f32 %v2987_v25, %v771_v31  ;;  %p3026_p13 = pnand %p908_p10, %p409_p7  ;;  %v792_v40 = vmul.f32 %v2987_v25, %v772_v33  ;;  %v774_v3 = vld [vmem:[%s2994_s19 + $0x38] sm:$0x3]  ;;  %v581_v28 = vld [vmem:[%s2982_s26 + $0x10] sm:$0xff] }
  0x1f   : > { %s3010_s22 = scalar_lea.vmem %s4766_s2, %s2687_s20  ;;  %v631_v39 = vadd.f32 %v3001_v29, %v605_v32  ;;  %v636_v44 = vadd.f32 %v3001_v29, %v610_v35  ;;  %p3044_p0 = pnand %p1085_p12, %p420_p8  ;;  %v632_v53 = vadd.f32 %v3001_v29, %v606_v41  ;;  %v612_v61 = vmul.f32 %v2987_v25, %v586_v50  ;;  %v582_v18 = vld [vmem:[%s2982_s26 + $0x18] sm:$0x3] }
  0x20   : > { %v948_v38 = vld [vmem:[%s3010_s22 + $0x20] sm:$0xff]  ;;  %s2697_s25 = scalar_select %p3014_p11, 0.0, 1.0  ;;  %v675_v42 = vmul.f32 0.01, %v635_v34  ;;  %vm655_vm8 = vcmp.ge.f32.partialorder %v635_v34, 0.0  ;;  %v811_v45 = vadd.f32 %v3001_v29, %v791_v37  ;;  %v812_v49 = vadd.f32 %v3001_v29, %v792_v40 }
  0x21   : > { %v944_v43 = vld [vmem:[%s3010_s22] sm:$0xff]  ;;  %v968_v46 = vmul.f32 %v2987_v25, %v948_v38  ;;  %v949_v47 = vld [vmem:[%s3010_s22 + $0x28] sm:$0x3]  ;;  %s2698_s13 = scalar_select %p3026_p13, 0.0, 1.0  ;;  %vm651_vm9 = vcmp.ge.f32.partialorder %v631_v39, 0.0  ;;  %v611_v9 = vmul.f32 %v2987_v25, %v585_v62  ;;  %v638_v13 = vadd.f32 %v3001_v29, %v612_v61 }
  0x22   : > { %509 = vbcast.lane.b32.xlu1 %v503_v10, 264  ;;  %505 = vbcast.lane.b32.xlu0 %v503_v10, 256  ;;  %v671_v48 = vmul.f32 0.01, %v631_v39  ;;  %v3053_v51 = vstv %s2697_s25  ;;  %v964_v52 = vmul.f32 %v2987_v25, %v944_v43  ;;  %v945_v54 = vld [vmem:[%s3010_s22 + $0x8] sm:$0x3]  ;;  %v3058_v55 = vsel %vm655_vm8, %v635_v34, %v675_v42 }
  0x23   : > { %4826 = vst [vmem:[#allocation4_spill] sm:$0xff] %v3053_v51  ;;  %vm656_vm10 = vcmp.ge.f32.partialorder %v636_v44, 0.0  ;;  %v676_v56 = vmul.f32 0.01, %v636_v44  ;;  %v969_v57 = vmul.f32 %v2987_v25, %v949_v47  ;;  %v951_v58 = vld [vmem:[%s3010_s22 + $0x38] sm:$0x3]  ;;  %v988_v60 = vadd.f32 %v3001_v29, %v968_v46 }
  0x24   : > { %vm831_vm11 = vcmp.ge.f32.partialorder %v811_v45, 0.0  ;;  %v851_v59 = vmul.f32 0.01, %v811_v45  ;;  %v3065_v63 = vstv %s2698_s13  ;;  %s2699_s15 = scalar_select %p3044_p0, 0.0, 1.0  ;;  %v3070_v0 = vsel %vm651_vm9, %v631_v39, %v671_v48  ;;  %v950_v10 = vld [vmem:[%s3010_s22 + $0x30] sm:$0xff] }
  0x25   : > { %v852_v1 = vmul.f32 0.01, %v812_v49  ;;  %v965_v2 = vmul.f32 %v2987_v25, %v945_v54  ;;  %v984_v4 = vadd.f32 %v3001_v29, %v964_v52  ;;  %vm832_vm12 = vcmp.ge.f32.partialorder %v812_v49, 0.0  ;;  %v946_v33 = vld [vmem:[%s3010_s22 + $0x10] sm:$0xff]  ;;  %v588_v46 = vld [vmem:[%s2982_s26 + $0x48] sm:$0x3] }
  0x26   : > { %487 = vbcast.lane.b32.xlu1 %v481_v12, 264  ;;  %483 = vbcast.lane.b32.xlu0 %v481_v12, 256  ;;  %v672_v5 = vmul.f32 0.01, %v632_v53  ;;  %v971_v6 = vmul.f32 %v2987_v25, %v951_v58  ;;  %v3077_v7 = vsel %vm656_vm10, %v636_v44, %v676_v56  ;;  %v989_v8 = vadd.f32 %v3001_v29, %v969_v57  ;;  %v590_v50 = vld [vmem:[%s2982_s26 + $0x58] sm:$0x3] }
  0x27   : > { %vm652_vm13 = vcmp.ge.f32.partialorder %v632_v53, 0.0  ;;  %v3083_v11 = vsel %vm831_vm11, %v811_v45, %v851_v59  ;;  %v1028_v12 = vmul.f32 0.01, %v988_v60  ;;  %vm1008_vm14 = vcmp.ge.f32.partialorder %v988_v60, 0.0  ;;  %v953_v57 = vld [vmem:[%s3010_s22 + $0x48] sm:$0x3] }
  0x28   : > { %v3087_v15 = vstv %s2699_s15  ;;  %v3089_v16 = vsel %vm832_vm12, %v812_v49, %v852_v1  ;;  %vm1004_vm15 = vcmp.ge.f32.partialorder %v984_v4, 0.0  ;;  %v991_v20 = vadd.f32 %v3001_v29, %v971_v6  ;;  %v589_v61 = vld [vmem:[%s2982_s26 + $0x50] sm:$0xff]  ;;  %s2857_s16 = smov 6   ;;  %s2858_s17 = smov 12  }
  0x29   : > { %v970_v22 = vmul.f32 %v2987_v25, %v950_v10  ;;  %vm1009_vm0 = vcmp.ge.f32.partialorder %v989_v8, 0.0  ;;  %v1029_v26 = vmul.f32 0.01, %v989_v8  ;;  %v637_v27 = vadd.f32 %v3001_v29, %v611_v9  ;;  %v952_v10 = vld [vmem:[%s3010_s22 + $0x40] sm:$0xff]  ;;  %s2859_s18 = smov 4   ;;  %s2860_s20 = smov 2  }
  0x2a   : > { %520 = vbcast.lane.b32.xlu1 %v514_v14, 264  ;;  %516 = vbcast.lane.b32.xlu0 %v514_v14, 256  ;;  %v794_v14 = vmul.f32 %v2987_v25, %v774_v3  ;;  %v1048_v30 = vsel %vm1008_vm14, %v988_v60, %v1028_v12  ;;  %vm658_vm1 = vcmp.ge.f32.partialorder %v638_v13, 0.0  ;;  %v678_v31 = vmul.f32 0.01, %v638_v13  ;;  %s2861_s10 = smov 8  }
  0x2b   : > { %v608_v32 = vmul.f32 %v2987_v25, %v582_v18  ;;  %v1031_v38 = vmul.f32 0.01, %v991_v20  ;;  %v990_v39 = vadd.f32 %v3001_v29, %v970_v22  ;;  %v607_v40 = vmul.f32 %v2987_v25, %v581_v28  ;;  %s2862_s11 = smov 10   ;;  %s2863_s14 = smov 14  }
  0x2c   : > { %v3105_v35 = vadd.f32 %v3001_v29, %v794_v14  ;;  %vm1011_vm3 = vcmp.ge.f32.partialorder %v991_v20, 0.0  ;;  %v677_v44 = vmul.f32 0.01, %v637_v27  ;;  %v966_v45 = vmul.f32 %v2987_v25, %v946_v33  ;;  %s2864_s12 = smov 16   ;;  %s2865_s13 = smov 18  }
  0x2d   : > { %v1049_v47 = vsel %vm1009_vm0, %v989_v8, %v1029_v26  ;;  %v3120_v48 = vsel %vm658_vm1, %v638_v13, %v678_v31  ;;  %vm657_vm4 = vcmp.ge.f32.partialorder %v637_v27, 0.0  ;;  %v634_v49 = vadd.f32 %v3001_v29, %v608_v32  ;;  %s2866_s15 = smov 20   ;;  %s2872_s23 = smov 32  }
  0x2e   : > { %531 = vbcast.lane.b32.xlu1 %v525_v17, 264  ;;  %527 = vbcast.lane.b32.xlu0 %v525_v17, 256  ;;  %v985_v17 = vadd.f32 %v3001_v29, %v965_v2  ;;  %v3133_v58 = vsel %vm1011_vm3, %v991_v20, %v1031_v38  ;;  %vm1010_vm5 = vcmp.ge.f32.partialorder %v990_v39, 0.0  ;;  %v633_v59 = vadd.f32 %v3001_v29, %v607_v40  ;;  %v594_v40 = vld [vmem:[%s2982_s26 + $0x78] sm:$0x3]  ;;  %p430_p1 = scmp.lt.s32.totalorder %s2838_s27, 7 }
  0x2f   : > { %v614_v60 = vmul.f32 %v2987_v25, %v588_v46  ;;  %v3142_v2 = vsel %vm657_vm4, %v637_v27, %v677_v44  ;;  %v1030_v3 = vmul.f32 0.01, %v990_v39  ;;  %vm654_vm6 = vcmp.ge.f32.partialorder %v634_v49, 0.0 }
  0x30   : > { %v1025_v34 = vmul.f32 0.01, %v985_v17  ;;  %vm1005_vm2 = vcmp.ge.f32.partialorder %v985_v17, 0.0  ;;  %v674_v8 = vmul.f32 0.01, %v634_v49  ;;  %v973_v9 = vmul.f32 %v2987_v25, %v953_v57  ;;  %s5016_s27 = smov (!%p430_p1, %s2838_s27), 7 }
  0x31   : > { %v615_v14 = vmul.f32 %v2987_v25, %v589_v61  ;;  %vm653_vm8 = vcmp.ge.f32.partialorder %v633_v59, 0.0  ;;  %v673_v18 = vmul.f32 0.01, %v633_v59  ;;  %v3153_v20 = vadd.f32 %v3001_v29, %v614_v60 }
  0x32   : > { %542 = vbcast.lane.b32.xlu1 %v536_v19, 264  ;;  %538 = vbcast.lane.b32.xlu0 %v536_v19, 256  ;;  %v3093_v19 = vsel %vm652_vm13, %v632_v53, %v672_v5  ;;  %v1045_v52 = vsel %vm1005_vm2, %v985_v17, %v1025_v34  ;;  %v3126_v53 = vmul.f32 0.01, %v3105_v35  ;;  %v616_v5 = vmul.f32 %v2987_v25, %v590_v50 }
  0x33   : > { %v972_v27 = vmul.f32 %v2987_v25, %v952_v10  ;;  %v1050_v32 = vsel %vm1010_vm5, %v990_v39, %v1030_v3  ;;  %v694_v34 = vsel %vm654_vm6, %v634_v49, %v674_v8  ;;  %v641_v38 = vadd.f32 %v3001_v29, %v615_v14 }
  0x34   : > { %v642_v28 = vadd.f32 %v3001_v29, %v616_v5  ;;  %v3179_v39 = vmul.f32 0.01, %v3153_v20  ;;  %v993_v50 = vadd.f32 %v3001_v29, %v973_v9  ;;  %vm660_vm12 = vcmp.ge.f32.partialorder %v3153_v20, 0.0 }
  0x35   : > { %vm661_vm11 = vcmp.ge.f32.partialorder %v641_v38, 0.0  ;;  %v681_v10 = vmul.f32 0.01, %v641_v38  ;;  %vm834_vm3 = vcmp.ge.f32.partialorder %v3105_v35, 0.0 }
  0x36   : > { %553 = vbcast.lane.b32.xlu1 %v547_v21, 264  ;;  %549 = vbcast.lane.b32.xlu0 %v547_v21, 256  ;;  %v773_v21 = vld [vmem:[%s2994_s19 + $0x30] sm:$0xff]  ;;  %vm662_vm10 = vcmp.ge.f32.partialorder %v642_v28, 0.0  ;;  %v682_v5 = vmul.f32 0.01, %v642_v28 }
  0x37   : > { %v793_v36 = vmul.f32 %v2987_v25, %v773_v21  ;;  %v776_v21 = vld [vmem:[%s2994_s19 + $0x48] sm:$0x3]  ;;  %vm1013_vm13 = vcmp.ge.f32.partialorder %v993_v50, 0.0 }
  0x39   : > { %v3129_v54 = vadd.f32 %v3001_v29, %v793_v36 }
  0x3a   : > { %564 = vbcast.lane.b32.xlu1 %v558_v23, 264  ;;  %560 = vbcast.lane.b32.xlu0 %v558_v23, 256  ;;  %v947_v23 = vld [vmem:[%s3010_s22 + $0x18] sm:$0x3] }
  0x3b   : > { %v967_v37 = vmul.f32 %v2987_v25, %v947_v23 }
  0x3d   : > { %v987_v56 = vadd.f32 %v3001_v29, %v967_v37  ;;  %v3169_v37 = vmul.f32 %v2987_v25, %v776_v21 }
  0x3e   : > { %575 = vbcast.lane.b32.xlu1 %v569_v24, 264  ;;  %571 = vbcast.lane.b32.xlu0 %v569_v24, 256  ;;  %v1024_v24 = vmul.f32 0.01, %v984_v4 }
  0x3f   : > { %vm1007_vm7 = vcmp.ge.f32.partialorder %v987_v56, 0.0  ;;  %v1027_v13 = vmul.f32 0.01, %v987_v56 }
  0x40   : > { %v1044_v43 = vsel %vm1004_vm15, %v984_v4, %v1024_v24  ;;  %v986_v4 = vadd.f32 %v3001_v29, %v966_v45 }
  0x41   : > { %v1047_v36 = vsel %vm1007_vm7, %v987_v56, %v1027_v13  ;;  %vm833_vm7 = vcmp.ge.f32.partialorder %v3129_v54, 0.0 }
  0x42   : > { %v1026_v26 = vmul.f32 0.01, %v986_v4  ;;  %vm1006_vm9 = vcmp.ge.f32.partialorder %v986_v4, 0.0 }
  0x44   : > { %v1046_v49 = vsel %vm1006_vm9, %v986_v4, %v1026_v26  ;;  %v587_v4 = vld [vmem:[%s2982_s26 + $0x40] sm:$0xff] }
  0x8c   : > { %v3111_v41 = vpop.permute.xlu1 %494  ;;  %v3113_v42 = vpop.permute.xlu0 %472 }
  0x8d   : > { %v1064_v6 = vmul.f32 %v1044_v43, %v3113_v42  ;;  %v1068_v31 = vmul.f32 %v1048_v30, %v3111_v41  ;;  %v593_v43 = vld [vmem:[%s2982_s26 + $0x70] sm:$0xff]  ;;  %v693_v30 = vsel %vm653_vm8, %v633_v59, %v673_v18  ;;  %v620_v59 = vmul.f32 %v2987_v25, %v594_v40 }
  0x8e   : > { %v619_v60 = vmul.f32 %v2987_v25, %v593_v43  ;;  %v702_v43 = vsel %vm662_vm10, %v642_v28, %v682_v5 }
  0x8f   : > { %v1091_v33 = vmul.f32 %v3087_v15, %v1064_v6  ;;  %v1095_v56 = vmul.f32 %v3087_v15, %v1068_v31 }
  0x90   : > { %v3138_v62 = vpop.permute.xlu1 %498  ;;  %v3140_v1 = vpop.permute.xlu0 %476  ;;  %v645_v26 = vadd.f32 %v3001_v29, %v619_v60  ;;  %v591_v60 = vld [vmem:[%s2982_s26 + $0x60] sm:$0xff] }
  0x91   : > { %v1065_v12 = vmul.f32 %v1045_v52, %v3140_v1  ;;  %v1069_v17 = vmul.f32 %v1049_v47, %v3138_v62  ;;  %v992_v52 = vadd.f32 %v3001_v29, %v972_v27 }
  0x92   : > { %vm665_vm0 = vcmp.ge.f32.partialorder %v645_v26, 0.0 }
  0x93   : > { %v1092_v24 = vmul.f32 %v3087_v15, %v1065_v12  ;;  %v1096_v44 = vmul.f32 %v3087_v15, %v1069_v17  ;;  %vm1012_vm14 = vcmp.ge.f32.partialorder %v992_v52, 0.0  ;;  %v1032_v40 = vmul.f32 0.01, %v992_v52 }
  0x94   : > { %v3156_v22 = vpop.permute.xlu1 %509  ;;  %v3158_v23 = vpop.permute.xlu0 %505 }
  0x95   : > { %v3175_v45 = vpack.c.bf16 %v1092_v24, %v1091_v33  ;;  %v3196_v6 = vpack.c.bf16 %v1096_v44, %v1095_v56  ;;  %v1071_v8 = vmul.f32 %v3133_v58, %v3156_v22  ;;  %v1070_v12 = vmul.f32 %v1050_v32, %v3158_v23  ;;  %v775_v33 = vld [vmem:[%s2994_s19 + $0x40] sm:$0xff] }
  0x96   : > { %v613_v58 = vmul.f32 %v2987_v25, %v587_v4  ;;  %v646_v24 = vadd.f32 %v3001_v29, %v620_v59  ;;  %v1033_v32 = vmul.f32 0.01, %v993_v50  ;;  %v701_v44 = vsel %vm661_vm11, %v641_v38, %v681_v10 }
  0x97   : > { %1891 = vrot.lane.b32.xlu1 %v3175_v45, %s2857_s16  ;;  %v1097_v56 = vmul.f32 %v3087_v15, %v1070_v12  ;;  %v795_v28 = vmul.f32 %v2987_v25, %v775_v33  ;;  %v617_v10 = vmul.f32 %v2987_v25, %v591_v60 }
  0x98   : > { %v3181_v46 = vpop.permute.xlu1 %487  ;;  %v3183_v47 = vpop.permute.xlu0 %483  ;;  %vm666_vm15 = vcmp.ge.f32.partialorder %v646_v24, 0.0  ;;  %v1053_v5 = vsel %vm1013_vm13, %v993_v50, %v1033_v32 }
  0x99   : > { %v714_v57 = vmul.f32 %v694_v34, %v3181_v46  ;;  %v1067_v61 = vmul.f32 %v1047_v36, %v3181_v46  ;;  %v713_v3 = vmul.f32 %v693_v30, %v3183_v47  ;;  %v1066_v17 = vmul.f32 %v1046_v49, %v3183_v47  ;;  %v592_v34 = vld [vmem:[%s2982_s26 + $0x68] sm:$0x3] }
  0x9a   : > { %v718_v36 = vmul.f32 %v3120_v48, %v3156_v22  ;;  %v1098_v30 = vmul.f32 %v3087_v15, %v1071_v8  ;;  %v717_v49 = vmul.f32 %v3142_v2, %v3158_v23  ;;  %v618_v38 = vmul.f32 %v2987_v25, %v592_v34 }
  0x9b   : > { %v740_v9 = vmul.f32 %v3053_v51, %v714_v57  ;;  %v1094_v13 = vmul.f32 %v3087_v15, %v1067_v61  ;;  %v739_v14 = vmul.f32 %v3053_v51, %v713_v3  ;;  %1895 = vrot.lane.b32.xlu1 %v3196_v6, %s2857_s16  ;;  %v1093_v31 = vmul.f32 %v3087_v15, %v1066_v17 }
  0x9c   : > { %v3205_v18 = vpop.permute.xlu1 %520  ;;  %v3208_v21 = vpop.permute.xlu0 %516  ;;  %v686_v61 = vmul.f32 0.01, %v646_v24  ;;  %v685_v3 = vmul.f32 0.01, %v645_v26  ;;  %v639_v8 = vadd.f32 %v3001_v29, %v613_v58  ;;  %v744_v12 = vmul.f32 %v3053_v51, %v718_v36 }
  0x9d   : > { %v3215_v27 = vpack.c.bf16 %v740_v9, %v739_v14  ;;  %v3228_v57 = vpack.c.bf16 %v1094_v13, %v1093_v31  ;;  %v1052_v9 = vsel %vm1012_vm14, %v992_v52, %v1032_v40  ;;  %v743_v13 = vmul.f32 %v3053_v51, %v717_v49 }
  0x9e   : > { %v3249_v14 = vpack.c.bf16 %v1098_v30, %v1097_v56  ;;  %v3253_v17 = vadd.f32 %v3001_v29, %v3169_v37  ;;  %v712_v52 = vmul.f32 %v3093_v19, %v3140_v1  ;;  %v644_v31 = vadd.f32 %v3001_v29, %v618_v38 }
  0x9f   : > { %4827 = vst [vmem:[#allocation5_spill] sm:$0xff] %v3215_v27  ;;  %1226 = vrot.lane.b32.xlu0 %v3215_v27, %s2857_s16  ;;  %1963 = vrot.lane.b32.xlu1 %v3228_v57, %s2858_s17  ;;  %v706_v32 = vsel %vm666_vm15, %v646_v24, %v686_v61  ;;  %v705_v33 = vsel %vm665_vm0, %v645_v26, %v685_v3  ;;  %vm659_vm1 = vcmp.ge.f32.partialorder %v639_v8, 0.0  ;;  %v679_v30 = vmul.f32 0.01, %v639_v8 }
  0xa0   : > { %v3232_v59 = vpop.permute.xlu1 %531  ;;  %v3234_v48 = vpop.permute.xlu0 %527  ;;  %v1073_v34 = vmul.f32 %v1053_v5, %v3205_v18  ;;  %v1072_v36 = vmul.f32 %v1052_v9, %v3208_v21  ;;  %v700_v19 = vsel %vm660_vm12, %v3153_v20, %v3179_v39  ;;  %v815_v24 = vadd.f32 %v3001_v29, %v795_v28 }
  0xa1   : > { %v722_v2 = vmul.f32 %v702_v43, %v3232_v59  ;;  %v721_v4 = vmul.f32 %v701_v44, %v3234_v48  ;;  %v643_v26 = vadd.f32 %v3001_v29, %v617_v10  ;;  %v711_v43 = vmul.f32 %v3070_v0, %v3113_v42 }
  0xa2   : > { %v3278_v44 = vpack.c.bf16 %v744_v12, %v743_v13  ;;  %v4773_v49 = vrot.slane %v3215_v27, 1  ;;  %v716_v20 = vmul.f32 %v3077_v7, %v3138_v62  ;;  %vm664_vm2 = vcmp.ge.f32.partialorder %v644_v31, 0.0 }
  0xa3   : > { %1893 = vrot.lane.b32.xlu0 %v3228_v57, %s2857_s16  ;;  %v748_v37 = vmul.f32 %v3053_v51, %v722_v2  ;;  %v747_v40 = vmul.f32 %v3053_v51, %v721_v4  ;;  %1967 = vrot.lane.b32.xlu1 %v3249_v14, %s2858_s17  ;;  %v738_v28 = vmul.f32 %v3053_v51, %v712_v52  ;;  %v684_v7 = vmul.f32 0.01, %v644_v31 }
  0xa4   : > { %v3257_v50 = vpop.permute.xlu1 %542  ;;  %v3259_v58 = vpop.permute.xlu0 %538  ;;  %4828 = vst [vmem:[#allocation6_spill] sm:$0xff] %v3278_v44  ;;  %v1100_v38 = vmul.f32 %v3087_v15, %v1073_v34  ;;  %v1099_v61 = vmul.f32 %v3087_v15, %v1072_v36  ;;  %v683_v2 = vmul.f32 0.01, %v643_v26  ;;  %v715_v9 = vmul.f32 %v3058_v55, %v3111_v41  ;;  %v778_v34 = vld [vmem:[%s2994_s19 + $0x58] sm:$0x3]  ;;  %v777_v36 = vld [vmem:[%s2994_s19 + $0x50] sm:$0xff] }
  0xa5   : > { %v3295_v3 = vpack.c.bf16 %v748_v37, %v747_v40  ;;  %v737_v10 = vmul.f32 %v3053_v51, %v711_v43  ;;  %vm663_vm4 = vcmp.ge.f32.partialorder %v643_v26, 0.0  ;;  %v3308_v12 = vrot.slane %v3278_v44, 1 }
  0xa6   : > { %v742_v13 = vmul.f32 %v3053_v51, %v716_v20  ;;  %vm836_vm5 = vcmp.ge.f32.partialorder %v3253_v17, 0.0  ;;  %v856_v52 = vmul.f32 0.01, %v3253_v17  ;;  %v3316_v55 = vpack.c.bf16 %v1100_v38, %v1099_v61 }
  0xa7   : > { %1897 = vrot.lane.b32.xlu0 %v3249_v14, %s2857_s16  ;;  %1211 = vrot.lane.b32.xlu1 %v4773_v49, %s2859_s18  ;;  %v3325_v40 = vrot.slane %v3295_v3, 1  ;;  %vm835_vm6 = vcmp.ge.f32.partialorder %v815_v24, 0.0  ;;  %v855_v43 = vmul.f32 0.01, %v815_v24  ;;  %v704_v20 = vsel %vm664_vm2, %v644_v31, %v684_v7 }
  0xa8   : > { %v3283_v56 = vpop.permute.xlu1 %553  ;;  %v3285_v60 = vpop.permute.xlu0 %549  ;;  %v853_v38 = vmul.f32 0.01, %v3129_v54  ;;  %v798_v61 = vmul.f32 %v2987_v25, %v778_v34  ;;  %v797_v31 = vmul.f32 %v2987_v25, %v777_v36  ;;  %v891_v34 = vmul.f32 %v3083_v11, %v3111_v41 }
  0xa9   : > { %v726_v39 = vmul.f32 %v706_v32, %v3283_v56  ;;  %v725_v0 = vmul.f32 %v705_v33, %v3285_v60  ;;  %v699_v32 = vsel %vm659_vm1, %v639_v8, %v679_v30  ;;  %v3314_v33 = vpack.c.bf16 %v738_v28, %v737_v10 }
  0xaa   : > { %v703_v8 = vsel %vm663_vm4, %v643_v26, %v683_v2  ;;  %v741_v30 = vmul.f32 %v3053_v51, %v715_v9  ;;  %v1131_v28 = vshll.u32 %v3215_v27, 16  ;;  %v724_v9 = vmul.f32 %v704_v20, %v3257_v50 }
  0xab   : > { %v752_v4 = vmul.f32 %v3053_v51, %v726_v39  ;;  %v751_v5 = vmul.f32 %v3053_v51, %v725_v0  ;;  %1965 = vrot.lane.b32.xlu0 %v3196_v6, %s2858_s17  ;;  %4829 = vst [vmem:[#allocation7_spill] sm:$0xff] %v3314_v33  ;;  %1215 = vrot.lane.b32.xlu1 %v3308_v12, %s2859_s18  ;;  %v1201_v2 = vrot.slane %v3314_v33, 1  ;;  %v1129_v11 = vshrl.u32 %v3215_v27, 16 }
  0xac   : > { %v720_v39 = vmul.f32 %v700_v19, %v3205_v18  ;;  %v719_v0 = vmul.f32 %v699_v32, %v3208_v21  ;;  %v3339_v26 = vpack.c.bf16 %v742_v13, %v741_v30  ;;  %v892_v19 = vmul.f32 %v3089_v16, %v3138_v62 }
  0xad   : > { %v3320_v37 = vpack.c.bf16 %v752_v4, %v751_v5  ;;  %v876_v4 = vsel %vm836_vm5, %v3253_v17, %v856_v52  ;;  %v875_v5 = vsel %vm835_vm6, %v815_v24, %v855_v43  ;;  %v723_v10 = vmul.f32 %v703_v8, %v3259_v58 }
  0xae   : > { %v746_v16 = vmul.f32 %v3053_v51, %v720_v39  ;;  %v745_v62 = vmul.f32 %v3053_v51, %v719_v0  ;;  %v1133_v13 = vrot.slane %v1131_v28, 1  ;;  %v1145_v32 = vshll.u32 %v3278_v44, 16 }
  0xaf   : > { %4830 = vst [vmem:[#allocation8_spill] sm:$0xff] %v3320_v37  ;;  %1969 = vrot.lane.b32.xlu0 %v3316_v55, %s2858_s17  ;;  %1219 = vrot.lane.b32.xlu1 %v3325_v40, %s2859_s18  ;;  %v3346_v7 = vrot.slane %v3320_v37, 1  ;;  %v874_v17 = vsel %vm834_vm3, %v3105_v35, %v3126_v53  ;;  %v818_v24 = vadd.f32 %v3001_v29, %v798_v61  ;;  %v3375_v41 = vrot.slane %v3339_v26, 1 }
  0xb0   : > { %v817_v52 = vadd.f32 %v3001_v29, %v797_v31  ;;  %v919_v36 = vmul.f32 %v3065_v63, %v892_v19  ;;  %v873_v43 = vsel %vm833_vm7, %v3129_v54, %v853_v38  ;;  %v896_v35 = vmul.f32 %v876_v4, %v3205_v18 }
  0xb1   : > { %4831 = vst [vmem:[#allocation9_spill] sm:$0xff] %v3346_v7  ;;  %v895_v53 = vmul.f32 %v875_v5, %v3208_v21  ;;  %v750_v20 = vmul.f32 %v3053_v51, %v724_v9  ;;  %v749_v8 = vmul.f32 %v3053_v51, %v723_v10  ;;  %v3381_v30 = vpack.c.bf16 %v746_v16, %v745_v62 }
  0xb2   : > { %v3383_v39 = vor.u32 %v1133_v13, %v1129_v11  ;;  %v1147_v54 = vrot.slane %v1145_v32, 1  ;;  %v1159_v0 = vshll.u32 %v3295_v3, 16  ;;  %v918_v28 = vmul.f32 %v3065_v63, %v891_v34 }
  0xb3   : > { %1209 = vrot.lane.b32.xlu0 %v1201_v2, %s2859_s18  ;;  %1223 = vrot.lane.b32.xlu1 %v3346_v7, %s2859_s18  ;;  %4832 = vst [vmem:[#allocation10_spill] sm:$0xff] %v3381_v30  ;;  %vm838_vm8 = vcmp.ge.f32.partialorder %v818_v24, 0.0  ;;  %v858_v18 = vmul.f32 0.01, %v818_v24  ;;  %vm837_vm9 = vcmp.ge.f32.partialorder %v817_v52, 0.0  ;;  %v1143_v38 = vshrl.u32 %v3278_v44, 16 }
  0xb4   : > { %v857_v21 = vmul.f32 0.01, %v817_v52  ;;  %v3393_v61 = vrot.slane %v3381_v30, 1  ;;  %v1124_v31 = vshll.u32 %v3314_v33, 16  ;;  %v3396_v19 = vpack.c.bf16 %v919_v36, %v918_v28  ;;  %v783_v7 = vld [vmem:[%s2994_s19 + $0x80] sm:$0xff] }
  0xb5   : > { %v923_v2 = vmul.f32 %v3065_v63, %v896_v35  ;;  %v922_v4 = vmul.f32 %v3065_v63, %v895_v53  ;;  %v3400_v5 = vpack.c.bf16 %v750_v20, %v749_v8  ;;  %v3402_v9 = vor.u32 %v1147_v54, %v1143_v38 }
  0xb6   : > { %v1157_v10 = vshrl.u32 %v3295_v3, 16  ;;  %v1161_v16 = vrot.slane %v1159_v0, 1  ;;  %v1173_v62 = vshll.u32 %v3320_v37, 16  ;;  %v894_v13 = vmul.f32 %v874_v17, %v3156_v22 }
  0xb7   : > { %1213 = vrot.lane.b32.xlu0 %v3375_v41, %s2859_s18  ;;  %1179 = vrot.lane.b32.xlu1 %v3383_v39, %s2860_s20  ;;  %4833 = vst [vmem:[#allocation11_spill] sm:$0xff] %v3400_v5  ;;  %v893_v32 = vmul.f32 %v873_v43, %v3158_v23  ;;  %v878_v34 = vsel %vm838_vm8, %v818_v24, %v858_v18  ;;  %v3415_v11 = vrot.slane %v3400_v5, 1  ;;  %v1126_v35 = vrot.slane %v1124_v31, 1 }
  0xb8   : > { %v877_v36 = vsel %vm837_vm9, %v817_v52, %v857_v21  ;;  %v1138_v53 = vshll.u32 %v3339_v26, 16  ;;  %v3418_v20 = vpack.c.bf16 %v923_v2, %v922_v4  ;;  %v1171_v8 = vshrl.u32 %v3320_v37, 16 }
  0xb9   : > { %4834 = vst [vmem:[#allocation12_spill] sm:$0xff] %v3415_v11  ;;  %v3421_v22 = vor.u32 %v1161_v16, %v1157_v10  ;;  %v1175_v23 = vrot.slane %v1173_v62, 1  ;;  %v1122_v17 = vshrl.u32 %v3314_v33, 16  ;;  %v1380_v24 = vshll.u32 %v3396_v19, 16  ;;  %v782_v33 = vld [vmem:[%s2994_s19 + $0x78] sm:$0x3] }
  0xba   : > { %4835 = vst [vmem:[#allocation13_spill] sm:$0xff] %v3418_v20  ;;  %v921_v52 = vmul.f32 %v3065_v63, %v894_v13  ;;  %v920_v43 = vmul.f32 %v3065_v63, %v893_v32  ;;  %v898_v54 = vmul.f32 %v878_v34, %v3232_v59  ;;  %v897_v0 = vmul.f32 %v877_v36, %v3234_v48 }
  0xbb   : > { %1217 = vrot.lane.b32.xlu0 %v3393_v61, %s2859_s18  ;;  %1183 = vrot.lane.b32.xlu1 %v3402_v9, %s2860_s20  ;;  %v1127_v28 = vor.u32 %v1126_v35, %v1122_v17  ;;  %v1140_v18 = vrot.slane %v1138_v53, 1  ;;  %v1152_v21 = vshll.u32 %v3381_v30, 16  ;;  %v3434_v38 = vor.u32 %v1175_v23, %v1171_v8 }
  0xbc   : > { %v1382_v31 = vrot.slane %v1380_v24, 1  ;;  %v1136_v2 = vshrl.u32 %v3339_v26, 16  ;;  %v1394_v4 = vshll.u32 %v3418_v20, 16  ;;  %v3439_v10 = vpack.c.bf16 %v921_v52, %v920_v43 }
  0xbd   : > { %4836 = vst [vmem:[#allocation14_spill] sm:$0xff] %v3434_v38  ;;  %v925_v16 = vmul.f32 %v3065_v63, %v898_v54  ;;  %v924_v62 = vmul.f32 %v3065_v63, %v897_v0  ;;  %v1378_v13 = vshrl.u32 %v3396_v19, 16  ;;  %v1150_v34 = vshrl.u32 %v3381_v30, 16 }
  0xbe   : > { %v3446_v32 = vor.u32 %v1140_v18, %v1136_v2  ;;  %v1154_v36 = vrot.slane %v1152_v21, 1  ;;  %v1166_v35 = vshll.u32 %v3400_v5, 16  ;;  %v1392_v8 = vshrl.u32 %v3418_v20, 16  ;;  %v779_v2 = vld [vmem:[%s2994_s19 + $0x60] sm:$0xff] }
  0xbf   : > { %1221 = vrot.lane.b32.xlu0 %v3415_v11, %s2859_s18  ;;  %1187 = vrot.lane.b32.xlu1 %v3421_v22, %s2860_s20  ;;  %v3450_v53 = vor.u32 %v1382_v31, %v1378_v13  ;;  %v1396_v23 = vrot.slane %v1394_v4, 1  ;;  %v1812_v17 = vshrl.u32 %v3175_v45, 16  ;;  %v3456_v24 = vpack.c.bf16 %v925_v16, %v924_v62  ;;  %v780_v31 = vld [vmem:[%s2994_s19 + $0x68] sm:$0x3] }
  0xc0   : > { %v3460_v52 = vor.u32 %v1154_v36, %v1150_v34  ;;  %v1164_v43 = vshrl.u32 %v3400_v5, 16  ;;  %v1168_v54 = vrot.slane %v1166_v35, 1  ;;  %v1387_v0 = vshll.u32 %v3439_v10, 16 }
  0xc1   : > { %4837 = vst [vmem:[#allocation15_spill] sm:$0xff] %v3450_v53  ;;  %4838 = vst [vmem:[#allocation16_spill] sm:$0xff] %v3456_v24  ;;  %v1814_v18 = vrot.slane %v1812_v17, 7  ;;  %v1826_v21 = vshrl.u32 %v3196_v6, 16  ;;  %v1815_v4 = vshll.u32 %v3175_v45, 16  ;;  %v1401_v13 = vshll.u32 %v3456_v24, 16 }
  0xc2   : > { %v3474_v16 = vor.u32 %v1168_v54, %v1164_v43  ;;  %v1389_v62 = vrot.slane %v1387_v0, 1  ;;  %v1385_v35 = vshrl.u32 %v3439_v10, 16  ;;  %v1829_v49 = vshll.u32 %v3196_v6, 16 }
  0xc3   : > { %1177 = vrot.lane.b32.xlu0 %v1127_v28, %s2860_s20  ;;  %1191 = vrot.lane.b32.xlu1 %v3434_v38, %s2860_s20  ;;  %v3464_v28 = vor.u32 %v1396_v23, %v1392_v8  ;;  %v1817_v34 = vor.u32 %v1815_v4, %v1814_v18  ;;  %v1828_v36 = vrot.slane %v1826_v21, 7  ;;  %v800_v8 = vmul.f32 %v2987_v25, %v780_v31 }
  0xc4   : > { %4840 = vst [vmem:[#allocation18_spill] sm:$0xff] %v3474_v16  ;;  %v799_v23 = vmul.f32 %v2987_v25, %v779_v2  ;;  %v3484_v45 = vor.u32 %v1389_v62, %v1385_v35  ;;  %v1399_v43 = vshrl.u32 %v3456_v24, 16  ;;  %v1403_v54 = vrot.slane %v1401_v13, 1  ;;  %v955_v35 = vld [vmem:[%s3010_s22 + $0x58] sm:$0x3]  ;;  %v781_v24 = vld [vmem:[%s2994_s19 + $0x70] sm:$0xff] }
  0xc5   : > { %4839 = vst [vmem:[#allocation17_spill] sm:$0xff] %v3464_v28  ;;  %v1819_v0 = vshrl.u32 %v3228_v57, 16  ;;  %v3488_v18 = vor.u32 %v1829_v49, %v1828_v36  ;;  %v1907_v31 = vrot.slane %v1815_v4, 1  ;;  %v820_v2 = vadd.f32 %v3001_v29, %v800_v8 }
  0xc6   : > { %4841 = vst [vmem:[#allocation19_spill] sm:$0xff] %v3484_v45  ;;  %v3497_v62 = vor.u32 %v1403_v54, %v1399_v43  ;;  %v1911_v4 = vrot.slane %v1829_v49, 1  ;;  %v1822_v8 = vshll.u32 %v3228_v57, 16  ;;  %v802_v43 = vmul.f32 %v2987_v25, %v782_v33  ;;  %v954_v54 = vld [vmem:[%s3010_s22 + $0x50] sm:$0xff] }
  0xc7   : > { %1181 = vrot.lane.b32.xlu0 %v3446_v32, %s2860_s20  ;;  %1795 = vrot.lane.b32.xlu1 %v3450_v53, %s2860_s20  ;;  %v1821_v13 = vrot.slane %v1819_v0, 7  ;;  %vm840_vm10 = vcmp.ge.f32.partialorder %v820_v2, 0.0  ;;  %v860_v20 = vmul.f32 0.01, %v820_v2  ;;  %v801_v36 = vmul.f32 %v2987_v25, %v781_v24  ;;  %v3552_v53 = vpop.permute.xlu1 %564 }
  0xc8   : > { %4842 = vst [vmem:[#allocation20_spill] sm:$0xff] %v3497_v62  ;;  %v975_v11 = vmul.f32 %v2987_v25, %v955_v35  ;;  %v3516_v37 = vor.u32 %v1911_v4, %v1826_v21  ;;  %v1836_v33 = vshll.u32 %v3249_v14, 16  ;;  %v974_v24 = vmul.f32 %v2987_v25, %v954_v54 }
  0xc9   : > { %v1909_v21 = vrot.slane %v1822_v8, 1 }
  0xcb   : > { %1185 = vrot.lane.b32.xlu0 %v3460_v52, %s2860_s20  ;;  %1799 = vrot.lane.b32.xlu1 %v3464_v28, %s2860_s20  ;;  %v1908_v28 = vor.u32 %v1907_v31, %v1812_v17  ;;  %v1824_v17 = vor.u32 %v1822_v8, %v1821_v13  ;;  %v4843_v31 = vshrl.u32 %v3249_v14, 16  ;;  %v786_v8 = vld [vmem:[%s2994_s19 + $0x98] sm:$0x3] }
  0xcd   : > { %v1835_v49 = vrot.slane %v4843_v31, 7  ;;  %v821_v31 = vadd.f32 %v3001_v29, %v801_v36  ;;  %v1910_v36 = vor.u32 %v1909_v21, %v1819_v0 }
  0xcf   : > { %1189 = vrot.lane.b32.xlu0 %v3474_v16, %s2860_s20  ;;  %1867 = vrot.lane.b32.xlu1 %v1817_v34, %s2859_s18  ;;  %v819_v34 = vadd.f32 %v3001_v29, %v799_v23  ;;  %v784_v23 = vld [vmem:[%s2994_s19 + $0x88] sm:$0x3]  ;;  %v822_v16 = vadd.f32 %v3001_v29, %v802_v43  ;;  %vm841_vm13 = vcmp.ge.f32.partialorder %v821_v31, 0.0  ;;  %v861_v43 = vmul.f32 0.01, %v821_v31 }
  0xd0   : > { %v804_v57 = vmul.f32 %v2987_v25, %v784_v23 }
  0xd1   : > { %v859_v38 = vmul.f32 0.01, %v819_v34  ;;  %vm839_vm11 = vcmp.ge.f32.partialorder %v819_v34, 0.0  ;;  %vm842_vm12 = vcmp.ge.f32.partialorder %v822_v16, 0.0 }
  0xd2   : > { %v824_v35 = vadd.f32 %v3001_v29, %v804_v57 }
  0xd3   : > { %1797 = vrot.lane.b32.xlu0 %v3484_v45, %s2860_s20  ;;  %1871 = vrot.lane.b32.xlu1 %v3488_v18, %s2859_s18  ;;  %v879_v13 = vsel %vm839_vm11, %v819_v34, %v859_v38  ;;  %v995_v38 = vadd.f32 %v3001_v29, %v975_v11  ;;  %v862_v34 = vmul.f32 0.01, %v822_v16  ;;  %v785_v11 = vld [vmem:[%s2994_s19 + $0x90] sm:$0xff] }
  0xd4   : > { %v864_v54 = vmul.f32 0.01, %v824_v35  ;;  %vm844_vm14 = vcmp.ge.f32.partialorder %v824_v35, 0.0  ;;  %v805_v5 = vmul.f32 %v2987_v25, %v785_v11 }
  0xd5   : > { %vm1015_vm0 = vcmp.ge.f32.partialorder %v995_v38, 0.0  ;;  %v882_v0 = vsel %vm842_vm12, %v822_v16, %v862_v34 }
  0xd6   : > { %v884_v51 = vsel %vm844_vm14, %v824_v35, %v864_v54 }
  0xd7   : > { %1801 = vrot.lane.b32.xlu0 %v3497_v62, %s2860_s20  ;;  %1923 = vrot.lane.b32.xlu1 %v1908_v28, %s2861_s10  ;;  %v803_v62 = vmul.f32 %v2987_v25, %v783_v7  ;;  %v880_v28 = vsel %vm840_vm10, %v820_v2, %v860_v20  ;;  %v3526_v7 = vor.u32 %v1836_v33, %v1835_v49 }
  0xd8   : > { %v900_v23 = vmul.f32 %v880_v28, %v3257_v50  ;;  %v899_v20 = vmul.f32 %v879_v13, %v3259_v58  ;;  %v994_v2 = vadd.f32 %v3001_v29, %v974_v24  ;;  %v1035_v24 = vmul.f32 0.01, %v995_v38 }
  0xd9   : > { %v823_v4 = vadd.f32 %v3001_v29, %v803_v62  ;;  %v1913_v62 = vrot.slane %v1836_v33, 1  ;;  %v4844_v33 = vshrl.u32 %v3249_v14, 16  ;;  %v904_v54 = vmul.f32 %v884_v51, %v3552_v53 }
  0xda   : > { %v927_v57 = vmul.f32 %v3065_v63, %v900_v23  ;;  %v926_v28 = vmul.f32 %v3065_v63, %v899_v20  ;;  %v1034_v13 = vmul.f32 0.01, %v994_v2  ;;  %vm1014_vm1 = vcmp.ge.f32.partialorder %v994_v2, 0.0  ;;  %v956_v23 = vld [vmem:[%s3010_s22 + $0x60] sm:$0xff] }
  0xdb   : > { %1869 = vrot.lane.b32.xlu0 %v1824_v17, %s2859_s18  ;;  %1927 = vrot.lane.b32.xlu1 %v3516_v37, %s2861_s10  ;;  %v863_v49 = vmul.f32 0.01, %v823_v4  ;;  %vm843_vm15 = vcmp.ge.f32.partialorder %v823_v4, 0.0  ;;  %v3548_v21 = vor.u32 %v1913_v62, %v4844_v33  ;;  %v881_v20 = vsel %vm841_vm13, %v821_v31, %v861_v43  ;;  %v957_v33 = vld [vmem:[%s3010_s22 + $0x68] sm:$0x3] }
  0xdc   : > { %v3557_v16 = vpack.c.bf16 %v927_v57, %v926_v28  ;;  %v1055_v34 = vsel %vm1015_vm0, %v995_v38, %v1035_v24  ;;  %v1054_v62 = vsel %vm1014_vm1, %v994_v2, %v1034_v13  ;;  %v902_v31 = vmul.f32 %v882_v0, %v3283_v56  ;;  %v3576_v2 = vld [vmem:[%s4769_s5] ss:$0 sm:$0xff] }
  0xdd   : > { %v883_v45 = vsel %vm843_vm15, %v823_v4, %v863_v49  ;;  %v901_v35 = vmul.f32 %v881_v20, %v3285_v60  ;;  %v825_v38 = vadd.f32 %v3001_v29, %v805_v5  ;;  %v977_v57 = vmul.f32 %v3576_v2, %v957_v33 }
  0xde   : > { %4845 = vst [vmem:[#allocation21_spill] sm:$0xff] %v3557_v16  ;;  %v976_v28 = vmul.f32 %v3576_v2, %v956_v23  ;;  %v1408_v51 = vshll.u32 %v3557_v16, 16  ;;  %v929_v5 = vmul.f32 %v3065_v63, %v902_v31  ;;  %v1406_v20 = vshrl.u32 %v3557_v16, 16 }
  0xdf   : > { %1873 = vrot.lane.b32.xlu0 %v3526_v7, %s2859_s18  ;;  %1946 = vrot.lane.b32.xlu1 %v1824_v17, %s2862_s11  ;;  %v806_v17 = vmul.f32 %v2987_v25, %v786_v8  ;;  %v3554_v8 = vpop.permute.xlu0 %560  ;;  %v4846_v25 = vshrl.u32 %v3316_v55, 16  ;;  %v928_v24 = vmul.f32 %v3065_v63, %v901_v35  ;;  %v865_v23 = vmul.f32 0.01, %v825_v38 }
  0xe0   : > { %v903_v49 = vmul.f32 %v883_v45, %v3554_v8  ;;  %v1075_v45 = vmul.f32 %v1055_v34, %v3232_v59  ;;  %v3597_v59 = vld [vmem:[%s4770_s6] ss:$0 sm:$0xff]  ;;  %v1410_v34 = vrot.slane %v1408_v51, 1  ;;  %vm845_vm3 = vcmp.ge.f32.partialorder %v825_v38, 0.0 }
  0xe1   : > { %v826_v43 = vadd.f32 %v3001_v29, %v806_v17  ;;  %v1842_v4 = vrot.slane %v4846_v25, 7  ;;  %v1074_v29 = vmul.f32 %v1054_v62, %v3234_v48  ;;  %v931_v17 = vmul.f32 %v3065_v63, %v904_v54  ;;  %v3612_v54 = vpop.permute.xlu1 %575 }
  0xe2   : > { %v930_v0 = vmul.f32 %v3065_v63, %v903_v49  ;;  %v997_v48 = vadd.f32 %v3597_v59, %v977_v57  ;;  %v1102_v62 = vmul.f32 %v3087_v15, %v1075_v45  ;;  %v996_v31 = vadd.f32 %v3597_v59, %v976_v28  ;;  %v958_v28 = vld [vmem:[%s3010_s22 + $0x70] sm:$0xff] }
  0xe3   : > { %1925 = vrot.lane.b32.xlu0 %v1910_v36, %s2861_s10  ;;  %1950 = vrot.lane.b32.xlu1 %v3526_v7, %s2862_s11  ;;  %v866_v11 = vmul.f32 0.01, %v826_v43  ;;  %vm846_vm2 = vcmp.ge.f32.partialorder %v826_v43, 0.0  ;;  %v1101_v33 = vmul.f32 %v3087_v15, %v1074_v29  ;;  %v3606_v35 = vpack.c.bf16 %v929_v5, %v928_v24  ;;  %v3615_v57 = vpop.permute.xlu0 %571  ;;  %v959_v29 = vld [vmem:[%s3010_s22 + $0x78] sm:$0x3] }
  0xe4   : > { %v3610_v25 = vpack.c.bf16 %v931_v17, %v930_v0  ;;  %v885_v51 = vsel %vm845_vm3, %v825_v38, %v865_v23  ;;  %vm1017_vm4 = vcmp.ge.f32.partialorder %v997_v48, 0.0  ;;  %v1037_v45 = vmul.f32 0.01, %v997_v48 }
  0xe5   : > { %4847 = vst [vmem:[#allocation22_spill] sm:$0xff] %v3606_v35  ;;  %v886_v49 = vsel %vm846_vm2, %v826_v43, %v866_v11  ;;  %v3619_v5 = vor.u32 %v1410_v34, %v1406_v20  ;;  %vm1016_vm5 = vcmp.ge.f32.partialorder %v996_v31, 0.0  ;;  %v4850_v43 = vshrl.u32 %v3316_v55, 16 }
  0xe6   : > { %4848 = vst [vmem:[#allocation23_spill] sm:$0xff] %v3610_v25  ;;  %v906_v24 = vmul.f32 %v886_v49, %v3612_v54  ;;  %v905_v11 = vmul.f32 %v885_v51, %v3615_v57  ;;  %v1479_v17 = vshll.u32 %v3610_v25, 16  ;;  %v1415_v0 = vshll.u32 %v3606_v35, 16 }
  0xe7   : > { %1929 = vrot.lane.b32.xlu0 %v3548_v21, %s2861_s10  ;;  %1981 = vrot.lane.b32.xlu1 %v1910_v36, %s2863_s14  ;;  %v1843_v36 = vshll.u32 %v3316_v55, 16  ;;  %4849 = vst [vmem:[#allocation24_spill] sm:$0xff] %v3619_v5  ;;  %v979_v23 = vmul.f32 %v3576_v2, %v959_v29  ;;  %v978_v20 = vmul.f32 %v3576_v2, %v958_v28  ;;  %v1413_v49 = vshrl.u32 %v3606_v35, 16 }
  0xe8   : > { %v1057_v34 = vsel %vm1017_vm4, %v997_v48, %v1037_v45  ;;  %v932_v51 = vmul.f32 %v3065_v63, %v905_v11  ;;  %v1481_v29 = vrot.slane %v1479_v17, 1  ;;  %vm1533_vm4 = vcmask 15360  }
  0xe9   : > { %v3590_v13 = vor.u32 %v1843_v36, %v1842_v4  ;;  %v1915_v4 = vrot.slane %v1843_v36, 1  ;;  %v1036_v36 = vmul.f32 0.01, %v996_v31  ;;  %v999_v48 = vadd.f32 %v3597_v59, %v979_v23 }
  0xea   : > { %v998_v45 = vadd.f32 %v3597_v59, %v978_v20 }
  0xeb   : > { %1948 = vrot.lane.b32.xlu0 %v3488_v18, %s2862_s11  ;;  %1985 = vrot.lane.b32.xlu1 %v3548_v21, %s2863_s14  ;;  %v3630_v38 = vor.u32 %v1915_v4, %v4850_v43  ;;  %v1477_v4 = vshrl.u32 %v3610_v25, 16  ;;  %v1417_v43 = vrot.slane %v1415_v0, 1  ;;  %vm1019_vm6 = vcmp.ge.f32.partialorder %v999_v48, 0.0 }
  0xec   : > { %v1038_v23 = vmul.f32 0.01, %v998_v45  ;;  %vm1018_vm7 = vcmp.ge.f32.partialorder %v998_v45, 0.0 }
  0xed   : > { %v3657_v11 = vor.u32 %v1481_v29, %v1477_v4  ;;  %v3659_v17 = vor.u32 %v1417_v43, %v1413_v49 }
  0xef   : > { %1952 = vrot.lane.b32.xlu0 %v3590_v13, %s2862_s11  ;;  %2004 = vrot.lane.b32.xlu1 %v3488_v18, %s2864_s12  ;;  %v3623_v18 = vpack.c.bf16 %v1102_v62, %v1101_v33  ;;  %v1056_v62 = vsel %vm1016_vm5, %v996_v31, %v1036_v36  ;;  %v933_v33 = vmul.f32 %v3065_v63, %v906_v24  ;;  %vm1550_vm5 = vcmask 31744  }
  0xf0   : > { %v1077_v31 = vmul.f32 %v1057_v34, %v3257_v50  ;;  %v1076_v36 = vmul.f32 %v1056_v62, %v3259_v58  ;;  %4852 = vst [vmem:[#allocation26_spill] sm:$0xff] %v3657_v11  ;;  %4853 = vst [vmem:[#allocation27_spill] sm:$0xff] %v3659_v17  ;;  %v1039_v50 = vmul.f32 0.01, %v999_v48 }
  0xf1   : > { %v4801_v28 = vshrl.u32 %v3623_v18, 16  ;;  %v3655_v24 = vpack.c.bf16 %v933_v33, %v932_v51  ;;  %v1058_v33 = vsel %vm1018_vm7, %v998_v45, %v1038_v23  ;;  %v960_v23 = vld [vmem:[%s3010_s22 + $0x80] sm:$0xff]  ;;  %vm1584_vm7 = vcmask 64512  }
  0xf2   : > { %v1104_v58 = vmul.f32 %v3087_v15, %v1077_v31  ;;  %v1059_v62 = vsel %vm1019_vm6, %v999_v48, %v1039_v50  ;;  %v1078_v51 = vmul.f32 %v1058_v33, %v3285_v60  ;;  %v961_v50 = vld [vmem:[%s3010_s22 + $0x88] sm:$0x3]  ;;  %vm1567_vm6 = vcmask 48128  }
  0xf3   : > { %1983 = vrot.lane.b32.xlu0 %v3516_v37, %s2863_s14  ;;  %1803 = vrot.lane.b32.xlu1 %v3619_v5, %s2860_s20  ;;  %4851 = vst [vmem:[#allocation25_spill] sm:$0xff] %v3655_v24  ;;  %v1849_v0 = vrot.slane %v4801_v28, 7  ;;  %v1791_v34 = vshll.u32 %v3655_v24, 16  ;;  %v1079_v49 = vmul.f32 %v1059_v62, %v3283_v56  ;;  %v1789_v29 = vshrl.u32 %v3655_v24, 16 }
  0xf4   : > { %v1105_v31 = vmul.f32 %v3087_v15, %v1078_v51  ;;  %v980_v62 = vmul.f32 %v3576_v2, %v960_v23 }
  0xf5   : > { %v1793_v43 = vrot.slane %v1791_v34, 1  ;;  %v1106_v45 = vmul.f32 %v3087_v15, %v1079_v49 }
  0xf7   : > { %1987 = vrot.lane.b32.xlu0 %v3630_v38, %s2863_s14  ;;  %2008 = vrot.lane.b32.xlu1 %v3590_v13, %s2864_s12  ;;  %v1794_v56 = vor.u32 %v1793_v43, %v1789_v29  ;;  %v1000_v43 = vadd.f32 %v3597_v59, %v980_v62 }
  0xf9   : > { %vm1020_vm9 = vcmp.ge.f32.partialorder %v1000_v43, 0.0 }
  0xfb   : > { %2006 = vrot.lane.b32.xlu0 %v3526_v7, %s2864_s12  ;;  %2021 = vrot.lane.b32.xlu1 %v3196_v6, %s2865_s13  ;;  %v1103_v7 = vmul.f32 %v3087_v15, %v1076_v36  ;;  %v1850_v6 = vshll.u32 %v3623_v18, 16  ;;  %v3692_v36 = vpack.c.bf16 %v1106_v45, %v1105_v31 }
  0xfd   : > { %v3670_v20 = vor.u32 %v1850_v6, %v1849_v0  ;;  %v3673_v4 = vpack.c.bf16 %v1104_v58, %v1103_v7  ;;  %v1861_v34 = vshrl.u32 %v3692_v36, 16  ;;  %v1864_v31 = vshll.u32 %v3692_v36, 16 }
  0xff   : > { %1805 = vrot.lane.b32.xlu0 %v3659_v17, %s2860_s20  ;;  %1807 = vrot.lane.b32.xlu1 %v3657_v11, %s2860_s20  ;;  %v1854_v48 = vshrl.u32 %v3673_v4, 16  ;;  %v1863_v51 = vrot.slane %v1861_v34, 7 }
 0x103   : > { %2010 = vrot.lane.b32.xlu0 %v3670_v20, %s2864_s12  ;;  %1875 = vrot.lane.b32.xlu1 %v3590_v13, %s2859_s18  ;;  %v1856_v13 = vrot.slane %v1854_v48, 7 }
 0x107   : > { %2023 = vrot.lane.b32.xlu0 %v3249_v14, %s2865_s13  ;;  %2025 = vrot.lane.b32.xlu1 %v3316_v55, %s2865_s13  ;;  %v1857_v14 = vshll.u32 %v3673_v4, 16 }
 0x109   : > { %v3689_v60 = vpop.permute.xlu1 %1891  ;;  %v3701_v58 = vor.u32 %v1857_v14, %v1856_v13  ;;  %v1919_v24 = vrot.slane %v1857_v14, 1 }
 0x10b   : > { %1809 = vrot.lane.b32.xlu0 %v1794_v56, %s2860_s20  ;;  %2039 = vrot.lane.b32.xlu1 %v3516_v37, %s2866_s15  ;;  %v981_v37 = vmul.f32 %v3576_v2, %v961_v50  ;;  %v1040_v50 = vmul.f32 0.01, %v1000_v43  ;;  %s2691_s20 = sshll.u32 %s5014_s28, 3 }
 0x10d   : > { %v3697_v0 = vpop.permute.xlu1 %1895  ;;  %v1001_v29 = vadd.f32 %v3597_v59, %v981_v37  ;;  %v1917_v37 = vrot.slane %v1850_v6, 1  ;;  %v1060_v28 = vsel %vm1020_vm9, %v1000_v43, %v1040_v50  ;;  %v4860_v6 = vshrl.u32 %v3623_v18, 16 }
 0x10e   : > { %4854 = vst [vmem:[#allocation28_spill] sm:$0xff] %v3697_v0  ;;  %v1080_v25 = vmul.f32 %v1060_v28, %v3554_v8  ;;  %vm1618_vm9 = vcmask 97280  }
 0x10f   : > { %1877 = vrot.lane.b32.xlu0 %v3670_v20, %s2859_s18  ;;  %1879 = vrot.lane.b32.xlu1 %v3701_v58, %s2859_s18  ;;  %v1041_v13 = vmul.f32 0.01, %v1001_v29  ;;  %vm1021_vm8 = vcmp.ge.f32.partialorder %v1001_v29, 0.0 }
 0x110   : > { %v1107_v50 = vmul.f32 %v3087_v15, %v1080_v25 }
 0x111   : > { %v3707_v7 = vpop.permute.xlu0 %1226  ;;  %v3712_v33 = vpop.permute.xlu1 %1963  ;;  %v1061_v62 = vsel %vm1021_vm8, %v1001_v29, %v1041_v13  ;;  %v1918_v29 = vor.u32 %v1917_v37, %v4860_v6  ;;  %v3755_v13 = vor.u32 %v1919_v24, %v1854_v48  ;;  %vm1601_vm8 = vcmask 80896  }
 0x112   : > { %4855 = vst [vmem:[#allocation29_spill] sm:$0xff] %v3707_v7  ;;  %v1081_v11 = vmul.f32 %v1061_v62, %v3552_v53  ;;  %v962_v62 = vld [vmem:[%s3010_s22 + $0x90] sm:$0xff] }
 0x113   : > { %2027 = vrot.lane.b32.xlu0 %v3623_v18, %s2865_s13  ;;  %1899 = vrot.lane.b32.xlu1 %v3316_v55, %s2857_s16  ;;  %v3731_v55 = vor.u32 %v1864_v31, %v1863_v51  ;;  %v982_v37 = vmul.f32 %v3576_v2, %v962_v62 }
 0x114   : > { %v1108_v14 = vmul.f32 %v3087_v15, %v1081_v11  ;;  %v1921_v11 = vrot.slane %v1864_v31, 1 }
 0x115   : > { %v3718_v49 = vpop.permute.xlu0 %1893  ;;  %v3722_v45 = vpop.permute.xlu1 %1967  ;;  %v1002_v31 = vadd.f32 %v3597_v59, %v982_v37 }
 0x116   : > { %4856 = vst [vmem:[#allocation30_spill] sm:$0xff] %v3722_v45  ;;  %v1119_v24 = vpack.c.bf16 %v1108_v14, %v1107_v50  ;;  %v3783_v14 = vor.u32 %v1921_v11, %v1861_v34 }
 0x117   : > { %2041 = vrot.lane.b32.xlu0 %v3548_v21, %s2866_s15  ;;  %2043 = vrot.lane.b32.xlu1 %v3630_v38, %s2866_s15  ;;  %vm1022_vm11 = vcmp.ge.f32.partialorder %v1002_v31, 0.0 }
 0x118   : > { %v1940_v50 = vshrl.u32 %v1119_v24, 16  ;;  %v1943_v11 = vshll.u32 %v1119_v24, 16 }
 0x119   : > { %v3729_v56 = vpop.permute.xlu0 %1897  ;;  %v3733_v23 = vpop.permute.xlu1 %1211 }
 0x11a   : > { %4857 = vst [vmem:[#allocation31_spill] sm:$0xff] %v3733_v23  ;;  %v1942_v62 = vrot.slane %v1940_v50, 7  ;;  %v768_v23 = vld [vmem:[%s2994_s19 + $0x8] sm:$0x3] }
 0x11b   : > { %1881 = vrot.lane.b32.xlu0 %v3731_v55, %s2859_s18  ;;  %1903 = vrot.lane.b32.xlu1 %v3673_v4, %s2857_s16 }
 0x11c   : > { %v1945_v37 = vor.u32 %v1943_v11, %v1942_v62 }
 0x11d   : > { %v3739_v21 = vpop.permute.xlu0 %1965  ;;  %v3741_v51 = vpop.permute.xlu1 %1215 }
 0x11e   : > { %4858 = vst [vmem:[#allocation32_spill] sm:$0xff] %v3741_v51 }
 0x11f   : > { %1901 = vrot.lane.b32.xlu0 %v3623_v18, %s2857_s16  ;;  %1931 = vrot.lane.b32.xlu1 %v3630_v38, %s2861_s10  ;;  %v963_v38 = vld [vmem:[%s3010_s22 + $0x98] sm:$0x3]  ;;  %s2868_s22 = smov 24  }
 0x120   : > { %v983_v25 = vmul.f32 %v3576_v2, %v963_v38 }
 0x121   : > { %v3749_v5 = vpop.permute.xlu0 %1969  ;;  %v3753_v43 = vpop.permute.xlu1 %1219 }
 0x122   : > { %4859 = vst [vmem:[#allocation33_spill] sm:$0xff] %v3749_v5  ;;  %4861 = vst [vmem:[#allocation34_spill] sm:$0xff] %v3753_v43 }
 0x123   : > { %2045 = vrot.lane.b32.xlu0 %v1918_v29, %s2866_s15  ;;  %1935 = vrot.lane.b32.xlu1 %v3755_v13, %s2861_s10 }
 0x125   : > { %v3762_v28 = vpop.permute.xlu0 %1209  ;;  %v3766_v17 = vpop.permute.xlu1 %1223 }
 0x126   : > { %4862 = vst [vmem:[#allocation35_spill] sm:$0xff] %v3762_v28  ;;  %4863 = vst [vmem:[#allocation36_spill] sm:$0xff] %v3766_v17 }
 0x127   : > { %1905 = vrot.lane.b32.xlu0 %v3692_v36, %s2857_s16  ;;  %1954 = vrot.lane.b32.xlu1 %v3670_v20, %s2862_s11  ;;  %v1003_v20 = vadd.f32 %v3597_v59, %v983_v25 }
 0x129   : > { %v3772_v48 = vpop.permute.xlu0 %1213  ;;  %v3776_v6 = vpop.permute.xlu1 %1179  ;;  %v1043_v16 = vmul.f32 0.01, %v1003_v20  ;;  %vm1023_vm10 = vcmp.ge.f32.partialorder %v1003_v20, 0.0 }
 0x12a   : > { %4864 = vst [vmem:[#allocation37_spill] sm:$0xff] %v3772_v48 }
 0x12b   : > { %1933 = vrot.lane.b32.xlu0 %v1918_v29, %s2861_s10  ;;  %1958 = vrot.lane.b32.xlu1 %v3731_v55, %s2862_s11 }
 0x12d   : > { %v3781_v17 = vpop.permute.xlu0 %1217  ;;  %v3787_v43 = vpop.permute.xlu1 %1183 }
 0x12e   : > { %4865 = vst [vmem:[#allocation38_spill] sm:$0xff] %v3781_v17  ;;  %4866 = vst [vmem:[#allocation39_spill] sm:$0xff] %v3787_v43  ;;  %v1042_v17 = vmul.f32 0.01, %v1002_v31 }
 0x12f   : > { %1937 = vrot.lane.b32.xlu0 %v3783_v14, %s2861_s10  ;;  %1971 = vrot.lane.b32.xlu1 %v3623_v18, %s2858_s17  ;;  %v1063_v18 = vsel %vm1023_vm10, %v1003_v20, %v1043_v16  ;;  %vm1635_vm10 = vcmask 113664  }
 0x130   : > { %v1062_v35 = vsel %vm1022_vm11, %v1002_v31, %v1042_v17  ;;  %v1083_v7 = vmul.f32 %v1063_v18, %v3612_v54  ;;  %vm1652_vm11 = vcmask 130048  }
 0x131   : > { %v3793_v38 = vpop.permute.xlu0 %1221  ;;  %v3795_v34 = vpop.permute.xlu1 %1187 }
 0x132   : > { %4867 = vst [vmem:[#allocation40_spill] sm:$0xff] %v3793_v38  ;;  %4868 = vst [vmem:[#allocation41_spill] sm:$0xff] %v3795_v34  ;;  %v1082_v34 = vmul.f32 %v1062_v35, %v3615_v57  ;;  %v1110_v16 = vmul.f32 %v3087_v15, %v1083_v7 }
 0x133   : > { %1956 = vrot.lane.b32.xlu0 %v3701_v58, %s2862_s11  ;;  %1975 = vrot.lane.b32.xlu1 %v3692_v36, %s2858_s17 }
 0x134   : > { %v1109_v17 = vmul.f32 %v3087_v15, %v1082_v34 }
 0x135   : > { %v3801_v25 = vpop.permute.xlu0 %1177  ;;  %v3803_v38 = vpop.permute.xlu1 %1191 }
 0x136   : > { %4869 = vst [vmem:[#allocation42_spill] sm:$0xff] %v3801_v25  ;;  %4870 = vst [vmem:[#allocation43_spill] sm:$0xff] %v3803_v38  ;;  %v1120_v35 = vpack.c.bf16 %v1110_v16, %v1109_v17 }
 0x137   : > { %1960 = vrot.lane.b32.xlu0 %v1945_v37, %s2862_s11  ;;  %1989 = vrot.lane.b32.xlu1 %v1918_v29, %s2863_s14  ;;  %v1979_v29 = vrot.slane %v1943_v11, 1 }
 0x138   : > { %v1998_v34 = vshrl.u32 %v1120_v35, 16 }
 0x139   : > { %v3809_v48 = vpop.permute.xlu0 %1181  ;;  %v3811_v45 = vpop.permute.xlu1 %1795  ;;  %v1980_v7 = vor.u32 %v1979_v29, %v1940_v50 }
 0x13a   : > { %4871 = vst [vmem:[#allocation44_spill] sm:$0xff] %v3809_v48  ;;  %v2000_v11 = vrot.slane %v1998_v34, 7 }
 0x13b   : > { %1973 = vrot.lane.b32.xlu0 %v3673_v4, %s2858_s17  ;;  %1993 = vrot.lane.b32.xlu1 %v3783_v14, %s2863_s14 }
 0x13d   : > { %v3819_v20 = vpop.permute.xlu0 %1185  ;;  %v3821_v31 = vpop.permute.xlu1 %1799 }
 0x13e   : > { %4872 = vst [vmem:[#allocation45_spill] sm:$0xff] %v3819_v20 }
 0x13f   : > { %1977 = vrot.lane.b32.xlu0 %v1119_v24, %s2858_s17  ;;  %2012 = vrot.lane.b32.xlu1 %v3701_v58, %s2864_s12 }
 0x141   : > { %v3826_v62 = vpop.permute.xlu0 %1189  ;;  %v3828_v18 = vpop.permute.xlu1 %1867 }
 0x142   : > { %4873 = vst [vmem:[#allocation46_spill] sm:$0xff] %v3826_v62 }
 0x143   : > { %1991 = vrot.lane.b32.xlu0 %v3755_v13, %s2863_s14  ;;  %2016 = vrot.lane.b32.xlu1 %v1945_v37, %s2864_s12  ;;  %v2001_v37 = vshll.u32 %v1120_v35, 16 }
 0x145   : > { %v3833_v15 = vpop.permute.xlu0 %1797  ;;  %v3835_v38 = vpop.permute.xlu1 %1871  ;;  %v2003_v17 = vor.u32 %v2001_v37, %v2000_v11 }
 0x147   : > { %1995 = vrot.lane.b32.xlu0 %v1980_v7, %s2863_s14  ;;  %2029 = vrot.lane.b32.xlu1 %v3673_v4, %s2865_s13 }
 0x149   : > { %v3840_v58 = vpop.permute.xlu0 %1801  ;;  %v3842_v16 = vpop.permute.xlu1 %1923 }
 0x14b   : > { %2014 = vrot.lane.b32.xlu0 %v3731_v55, %s2864_s12  ;;  %2033 = vrot.lane.b32.xlu1 %v1119_v24, %s2865_s13 }
 0x14d   : > { %v3847_v50 = vpop.permute.xlu0 %1869  ;;  %v3849_v29 = vpop.permute.xlu1 %1927 }
 0x14e   : > { %4874 = vst [vmem:[#allocation47_spill] sm:$0xff] %v3849_v29 }
 0x14f   : > { %2018 = vrot.lane.b32.xlu0 %v2003_v17, %s2864_s12  ;;  %2047 = vrot.lane.b32.xlu1 %v3755_v13, %s2866_s15  ;;  %v2037_v13 = vrot.slane %v2001_v37, 1 }
 0x151   : > { %v3854_v4 = vpop.permute.xlu0 %1873  ;;  %v3856_v62 = vpop.permute.xlu1 %1946 }
 0x153   : > { %2031 = vrot.lane.b32.xlu0 %v3692_v36, %s2865_s13  ;;  %2051 = vrot.lane.b32.xlu1 %v1980_v7, %s2866_s15  ;;  %v2038_v7 = vor.u32 %v2037_v13, %v1998_v34  ;;  %v770_v13 = vld [vmem:[%s2994_s19 + $0x18] sm:$0x3] }
 0x154   : > { %v790_v28 = vmul.f32 %v3576_v2, %v770_v13 }
 0x155   : > { %v3861_v55 = vpop.permute.xlu0 %1925  ;;  %v3863_v24 = vpop.permute.xlu1 %1950 }
 0x156   : > { %4875 = vst [vmem:[#allocation48_spill] sm:$0xff] %v3863_v24  ;;  %v4880_v24 = vrot.slane %v3215_v27, 1 }
 0x157   : > { %2035 = vrot.lane.b32.xlu0 %v1120_v35, %s2865_s13  ;;  %1228 = vrot.lane.b32.xlu1 %v3339_v26, %s2857_s16 }
 0x159   : > { %v3868_v11 = vpop.permute.xlu0 %1929  ;;  %v3870_v17 = vpop.permute.xlu1 %1981 }
 0x15b   : > { %2049 = vrot.lane.b32.xlu0 %v3783_v14, %s2866_s15  ;;  %1232 = vrot.lane.b32.xlu1 %v3381_v30, %s2857_s16 }
 0x15d   : > { %v3876_v36 = vpop.permute.xlu0 %1948  ;;  %v3878_v35 = vpop.permute.xlu1 %1985 }
 0x15e   : > { %4876 = vst [vmem:[#allocation49_spill] sm:$0xff] %v3878_v35 }
 0x15f   : > { %2053 = vrot.lane.b32.xlu0 %v2038_v7, %s2866_s15  ;;  %1251 = vrot.lane.b32.xlu1 %v3446_v32, %s2861_s10  ;;  %v769_v7 = vld [vmem:[%s2994_s19 + $0x10] sm:$0xff] }
 0x161   : > { %v3883_v37 = vpop.permute.xlu0 %1952  ;;  %v3885_v20 = vpop.permute.xlu1 %2004 }
 0x163   : > { %1230 = vrot.lane.b32.xlu0 %v3278_v44, %s2857_s16  ;;  %1255 = vrot.lane.b32.xlu1 %v3460_v52, %s2861_s10 }
 0x165   : > { %v3891_v14 = vpop.permute.xlu0 %1983  ;;  %v3893_v34 = vpop.permute.xlu1 %1803 }
 0x166   : > { %4877 = vst [vmem:[#allocation50_spill] sm:$0xff] %v3893_v34  ;;  %v789_v34 = vmul.f32 %v3576_v2, %v769_v7  ;;  %v788_v7 = vmul.f32 %v3576_v2, %v768_v23 }
 0x167   : > { %1249 = vrot.lane.b32.xlu0 %v3383_v39, %s2861_s10  ;;  %1268 = vrot.lane.b32.xlu1 %v3375_v41, %s2862_s11 }
 0x168   : > { %v809_v25 = vadd.f32 %v3597_v59, %v789_v34  ;;  %v808_v34 = vadd.f32 %v3597_v59, %v788_v7 }
 0x169   : > { %v3901_v35 = vpop.permute.xlu0 %1987  ;;  %v3903_v48 = vpop.permute.xlu1 %2008 }
 0x16a   : > { %4878 = vst [vmem:[#allocation51_spill] sm:$0xff] %v3901_v35  ;;  %4879 = vst [vmem:[#allocation52_spill] sm:$0xff] %v3903_v48  ;;  %v810_v48 = vadd.f32 %v3597_v59, %v790_v28  ;;  %v767_v35 = vld [vmem:[%s2994_s19] sm:$0xff]  ;;  %v849_v0 = vmul.f32 0.01, %v809_v25  ;;  %vm829_vm13 = vcmp.ge.f32.partialorder %v809_v25, 0.0 }
 0x16b   : > { %1253 = vrot.lane.b32.xlu0 %v3402_v9, %s2861_s10  ;;  %1272 = vrot.lane.b32.xlu1 %v3393_v61, %s2862_s11  ;;  %v787_v5 = vmul.f32 %v3576_v2, %v767_v35  ;;  %v848_v43 = vmul.f32 0.01, %v808_v34  ;;  %vm828_vm14 = vcmp.ge.f32.partialorder %v808_v34, 0.0  ;;  %s2867_s19 = smov 22  }
 0x16c   : > { %vm830_vm12 = vcmp.ge.f32.partialorder %v810_v48, 0.0  ;;  %v869_v35 = vsel %vm829_vm13, %v809_v25, %v849_v0  ;;  %vm1686_vm13 = vcmask 162816  }
 0x16d   : > { %v3911_v39 = vpop.permute.xlu0 %2006  ;;  %v3914_v51 = vpop.permute.xlu1 %2021  ;;  %v807_v23 = vadd.f32 %v3597_v59, %v787_v5  ;;  %v889_v7 = vmul.f32 %v869_v35, %v3183_v47  ;;  %v868_v5 = vsel %vm828_vm14, %v808_v34, %v848_v43  ;;  %vm2364_vm14 = vcmask 1042432  }
 0x16e   : > { %v888_v25 = vmul.f32 %v868_v5, %v3140_v1 }
 0x16f   : > { %1266 = vrot.lane.b32.xlu0 %v4880_v24, %s2862_s11  ;;  %1285 = vrot.lane.b32.xlu1 %v3278_v44, %s2858_s17  ;;  %v850_v24 = vmul.f32 0.01, %v810_v48  ;;  %vm827_vm15 = vcmp.ge.f32.partialorder %v807_v23, 0.0 }
 0x170   : > { %v915_v34 = vmul.f32 %v3065_v63, %v888_v25 }
 0x171   : > { %v3924_v13 = vpop.permute.xlu0 %1805  ;;  %v3927_v29 = vpop.permute.xlu1 %1807 }
 0x172   : > { %4881 = vst [vmem:[#allocation53_spill] sm:$0xff] %v3924_v13  ;;  %4882 = vst [vmem:[#allocation54_spill] sm:$0xff] %v3927_v29  ;;  %v870_v29 = vsel %vm830_vm12, %v810_v48, %v850_v24  ;;  %vm1669_vm12 = vcmask 146432  }
 0x173   : > { %1270 = vrot.lane.b32.xlu0 %v3308_v12, %s2862_s11  ;;  %1289 = vrot.lane.b32.xlu1 %v3295_v3, %s2858_s17 }
 0x175   : > { %v3934_v28 = vpop.permute.xlu0 %2010  ;;  %v3937_v13 = vpop.permute.xlu1 %1875 }
 0x176   : > { %4883 = vst [vmem:[#allocation55_spill] sm:$0xff] %v3934_v28  ;;  %4884 = vst [vmem:[#allocation56_spill] sm:$0xff] %v3937_v13  ;;  %v890_v28 = vmul.f32 %v870_v29, %v3181_v46  ;;  %v847_v13 = vmul.f32 0.01, %v807_v23  ;;  %v916_v46 = vmul.f32 %v3065_v63, %v889_v7 }
 0x177   : > { %1283 = vrot.lane.b32.xlu0 %v3339_v26, %s2858_s17  ;;  %1308 = vrot.lane.b32.xlu1 %v3402_v9, %s2863_s14 }
 0x178   : > { %v917_v0 = vmul.f32 %v3065_v63, %v890_v28  ;;  %v867_v48 = vsel %vm827_vm15, %v807_v23, %v847_v13  ;;  %v595_v13 = vld [vmem:[%s2982_s26 + $0x80] sm:$0xff]  ;;  %vm1703_vm15 = vcmask 179200  }
 0x179   : > { %v3944_v44 = vpop.permute.xlu0 %2023  ;;  %v3948_v27 = vpop.permute.xlu1 %2025  ;;  %v887_v24 = vmul.f32 %v867_v48, %v3113_v42  ;;  %v621_v35 = vmul.f32 %v3576_v2, %v595_v13 }
 0x17a   : > { %v3968_v43 = vpack.c.bf16 %v917_v0, %v916_v46 }
 0x17b   : > { %1287 = vrot.lane.b32.xlu0 %v3381_v30, %s2858_s17  ;;  %1312 = vrot.lane.b32.xlu1 %v3421_v22, %s2863_s14  ;;  %v647_v46 = vadd.f32 %v3597_v59, %v621_v35 }
 0x17c   : > { %v1373_v42 = vshll.u32 %v3968_v43, 16  ;;  %v1371_v25 = vshrl.u32 %v3968_v43, 16 }
 0x17d   : > { %v3954_v9 = vpop.permute.xlu0 %1809  ;;  %v3958_v47 = vpop.permute.xlu1 %2039  ;;  %v687_v13 = vmul.f32 0.01, %v647_v46  ;;  %vm667_vm1 = vcmp.ge.f32.partialorder %v647_v46, 0.0 }
 0x17e   : > { %4885 = vst [vmem:[#allocation57_spill] sm:$0xff] %v3954_v9 }
 0x17f   : > { %1306 = vrot.lane.b32.xlu0 %v3446_v32, %s2863_s14  ;;  %1325 = vrot.lane.b32.xlu1 %v3308_v12, %s2864_s12  ;;  %v596_v32 = vld [vmem:[%s2982_s26 + $0x88] sm:$0x3]  ;;  %v914_v12 = vmul.f32 %v3065_v63, %v887_v24  ;;  %v1375_v63 = vrot.slane %v1373_v42, 1 }
 0x181   : > { %v3965_v29 = vpop.permute.xlu0 %1877  ;;  %v3970_v28 = vpop.permute.xlu1 %1879  ;;  %v934_v5 = vpack.c.bf16 %v915_v34, %v914_v12  ;;  %v4006_v34 = vor.u32 %v1375_v63, %v1371_v25  ;;  %v707_v25 = vsel %vm667_vm1, %v647_v46, %v687_v13  ;;  %vm1737_vm1 = vcmask 211968  }
 0x182   : > { %4886 = vst [vmem:[#allocation58_spill] sm:$0xff] %v3965_v29  ;;  %4887 = vst [vmem:[#allocation59_spill] sm:$0xff] %v3970_v28  ;;  %v727_v9 = vmul.f32 %v707_v25, %v3554_v8  ;;  %v4904_v25 = vld [vmem:[#allocation18_spill] sm:$0xff] }
 0x183   : > { %1310 = vrot.lane.b32.xlu0 %v3460_v52, %s2863_s14  ;;  %1329 = vrot.lane.b32.xlu1 %v3325_v40, %s2864_s12  ;;  %v622_v52 = vmul.f32 %v3576_v2, %v596_v32  ;;  %v1366_v24 = vshll.u32 %v934_v5, 16  ;;  %v1364_v35 = vshrl.u32 %v934_v5, 16 }
 0x185   : > { %v3979_v1 = vpop.permute.xlu0 %2027  ;;  %v3982_v23 = vpop.permute.xlu1 %1899  ;;  %v1368_v42 = vrot.slane %v1366_v24, 1  ;;  %v4895_v24 = vld [vmem:[#allocation19_spill] sm:$0xff] }
 0x186   : > { %4888 = vst [vmem:[#allocation60_spill] sm:$0xff] %v3982_v23 }
 0x187   : > { %1323 = vrot.lane.b32.xlu0 %v3375_v41, %s2864_s12  ;;  %1349 = vrot.lane.b32.xlu1 %v3968_v43, %s2865_s13  ;;  %v648_v41 = vadd.f32 %v3597_v59, %v622_v52  ;;  %v1369_v23 = vor.u32 %v1368_v42, %v1364_v35  ;;  %v4817_v42 = vrot.slane %v3968_v43, 1  ;;  %v1435_v35 = vrot.slane %v934_v5, 1 }
 0x189   : > { %v3991_v7 = vpop.permute.xlu0 %2041  ;;  %v3993_v0 = vpop.permute.xlu1 %2043  ;;  %vm668_vm0 = vcmp.ge.f32.partialorder %v648_v41, 0.0 }
 0x18b   : > { %1327 = vrot.lane.b32.xlu0 %v3393_v61, %s2864_s12  ;;  %1353 = vrot.lane.b32.xlu1 %v3439_v10, %s2865_s13  ;;  %v688_v61 = vmul.f32 0.01, %v648_v41 }
 0x18d   : > { %v4001_v48 = vpop.permute.xlu0 %1881  ;;  %v4004_v32 = vpop.permute.xlu1 %1903  ;;  %v708_v63 = vsel %vm668_vm0, %v648_v41, %v688_v61  ;;  %v4897_v41 = vld [vmem:[#allocation4_spill] sm:$0xff]  ;;  %vm1720_vm0 = vcmask 195584  }
 0x18e   : > { %4889 = vst [vmem:[#allocation61_spill] sm:$0xff] %v4001_v48  ;;  %4890 = vst [vmem:[#allocation62_spill] sm:$0xff] %v4004_v32  ;;  %v4893_v32 = vld [vmem:[#allocation11_spill] sm:$0xff]  ;;  %v728_v48 = vmul.f32 %v708_v63, %v3552_v53  ;;  %v753_v61 = vmul.f32 %v4897_v41, %v727_v9 }
 0x18f   : > { %1347 = vrot.lane.b32.xlu0 %v934_v5, %s2865_s13  ;;  %1421 = vrot.lane.b32.xlu1 %v4006_v34, %s2866_s15  ;;  %v4901_v9 = vld [vmem:[#allocation15_spill] sm:$0xff] }
 0x190   : > { %v754_v46 = vmul.f32 %v4897_v41, %v728_v48 }
 0x191   : > { %v4011_v12 = vpop.permute.xlu0 %1901  ;;  %v4013_v52 = vpop.permute.xlu1 %1931 }
 0x192   : > { %4891 = vst [vmem:[#allocation63_spill] sm:$0xff] %v4011_v12  ;;  %4892 = vst [vmem:[#allocation64_spill] sm:$0xff] %v4013_v52  ;;  %v4042_v8 = vpack.c.bf16 %v754_v46, %v753_v61 }
 0x193   : > { %1351 = vrot.lane.b32.xlu0 %v3396_v19, %s2865_s13  ;;  %1236 = vrot.lane.b32.xlu1 %v4893_v32, %s2857_s16 }
 0x195   : > { %v4019_v28 = vpop.permute.xlu0 %2045  ;;  %v4023_v12 = vpop.permute.xlu1 %1935 }
 0x196   : > { %4894 = vst [vmem:[#allocation11_spill] sm:$0xff] %v4023_v12  ;;  %v1245_v12 = vshll.u32 %v4042_v8, 16 }
 0x197   : > { %1419 = vrot.lane.b32.xlu0 %v1369_v23, %s2866_s15  ;;  %1425 = vrot.lane.b32.xlu1 %v4895_v24, %s2866_s15 }
 0x199   : > { %v4028_v52 = vpop.permute.xlu0 %1905  ;;  %v4032_v13 = vpop.permute.xlu1 %1954 }
 0x19a   : > { %4896 = vst [vmem:[#allocation19_spill] sm:$0xff] %v4028_v52  ;;  %4898 = vst [vmem:[#allocation4_spill] sm:$0xff] %v4032_v13  ;;  %v597_v52 = vld [vmem:[%s2982_s26 + $0x90] sm:$0xff] }
 0x19b   : > { %1234 = vrot.lane.b32.xlu0 %v3295_v3, %s2857_s16  ;;  %1445 = vrot.lane.b32.xlu1 %v4817_v42, %s2867_s19  ;;  %v4818_v42 = vrot.slane %v3439_v10, 1 }
 0x19d   : > { %v4040_v53 = vpop.permute.xlu0 %1933  ;;  %v4044_v23 = vpop.permute.xlu1 %1958 }
 0x19e   : > { %4899 = vst [vmem:[#allocation65_spill] sm:$0xff] %v4040_v53  ;;  %4900 = vst [vmem:[#allocation66_spill] sm:$0xff] %v4044_v23  ;;  %v4907_v23 = vld [vmem:[#allocation8_spill] sm:$0xff] }
 0x19f   : > { %1423 = vrot.lane.b32.xlu0 %v4901_v9, %s2866_s15  ;;  %1240 = vrot.lane.b32.xlu1 %v4042_v8, %s2857_s16 }
 0x1a1   : > { %v4050_v48 = vpop.permute.xlu0 %1937  ;;  %v4052_v63 = vpop.permute.xlu1 %1971 }
 0x1a2   : > { %4902 = vst [vmem:[#allocation15_spill] sm:$0xff] %v4050_v48  ;;  %4903 = vst [vmem:[#allocation67_spill] sm:$0xff] %v4052_v63  ;;  %v1247_v63 = vrot.slane %v1245_v12, 1 }
 0x1a3   : > { %1443 = vrot.lane.b32.xlu0 %v1435_v35, %s2867_s19  ;;  %1259 = vrot.lane.b32.xlu1 %v4904_v25, %s2861_s10 }
 0x1a5   : > { %v4057_v46 = vpop.permute.xlu0 %1956  ;;  %v4059_v61 = vpop.permute.xlu1 %1975 }
 0x1a6   : > { %4905 = vst [vmem:[#allocation18_spill] sm:$0xff] %v4057_v46  ;;  %4906 = vst [vmem:[#allocation68_spill] sm:$0xff] %v4059_v61  ;;  %v1243_v61 = vshrl.u32 %v4042_v8, 16 }
 0x1a7   : > { %1238 = vrot.lane.b32.xlu0 %v4907_v23, %s2857_s16  ;;  %1449 = vrot.lane.b32.xlu1 %v4818_v42, %s2867_s19  ;;  %v1437_v42 = vrot.slane %v3396_v19, 1  ;;  %s2870_s16 = smov 28  }
 0x1a9   : > { %v4068_v5 = vpop.permute.xlu0 %1960  ;;  %v4070_v35 = vpop.permute.xlu1 %1989 }
 0x1aa   : > { %4908 = vst [vmem:[#allocation8_spill] sm:$0xff] %v4068_v5  ;;  %4909 = vst [vmem:[#allocation69_spill] sm:$0xff] %v4070_v35  ;;  %v4082_v5 = vor.u32 %v1247_v63, %v1243_v61  ;;  %v598_v35 = vld [vmem:[%s2982_s26 + $0x98] sm:$0x3]  ;;  %v4917_v61 = vld [vmem:[#allocation14_spill] sm:$0xff]  ;;  %s2869_s26 = smov 26  }
 0x1ab   : > { %1257 = vrot.lane.b32.xlu0 %v3421_v22, %s2861_s10  ;;  %1462 = vrot.lane.b32.xlu1 %v3396_v19, %s2868_s22  ;;  %v624_v46 = vmul.f32 %v3576_v2, %v598_v35 }
 0x1ad   : > { %v4077_v13 = vpop.permute.xlu0 %1973  ;;  %v4080_v48 = vpop.permute.xlu1 %1993 }
 0x1ae   : > { %4910 = vst [vmem:[#allocation70_spill] sm:$0xff] %v4077_v13  ;;  %4911 = vst [vmem:[#allocation71_spill] sm:$0xff] %v4080_v48  ;;  %v4914_v13 = vld [vmem:[#allocation12_spill] sm:$0xff] }
 0x1af   : > { %1447 = vrot.lane.b32.xlu0 %v1437_v42, %s2867_s19  ;;  %1263 = vrot.lane.b32.xlu1 %v4082_v5, %s2861_s10 }
 0x1b1   : > { %v4087_v22 = vpop.permute.xlu0 %1977  ;;  %v4089_v12 = vpop.permute.xlu1 %2012 }
 0x1b2   : > { %4912 = vst [vmem:[#allocation72_spill] sm:$0xff] %v4087_v22  ;;  %4913 = vst [vmem:[#allocation73_spill] sm:$0xff] %v4089_v12  ;;  %v623_v22 = vmul.f32 %v3576_v2, %v597_v52  ;;  %v4918_v12 = vld [vmem:[#allocation13_spill] sm:$0xff]  ;;  %v4820_v52 = vrot.slane %v4042_v8, 1 }
 0x1b3   : > { %1460 = vrot.lane.b32.xlu0 %v3968_v43, %s2868_s22  ;;  %1276 = vrot.lane.b32.xlu1 %v4914_v13, %s2862_s11 }
 0x1b5   : > { %v4097_v48 = vpop.permute.xlu0 %1991  ;;  %v4099_v63 = vpop.permute.xlu1 %2016 }
 0x1b6   : > { %4915 = vst [vmem:[#allocation12_spill] sm:$0xff] %v4097_v48  ;;  %4916 = vst [vmem:[#allocation74_spill] sm:$0xff] %v4099_v63  ;;  %v650_v48 = vadd.f32 %v3597_v59, %v624_v46  ;;  %v649_v63 = vadd.f32 %v3597_v59, %v623_v22 }
 0x1b7   : > { %1261 = vrot.lane.b32.xlu0 %v4917_v61, %s2861_s10  ;;  %1466 = vrot.lane.b32.xlu1 %v4918_v12, %s2868_s22  ;;  %s442_s10 = sadd.s32 %s2691_s20, %s5016_s27 }
 0x1b8   : > { %vm670_vm2 = vcmp.ge.f32.partialorder %v650_v48, 0.0  ;;  %vm669_vm3 = vcmp.ge.f32.partialorder %v649_v63, 0.0 }
 0x1b9   : > { %v4107_v53 = vpop.permute.xlu0 %1995  ;;  %v4109_v29 = vpop.permute.xlu1 %2029 }
 0x1ba   : > { %4919 = vst [vmem:[#allocation14_spill] sm:$0xff] %v4107_v53  ;;  %4920 = vst [vmem:[#allocation13_spill] sm:$0xff] %v4109_v29  ;;  %v690_v29 = vmul.f32 0.01, %v650_v48  ;;  %v689_v53 = vmul.f32 0.01, %v649_v63 }
 0x1bb   : > { %1274 = vrot.lane.b32.xlu0 %v3325_v40, %s2862_s11  ;;  %1485 = vrot.lane.b32.xlu1 %v4901_v9, %s2869_s26 }
 0x1bc   : > { %v710_v9 = vsel %vm670_vm2, %v650_v48, %v690_v29  ;;  %v709_v46 = vsel %vm669_vm3, %v649_v63, %v689_v53  ;;  %vm1754_vm2 = vcmask 228352   ;;  %vm1771_vm3 = vcmask 244736  }
 0x1bd   : > { %v4117_v35 = vpop.permute.xlu0 %2014  ;;  %v4119_v2 = vpop.permute.xlu1 %2033 }
 0x1be   : > { %4921 = vst [vmem:[#allocation75_spill] sm:$0xff] %v4117_v35  ;;  %4922 = vst [vmem:[#allocation76_spill] sm:$0xff] %v4119_v2  ;;  %v730_v2 = vmul.f32 %v710_v9, %v3612_v54  ;;  %v729_v35 = vmul.f32 %v709_v46, %v3615_v57 }
 0x1bf   : > { %1464 = vrot.lane.b32.xlu0 %v3439_v10, %s2868_s22  ;;  %1280 = vrot.lane.b32.xlu1 %v4820_v52, %s2862_s11  ;;  %v4924_v52 = vld [vmem:[#allocation9_spill] sm:$0xff] }
 0x1c0   : > { %v756_v29 = vmul.f32 %v4897_v41, %v730_v2  ;;  %v755_v53 = vmul.f32 %v4897_v41, %v729_v35  ;;  %v4926_v2 = vrot.slane %v3968_v43, 1  ;;  %v1439_v43 = vrot.slane %v4918_v12, 1 }
 0x1c1   : > { %v4127_v40 = vpop.permute.xlu0 %2018  ;;  %v4129_v59 = vpop.permute.xlu1 %2047 }
 0x1c2   : > { %4923 = vst [vmem:[#allocation77_spill] sm:$0xff] %v4129_v59  ;;  %v4925_v59 = vld [vmem:[#allocation17_spill] sm:$0xff]  ;;  %v4158_v63 = vpack.c.bf16 %v756_v29, %v755_v53 }
 0x1c3   : > { %1483 = vrot.lane.b32.xlu0 %v4006_v34, %s2869_s26  ;;  %1293 = vrot.lane.b32.xlu1 %v4907_v23, %s2858_s17 }
 0x1c4   : > { %v1302_v46 = vshll.u32 %v4158_v63, 16 }
 0x1c5   : > { %v4135_v22 = vpop.permute.xlu0 %2031  ;;  %v4139_v30 = vpop.permute.xlu1 %2051 }
 0x1c7   : > { %1278 = vrot.lane.b32.xlu0 %v4924_v52, %s2862_s11  ;;  %1489 = vrot.lane.b32.xlu1 %v4925_v59, %s2869_s26  ;;  %s2692_s11 = sshll.u32 %s442_s10, 1 }
 0x1c9   : > { %v4145_v34 = vpop.permute.xlu0 %2035  ;;  %v4149_v48 = vpop.permute.xlu1 %1228 }
 0x1cb   : > { %1291 = vrot.lane.b32.xlu0 %v4893_v32, %s2858_s17  ;;  %1502 = vrot.lane.b32.xlu1 %v1437_v42, %s2870_s16  ;;  %v2058_v42 = vsel %vm1533_vm4, %v3439_v10, %v3833_v15 }
 0x1cd   : > { %v4154_v54 = vpop.permute.xlu0 %2049  ;;  %v4156_v57 = vpop.permute.xlu1 %1232 }
 0x1cf   : > { %1487 = vrot.lane.b32.xlu0 %v4895_v24, %s2869_s26  ;;  %1297 = vrot.lane.b32.xlu1 %v4158_v63, %s2858_s17  ;;  %v2074_v24 = vsel %vm1550_vm5, %v2058_v42, %v3847_v50 }
 0x1d0   : > { %v2090_v15 = vsel %vm1567_vm6, %v2074_v24, %v3718_v49  ;;  %v1304_v24 = vrot.slane %v1302_v46, 1 }
 0x1d1   : > { %v4164_v41 = vpop.permute.xlu0 %2053  ;;  %v4169_v35 = vpop.permute.xlu1 %1251  ;;  %v2106_v50 = vsel %vm1584_vm7, %v2090_v15, %v3861_v55 }
 0x1d2   : > { %v2122_v53 = vsel %vm1601_vm8, %v2106_v50, %v3876_v36 }
 0x1d3   : > { %1500 = vrot.lane.b32.xlu0 %v4926_v2, %s2870_s16  ;;  %1316 = vrot.lane.b32.xlu1 %v4917_v61, %s2863_s14  ;;  %v2056_v61 = vsel %vm1533_vm4, %v3396_v19, %v3811_v45  ;;  %v1300_v2 = vshrl.u32 %v4158_v63, 16  ;;  %v2138_v45 = vsel %vm1618_vm9, %v2122_v53, %v3739_v21 }
 0x1d4   : > { %v2072_v42 = vsel %vm1550_vm5, %v2056_v61, %v3828_v18  ;;  %v2154_v18 = vsel %vm1635_vm10, %v2138_v45, %v3891_v14 }
 0x1d5   : > { %v4178_v9 = vpop.permute.xlu0 %1230  ;;  %v4183_v29 = vpop.permute.xlu1 %1255  ;;  %v2088_v36 = vsel %vm1567_vm6, %v2072_v42, %v3689_v60  ;;  %v2170_v21 = vsel %vm1652_vm11, %v2154_v18, %v3911_v39  ;;  %v1305_v15 = vor.u32 %v1304_v24, %v1300_v2  ;;  %v4927_v60 = vld [vmem:[#allocation16_spill] sm:$0xff] }
 0x1d6   : > { %v2062_v50 = vsel %vm1533_vm4, %v4927_v60, %v3840_v58  ;;  %v2186_v61 = vsel %vm1669_vm12, %v2170_v21, %v3944_v44  ;;  %v4933_v21 = vld [vmem:[#allocation33_spill] sm:$0xff] }
 0x1d7   : > { %1295 = vrot.lane.b32.xlu0 %v4042_v8, %s2858_s17  ;;  %1506 = vrot.lane.b32.xlu1 %v1439_v43, %s2870_s16  ;;  %s2871_s17 = smov 30   ;;  %v2078_v39 = vsel %vm1550_vm5, %v2062_v50, %v3854_v4  ;;  %v2202_v42 = vsel %vm1686_vm13, %v2186_v61, %v3991_v7  ;;  %v2060_v4 = vsel %vm1533_vm4, %v4918_v12, %v3821_v31  ;;  %v2811_v50 = vld [vmem:[%s4767_s3 + $0x8] sm:$0xff]   ;;  %v4935_v61 = vld [vmem:[#allocation51_spill] sm:$0xff] }
 0x1d8   : > { %v2223_v2 = vshll.u32 %v2202_v42, 16 }
 0x1d9   : > { %v4198_v49 = vpop.permute.xlu0 %1249  ;;  %v4203_v55 = vpop.permute.xlu1 %1268 }
 0x1db   : > { %1314 = vrot.lane.b32.xlu0 %v4904_v25, %s2863_s14  ;;  %1519 = vrot.lane.b32.xlu1 %v3439_v10, %s2871_s17  ;;  %v2104_v25 = vsel %vm1584_vm7, %v2088_v36, %v3842_v16  ;;  %v4928_v16 = vrot.slane %v3439_v10, 1  ;;  %v2094_v10 = vsel %vm1567_vm6, %v2078_v39, %v3729_v56  ;;  %v2810_v56 = vld [vmem:[%s4767_s3] sm:$0xff]   ;;  %v2221_v39 = vshrl.u32 %v2202_v42, 16 }
 0x1dc   : > { %v2120_v14 = vsel %vm1601_vm8, %v2104_v25, %v3856_v62  ;;  %v2110_v7 = vsel %vm1584_vm7, %v2094_v10, %v3868_v11  ;;  %2723 = vmatprep.subr.bf16.mxu0 %v2810_v56  ;;  %2739 = vmatprep.subr.bf16.mxu1 %v2810_v56  ;;  %v2225_v11 = vrot.slane %v2223_v2, 1  ;;  %v4932_v25 = vld [vmem:[#allocation28_spill] sm:$0xff]  ;;  %v4937_v10 = vld [vmem:[#allocation7_spill] sm:$0xff] }
 0x1dd   : > { %v4215_v46 = vpop.permute.xlu0 %1253  ;;  %v4228_v53 = vpop.permute.xlu1 %1272  ;;  %v2136_v44 = vsel %vm1618_vm9, %v2120_v14, %v3712_v33  ;;  %2724 = vmatpush3.bf16.msra.mxu0 %v2810_v56  ;;  %2743 = vmatpush3.bf16.msra.mxu1 %v2810_v56 }
 0x1de   : > { %v2152_v62 = vsel %vm1635_vm10, %v2136_v44, %v3870_v17  ;;  %v2076_v17 = vsel %vm1550_vm5, %v2060_v4, %v3835_v38  ;;  %v4929_v38 = vld [vmem:[#allocation5_spill] sm:$0xff]  ;;  %v4938_v4 = vld [vmem:[#allocation48_spill] sm:$0xff]  ;;  %2725 = vmatprep.subr.bf16.mxu0 %v2811_v50  ;;  %2740 = vmatprep.subr.bf16.mxu1 %v2811_v50 }
 0x1df   : > { %1504 = vrot.lane.b32.xlu0 %v4928_v16, %s2870_s16  ;;  %1320 = vrot.lane.b32.xlu1 %v1305_v15, %s2863_s14  ;;  %v2168_v33 = vsel %vm1652_vm11, %v2152_v62, %v3885_v20  ;;  %v4936_v62 = vld [vmem:[#allocation42_spill] sm:$0xff] }
 0x1e0   : > { %v2184_v45 = vsel %vm1669_vm12, %v2168_v33, %v3914_v51  ;;  %v1537_v51 = vsel %vm1533_vm4, %v4929_v38, %v3776_v6  ;;  %v1535_v2 = vsel %vm1533_vm4, %v4937_v10, %v4936_v62  ;;  %v4939_v33 = vld [vmem:[#allocation55_spill] sm:$0xff] }
 0x1e1   : > { %v4238_v58 = vpop.permute.xlu0 %1266  ;;  %v4246_v24 = vpop.permute.xlu1 %1285  ;;  %v4272_v20 = vsel %vm1686_vm13, %v2184_v45, %v3958_v47  ;;  %v2092_v47 = vsel %vm1567_vm6, %v2076_v17, %v4932_v25  ;;  %v2226_v17 = vor.u32 %v2225_v11, %v2221_v39  ;;  %2726 = vmatpush3.bf16.msra.mxu0 %v2811_v50  ;;  %2744 = vmatpush3.bf16.msra.mxu1 %v2811_v50  ;;  %v4942_v11 = vld [vmem:[#allocation35_spill] sm:$0xff] }
 0x1e2   : > { %v2217_v16 = vshll.u32 %v4272_v20, 16 }
 0x1e3   : > { %1517 = vrot.lane.b32.xlu0 %v3396_v19, %s2871_s17  ;;  %v2126_v19 = vsel %vm1601_vm8, %v2110_v7, %v3883_v37  ;;  %1333 = vrot.lane.b32.xlu1 %v4924_v52, %s2864_s12  ;;  %v4930_v37 = vld [vmem:[#allocation39_spill] sm:$0xff]  ;;  %v4931_v52 = vld [vmem:[#allocation6_spill] sm:$0xff] }
 0x1e4   : > { %v1541_v18 = vsel %vm1533_vm4, %v4931_v52, %v4930_v37  ;;  %v2142_v15 = vsel %vm1618_vm9, %v2126_v19, %v4933_v21  ;;  %v4940_v19 = vld [vmem:[#allocation32_spill] sm:$0xff]  ;;  %v4941_v52 = vld [vmem:[#allocation31_spill] sm:$0xff]  ;;  %v4943_v21 = vld [vmem:[#allocation30_spill] sm:$0xff] }
 0x1e5   : > { %v4268_v31 = vpop.permute.xlu0 %1270  ;;  %v1290_v36 = vpop.permute.xlu1 %1289  ;;  %v2158_v6 = vsel %vm1635_vm10, %v2142_v15, %v4935_v61  ;;  %v1558_v45 = vsel %vm1550_vm5, %v1541_v18, %v4940_v19  ;;  %v1554_v25 = vsel %vm1550_vm5, %v1537_v51, %v4941_v52  ;;  %v1552_v18 = vsel %vm1550_vm5, %v1535_v2, %v4942_v11 }
 0x1e6   : > { %v2174_v56 = vsel %vm1652_vm11, %v2158_v6, %v4939_v33  ;;  %v2219_v15 = vrot.slane %v2217_v16, 1  ;;  %v1322_v6 = vrot.slane %v4158_v63, 1  ;;  %v1571_v39 = vsel %vm1567_vm6, %v1554_v25, %v4149_v48 }
 0x1e7   : > { %1318 = vrot.lane.b32.xlu0 %v4082_v5, %s2863_s14  ;;  %v4934_v5 = vld [vmem:[#allocation47_spill] sm:$0xff]  ;;  %1523 = vrot.lane.b32.xlu1 %v4927_v60, %s2871_s17  ;;  %v2190_v42 = vsel %vm1669_vm12, %v2174_v56, %v3979_v1  ;;  %v2812_v1 = vld [vmem:[%s4767_s3 + $0x10] sm:$0xff]   ;;  %v1588_v63 = vsel %vm1584_vm7, %v1571_v39, %v4169_v35  ;;  %v4951_v39 = vld [vmem:[#allocation20_spill] sm:$0xff] }
 0x1e8   : > { %v2108_v14 = vsel %vm1584_vm7, %v2092_v47, %v4934_v5  ;;  %v2206_v37 = vsel %vm1686_vm13, %v2190_v42, %v4019_v28  ;;  %v1575_v47 = vsel %vm1567_vm6, %v1558_v45, %v4156_v57  ;;  %v4944_v57 = vld [vmem:[#allocation44_spill] sm:$0xff]  ;;  %2727 = vmatprep.subr.bf16.mxu0 %v2812_v1  ;;  %2741 = vmatprep.subr.bf16.mxu1 %v2812_v1 }
 0x1e9   : > { %v4296_v44 = vpop.permute.xlu0 %1283  ;;  %v2124_v7 = vsel %vm1601_vm8, %v2108_v14, %v4938_v4  ;;  %v1309_v38 = vpop.permute.xlu1 %1308  ;;  %v1592_v28 = vsel %vm1584_vm7, %v1575_v47, %v4183_v29  ;;  %v1539_v5 = vsel %vm1533_vm4, %v3339_v26, %v4944_v57  ;;  %v4945_v14 = vld [vmem:[#allocation49_spill] sm:$0xff]  ;;  %v2215_v29 = vshrl.u32 %v4272_v20, 16  ;;  %2728 = vmatpush3.bf16.msra.mxu0 %v2812_v1  ;;  %v4946_v26 = vld [vmem:[#allocation52_spill] sm:$0xff]  ;;  %v2813_v20 = vld [vmem:[%s4767_s3 + $0x18] ss:$0 sps:$4 sm:$0x77]   ;;  %2745 = vmatpush3.bf16.msra.mxu1 %v2812_v1 }
 0x1ea   : > { %v1609_v61 = vsel %vm1601_vm8, %v1592_v28, %v4228_v53  ;;  %v2235_v16 = vshll.u32 %v2206_v37, 16  ;;  %v4947_v4 = vld [vmem:[#allocation37_spill] sm:$0xff]  ;;  %v1605_v33 = vsel %vm1601_vm8, %v1588_v63, %v4203_v55  ;;  %2747 = vmatprep.subr.msk.bf16.mxu0 %vm2364_vm14, %v2813_v20  ;;  %2748 = vmatprep.subr.msk.bf16.mxu1 %vm2364_vm14, %v2813_v20  ;;  %v2233_v25 = vshrl.u32 %v2206_v37, 16 }
 0x1eb   : > { %1331 = vrot.lane.b32.xlu0 %v4914_v13, %s2864_s12  ;;  %v2140_v13 = vsel %vm1618_vm9, %v2124_v7, %v4943_v21  ;;  %2265 = vrot.lane.b32.xlu1 %v2226_v17, %s2872_s23  ;;  %v1626_v62 = vsel %vm1618_vm9, %v1609_v61, %v1290_v36  ;;  %v2220_v36 = vor.u32 %v2219_v15, %v2215_v29  ;;  %v4948_v47 = vld [vmem:[#allocation29_spill] sm:$0xff] }
 0x1ec   : > { %v2156_v50 = vsel %vm1635_vm10, %v2140_v13, %v4945_v14  ;;  %v1556_v7 = vsel %vm1550_vm5, %v1539_v5, %v4947_v4  ;;  %v1622_v17 = vsel %vm1618_vm9, %v1605_v33, %v4246_v24  ;;  %v2366_v24 = vsel %vm2364_vm14, %v2813_v20, 0 }
 0x1ed   : > { %v1288_v51 = vpop.permute.xlu0 %1287  ;;  %v1313_v10 = vpop.permute.xlu1 %1312  ;;  %v2172_v53 = vsel %vm1652_vm11, %v2156_v50, %v4946_v26  ;;  %v1573_v42 = vsel %vm1567_vm6, %v1556_v7, %v4178_v9  ;;  %v1639_v19 = vsel %vm1635_vm10, %v1622_v17, %v1309_v38  ;;  %v1569_v1 = vsel %vm1567_vm6, %v1552_v18, %v4948_v47  ;;  %2730 = vmatpush3.bf16.msra.mxu0 %v2366_v24 }
 0x1ee   : > { %v1643_v2 = vsel %vm1635_vm10, %v1626_v62, %v1313_v10  ;;  %v2188_v48 = vsel %vm1669_vm12, %v2172_v53, %v3948_v27  ;;  %v2237_v27 = vrot.slane %v2235_v16, 1  ;;  %v1590_v55 = vsel %vm1584_vm7, %v1573_v42, %v4215_v46  ;;  %2746 = vmatpush3.bf16.msra.mxu1 %v2366_v24  ;;  %v4952_v53 = vld [vmem:[#allocation21_spill] sm:$0xff]  ;;  %v4954_v42 = vld [vmem:[#allocation24_spill] sm:$0xff] }
 0x1ef   : > { %1521 = vrot.lane.b32.xlu0 %v4918_v12, %s2871_s17  ;;  %1337 = vrot.lane.b32.xlu1 %v1322_v6, %s2864_s12  ;;  %v2204_v56 = vsel %vm1686_vm13, %v2188_v48, %v3993_v0  ;;  %v1607_v0 = vsel %vm1601_vm8, %v1590_v55, %v4268_v31  ;;  %v1586_v38 = vsel %vm1584_vm7, %v1569_v1, %v4198_v49  ;;  %v4949_v18 = vrot.slane %v4042_v8, 1 }
 0x1f0   : > { %v2229_v52 = vshll.u32 %v2204_v56, 16  ;;  %v1624_v11 = vsel %vm1618_vm9, %v1607_v0, %v1288_v51  ;;  %v2238_v21 = vor.u32 %v2237_v27, %v2233_v25  ;;  %v1603_v37 = vsel %vm1601_vm8, %v1586_v38, %v4238_v58  ;;  %v4957_v25 = vld [vmem:[#allocation34_spill] sm:$0xff]  ;;  %v4958_v38 = vld [vmem:[#allocation45_spill] sm:$0xff] }
 0x1f1   : > { %v1307_v35 = vpop.permute.xlu0 %1306  ;;  %v1326_v45 = vpop.permute.xlu1 %1325  ;;  %v1620_v15 = vsel %vm1618_vm9, %v1603_v37, %v4296_v44  ;;  %v2227_v14 = vshrl.u32 %v2204_v56, 16  ;;  %v4950_v44 = vld [vmem:[#allocation22_spill] sm:$0xff]  ;;  %v1440_v4 = vrot.slane %v4927_v60, 1 }
 0x1f2   : > { %v1656_v9 = vsel %vm1652_vm11, %v1639_v19, %v1326_v45  ;;  %v2231_v51 = vrot.slane %v2229_v52, 1  ;;  %v1637_v49 = vsel %vm1635_vm10, %v1620_v15, %v1307_v35  ;;  %v1442_v56 = vrot.slane %v4950_v44, 1 }
 0x1f3   : > { %2263 = vrot.lane.b32.xlu0 %v2220_v36, %s2872_s23  ;;  %1357 = vrot.lane.b32.xlu1 %v4927_v60, %s2865_s13  ;;  %v1441_v45 = vrot.slane %v4952_v53, 1 }
 0x1f4   : > { %v2232_v50 = vor.u32 %v2231_v51, %v2227_v14  ;;  %v4963_v14 = vld [vmem:[#allocation43_spill] sm:$0xff] }
 0x1f5   : > { %v1311_v46 = vpop.permute.xlu0 %1310  ;;  %v1330_v13 = vpop.permute.xlu1 %1329 }
 0x1f6   : > { %v1641_v31 = vsel %vm1635_vm10, %v1624_v11, %v1311_v46  ;;  %v1660_v28 = vsel %vm1652_vm11, %v1643_v2, %v1330_v13  ;;  %v4953_v2 = vld [vmem:[#allocation27_spill] sm:$0xff]  ;;  %v4960_v13 = vld [vmem:[#allocation53_spill] sm:$0xff] }
 0x1f7   : > { %1335 = vrot.lane.b32.xlu0 %v4949_v18, %s2864_s12  ;;  %2269 = vrot.lane.b32.xlu1 %v2238_v21, %s2872_s23  ;;  %v2066_v18 = vsel %vm1533_vm4, %v4950_v44, %v4960_v13  ;;  %s2688_s12 = sshll.u32 %s5016_s27, 3 }
 0x1f9   : > { %v1324_v57 = vpop.permute.xlu0 %1323  ;;  %v1350_v58 = vpop.permute.xlu1 %1349 }
 0x1fa   : > { %v1654_v5 = vsel %vm1652_vm11, %v1637_v49, %v1324_v57  ;;  %v1673_v8 = vsel %vm1669_vm12, %v1656_v9, %v1350_v58  ;;  %v4955_v9 = vld [vmem:[#allocation41_spill] sm:$0xff]  ;;  %v4962_v49 = vld [vmem:[#allocation38_spill] sm:$0xff]  ;;  %v1549_v58 = vsel %vm1533_vm4, %v4907_v23, %v4963_v14 }
 0x1fb   : > { %1355 = vrot.lane.b32.xlu0 %v4918_v12, %s2865_s13  ;;  %1361 = vrot.lane.b32.xlu1 %v4950_v44, %s2865_s13  ;;  %v1545_v24 = vsel %vm1533_vm4, %v3295_v3, %v4955_v9  ;;  %v4956_v12 = vld [vmem:[#allocation23_spill] sm:$0xff]  ;;  %v4969_v23 = vld [vmem:[#allocation18_spill] sm:$0xff] }
 0x1fc   : > { %v1562_v47 = vsel %vm1550_vm5, %v1545_v24, %v4957_v25  ;;  %v4974_v24 = vld [vmem:[#allocation50_spill] sm:$0xff] }
 0x1fd   : > { %v1328_v61 = vpop.permute.xlu0 %1327  ;;  %v1354_v29 = vpop.permute.xlu1 %1353 }
 0x1fe   : > { %v1658_v6 = vsel %vm1652_vm11, %v1641_v31, %v1328_v61  ;;  %v1677_v16 = vsel %vm1669_vm12, %v1660_v28, %v1354_v29  ;;  %v4959_v31 = vld [vmem:[#allocation10_spill] sm:$0xff] }
 0x1ff   : > { %2267 = vrot.lane.b32.xlu0 %v2232_v50, %s2872_s23  ;;  %1429 = vrot.lane.b32.xlu1 %v4951_v39, %s2866_s15  ;;  %v1543_v21 = vsel %vm1533_vm4, %v4959_v31, %v4958_v38  ;;  %v4961_v28 = vld [vmem:[#allocation58_spill] sm:$0xff]  ;;  %v4977_v38 = vld [vmem:[#allocation56_spill] sm:$0xff] }
 0x200   : > { %v2082_v51 = vsel %vm1550_vm5, %v2066_v18, %v4961_v28  ;;  %v1560_v57 = vsel %vm1550_vm5, %v1543_v21, %v4962_v49  ;;  %v4978_v21 = vld [vmem:[#allocation15_spill] sm:$0xff]  ;;  %v4980_v28 = vld [vmem:[#allocation60_spill] sm:$0xff] }
 0x201   : > { %v1348_v62 = vpop.permute.xlu0 %1347  ;;  %v1422_v26 = vpop.permute.xlu1 %1421  ;;  %v4981_v49 = vld [vmem:[#allocation8_spill] sm:$0xff] }
 0x202   : > { %v1671_v10 = vsel %vm1669_vm12, %v1654_v5, %v1348_v62  ;;  %v1690_v63 = vsel %vm1686_vm13, %v1673_v8, %v1422_v26  ;;  %v4964_v8 = vld [vmem:[#allocation63_spill] sm:$0xff]  ;;  %v4967_v26 = vld [vmem:[#allocation57_spill] sm:$0xff] }
 0x203   : > { %1359 = vrot.lane.b32.xlu0 %v4952_v53, %s2865_s13  ;;  %1433 = vrot.lane.b32.xlu1 %v4953_v2, %s2866_s15  ;;  %v2098_v50 = vsel %vm1567_vm6, %v2082_v51, %v4964_v8  ;;  %v4982_v8 = vld [vmem:[#allocation64_spill] sm:$0xff]  ;;  %s2689_s13 = sshll.u32 %s5014_s28, 6 }
 0x205   : > { %v1352_v20 = vpop.permute.xlu0 %1351  ;;  %v1237_v36 = vpop.permute.xlu1 %1236 }
 0x206   : > { %v1675_v48 = vsel %vm1669_vm12, %v1658_v6, %v1352_v20  ;;  %v1579_v11 = vsel %vm1567_vm6, %v1562_v47, %v1237_v36  ;;  %v4965_v6 = vld [vmem:[#allocation26_spill] sm:$0xff]  ;;  %v4976_v47 = vld [vmem:[#allocation12_spill] sm:$0xff] }
 0x207   : > { %1427 = vrot.lane.b32.xlu0 %v4925_v59, %s2866_s15  ;;  %1453 = vrot.lane.b32.xlu1 %v1440_v4, %s2867_s19 }
 0x209   : > { %v1420_v7 = vpop.permute.xlu0 %1419  ;;  %v1426_v35 = vpop.permute.xlu1 %1425 }
 0x20a   : > { %v1688_v33 = vsel %vm1686_vm13, %v1671_v10, %v1420_v7  ;;  %v1694_v17 = vsel %vm1686_vm13, %v1677_v16, %v1426_v35  ;;  %v4966_v16 = vld [vmem:[#allocation65_spill] sm:$0xff]  ;;  %v4971_v35 = vld [vmem:[#allocation70_spill] sm:$0xff] }
 0x20b   : > { %1431 = vrot.lane.b32.xlu0 %v4954_v42, %s2866_s15  ;;  %1457 = vrot.lane.b32.xlu1 %v1442_v56, %s2867_s19  ;;  %v2114_v62 = vsel %vm1584_vm7, %v2098_v50, %v4966_v16  ;;  %v4970_v7 = vld [vmem:[#allocation61_spill] sm:$0xff]  ;;  %v4984_v16 = vld [vmem:[#allocation54_spill] sm:$0xff]  ;;  %s434_s15 = sadd.s32 %s2689_s13, %s2688_s12 }
 0x20d   : > { %v1235_v59 = vpop.permute.xlu0 %1234  ;;  %v1446_v27 = vpop.permute.xlu1 %1445 }
 0x20e   : > { %v4426_v55 = vsel %vm1703_vm15, %v1690_v63, %v1446_v27  ;;  %v1577_v61 = vsel %vm1567_vm6, %v1560_v57, %v1235_v59  ;;  %v4968_v63 = vld [vmem:[#allocation25_spill] sm:$0xff]  ;;  %v1499_v27 = vrot.slane %v4956_v12, 1 }
 0x20f   : > { %1451 = vrot.lane.b32.xlu0 %v1439_v43, %s2867_s19  ;;  %1470 = vrot.lane.b32.xlu1 %v4952_v53, %s2868_s22  ;;  %v2070_v20 = vsel %vm1533_vm4, %v4968_v63, %v4967_v26  ;;  %v4986_v26 = vld [vmem:[#allocation14_spill] sm:$0xff] }
 0x211   : > { %v1424_v19 = vpop.permute.xlu0 %1423  ;;  %v1241_v52 = vpop.permute.xlu1 %1240 }
 0x212   : > { %v1692_v0 = vsel %vm1686_vm13, %v1675_v48, %v1424_v19  ;;  %v2130_v48 = vsel %vm1601_vm8, %v2114_v62, %v4969_v23  ;;  %v4973_v19 = vld [vmem:[#allocation46_spill] sm:$0xff]  ;;  %v4987_v23 = vld [vmem:[#allocation59_spill] sm:$0xff] }
 0x213   : > { %1455 = vrot.lane.b32.xlu0 %v1441_v45, %s2867_s19  ;;  %1474 = vrot.lane.b32.xlu1 %v4956_v12, %s2868_s22  ;;  %v1547_v9 = vsel %vm1533_vm4, %v4893_v32, %v4973_v19  ;;  %v4979_v32 = vld [vmem:[#allocation75_spill] sm:$0xff]  ;;  %v4991_v19 = vld [vmem:[#allocation69_spill] sm:$0xff]  ;;  %s2690_s19 = sshll.u32 %s434_s15, 3 }
 0x214   : > { %s4710_s18 = scalar_lea.vmem %s4771_s7, %s2690_s19 }
 0x215   : > { %v1444_v43 = vpop.permute.xlu0 %1443  ;;  %v1260_v46 = vpop.permute.xlu1 %1259 }
 0x216   : > { %v4441_v1 = vsel %vm1703_vm15, %v1688_v33, %v1444_v43  ;;  %v4447_v3 = vsel %vm1584_vm7, %v1579_v11, %v1260_v46  ;;  %v2086_v33 = vsel %vm1550_vm5, %v2070_v20, %v4970_v7  ;;  %v2064_v43 = vsel %vm1533_vm4, %v4952_v53, %v4974_v24 }
 0x217   : > { %1468 = vrot.lane.b32.xlu0 %v4927_v60, %s2868_s22  ;;  %1493 = vrot.lane.b32.xlu1 %v4954_v42, %s2869_s26  ;;  %v2146_v42 = vsel %vm1618_vm9, %v2130_v48, %v4971_v35  ;;  %v2080_v31 = vsel %vm1550_vm5, %v2064_v43, %v4977_v38  ;;  %v4989_v35 = vld [vmem:[#allocation40_spill] sm:$0xff]  ;;  %v4994_v38 = vld [vmem:[#allocation66_spill] sm:$0xff] }
 0x218   : > { %v2162_v11 = vsel %vm1635_vm10, %v2146_v42, %v4976_v47  ;;  %v2096_v51 = vsel %vm1567_vm6, %v2080_v31, %v4980_v28  ;;  %v1564_v42 = vsel %vm1550_vm5, %v1547_v9, %v4989_v35  ;;  %v4993_v47 = vld [vmem:[#allocation73_spill] sm:$0xff]  ;;  %v4998_v28 = vld [vmem:[#allocation71_spill] sm:$0xff] }
 0x219   : > { %v4454_v37 = vpop.permute.xlu0 %1238  ;;  %v1450_v15 = vpop.permute.xlu1 %1449  ;;  %v2178_v18 = vsel %vm1652_vm11, %v2162_v11, %v4979_v32  ;;  %v2112_v50 = vsel %vm1584_vm7, %v2096_v51, %v4982_v8  ;;  %v4995_v31 = vld [vmem:[#allocation13_spill] sm:$0xff] }
 0x21a   : > { %v4466_v5 = vsel %vm1703_vm15, %v1694_v17, %v1450_v15  ;;  %v4972_v17 = vld [vmem:[#allocation36_spill] sm:$0xff]  ;;  %v1581_v60 = vsel %vm1567_vm6, %v1564_v42, %v4454_v37  ;;  %v4999_v37 = vld [vmem:[#allocation74_spill] sm:$0xff] }
 0x21b   : > { %1472 = vrot.lane.b32.xlu0 %v4950_v44, %s2868_s22  ;;  %1497 = vrot.lane.b32.xlu1 %v4965_v6, %s2869_s26  ;;  %v1566_v59 = vsel %vm1550_vm5, %v1549_v58, %v4972_v17  ;;  %v4990_v17 = vld [vmem:[#allocation62_spill] sm:$0xff] }
 0x21c   : > { %v1583_v14 = vsel %vm1567_vm6, %v1566_v59, %v1241_v52  ;;  %v4985_v52 = vld [vmem:[#allocation4_spill] sm:$0xff] }
 0x21d   : > { %v1258_v29 = vpop.permute.xlu0 %1257  ;;  %v4486_v36 = vpop.permute.xlu1 %1462  ;;  %v2128_v62 = vsel %vm1601_vm8, %v2112_v50, %v4985_v52 }
 0x21e   : > { %v4479_v10 = vsel %vm1584_vm7, %v1577_v61, %v1258_v29 }
 0x21f   : > { %1491 = vrot.lane.b32.xlu0 %v4951_v39, %s2869_s26  ;;  %v4975_v39 = vld [vmem:[#allocation19_spill] sm:$0xff]  ;;  %1510 = vrot.lane.b32.xlu1 %v1441_v45, %s2870_s16  ;;  %v2194_v45 = vsel %vm1669_vm12, %v2178_v18, %v4135_v22  ;;  %v2068_v22 = vsel %vm1533_vm4, %v4956_v12, %v4984_v16  ;;  %vm2279_vm4 = vcmask 261120  }
 0x220   : > { %v2102_v25 = vsel %vm1567_vm6, %v2086_v33, %v4975_v39  ;;  %v2210_v6 = vsel %vm1686_vm13, %v2194_v45, %v4154_v54  ;;  %v2084_v48 = vsel %vm1550_vm5, %v2068_v22, %v4987_v23  ;;  %v4988_v54 = vld [vmem:[#allocation67_spill] sm:$0xff]  ;;  %vm2351_vm5 = vcmask 441344  }
 0x221   : > { %v1448_v46 = vpop.permute.xlu0 %1447  ;;  %v2118_v13 = vsel %vm1584_vm7, %v2102_v25, %v4978_v21  ;;  %v1264_v58 = vpop.permute.xlu1 %1263  ;;  %v2144_v7 = vsel %vm1618_vm9, %v2128_v62, %v4988_v54  ;;  %v2100_v59 = vsel %vm1567_vm6, %v2084_v48, %v4990_v17  ;;  %v2247_v43 = vshll.u32 %v2210_v6, 16  ;;  %v4992_v25 = vld [vmem:[#allocation11_spill] sm:$0xff] }
 0x222   : > { %v4515_v15 = vsel %vm1703_vm15, %v1692_v0, %v1448_v46  ;;  %v2134_v57 = vsel %vm1601_vm8, %v2118_v13, %v4981_v49  ;;  %v4983_v0 = vld [vmem:[#allocation72_spill] sm:$0xff]  ;;  %v1600_v29 = vsel %vm1584_vm7, %v1583_v14, %v1264_v58  ;;  %vm2433_vm6 = vcmask 39936  }
 0x223   : > { %1495 = vrot.lane.b32.xlu0 %v4953_v2, %s2869_s26  ;;  %v2150_v61 = vsel %vm1618_vm9, %v2134_v57, %v4983_v0  ;;  %1514 = vrot.lane.b32.xlu1 %v1499_v27, %s2870_s16  ;;  %v2160_v27 = vsel %vm1635_vm10, %v2144_v7, %v4991_v19  ;;  %v4996_v13 = vld [vmem:[#allocation68_spill] sm:$0xff]  ;;  %v2249_v49 = vrot.slane %v2247_v43, 1  ;;  %v2245_v0 = vshrl.u32 %v2210_v6, 16 }
 0x224   : > { %v2166_v2 = vsel %vm1635_vm10, %v2150_v61, %v4986_v26  ;;  %v2176_v9 = vsel %vm1652_vm11, %v2160_v27, %v4993_v47  ;;  %v5000_v58 = vld [vmem:[#allocation76_spill] sm:$0xff] }
 0x225   : > { %v4541_v20 = vpop.permute.xlu0 %1460  ;;  %v2182_v33 = vsel %vm1652_vm11, %v2166_v2, %v4127_v40  ;;  %v1277_v39 = vpop.permute.xlu1 %1276  ;;  %v2116_v40 = vsel %vm1584_vm7, %v2100_v59, %v4992_v25  ;;  %v2192_v21 = vsel %vm1669_vm12, %v2176_v9, %v4995_v31 }
 0x226   : > { %v2198_v24 = vsel %vm1669_vm12, %v2182_v33, %v4145_v34  ;;  %v1613_v46 = vsel %vm1601_vm8, %v4447_v3, %v1277_v39  ;;  %v2132_v34 = vsel %vm1601_vm8, %v2116_v40, %v4994_v38 }
 0x227   : > { %1508 = vrot.lane.b32.xlu0 %v1440_v4, %s2870_s16  ;;  %v2214_v11 = vsel %vm1686_vm13, %v2198_v24, %v4164_v41  ;;  %1527 = vrot.lane.b32.xlu1 %v4950_v44, %s2871_s17  ;;  %v2148_v32 = vsel %vm1618_vm9, %v2132_v34, %v4996_v13  ;;  %v4997_v41 = vld [vmem:[#allocation77_spill] sm:$0xff]  ;;  %v2250_v44 = vor.u32 %v2249_v49, %v2245_v0 }
 0x228   : > { %v2208_v18 = vsel %vm1686_vm13, %v2192_v21, %v4997_v41  ;;  %v2164_v51 = vsel %vm1635_vm10, %v2148_v32, %v4998_v28  ;;  %v2259_v57 = vshll.u32 %v2214_v11, 16  ;;  %v2257_v2 = vshrl.u32 %v2214_v11, 16 }
 0x229   : > { %v1262_v4 = vpop.permute.xlu0 %1261  ;;  %v4583_v45 = vpop.permute.xlu1 %1466  ;;  %v2180_v14 = vsel %vm1652_vm11, %v2164_v51, %v4999_v37  ;;  %v2241_v50 = vshll.u32 %v2208_v18, 16 }
 0x22a   : > { %v1598_v3 = vsel %vm1584_vm7, %v1581_v60, %v1262_v4  ;;  %v2196_v8 = vsel %vm1669_vm12, %v2180_v14, %v5000_v58  ;;  %v1724_v14 = vsel %vm1720_vm0, %v4426_v55, %v4486_v36  ;;  %v1722_v58 = vsel %vm1720_vm0, %v4441_v1, %v4541_v20 }
 0x22b   : > { %1512 = vrot.lane.b32.xlu0 %v1442_v56, %s2870_s16  ;;  %1531 = vrot.lane.b32.xlu1 %v4968_v63, %s2871_s17  ;;  %v2212_v16 = vsel %vm1686_vm13, %v2196_v8, %v4139_v30  ;;  %v2261_v56 = vrot.slane %v2259_v57, 1  ;;  %v2243_v62 = vrot.slane %v2241_v50, 1  ;;  %v2239_v63 = vshrl.u32 %v2208_v18, 16 }
 0x22c   : > { %v2253_v26 = vshll.u32 %v2212_v16, 16  ;;  %v2251_v7 = vshrl.u32 %v2212_v16, 16  ;;  %vm2492_vm7 = vcmask 1040384  }
 0x22d   : > { %v1275_v61 = vpop.permute.xlu0 %1274  ;;  %v1486_v52 = vpop.permute.xlu1 %1485  ;;  %v2262_v23 = vor.u32 %v2261_v56, %v2257_v2  ;;  %v1728_v2 = vsel %vm1720_vm0, %v4466_v5, %v4583_v45 }
 0x22e   : > { %v1611_v22 = vsel %vm1601_vm8, %v4479_v10, %v1275_v61  ;;  %v2244_v10 = vor.u32 %v2243_v62, %v2239_v63  ;;  %v2255_v54 = vrot.slane %v2253_v26, 1  ;;  %v1741_v8 = vsel %vm1737_vm1, %v1724_v14, %v1486_v52 }
 0x22f   : > { %1525 = vrot.lane.b32.xlu0 %v4952_v53, %s2871_s17  ;;  %2273 = vrot.lane.b32.xlu1 %v2250_v44, %s2872_s23 }
 0x230   : > { %v2256_v42 = vor.u32 %v2255_v54, %v2251_v7 }
 0x231   : > { %v4601_v6 = vpop.permute.xlu0 %1464  ;;  %v1281_v48 = vpop.permute.xlu1 %1280 }
 0x232   : > { %v1617_v30 = vsel %vm1601_vm8, %v1600_v29, %v1281_v48  ;;  %v1726_v63 = vsel %vm1720_vm0, %v4515_v15, %v4601_v6 }
 0x233   : > { %1529 = vrot.lane.b32.xlu0 %v4956_v12, %s2871_s17  ;;  %2277 = vrot.lane.b32.xlu1 %v2262_v23, %s2872_s23 }
 0x235   : > { %v1484_v53 = vpop.permute.xlu0 %1483  ;;  %v1294_v33 = vpop.permute.xlu1 %1293 }
 0x236   : > { %v1630_v35 = vsel %vm1618_vm9, %v1613_v46, %v1294_v33  ;;  %v1739_v50 = vsel %vm1737_vm1, %v1722_v58, %v1484_v53 }
 0x237   : > { %2271 = vrot.lane.b32.xlu0 %v2244_v10, %s2872_s23 }
 0x239   : > { %v1279_v17 = vpop.permute.xlu0 %1278  ;;  %v1490_v19 = vpop.permute.xlu1 %1489 }
 0x23a   : > { %v1615_v59 = vsel %vm1601_vm8, %v1598_v3, %v1279_v17  ;;  %v1745_v23 = vsel %vm1737_vm1, %v1728_v2, %v1490_v19  ;;  %vm2494_vm8 = vcmask 33792  }
 0x23b   : > { %2275 = vrot.lane.b32.xlu0 %v2256_v42, %s2872_s23  ;;  %s444_s23 = scalar_lea.vmem %s4772_s8, %s2692_s11 }
 0x23d   : > { %v1292_v12 = vpop.permute.xlu0 %1291  ;;  %v1503_v27 = vpop.permute.xlu1 %1502 }
 0x23e   : > { %v1628_v29 = vsel %vm1618_vm9, %v1611_v22, %v1292_v12  ;;  %v1758_v61 = vsel %vm1754_vm2, %v1741_v8, %v1503_v27 }
 0x241   : > { %v1488_v24 = vpop.permute.xlu0 %1487  ;;  %v1298_v43 = vpop.permute.xlu1 %1297 }
 0x242   : > { %v1634_v39 = vsel %vm1618_vm9, %v1617_v30, %v1298_v43  ;;  %v1743_v48 = vsel %vm1737_vm1, %v1726_v63, %v1488_v24 }
 0x245   : > { %v1501_v25 = vpop.permute.xlu0 %1500  ;;  %v1317_v40 = vpop.permute.xlu1 %1316 }
 0x246   : > { %v1647_v47 = vsel %vm1635_vm10, %v1630_v35, %v1317_v40  ;;  %v1756_v16 = vsel %vm1754_vm2, %v1739_v50, %v1501_v25 }
 0x249   : > { %v1296_v9 = vpop.permute.xlu0 %1295  ;;  %v1507_v46 = vpop.permute.xlu1 %1506 }
 0x24a   : > { %v1632_v11 = vsel %vm1618_vm9, %v1615_v59, %v1296_v9  ;;  %v1762_v10 = vsel %vm1754_vm2, %v1745_v23, %v1507_v46 }
 0x24d   : > { %v1315_v38 = vpop.permute.xlu0 %1314  ;;  %v1520_v31 = vpop.permute.xlu1 %1519 }
 0x24e   : > { %v1645_v34 = vsel %vm1635_vm10, %v1628_v29, %v1315_v38  ;;  %v1775_v22 = vsel %vm1771_vm3, %v1758_v61, %v1520_v31 }
 0x251   : > { %v1505_v21 = vpop.permute.xlu0 %1504  ;;  %v1321_v60 = vpop.permute.xlu1 %1320 }
 0x252   : > { %v4617_v4 = vsel %vm1635_vm10, %v1634_v39, %v1321_v60  ;;  %v1760_v54 = vsel %vm1754_vm2, %v1743_v48, %v1505_v21 }
 0x255   : > { %v1518_v13 = vpop.permute.xlu0 %1517  ;;  %v1334_v32 = vpop.permute.xlu1 %1333 }
 0x256   : > { %v4620_v41 = vsel %vm1652_vm11, %v1647_v47, %v1334_v32  ;;  %v1773_v44 = vsel %vm1771_vm3, %v1756_v16, %v1518_v13 }
 0x259   : > { %v1319_v18 = vpop.permute.xlu0 %1318  ;;  %v1524_v28 = vpop.permute.xlu1 %1523 }
 0x25a   : > { %v4623_v3 = vsel %vm1635_vm10, %v1632_v11, %v1319_v18  ;;  %v1779_v53 = vsel %vm1771_vm3, %v1762_v10, %v1524_v28 }
 0x25d   : > { %v1332_v51 = vpop.permute.xlu0 %1331  ;;  %v2266_v57 = vpop.permute.xlu1 %2265 }
 0x25e   : > { %v4626_v49 = vsel %vm1652_vm11, %v1645_v34, %v1332_v51  ;;  %v2283_v36 = vsel %vm2279_vm4, %v1775_v22, %v2266_v57 }
 0x261   : > { %v1522_v37 = vpop.permute.xlu0 %1521  ;;  %v1338_v0 = vpop.permute.xlu1 %1337 }
 0x262   : > { %v1777_v7 = vsel %vm1771_vm3, %v1760_v54, %v1522_v37  ;;  %v1668_v8 = vsel %vm1652_vm11, %v4617_v4, %v1338_v0 }
 0x265   : > { %v2264_v55 = vpop.permute.xlu0 %2263  ;;  %v1358_v20 = vpop.permute.xlu1 %1357 }
 0x266   : > { %v2281_v1 = vsel %vm2279_vm4, %v1773_v44, %v2264_v55  ;;  %v1681_v32 = vsel %vm1669_vm12, %v4620_v41, %v1358_v20 }
 0x267   : > { %v2701_v56 = vcombine.low %v2281_v1, %v2283_v36 }
 0x269   : > { %2731 = vmatprep.mubr.msk.bf16.mxu0 %vm2351_vm5, %v2701_v56  ;;  %v1336_v52 = vpop.permute.xlu0 %1335  ;;  %v2270_v62 = vpop.permute.xlu1 %2269 }
 0x26a   : > { %v2287_v5 = vsel %vm2279_vm4, %v1779_v53, %v2270_v62  ;;  %v1666_v50 = vsel %vm1652_vm11, %v4623_v3, %v1336_v52 }
 0x26d   : > { %v1356_v26 = vpop.permute.xlu0 %1355  ;;  %v1362_v30 = vpop.permute.xlu1 %1361 }
 0x26e   : > { %v1679_v18 = vsel %vm1669_vm12, %v4626_v49, %v1356_v26  ;;  %v1685_v61 = vsel %vm1669_vm12, %v1668_v8, %v1362_v30 }
 0x271   : > { %v2268_v33 = vpop.permute.xlu0 %2267  ;;  %v1430_v35 = vpop.permute.xlu1 %1429 }
 0x272   : > { %v2285_v45 = vsel %vm2279_vm4, %v1777_v7, %v2268_v33  ;;  %v1698_v28 = vsel %vm1686_vm13, %v1681_v32, %v1430_v35 }
 0x273   : > { %v2702_v15 = vcombine.low %v2285_v45, %v2287_v5 }
 0x275   : > { %2732 = vmatmul.mubr.msk.bf16.vlgmr.msra.gmra.mrb[0].mxu0 %vm2351_vm5, %v2702_v15  ;;  %v1360_v6 = vpop.permute.xlu0 %1359  ;;  %v1434_v42 = vpop.permute.xlu1 %1433 }
 0x276   : > { %v1683_v16 = vsel %vm1669_vm12, %v1666_v50, %v1360_v6  ;;  %v1702_v55 = vsel %vm1686_vm13, %v1685_v61, %v1434_v42  ;;  %v2700_v6 = vld [vmem:[%s4768_s4] ss:$0 sm:$0xff] }
 0x279   : > { %v1428_v17 = vpop.permute.xlu0 %1427  ;;  %v1454_v59 = vpop.permute.xlu1 %1453 }
 0x27a   : > { %v1696_v51 = vsel %vm1686_vm13, %v1679_v18, %v1428_v17  ;;  %v1715_v57 = vsel %vm1703_vm15, %v1698_v28, %v1454_v59 }
 0x27d   : > { %v1432_v19 = vpop.permute.xlu0 %1431  ;;  %v1458_v12 = vpop.permute.xlu1 %1457 }
 0x27e   : > { %v1700_v36 = vsel %vm1686_vm13, %v1683_v16, %v1432_v19  ;;  %v1719_v0 = vsel %vm1703_vm15, %v1702_v55, %v1458_v12 }
 0x281   : > { %v1452_v29 = vpop.permute.xlu0 %1451  ;;  %v1471_v27 = vpop.permute.xlu1 %1470 }
 0x282   : > { %v1713_v37 = vsel %vm1703_vm15, %v1696_v51, %v1452_v29  ;;  %v1732_v41 = vsel %vm1720_vm0, %v1715_v57, %v1471_v27 }
 0x285   : > { %v1456_v24 = vpop.permute.xlu0 %1455  ;;  %v1475_v43 = vpop.permute.xlu1 %1474 }
 0x286   : > { %v1717_v1 = vsel %vm1703_vm15, %v1700_v36, %v1456_v24  ;;  %v1736_v62 = vsel %vm1720_vm0, %v1719_v0, %v1475_v43 }
 0x289   : > { %v1469_v39 = vpop.permute.xlu0 %1468  ;;  %v1494_v25 = vpop.permute.xlu1 %1493 }
 0x28a   : > { %v1730_v49 = vsel %vm1720_vm0, %v1713_v37, %v1469_v39  ;;  %v1749_v22 = vsel %vm1737_vm1, %v1732_v41, %v1494_v25 }
 0x28d   : > { %v1473_v40 = vpop.permute.xlu0 %1472  ;;  %v1498_v47 = vpop.permute.xlu1 %1497 }
 0x28e   : > { %v1734_v26 = vsel %vm1720_vm0, %v1717_v1, %v1473_v40  ;;  %v1753_v23 = vsel %vm1737_vm1, %v1736_v62, %v1498_v47 }
 0x291   : > { %v1492_v9 = vpop.permute.xlu0 %1491  ;;  %v1511_v11 = vpop.permute.xlu1 %1510 }
 0x292   : > { %v1747_v44 = vsel %vm1737_vm1, %v1730_v49, %v1492_v9  ;;  %v1766_v4 = vsel %vm1754_vm2, %v1749_v22, %v1511_v11 }
 0x295   : > { %v1496_v46 = vpop.permute.xlu0 %1495  ;;  %v1515_v38 = vpop.permute.xlu1 %1514 }
 0x296   : > { %v1751_v48 = vsel %vm1737_vm1, %v1734_v26, %v1496_v46  ;;  %v1770_v54 = vsel %vm1754_vm2, %v1753_v23, %v1515_v38 }
 0x299   : > { %v1509_v34 = vpop.permute.xlu0 %1508  ;;  %v1528_v31 = vpop.permute.xlu1 %1527 }
 0x29a   : > { %v1764_v3 = vsel %vm1754_vm2, %v1747_v44, %v1509_v34  ;;  %v1783_v20 = vsel %vm1771_vm3, %v1766_v4, %v1528_v31 }
 0x29d   : > { %v1513_v21 = vpop.permute.xlu0 %1512  ;;  %v1532_v60 = vpop.permute.xlu1 %1531 }
 0x29e   : > { %v1768_v53 = vsel %vm1754_vm2, %v1751_v48, %v1513_v21  ;;  %v1787_v7 = vsel %vm1771_vm3, %v1770_v54, %v1532_v60 }
 0x2a1   : > { %v1526_v13 = vpop.permute.xlu0 %1525  ;;  %v2274_v14 = vpop.permute.xlu1 %2273 }
 0x2a2   : > { %v1781_v56 = vsel %vm1771_vm3, %v1764_v3, %v1526_v13  ;;  %v2291_v2 = vsel %vm2279_vm4, %v1783_v20, %v2274_v14 }
 0x2a5   : > { %v1530_v58 = vpop.permute.xlu0 %1529  ;;  %v2278_v30 = vpop.permute.xlu1 %2277 }
 0x2a6   : > { %v1785_v33 = vsel %vm1771_vm3, %v1768_v53, %v1530_v58  ;;  %v2295_v45 = vsel %vm2279_vm4, %v1787_v7, %v2278_v30 }
 0x2a9   : > { %v2272_v52 = vpop.permute.xlu0 %2271 }
 0x2aa   : > { %v2289_v63 = vsel %vm2279_vm4, %v1781_v56, %v2272_v52 }
 0x2ab   : > { %v2703_v10 = vcombine.low %v2289_v63, %v2291_v2 }
 0x2ad   : > { %2735 = vmatprep.mubr.msk.bf16.mxu1 %vm2351_vm5, %v2703_v10  ;;  %v2276_v5 = vpop.permute.xlu0 %2275 }
 0x2ae   : > { %v2293_v35 = vsel %vm2279_vm4, %v1785_v33, %v2276_v5 }
 0x2af   : > { %v2704_v15 = vcombine.low %v2293_v35, %v2295_v45 }
 0x2b1   : > { %2736 = vmatmul.mubr.msk.bf16.vlgmr.msra.gmra.mrb[0].mxu1 %vm2351_vm5, %v2704_v15 }
 0x348   : > { %v2733_v42 = vpop.f32.mrb[0].mxu0 }
 0x349   : > { %v2411_v17 = vadd.f32 %v2733_v42, %v2700_v6  ;;  %v2402_v59 = vpop.f32.mrb[1].mxu0 }
 0x34a   : > { %v2403_v19 = vadd.f32 %v2700_v6, %v2402_v59  ;;  %v2734_v12 = vpop.f32.mrb[2].mxu0 }
 0x34b   : > { %2436 = vst.msk [vmem:[%s4710_s18 + $0x10] sm:$0xff] %vm2433_vm6, %v2411_v17  ;;  %v2414_v29 = vadd.f32 %v2734_v12, %v2700_v6  ;;  %v2405_v27 = vpop.f32.mrb[3].mxu0  ;;  %v2465_v39 = vmul.f32 %v2411_v17, %v2411_v17  ;;  %v2445_v11 = vsel %vm2433_vm6, %v2411_v17, 0.0 }
 0x34c   : > { %2434 = vst.msk [vmem:[%s4710_s18] sm:$0xff] %vm2433_vm6, %v2403_v19  ;;  %v2463_v24 = vmul.f32 %v2403_v19, %v2403_v19  ;;  %v2406_v43 = vadd.f32 %v2700_v6, %v2405_v27  ;;  %v2442_v25 = vsel %vm2433_vm6, %v2403_v19, 0.0 }
 0x34d   : > { %2437 = vst.msk [vmem:[%s4710_s18 + $0x18] sm:$0xff] %vm2433_vm6, %v2414_v29  ;;  %v2466_v38 = vmul.f32 %v2414_v29, %v2414_v29  ;;  %v2474_v60 = vsel %vm2433_vm6, %v2465_v39, 0.0  ;;  %v2447_v13 = vsel %vm2433_vm6, %v2414_v29, 0.0 }
 0x34e   : > { %2435 = vst.msk [vmem:[%s4710_s18 + $0x8] sm:$0xff] %vm2433_vm6, %v2406_v43  ;;  %v2443_v40 = vsel %vm2433_vm6, %v2406_v43, 0.0  ;;  %v2464_v47 = vmul.f32 %v2406_v43, %v2406_v43  ;;  %v2471_v46 = vsel %vm2433_vm6, %v2463_v24, 0.0 }
 0x34f   : > { %v2444_v9 = vadd.f32 %v2443_v40, %v2442_v25  ;;  %v2476_v28 = vsel %vm2433_vm6, %v2466_v38, 0.0 }
 0x350   : > { %v2472_v34 = vsel %vm2433_vm6, %v2464_v47, 0.0 }
 0x351   : > { %v2446_v31 = vadd.f32 %v2445_v11, %v2444_v9  ;;  %v2473_v21 = vadd.f32 %v2472_v34, %v2471_v46 }
 0x353   : > { %v2475_v32 = vadd.f32 %v2474_v60, %v2473_v21  ;;  %v2448_v18 = vadd.f32 %v2447_v13, %v2446_v31 }
 0x355   : > { %v2477_v51 = vadd.f32 %v2476_v28, %v2475_v32 }
 0x384   : > { %v2737_v57 = vpop.f32.mrb[0].mxu1 }
 0x385   : > { %v2427_v37 = vadd.f32 %v2737_v57, %v2700_v6  ;;  %v2418_v14 = vpop.f32.mrb[1].mxu1 }
 0x386   : > { %v2419_v58 = vadd.f32 %v2700_v6, %v2418_v14  ;;  %v2738_v8 = vpop.f32.mrb[2].mxu1 }
 0x387   : > { %2440 = vst.msk [vmem:[%s4710_s18 + $0x30] sm:$0xff] %vm2433_vm6, %v2427_v37  ;;  %v2430_v50 = vadd.f32 %v2738_v8, %v2700_v6  ;;  %v2421_v41 = vpop.f32.mrb[3].mxu1  ;;  %v2469_v44 = vmul.f32 %v2427_v37, %v2427_v37  ;;  %v2453_v1 = vsel %vm2433_vm6, %v2427_v37, 0.0 }
 0x388   : > { %2438 = vst.msk [vmem:[%s4710_s18 + $0x20] sm:$0xff] %vm2433_vm6, %v2419_v58  ;;  %v2449_v49 = vsel %vm2433_vm6, %v2419_v58, 0.0  ;;  %v2467_v61 = vmul.f32 %v2419_v58, %v2419_v58  ;;  %v2422_v16 = vadd.f32 %v2700_v6, %v2421_v41 }
 0x389   : > { %v2450_v22 = vadd.f32 %v2449_v49, %v2448_v18  ;;  %2441 = vst.msk [vmem:[%s4710_s18 + $0x38] sm:$0xff] %vm2433_vm6, %v2430_v50  ;;  %v2470_v20 = vmul.f32 %v2430_v50, %v2430_v50  ;;  %v2482_v26 = vsel %vm2433_vm6, %v2469_v44, 0.0  ;;  %v2455_v2 = vsel %vm2433_vm6, %v2430_v50, 0.0 }
 0x38a   : > { %v2478_v55 = vsel %vm2433_vm6, %v2467_v61, 0.0  ;;  %2439 = vst.msk [vmem:[%s4710_s18 + $0x28] sm:$0xff] %vm2433_vm6, %v2422_v16  ;;  %v2451_v36 = vsel %vm2433_vm6, %v2422_v16, 0.0  ;;  %v2468_v4 = vmul.f32 %v2422_v16, %v2422_v16 }
 0x38b   : > { %v2479_v3 = vadd.f32 %v2478_v55, %v2477_v51  ;;  %v2452_v0 = vadd.f32 %v2451_v36, %v2450_v22  ;;  %v2484_v48 = vsel %vm2433_vm6, %v2470_v20, 0.0 }
 0x38c   : > { %v2480_v56 = vsel %vm2433_vm6, %v2468_v4, 0.0 }
 0x38d   : > { %v2454_v52 = vadd.f32 %v2453_v1, %v2452_v0  ;;  %v2481_v62 = vadd.f32 %v2480_v56, %v2479_v3 }
 0x38f   : > { %v2456_v63 = vadd.f32 %v2455_v2, %v2454_v52  ;;  %v2483_v23 = vadd.f32 %v2482_v26, %v2481_v62 }
 0x391   : > { %v2457_v30 = vrot.slane %v2456_v63, 4  ;;  %v2485_v10 = vadd.f32 %v2484_v48, %v2483_v23 }
 0x393   : > { %v2458_v54 = vadd.f32 %v2457_v30, %v2456_v63  ;;  %v2486_v53 = vrot.slane %v2485_v10, 4 }
 0x395   : > { %v2459_v7 = vrot.slane %v2458_v54, 2  ;;  %v2487_v33 = vadd.f32 %v2486_v53, %v2485_v10 }
 0x397   : > { %v2460_v5 = vadd.f32 %v2459_v7, %v2458_v54  ;;  %v2488_v45 = vrot.slane %v2487_v33, 2 }
 0x399   : > { %v2461_v35 = vrot.slane %v2460_v5, 1  ;;  %v2489_v15 = vadd.f32 %v2488_v45, %v2487_v33 }
 0x39b   : > { %v2490_v6 = vrot.slane %v2489_v15, 1  ;;  %v2462_v42 = vadd.f32 %v2461_v35, %v2460_v5 }
 0x39d   : > { %v2491_v17 = vadd.f32 %v2490_v6, %v2489_v15 }
 0x39f   : > { %v2493_v59 = vsel %vm2492_vm7, %v2462_v42, %v2491_v17 }
 0x3a0   : > { %2495 = vst.msk [vmem:[%s444_s23] sm:$0x3] %vm2494_vm8, %v2493_v59 }
 0x3a1 PF: > { %s19_s9 = sadd.s32 1, %s2854_s9   ;;  %s5001_s24 = sld [smem:[#allocation2_spill]] }
 0x3a2   : > { %p16_p2 = scmp.ge.s32.totalorder %s19_s9, 18   ;;  %s5002_s25 = sld [smem:[#allocation3_spill]] }
 0x3a3   : > { %s5003_s27 = smov %s2846_s29  ;;  %s5004_s28 = smov %s2850_s30 }
 0x3a4   :  { %18 = sbr.rel (!%p16_p2) target bundleno = 3 (0x3), region = 96 }
 0x3a7   : > { %s5005_s29 = smov %s5001_s24 }
 0x3a8   : > { %s5006_s30 = smov %s5002_s25 }

// kernel: convblock3d_forward.7
= control target key start
LH: loop header
LB: loop body
LE: loop exit
PB: predicated region body
PF: predicated region fallthrough
CT: control target
= control target key end

     0   :  { %s2979_s27 = smov 0   ;;  %s2981_s28 = smov 0   ;;  %s4847_s0 = inlined_call_operand.vmem [shape: f32[2,10,10,10,5], index: 0, kind: input, shape index: {}, may-alias: {0,1,2}]   ;;  %s4848_s1 = inlined_call_operand.vmem [shape: f32[2,10,10,10,5], index: 1, kind: input, shape index: {}, may-alias: {0,1,2}]   ;;  %s4849_s2 = inlined_call_operand.vmem [shape: f32[2,10,10,10,5], index: 2, kind: input, shape index: {}, may-alias: {0,1,2}]   ;;  %s4850_s3 = inlined_call_operand.vmem [shape: bf16[135,9], index: 3, kind: input, shape index: {}]   ;;  %s4851_s4 = inlined_call_operand.vmem [shape: f32[1,9], index: 4, kind: input, shape index: {}]   ;;  %s4852_s5 = inlined_call_operand.vmem [shape: f32[1,5], index: 5, kind: input, shape index: {}]   ;;  %s4853_s6 = inlined_call_operand.vmem [shape: f32[1,5], index: 6, kind: input, shape index: {}]   ;;  %s4854_s7 = inlined_call_operand.vmem [shape: f32[2,8,8,8,9], index: 7, kind: output, shape index: {0}]   ;;  %s4855_s8 = inlined_call_operand.vmem [shape: f32[2,8,2,9], index: 8, kind: output, shape index: {1}]  }
   0x1   :  { %s2983_s29 = smov 0   ;;  %s2985_s30 = smov 0  }
   0x2   :  { %s2987_s9 = smov 0  }
   0x3 LB: > { %s28_s10 = sadd.s32 1, %s2905_s29  ;;  %s31_s11 = sadd.s32 1, %s2909_s30  ;;  %s2913_s9 = sphi %s2987_s9, %s19_s9   ;;  %s2909_s30 = sphi %s2985_s30, %s5088_s30   ;;  %s2905_s29 = sphi %s2983_s29, %s5087_s29   ;;  %s2901_s28 = sphi %s2981_s28, %s5086_s28   ;;  %s2897_s27 = sphi %s2979_s27, %s5085_s27  }
   0x4   : > { %p29_p0 = scmp.ge.s32.totalorder %s28_s10, 8  ;;  %p2743_p1 = scmp.ge.s32.totalorder %s2913_s9, 1 }
   0x5   : > { %p327_p2 = scmp.lt.s32.totalorder %s2913_s9, 17 }
   0x6   : > { %s5090_s10 = smov (%p29_p0, %s28_s10), 0  ;;  %s5092_s11 = smov (!%p29_p0, %s31_s11), %s2909_s30 }
   0x7   : > { %4905 = sst [smem:[#allocation2_spill]] %s5090_s10  ;;  %p328_p3 = pnand %p2743_p1, %p327_p2 }
   0x8   : > { %p33_p4 = scmp.ge.s32.totalorder %s5092_s11, 2 }
   0x9   : > { %331 = sbr.rel (%p328_p3) target bundleno = 924 (0x39c), region = 48 }
   0xa   : > { %s5094_s11 = smov (%p33_p4, %s5092_s11), 0 }
   0xb   : > { %4906 = sst [smem:[#allocation3_spill]] %s5094_s11 }
  0x10   : > { %v446_v0 = vlaneseq  ;;  %v2915_v5 = vmov 0.0   ;;  %p397_p5 = scmp.lt.s32.totalorder %s2901_s28, 1  ;;  %p399_p6 = scmp.lt.s32.totalorder %s2897_s27, 9  ;;  %v3048_v25 = vld [vmem:[%s4852_s5] ss:$0 sm:$0xff] }
  0x11   : > { %s3020_s12 = sadd.s32 1, %s2897_s27  ;;  %s3023_s13 = sadd.s32 2, %s2897_s27  ;;  %v3060_v32 = vld [vmem:[%s4853_s6] ss:$0 sm:$0xff] }
  0x12   : > { %v447_v1 = vshrl.u32 %v446_v0, 7  ;;  %v450_v2 = vand.u32 127, %v446_v0  ;;  %s5096_s28 = smov (!%p397_p5, %s2901_s28), 1  ;;  %p409_p7 = scmp.lt.s32.totalorder %s3020_s12, 9 }
  0x13   : > { %s400_s14 = scalar_select %p399_p6, %s2897_s27, 9 }
  0x14   : > { %vm451_vm0 = vcmp.gt.s32.totalorder %v447_v1, 0  ;;  %vm457_vm1 = vcmp.gt.s32.totalorder %v450_v2, 0  ;;  %vm460_vm2 = vcmp.lt.s32.totalorder %v450_v2, 9  ;;  %v502_v3 = vsub.s32 3, %v447_v1  ;;  %s2802_s15 = smul.u32 200, %s5096_s28  ;;  %p420_p8 = scmp.lt.s32.totalorder %s3023_s13, 9 }
  0x15   : > { %vm458_vm3 = vmand %vm451_vm0, %vm457_vm1  ;;  %v491_v4 = vsub.s32 2, %v447_v1  ;;  %v469_v9 = vsub.s32 0, %v447_v1  ;;  %v480_v11 = vsub.s32 1, %v447_v1  ;;  %v513_v13 = vsub.s32 4, %v447_v1  ;;  %s2801_s16 = smul.u32 20, %s400_s14  ;;  %p731_p9 = scmp.gt.s32.totalorder %s2897_s27, 0 }
  0x16   : > { %vm461_vm4 = vmand %vm458_vm3, %vm460_vm2  ;;  %v524_v15 = vsub.s32 5, %v447_v1  ;;  %v448_v16 = vadd.s32 8, %v447_v1  ;;  %v535_v18 = vsub.s32 6, %v447_v1  ;;  %v546_v20 = vsub.s32 7, %v447_v1  ;;  %s410_s17 = scalar_select %p409_p7, %s3020_s12, 9 }
  0x17   : > { %v2752_v6 = vsel %vm461_vm4, 1.0, %v2915_v5  ;;  %s421_s18 = scalar_select %p420_p8, %s3023_s13, 9 }
  0x18   : > { %v503_v7 = vrot.slane %v2752_v6, %v502_v3  ;;  %v492_v8 = vrot.slane %v2752_v6, %v491_v4  ;;  %v470_v10 = vrot.slane %v2752_v6, %v469_v9  ;;  %v481_v12 = vrot.slane %v2752_v6, %v480_v11  ;;  %s403_s19 = sadd.s32 %s2802_s15, %s2801_s16  ;;  %s2803_s20 = smul.u32 20, %s410_s17 }
  0x19   : > { %v514_v14 = vrot.slane %v2752_v6, %v513_v13  ;;  %v525_v17 = vrot.slane %v2752_v6, %v524_v15  ;;  %vm454_vm5 = vcmp.lt.s32.totalorder %v448_v16, 9  ;;  %v536_v19 = vrot.slane %v2752_v6, %v535_v18  ;;  %s2744_s21 = sshll.u32 %s403_s19, 3  ;;  %s2804_s22 = smul.u32 20, %s421_s18 }
  0x1a   : > { %505 = vbcast.lane.b32.xlu1 %v503_v7, 256  ;;  %494 = vbcast.lane.b32.xlu0 %v492_v8, 256  ;;  %vm459_vm6 = vmand %vm454_vm5, %vm457_vm1  ;;  %v547_v21 = vrot.slane %v2752_v6, %v546_v20  ;;  %s3043_s25 = scalar_lea.vmem %s4847_s0, %s2744_s21  ;;  %s413_s26 = sadd.s32 %s2803_s20, %s2802_s15 }
  0x1b   : > { %vm462_vm7 = vmand %vm459_vm6, %vm460_vm2  ;;  %s424_s14 = sadd.s32 %s2804_s22, %s2802_s15  ;;  %v585_v26 = vld [vmem:[%s3043_s25 + $0x30] sm:$0xff]  ;;  %v583_v27 = vld [vmem:[%s3043_s25 + $0x20] sm:$0xff]  ;;  %s2745_s16 = sshll.u32 %s413_s26, 3 }
  0x1c   : > { %v2753_v22 = vsel %vm462_vm7, 1.0, %v2915_v5  ;;  %s2746_s17 = sshll.u32 %s424_s14, 3  ;;  %v586_v28 = vld [vmem:[%s3043_s25 + $0x38] sm:$0x3]  ;;  %v611_v29 = vmul.f32 %v3048_v25, %v585_v26  ;;  %v609_v30 = vmul.f32 %v3048_v25, %v583_v27  ;;  %v584_v31 = vld [vmem:[%s3043_s25 + $0x28] sm:$0x3]  ;;  %s3065_s15 = scalar_lea.vmem %s4848_s1, %s2745_s16 }
  0x1d   : > { %v558_v23 = vrot.slane %v2753_v22, %v469_v9  ;;  %v569_v24 = vrot.slane %v2753_v22, %v480_v11  ;;  %s3070_s22 = scalar_lea.vmem %s4849_s2, %s2746_s17  ;;  %v612_v33 = vmul.f32 %v3048_v25, %v586_v28  ;;  %p3075_p10 = pnand %p731_p9, %p399_p6  ;;  %v610_v34 = vmul.f32 %v3048_v25, %v584_v31  ;;  %v773_v36 = vld [vmem:[%s3065_s15 + $0x30] sm:$0xff]  ;;  %v774_v41 = vld [vmem:[%s3065_s15 + $0x38] sm:$0x3]  ;;  %v771_v46 = vld [vmem:[%s3065_s15 + $0x20] sm:$0xff] }
  0x1e   : > { %509 = vbcast.lane.b32.xlu1 %v503_v7, 264  ;;  %498 = vbcast.lane.b32.xlu0 %v492_v8, 264  ;;  %v637_v35 = vadd.f32 %v3060_v32, %v611_v29  ;;  %v950_v37 = vld [vmem:[%s3070_s22 + $0x30] sm:$0xff]  ;;  %v635_v38 = vadd.f32 %v3060_v32, %v609_v30  ;;  %v948_v39 = vld [vmem:[%s3070_s22 + $0x20] sm:$0xff]  ;;  %p1085_p11 = scmp.gt.s32.totalorder %s3023_s13, 0  ;;  %v793_v44 = vmul.f32 %v3048_v25, %v773_v36  ;;  %s2916_s14 = smov 15  }
  0x1f   : > { %v638_v40 = vadd.f32 %v3060_v32, %v612_v33  ;;  %v951_v42 = vld [vmem:[%s3070_s22 + $0x38] sm:$0x3]  ;;  %v949_v43 = vld [vmem:[%s3070_s22 + $0x28] sm:$0x3]  ;;  %s2756_s24 = scalar_select %p3075_p10, 0.0, 1.0  ;;  %v970_v45 = vmul.f32 %v3048_v25, %v950_v37  ;;  %v968_v47 = vmul.f32 %v3048_v25, %v948_v39  ;;  %v636_v48 = vadd.f32 %v3060_v32, %v610_v34 }
  0x20   : > { %v580_v49 = vld [vmem:[%s3043_s25 + $0x8] sm:$0x3]  ;;  %vm657_vm8 = vcmp.ge.f32.partialorder %v637_v35, 0.0  ;;  %v677_v50 = vmul.f32 0.01, %v637_v35  ;;  %vm655_vm9 = vcmp.ge.f32.partialorder %v635_v38, 0.0  ;;  %v794_v53 = vmul.f32 %v3048_v25, %v774_v41  ;;  %p3105_p12 = pnand %p1085_p11, %p420_p8 }
  0x21   : > { %v675_v51 = vmul.f32 0.01, %v635_v38  ;;  %v678_v52 = vmul.f32 0.01, %v638_v40  ;;  %v971_v54 = vmul.f32 %v3048_v25, %v951_v42  ;;  %v969_v55 = vmul.f32 %v3048_v25, %v949_v43  ;;  %v772_v61 = vld [vmem:[%s3065_s15 + $0x28] sm:$0x3] }
  0x22   : > { %476 = vbcast.lane.b32.xlu1 %v470_v10, 264  ;;  %472 = vbcast.lane.b32.xlu0 %v470_v10, 256  ;;  %vm658_vm10 = vcmp.ge.f32.partialorder %v638_v40, 0.0  ;;  %v606_v56 = vmul.f32 %v3048_v25, %v580_v49  ;;  %v3110_v57 = vstv %s2756_s24  ;;  %v990_v58 = vadd.f32 %v3060_v32, %v970_v45  ;;  %v944_v62 = vld [vmem:[%s3070_s22] sm:$0xff]  ;;  %v945_v2 = vld [vmem:[%s3070_s22 + $0x8] sm:$0x3] }
  0x23   : > { %4909 = vst [vmem:[#allocation4_spill] sm:$0xff] %v3110_v57  ;;  %v3114_v59 = vmul.f32 %v3048_v25, %v771_v46  ;;  %v988_v60 = vadd.f32 %v3060_v32, %v968_v47  ;;  %v3120_v63 = vsel %vm657_vm8, %v637_v35, %v677_v50  ;;  %v3123_v0 = vadd.f32 %v3060_v32, %v793_v44  ;;  %v579_v3 = vld [vmem:[%s3043_s25] sm:$0xff]  ;;  %v582_v8 = vld [vmem:[%s3043_s25 + $0x18] sm:$0x3]  ;;  %v946_v10 = vld [vmem:[%s3070_s22 + $0x10] sm:$0xff]  ;;  %s2917_s16 = smov 30  }
  0x24   : > { %v3126_v1 = vsel %vm655_vm9, %v635_v38, %v675_v51  ;;  %vm656_vm11 = vcmp.ge.f32.partialorder %v636_v48, 0.0  ;;  %v3130_v4 = vsel %vm658_vm10, %v638_v40, %v678_v52  ;;  %v3133_v5 = vadd.f32 %v3060_v32, %v794_v53  ;;  %v947_v9 = vld [vmem:[%s3070_s22 + $0x18] sm:$0x3]  ;;  %s2758_s13 = scalar_select %p3105_p12, 0.0, 1.0  ;;  %v581_v15 = vld [vmem:[%s3043_s25 + $0x10] sm:$0xff] }
  0x25   : > { %v991_v6 = vadd.f32 %v3060_v32, %v971_v54  ;;  %v989_v7 = vadd.f32 %v3060_v32, %v969_v55  ;;  %v676_v11 = vmul.f32 0.01, %v636_v48  ;;  %v632_v13 = vadd.f32 %v3060_v32, %v606_v56  ;;  %v588_v18 = vld [vmem:[%s3043_s25 + $0x48] sm:$0x3]  ;;  %v587_v51 = vld [vmem:[%s3043_s25 + $0x40] sm:$0xff]  ;;  %s2918_s17 = smov 45  }
  0x26   : > { %487 = vbcast.lane.b32.xlu1 %v481_v12, 264  ;;  %483 = vbcast.lane.b32.xlu0 %v481_v12, 256  ;;  %v3143_v12 = vmul.f32 %v3048_v25, %v772_v61  ;;  %vm1010_vm12 = vcmp.ge.f32.partialorder %v990_v58, 0.0  ;;  %v1030_v16 = vmul.f32 0.01, %v990_v58  ;;  %vm1008_vm13 = vcmp.ge.f32.partialorder %v988_v60, 0.0 }
  0x27   : > { %v605_v20 = vmul.f32 %v3048_v25, %v579_v3  ;;  %v966_v22 = vmul.f32 %v3048_v25, %v946_v10  ;;  %vm1011_vm14 = vcmp.ge.f32.partialorder %v991_v6, 0.0  ;;  %vm1009_vm15 = vcmp.ge.f32.partialorder %v989_v7, 0.0  ;;  %v953_v40 = vld [vmem:[%s3070_s22 + $0x48] sm:$0x3]  ;;  %p908_p13 = scmp.gt.s32.totalorder %s3020_s12, 0  ;;  %s2919_s18 = smov 10  }
  0x28   : > { %v608_v29 = vmul.f32 %v3048_v25, %v582_v8  ;;  %v607_v30 = vmul.f32 %v3048_v25, %v581_v15  ;;  %v614_v31 = vmul.f32 %v3048_v25, %v588_v18  ;;  %v3161_v33 = vstv %s2758_s13  ;;  %s2920_s10 = smov 5   ;;  %s2921_s11 = smov 20  }
  0x29   : > { %v3164_v34 = vsel %vm656_vm11, %v636_v48, %v676_v11  ;;  %v672_v35 = vmul.f32 0.01, %v632_v13  ;;  %vm652_vm0 = vcmp.ge.f32.partialorder %v632_v13, 0.0  ;;  %v631_v37 = vadd.f32 %v3060_v32, %v605_v20  ;;  %p3412_p0 = pnand %p908_p13, %p409_p7  ;;  %s2922_s20 = smov 25  }
  0x2a   : > { %520 = vbcast.lane.b32.xlu1 %v514_v14, 264  ;;  %516 = vbcast.lane.b32.xlu0 %v514_v14, 256  ;;  %v964_v14 = vmul.f32 %v3048_v25, %v944_v62  ;;  %v986_v39 = vadd.f32 %v3060_v32, %v966_v22  ;;  %v3172_v41 = vsel %vm1010_vm12, %v990_v58, %v1030_v16  ;;  %v955_v58 = vld [vmem:[%s3070_s22 + $0x58] sm:$0x3]  ;;  %v952_v62 = vld [vmem:[%s3070_s22 + $0x40] sm:$0xff]  ;;  %s2923_s21 = smov 35  }
  0x2b   : > { %v634_v48 = vadd.f32 %v3060_v32, %v608_v29  ;;  %v633_v49 = vadd.f32 %v3060_v32, %v607_v30  ;;  %v640_v50 = vadd.f32 %v3060_v32, %v614_v31  ;;  %v3190_v52 = vsel %vm652_vm0, %v632_v13, %v672_v35  ;;  %s2757_s12 = scalar_select %p3412_p0, 0.0, 1.0 }
  0x2c   : > { %v984_v28 = vadd.f32 %v3060_v32, %v964_v14  ;;  %v973_v54 = vmul.f32 %v3048_v25, %v953_v40  ;;  %vm651_vm3 = vcmp.ge.f32.partialorder %v631_v37, 0.0  ;;  %v1026_v56 = vmul.f32 0.01, %v986_v39  ;;  %s2924_s23 = smov 40   ;;  %s2925_s24 = smov 50  }
  0x2d   : > { %vm1006_vm5 = vcmp.ge.f32.partialorder %v986_v39, 0.0  ;;  %v613_v61 = vmul.f32 %v3048_v25, %v587_v51  ;;  %v674_v8 = vmul.f32 0.01, %v634_v48  ;;  %v680_v10 = vmul.f32 0.01, %v640_v50  ;;  %s2929_s26 = smov 65  }
  0x2e   : > { %531 = vbcast.lane.b32.xlu1 %v525_v17, 264  ;;  %527 = vbcast.lane.b32.xlu0 %v525_v17, 256  ;;  %v965_v17 = vmul.f32 %v3048_v25, %v945_v2  ;;  %v1024_v47 = vmul.f32 0.01, %v984_v28  ;;  %vm1004_vm1 = vcmp.ge.f32.partialorder %v984_v28, 0.0  ;;  %v954_v2 = vld [vmem:[%s3070_s22 + $0x50] sm:$0xff]  ;;  %v3202_v11 = vadd.f32 %v3060_v32, %v973_v54 }
  0x2f   : > { %vm654_vm6 = vcmp.ge.f32.partialorder %v634_v48, 0.0  ;;  %vm653_vm7 = vcmp.ge.f32.partialorder %v633_v49, 0.0  ;;  %vm660_vm8 = vcmp.ge.f32.partialorder %v640_v50, 0.0  ;;  %v1046_v15 = vsel %vm1006_vm5, %v986_v39, %v1026_v56  ;;  %v592_v51 = vld [vmem:[%s3043_s25 + $0x68] sm:$0x3]  ;;  %s2930_s19 = smov 70  }
  0x30   : > { %v985_v36 = vadd.f32 %v3060_v32, %v965_v17  ;;  %v972_v16 = vmul.f32 %v3048_v25, %v952_v62  ;;  %v590_v17 = vld [vmem:[%s3043_s25 + $0x58] sm:$0x3]  ;;  %v975_v20 = vmul.f32 %v3048_v25, %v955_v58  ;;  %v3226_v30 = vsel %vm660_vm8, %v640_v50, %v680_v10  ;;  %p430_p1 = scmp.lt.s32.totalorder %s2897_s27, 7 }
  0x31   : > { %vm1013_vm9 = vcmp.ge.f32.partialorder %v3202_v11, 0.0  ;;  %v1033_v35 = vmul.f32 0.01, %v3202_v11  ;;  %v618_v10 = vmul.f32 %v3048_v25, %v592_v51 }
  0x32   : > { %542 = vbcast.lane.b32.xlu1 %v536_v19, 264  ;;  %538 = vbcast.lane.b32.xlu0 %v536_v19, 256  ;;  %v1028_v19 = vmul.f32 0.01, %v988_v60  ;;  %v1025_v53 = vmul.f32 0.01, %v985_v36  ;;  %v992_v40 = vadd.f32 %v3060_v32, %v972_v16 }
  0x33   : > { %vm1005_vm2 = vcmp.ge.f32.partialorder %v985_v36, 0.0  ;;  %s5098_s27 = smov (!%p430_p1, %s2897_s27), 7 }
  0x34   : > { %v3175_v42 = vsel %vm1008_vm13, %v988_v60, %v1028_v19  ;;  %v671_v60 = vmul.f32 0.01, %v631_v37  ;;  %v1045_v13 = vsel %vm1005_vm2, %v985_v36, %v1025_v53  ;;  %v639_v19 = vadd.f32 %v3060_v32, %v613_v61 }
  0x35   : > { %v616_v36 = vmul.f32 %v3048_v25, %v590_v17  ;;  %vm1012_vm13 = vcmp.ge.f32.partialorder %v992_v40, 0.0 }
  0x36   : > { %553 = vbcast.lane.b32.xlu1 %v547_v21, 264  ;;  %549 = vbcast.lane.b32.xlu0 %v547_v21, 256  ;;  %v967_v21 = vmul.f32 %v3048_v25, %v947_v9  ;;  %v673_v9 = vmul.f32 0.01, %v633_v49  ;;  %v3214_v22 = vsel %vm651_vm3, %v631_v37, %v671_v60  ;;  %vm659_vm10 = vcmp.ge.f32.partialorder %v639_v19, 0.0 }
  0x37   : > { %v3253_v62 = vadd.f32 %v3060_v32, %v616_v36 }
  0x38   : > { %v987_v38 = vadd.f32 %v3060_v32, %v967_v21  ;;  %v974_v21 = vmul.f32 %v3048_v25, %v954_v2  ;;  %v3223_v29 = vsel %vm653_vm7, %v633_v49, %v673_v9  ;;  %v995_v49 = vadd.f32 %v3060_v32, %v975_v20 }
  0x39   : > { %v1032_v9 = vmul.f32 0.01, %v992_v40 }
  0x3a   : > { %560 = vbcast.lane.b32.xlu0 %v558_v23, 256  ;;  %564 = vbcast.lane.b32.xlu1 %v558_v23, 264  ;;  %v1031_v23 = vmul.f32 0.01, %v991_v6  ;;  %v1027_v55 = vmul.f32 0.01, %v987_v38  ;;  %v994_v50 = vadd.f32 %v3060_v32, %v974_v21 }
  0x3b   : > { %vm1007_vm4 = vcmp.ge.f32.partialorder %v987_v38, 0.0  ;;  %vm1015_vm11 = vcmp.ge.f32.partialorder %v995_v49, 0.0  ;;  %v591_v21 = vld [vmem:[%s3043_s25 + $0x60] sm:$0xff] }
  0x3c   : > { %v3178_v43 = vsel %vm1011_vm14, %v991_v6, %v1031_v23  ;;  %v1047_v14 = vsel %vm1007_vm4, %v987_v38, %v1027_v55  ;;  %v679_v55 = vmul.f32 0.01, %v639_v19  ;;  %v1034_v16 = vmul.f32 0.01, %v994_v50 }
  0x3d   : > { %vm1014_vm12 = vcmp.ge.f32.partialorder %v994_v50, 0.0  ;;  %vm662_vm14 = vcmp.ge.f32.partialorder %v3253_v62, 0.0  ;;  %vm834_vm4 = vcmp.ge.f32.partialorder %v3133_v5, 0.0 }
  0x3e   : > { %571 = vbcast.lane.b32.xlu0 %v569_v24, 256  ;;  %575 = vbcast.lane.b32.xlu1 %v569_v24, 264  ;;  %v1029_v24 = vmul.f32 0.01, %v989_v7 }
  0x40   : > { %v1049_v44 = vsel %vm1009_vm15, %v989_v7, %v1029_v24  ;;  %v1044_v7 = vsel %vm1004_vm1, %v984_v28, %v1024_v47  ;;  %v3218_v24 = vsel %vm654_vm6, %v634_v48, %v674_v8  ;;  %v589_v47 = vld [vmem:[%s3043_s25 + $0x50] sm:$0xff]  ;;  %vm833_vm6 = vcmp.ge.f32.partialorder %v3123_v0, 0.0 }
  0x41   : > { %v615_v2 = vmul.f32 %v3048_v25, %v589_v47 }
  0x8c   : > { %v3153_v26 = vpop.permute.xlu1 %505  ;;  %v3155_v27 = vpop.permute.xlu0 %494 }
  0x90   : > { %v3181_v45 = vpop.permute.xlu1 %509  ;;  %v3183_v46 = vpop.permute.xlu0 %498 }
  0x91   : > { %v1069_v37 = vmul.f32 %v1049_v44, %v3183_v46  ;;  %v1068_v44 = vmul.f32 %v3175_v42, %v3155_v27  ;;  %v1071_v56 = vmul.f32 %v3178_v43, %v3181_v45  ;;  %v594_v42 = vld [vmem:[%s3043_s25 + $0x78] sm:$0x3]  ;;  %v593_v43 = vld [vmem:[%s3043_s25 + $0x70] sm:$0xff] }
  0x93   : > { %v1095_v17 = vmul.f32 %v3161_v33, %v1068_v44  ;;  %v1098_v20 = vmul.f32 %v3161_v33, %v1071_v56 }
  0x94   : > { %v3197_v3 = vpop.permute.xlu1 %476  ;;  %v3199_v6 = vpop.permute.xlu0 %472 }
  0x95   : > { %v1064_v18 = vmul.f32 %v1044_v7, %v3199_v6  ;;  %v1065_v31 = vmul.f32 %v1045_v13, %v3197_v3  ;;  %v1096_v7 = vmul.f32 %v3161_v33, %v1069_v37  ;;  %v1070_v13 = vmul.f32 %v3172_v41, %v3153_v26 }
  0x96   : > { %v641_v41 = vadd.f32 %v3060_v32, %v615_v2  ;;  %v1053_v37 = vsel %vm1013_vm9, %v3202_v11, %v1033_v35  ;;  %v644_v11 = vadd.f32 %v3060_v32, %v618_v10 }
  0x97   : > { %v1091_v48 = vmul.f32 %v3161_v33, %v1064_v18  ;;  %v1092_v58 = vmul.f32 %v3161_v33, %v1065_v31  ;;  %v620_v18 = vmul.f32 %v3048_v25, %v594_v42  ;;  %v619_v31 = vmul.f32 %v3048_v25, %v593_v43 }
  0x98   : > { %v3216_v23 = vpop.permute.xlu1 %487  ;;  %v3220_v28 = vpop.permute.xlu0 %483  ;;  %v3276_v36 = vpack.c.bf16 %v1096_v7, %v1095_v17  ;;  %vm661_vm15 = vcmp.ge.f32.partialorder %v641_v41, 0.0  ;;  %v712_v42 = vmul.f32 %v3190_v52, %v3197_v3  ;;  %v711_v7 = vmul.f32 %v3214_v22, %v3199_v6 }
  0x99   : > { %v1067_v38 = vmul.f32 %v1047_v14, %v3216_v23  ;;  %v1066_v39 = vmul.f32 %v1046_v15, %v3220_v28  ;;  %v3264_v14 = vpack.c.bf16 %v1092_v58, %v1091_v48  ;;  %v1035_v15 = vmul.f32 0.01, %v995_v49 }
  0x9a   : > { %v682_v48 = vmul.f32 0.01, %v3253_v62  ;;  %v646_v35 = vadd.f32 %v3060_v32, %v620_v18  ;;  %v713_v56 = vmul.f32 %v3223_v29, %v3220_v28  ;;  %vm664_vm0 = vcmp.ge.f32.partialorder %v644_v11, 0.0 }
  0x9b   : > { %v1094_v53 = vmul.f32 %v3161_v33, %v1067_v38  ;;  %v1093_v54 = vmul.f32 %v3161_v33, %v1066_v39  ;;  %1891 = vrot.lane.b32.xlu0 %v3264_v14, %s2916_s14  ;;  %v3282_v38 = vsel %vm659_vm10, %v639_v19, %v679_v55  ;;  %v1097_v39 = vmul.f32 %v3161_v33, %v1070_v13 }
  0x9c   : > { %v3248_v60 = vpop.permute.xlu1 %520  ;;  %v3250_v61 = vpop.permute.xlu0 %516  ;;  %v1055_v51 = vsel %vm1015_vm11, %v995_v49, %v1035_v15  ;;  %v617_v19 = vmul.f32 %v3048_v25, %v591_v21  ;;  %v681_v49 = vmul.f32 0.01, %v641_v41  ;;  %vm666_vm1 = vcmp.ge.f32.partialorder %v646_v35, 0.0 }
  0x9d   : > { %v3258_v8 = vpack.c.bf16 %v1094_v53, %v1093_v54  ;;  %v1054_v53 = vsel %vm1014_vm12, %v994_v50, %v1034_v16  ;;  %v1052_v54 = vsel %vm1012_vm13, %v992_v40, %v1032_v9  ;;  %v3298_v55 = vpack.c.bf16 %v1098_v20, %v1097_v39 }
  0x9e   : > { %v645_v50 = vadd.f32 %v3060_v32, %v619_v31  ;;  %v714_v40 = vmul.f32 %v3218_v24, %v3216_v23  ;;  %v1073_v9 = vmul.f32 %v1053_v37, %v3248_v60  ;;  %v1072_v10 = vmul.f32 %v1052_v54, %v3250_v61 }
  0x9f   : > { %1893 = vrot.lane.b32.xlu1 %v3258_v8, %s2916_s14  ;;  %1963 = vrot.lane.b32.xlu0 %v3258_v8, %s2917_s16  ;;  %v684_v24 = vmul.f32 0.01, %v644_v11  ;;  %v643_v29 = vadd.f32 %v3060_v32, %v617_v19  ;;  %v718_v43 = vmul.f32 %v3130_v4, %v3181_v45  ;;  %v716_v52 = vmul.f32 %v3164_v34, %v3183_v46 }
  0xa0   : > { %v3286_v47 = vpop.permute.xlu1 %531  ;;  %v3290_v44 = vpop.permute.xlu0 %527  ;;  %v686_v15 = vmul.f32 0.01, %v646_v35  ;;  %v685_v16 = vmul.f32 0.01, %v645_v50  ;;  %v740_v17 = vmul.f32 %v3110_v57, %v714_v40  ;;  %v739_v18 = vmul.f32 %v3110_v57, %v713_v56 }
  0xa1   : > { %v1075_v58 = vmul.f32 %v1055_v51, %v3286_v47  ;;  %v1074_v2 = vmul.f32 %v1054_v53, %v3290_v44  ;;  %v738_v21 = vmul.f32 %v3110_v57, %v712_v42  ;;  %v737_v34 = vmul.f32 %v3110_v57, %v711_v7 }
  0xa2   : > { %v1100_v31 = vmul.f32 %v3161_v33, %v1073_v9  ;;  %v1099_v37 = vmul.f32 %v3161_v33, %v1072_v10  ;;  %v717_v39 = vmul.f32 %v3120_v63, %v3153_v26  ;;  %v702_v51 = vsel %vm662_vm14, %v3253_v62, %v682_v48 }
  0xa3   : > { %1965 = vrot.lane.b32.xlu1 %v3276_v36, %s2917_s16  ;;  %2021 = vrot.lane.b32.xlu0 %v3276_v36, %s2918_s17  ;;  %v1102_v20 = vmul.f32 %v3161_v33, %v1075_v58  ;;  %v1101_v4 = vmul.f32 %v3161_v33, %v1074_v2  ;;  %v683_v53 = vmul.f32 0.01, %v643_v29  ;;  %vm665_vm2 = vcmp.ge.f32.partialorder %v645_v50, 0.0 }
  0xa4   : > { %v3324_v22 = vpop.permute.xlu1 %542  ;;  %v3326_v13 = vpop.permute.xlu0 %538  ;;  %v715_v54 = vmul.f32 %v3126_v1, %v3155_v27  ;;  %v701_v19 = vsel %vm661_vm15, %v641_v41, %v681_v49  ;;  %v704_v40 = vsel %vm664_vm0, %v644_v11, %v684_v24  ;;  %vm663_vm3 = vcmp.ge.f32.partialorder %v643_v29, 0.0 }
  0xa5   : > { %v744_v63 = vmul.f32 %v3110_v57, %v718_v43  ;;  %v3350_v56 = vpack.c.bf16 %v740_v17, %v739_v18  ;;  %v3352_v62 = vpack.c.bf16 %v1102_v20, %v1101_v4  ;;  %v706_v48 = vsel %vm666_vm1, %v646_v35, %v686_v15 }
  0xa6   : > { %v742_v58 = vmul.f32 %v3110_v57, %v716_v52  ;;  %v3356_v2 = vpack.c.bf16 %v738_v21, %v737_v34  ;;  %v3358_v1 = vpack.c.bf16 %v1100_v31, %v1099_v37  ;;  %v705_v11 = vsel %vm665_vm2, %v645_v50, %v685_v16 }
  0xa7   : > { %2023 = vrot.lane.b32.xlu1 %v3298_v55, %s2918_s17  ;;  %1895 = vrot.lane.b32.xlu0 %v3276_v36, %s2916_s14  ;;  %4910 = vst [vmem:[#allocation5_spill] sm:$0xff] %v3350_v56  ;;  %v743_v42 = vmul.f32 %v3110_v57, %v717_v39  ;;  %v722_v7 = vmul.f32 %v702_v51, %v3286_v47  ;;  %v4856_v15 = vrot.slane %v3350_v56, 1  ;;  %v853_v18 = vmul.f32 0.01, %v3123_v0  ;;  %v776_v39 = vld [vmem:[%s3065_s15 + $0x48] sm:$0x3] }
  0xa8   : > { %4911 = vst [vmem:[#allocation6_spill] sm:$0xff] %v3356_v2  ;;  %v3360_v41 = vpop.permute.xlu1 %553  ;;  %v3362_v49 = vpop.permute.xlu0 %549  ;;  %v721_v9 = vmul.f32 %v701_v19, %v3290_v44  ;;  %v703_v35 = vsel %vm663_vm3, %v643_v29, %v683_v53  ;;  %v741_v10 = vmul.f32 %v3110_v57, %v715_v54  ;;  %v812_v24 = vadd.f32 %v3060_v32, %v3143_v12 }
  0xa9   : > { %v720_v43 = vmul.f32 %v3226_v30, %v3248_v60  ;;  %v719_v50 = vmul.f32 %v3282_v38, %v3250_v61  ;;  %v3378_v52 = vpack.c.bf16 %v744_v63, %v743_v42  ;;  %v726_v29 = vmul.f32 %v706_v48, %v3360_v41 }
  0xaa   : > { %v725_v16 = vmul.f32 %v705_v11, %v3362_v49  ;;  %v3384_v17 = vpack.c.bf16 %v742_v58, %v741_v10  ;;  %v1201_v12 = vrot.slane %v3356_v2, 1  ;;  %v724_v30 = vmul.f32 %v704_v40, %v3324_v22 }
  0xab   : > { %1897 = vrot.lane.b32.xlu1 %v3298_v55, %s2916_s14  ;;  %1899 = vrot.lane.b32.xlu0 %v3358_v1, %s2916_s14  ;;  %v723_v38 = vmul.f32 %v703_v35, %v3326_v13  ;;  %v811_v20 = vadd.f32 %v3060_v32, %v3114_v59  ;;  %v748_v4 = vmul.f32 %v3110_v57, %v722_v7  ;;  %v854_v34 = vmul.f32 0.01, %v3133_v5 }
  0xac   : > { %v747_v21 = vmul.f32 %v3110_v57, %v721_v9  ;;  %v746_v31 = vmul.f32 %v3110_v57, %v720_v43  ;;  %v745_v37 = vmul.f32 %v3110_v57, %v719_v50  ;;  %v852_v59 = vmul.f32 0.01, %v812_v24 }
  0xad   : > { %v752_v51 = vmul.f32 %v3110_v57, %v726_v29  ;;  %v751_v53 = vmul.f32 %v3110_v57, %v725_v16  ;;  %v3406_v54 = vrot.slane %v3378_v52, 1  ;;  %vm832_vm5 = vcmp.ge.f32.partialorder %v812_v24, 0.0 }
  0xae   : > { %v750_v19 = vmul.f32 %v3110_v57, %v724_v30  ;;  %v749_v40 = vmul.f32 %v3110_v57, %v723_v38  ;;  %v3419_v63 = vrot.slane %v3384_v17, 1  ;;  %v851_v48 = vmul.f32 0.01, %v811_v20 }
  0xaf   : > { %1901 = vrot.lane.b32.xlu1 %v3352_v62, %s2916_s14  ;;  %1209 = vrot.lane.b32.xlu0 %v1201_v12, %s2919_s18  ;;  %v3422_v58 = vpack.c.bf16 %v748_v4, %v747_v21  ;;  %vm831_vm7 = vcmp.ge.f32.partialorder %v811_v20, 0.0  ;;  %v874_v11 = vsel %vm834_vm4, %v3133_v5, %v854_v34  ;;  %v796_v42 = vmul.f32 %v3048_v25, %v776_v39  ;;  %v775_v39 = vld [vmem:[%s3065_s15 + $0x40] sm:$0xff] }
  0xb0   : > { %v3430_v7 = vpack.c.bf16 %v746_v31, %v745_v37  ;;  %v872_v9 = vsel %vm832_vm5, %v812_v24, %v852_v59  ;;  %v3434_v35 = vpack.c.bf16 %v752_v51, %v751_v53  ;;  %v1131_v43 = vshll.u32 %v3350_v56, 16  ;;  %v778_v51 = vld [vmem:[%s3065_s15 + $0x58] sm:$0x3] }
  0xb1   : > { %v3437_v10 = vrot.slane %v3422_v58, 1  ;;  %v873_v50 = vsel %vm833_vm6, %v3123_v0, %v853_v18  ;;  %v3443_v5 = vpack.c.bf16 %v750_v19, %v749_v40  ;;  %v1124_v16 = vshll.u32 %v3356_v2, 16  ;;  %v777_v19 = vld [vmem:[%s3065_s15 + $0x50] sm:$0xff] }
  0xb2   : > { %4913 = vst [vmem:[#allocation7_spill] sm:$0xff] %v3434_v35  ;;  %v3446_v29 = vrot.slane %v3430_v7, 1  ;;  %v871_v12 = vsel %vm831_vm7, %v811_v20, %v851_v48  ;;  %v3452_v24 = vrot.slane %v3434_v35, 1  ;;  %v894_v30 = vmul.f32 %v874_v11, %v3181_v45 }
  0xb3   : > { %1211 = vrot.lane.b32.xlu1 %v4856_v15, %s2919_s18  ;;  %1213 = vrot.lane.b32.xlu0 %v3419_v63, %s2919_s18  ;;  %4914 = vst [vmem:[#allocation8_spill] sm:$0xff] %v3437_v10  ;;  %4915 = vst [vmem:[#allocation9_spill] sm:$0xff] %v3443_v5  ;;  %v892_v0 = vmul.f32 %v872_v9, %v3183_v46  ;;  %v816_v38 = vadd.f32 %v3060_v32, %v796_v42  ;;  %v3460_v18 = vrot.slane %v3443_v5, 1  ;;  %v779_v15 = vld [vmem:[%s3065_s15 + $0x60] sm:$0xff] }
  0xb4   : > { %4916 = vst [vmem:[#allocation10_spill] sm:$0xff] %v3446_v29  ;;  %4917 = vst [vmem:[#allocation11_spill] sm:$0xff] %v3452_v24  ;;  %v893_v20 = vmul.f32 %v873_v50, %v3153_v26  ;;  %v1133_v4 = vrot.slane %v1131_v43, 1  ;;  %v1145_v21 = vshll.u32 %v3378_v52, 16  ;;  %v3464_v34 = vstv %s2757_s12  ;;  %s2933_s12 = smov 80  }
  0xb5   : > { %4918 = vst [vmem:[#allocation12_spill] sm:$0xff] %v3460_v18  ;;  %v891_v45 = vmul.f32 %v871_v12, %v3155_v27  ;;  %v1126_v46 = vrot.slane %v1124_v16, 1  ;;  %v1138_v31 = vshll.u32 %v3384_v17, 16  ;;  %v1129_v37 = vshrl.u32 %v3350_v56, 16 }
  0xb6   : > { %v921_v59 = vmul.f32 %v3464_v34, %v894_v30  ;;  %v919_v26 = vmul.f32 %v3464_v34, %v892_v0  ;;  %vm836_vm8 = vcmp.ge.f32.partialorder %v816_v38, 0.0  ;;  %v1122_v27 = vshrl.u32 %v3356_v2, 16 }
  0xb7   : > { %1215 = vrot.lane.b32.xlu1 %v3406_v54, %s2919_s18  ;;  %1217 = vrot.lane.b32.xlu0 %v3446_v29, %s2919_s18  ;;  %v920_v53 = vmul.f32 %v3464_v34, %v893_v20  ;;  %v3480_v40 = vor.u32 %v1133_v4, %v1129_v37  ;;  %v1147_v48 = vrot.slane %v1145_v21, 1  ;;  %v1159_v11 = vshll.u32 %v3422_v58, 16 }
  0xb8   : > { %v918_v42 = vmul.f32 %v3464_v34, %v891_v45  ;;  %v1127_v9 = vor.u32 %v1126_v46, %v1122_v27  ;;  %v1140_v43 = vrot.slane %v1138_v31, 1  ;;  %v1152_v50 = vshll.u32 %v3430_v7, 16  ;;  %v782_v46 = vld [vmem:[%s3065_s15 + $0x78] sm:$0x3]  ;;  %v781_v31 = vld [vmem:[%s3065_s15 + $0x70] sm:$0xff] }
  0xb9   : > { %v856_v16 = vmul.f32 0.01, %v816_v38  ;;  %v795_v12 = vmul.f32 %v3048_v25, %v775_v39  ;;  %v798_v30 = vmul.f32 %v3048_v25, %v778_v51  ;;  %v1143_v0 = vshrl.u32 %v3378_v52, 16 }
  0xba   : > { %v3490_v20 = vpack.c.bf16 %v921_v59, %v920_v53  ;;  %v3492_v4 = vpack.c.bf16 %v919_v26, %v918_v42  ;;  %v797_v21 = vmul.f32 %v3048_v25, %v777_v19  ;;  %v1136_v45 = vshrl.u32 %v3384_v17, 16 }
  0xbb   : > { %1219 = vrot.lane.b32.xlu1 %v3437_v10, %s2919_s18  ;;  %1221 = vrot.lane.b32.xlu0 %v3460_v18, %s2919_s18  ;;  %v3499_v37 = vor.u32 %v1147_v48, %v1143_v0  ;;  %v1157_v39 = vshrl.u32 %v3422_v58, 16  ;;  %v1161_v51 = vrot.slane %v1159_v11, 1  ;;  %v1173_v59 = vshll.u32 %v3434_v35, 16  ;;  %v780_v0 = vld [vmem:[%s3065_s15 + $0x68] sm:$0x3] }
  0xbc   : > { %4919 = vst [vmem:[#allocation13_spill] sm:$0xff] %v3490_v20  ;;  %4920 = vst [vmem:[#allocation14_spill] sm:$0xff] %v3492_v4  ;;  %v3503_v27 = vor.u32 %v1140_v43, %v1136_v45  ;;  %v1150_v26 = vshrl.u32 %v3430_v7, 16  ;;  %v1154_v53 = vrot.slane %v1152_v50, 1  ;;  %v1166_v19 = vshll.u32 %v3443_v5, 16 }
  0xbd   : > { %v876_v42 = vsel %vm836_vm8, %v816_v38, %v856_v16  ;;  %v818_v48 = vadd.f32 %v3060_v32, %v798_v30  ;;  %v817_v11 = vadd.f32 %v3060_v32, %v797_v21  ;;  %v802_v43 = vmul.f32 %v3048_v25, %v782_v46 }
  0xbe   : > { %v801_v45 = vmul.f32 %v3048_v25, %v781_v31  ;;  %v3519_v50 = vor.u32 %v1161_v51, %v1157_v39  ;;  %v1171_v38 = vshrl.u32 %v3434_v35, 16  ;;  %v1175_v16 = vrot.slane %v1173_v59, 1 }
  0xbf   : > { %1223 = vrot.lane.b32.xlu1 %v3452_v24, %s2919_s18  ;;  %1177 = vrot.lane.b32.xlu0 %v1127_v9, %s2920_s10  ;;  %v815_v9 = vadd.f32 %v3060_v32, %v795_v12  ;;  %v1387_v12 = vshll.u32 %v3490_v20, 16  ;;  %v3523_v2 = vor.u32 %v1154_v53, %v1150_v26  ;;  %v1164_v30 = vshrl.u32 %v3443_v5, 16 }
  0xc0   : > { %v1168_v21 = vrot.slane %v1166_v19, 1  ;;  %v1380_v57 = vshll.u32 %v3492_v4, 16  ;;  %v800_v31 = vmul.f32 %v3048_v25, %v780_v0  ;;  %v799_v24 = vmul.f32 %v3048_v25, %v779_v15 }
  0xc1   : > { %vm835_vm9 = vcmp.ge.f32.partialorder %v815_v9, 0.0  ;;  %v855_v46 = vmul.f32 0.01, %v815_v9  ;;  %vm838_vm10 = vcmp.ge.f32.partialorder %v818_v48, 0.0  ;;  %v858_v39 = vmul.f32 0.01, %v818_v48 }
  0xc2   : > { %v857_v51 = vmul.f32 0.01, %v817_v11  ;;  %v822_v59 = vadd.f32 %v3060_v32, %v802_v43  ;;  %vm837_vm11 = vcmp.ge.f32.partialorder %v817_v11, 0.0  ;;  %v3534_v26 = vor.u32 %v1175_v16, %v1171_v38 }
  0xc3   : > { %1179 = vrot.lane.b32.xlu1 %v3480_v40, %s2920_s10  ;;  %1181 = vrot.lane.b32.xlu0 %v3503_v27, %s2920_s10  ;;  %v1389_v53 = vrot.slane %v1387_v12, 1  ;;  %v1819_v19 = vshrl.u32 %v3258_v8, 16  ;;  %v821_v0 = vadd.f32 %v3060_v32, %v801_v45  ;;  %v3538_v15 = vor.u32 %v1168_v21, %v1164_v30 }
  0xc4   : > { %4921 = vst [vmem:[#allocation15_spill] sm:$0xff] %v3534_v26  ;;  %v1382_v35 = vrot.slane %v1380_v57, 1  ;;  %v1812_v10 = vshrl.u32 %v3264_v14, 16  ;;  %v875_v18 = vsel %vm835_vm9, %v815_v9, %v855_v46  ;;  %v820_v43 = vadd.f32 %v3060_v32, %v800_v31 }
  0xc5   : > { %v819_v29 = vadd.f32 %v3060_v32, %v799_v24  ;;  %v1385_v38 = vshrl.u32 %v3490_v20, 16  ;;  %v878_v16 = vsel %vm838_vm10, %v818_v48, %v858_v39  ;;  %v877_v12 = vsel %vm837_vm11, %v817_v11, %v857_v51 }
  0xc6   : > { %vm842_vm12 = vcmp.ge.f32.partialorder %v822_v59, 0.0  ;;  %v1378_v57 = vshrl.u32 %v3492_v4, 16  ;;  %v862_v45 = vmul.f32 0.01, %v822_v59  ;;  %v1821_v30 = vrot.slane %v1819_v19, 7 }
  0xc7   : > { %1183 = vrot.lane.b32.xlu1 %v3499_v37, %s2920_s10  ;;  %1185 = vrot.lane.b32.xlu0 %v3523_v2, %s2920_s10  ;;  %v3551_v9 = vor.u32 %v1389_v53, %v1385_v38  ;;  %v1822_v24 = vshll.u32 %v3258_v8, 16  ;;  %v861_v21 = vmul.f32 0.01, %v821_v0  ;;  %v1814_v31 = vrot.slane %v1812_v10, 7 }
  0xc8   : > { %v3554_v46 = vor.u32 %v1382_v35, %v1378_v57  ;;  %vm840_vm13 = vcmp.ge.f32.partialorder %v820_v43, 0.0  ;;  %v860_v48 = vmul.f32 0.01, %v820_v43  ;;  %v859_v11 = vmul.f32 0.01, %v819_v29 }
  0xc9   : > { %4922 = vst [vmem:[#allocation16_spill] sm:$0xff] %v3551_v9  ;;  %vm841_vm14 = vcmp.ge.f32.partialorder %v821_v0, 0.0  ;;  %v896_v39 = vmul.f32 %v876_v42, %v3248_v60  ;;  %v898_v51 = vmul.f32 %v878_v16, %v3286_v47  ;;  %v897_v53 = vmul.f32 %v877_v12, %v3290_v44 }
  0xca   : > { %vm839_vm15 = vcmp.ge.f32.partialorder %v819_v29, 0.0  ;;  %v882_v8 = vsel %vm842_vm12, %v822_v59, %v862_v45  ;;  %v1909_v35 = vrot.slane %v1822_v24, 1  ;;  %v1826_v38 = vshrl.u32 %v3276_v36, 16 }
  0xcb   : > { %1187 = vrot.lane.b32.xlu1 %v3519_v50, %s2920_s10  ;;  %1189 = vrot.lane.b32.xlu0 %v3538_v15, %s2920_s10  ;;  %v895_v57 = vmul.f32 %v875_v18, %v3250_v61  ;;  %v881_v20 = vsel %vm841_vm14, %v821_v0, %v861_v21  ;;  %v880_v60 = vsel %vm840_vm13, %v820_v43, %v860_v48 }
  0xcc   : > { %v879_v47 = vsel %vm839_vm15, %v819_v29, %v859_v11  ;;  %v923_v44 = vmul.f32 %v3464_v34, %v896_v39  ;;  %v925_v42 = vmul.f32 %v3464_v34, %v898_v51  ;;  %v924_v59 = vmul.f32 %v3464_v34, %v897_v53 }
  0xcd   : > { %v902_v16 = vmul.f32 %v882_v8, %v3360_v41  ;;  %v901_v61 = vmul.f32 %v881_v20, %v3362_v49  ;;  %v1910_v18 = vor.u32 %v1909_v35, %v1819_v19  ;;  %v1828_v0 = vrot.slane %v1826_v38, 7  ;;  %v956_v35 = vld [vmem:[%s3070_s22 + $0x60] sm:$0xff] }
  0xce   : > { %v922_v29 = vmul.f32 %v3464_v34, %v895_v57  ;;  %v900_v43 = vmul.f32 %v880_v60, %v3324_v22  ;;  %v899_v12 = vmul.f32 %v879_v47, %v3326_v13 }
  0xcf   : > { %1191 = vrot.lane.b32.xlu1 %v3534_v26, %s2920_s10  ;;  %v1815_v26 = vshll.u32 %v3264_v14, 16  ;;  %1795 = vrot.lane.b32.xlu0 %v3554_v46, %s2920_s10  ;;  %v1824_v14 = vor.u32 %v1822_v24, %v1821_v30  ;;  %v3580_v30 = vpack.c.bf16 %v925_v42, %v924_v59  ;;  %v928_v20 = vmul.f32 %v3464_v34, %v901_v61 }
  0xd0   : > { %v1833_v24 = vshrl.u32 %v3298_v55, 16  ;;  %v3586_v21 = vpack.c.bf16 %v923_v44, %v922_v29  ;;  %v976_v42 = vmul.f32 %v3048_v25, %v956_v35  ;;  %v1850_v35 = vshll.u32 %v3352_v62, 16 }
  0xd1   : > { %v1907_v4 = vrot.slane %v1815_v26, 1  ;;  %v1401_v51 = vshll.u32 %v3580_v30, 16  ;;  %v1399_v60 = vshrl.u32 %v3580_v30, 16 }
  0xd2   : > { %v1835_v39 = vrot.slane %v1833_v24, 7  ;;  %v1394_v8 = vshll.u32 %v3586_v21, 16  ;;  %v1392_v59 = vshrl.u32 %v3586_v21, 16 }
  0xd3   : > { %1797 = vrot.lane.b32.xlu1 %v3551_v9, %s2920_s10  ;;  %v1817_v9 = vor.u32 %v1815_v26, %v1814_v31  ;;  %v1829_v26 = vshll.u32 %v3276_v36, 16  ;;  %v1908_v45 = vor.u32 %v1907_v4, %v1812_v10  ;;  %v927_v10 = vmul.f32 %v3464_v34, %v900_v43  ;;  %v957_v31 = vld [vmem:[%s3070_s22 + $0x68] sm:$0x3] }
  0xd4   : > { %v926_v4 = vmul.f32 %v3464_v34, %v899_v12  ;;  %v977_v57 = vmul.f32 %v3048_v25, %v957_v31  ;;  %v1403_v47 = vrot.slane %v1401_v51, 1  ;;  %v996_v25 = vadd.f32 %v3060_v32, %v976_v42 }
  0xd5   : > { %1867 = vrot.lane.b32.xlu0 %v1817_v9, %s2919_s18  ;;  %v929_v9 = vmul.f32 %v3464_v34, %v902_v16  ;;  %v1831_v36 = vor.u32 %v1829_v26, %v1828_v0  ;;  %v1911_v19 = vrot.slane %v1829_v26, 1  ;;  %v1396_v16 = vrot.slane %v1394_v8, 1 }
  0xd6   : > { %v3600_v53 = vpack.c.bf16 %v927_v10, %v926_v4  ;;  %v3620_v0 = vor.u32 %v1403_v47, %v1399_v60  ;;  %v1036_v10 = vmul.f32 0.01, %v996_v25  ;;  %vm1016_vm1 = vcmp.ge.f32.partialorder %v996_v25, 0.0 }
  0xd7   : > { %1869 = vrot.lane.b32.xlu1 %v1824_v14, %s2919_s18  ;;  %v3593_v48 = vpack.c.bf16 %v929_v9, %v928_v20  ;;  %v3595_v11 = vor.u32 %v1911_v19, %v1826_v38  ;;  %v3624_v43 = vor.u32 %v1396_v16, %v1392_v59  ;;  %v1847_v20 = vshrl.u32 %v3352_v62, 16 }
  0xd8   : > { %v1408_v61 = vshll.u32 %v3600_v53, 16  ;;  %v1406_v12 = vshrl.u32 %v3600_v53, 16  ;;  %v1056_v51 = vsel %vm1016_vm1, %v996_v25, %v1036_v10  ;;  %v784_v10 = vld [vmem:[%s3065_s15 + $0x88] sm:$0x3]  ;;  %vm1550_vm1 = vcmask 80896  }
  0xd9   : > { %1923 = vrot.lane.b32.xlu0 %v1908_v45, %s2921_s11  ;;  %4923 = vst [vmem:[#allocation17_spill] sm:$0xff] %v3593_v48  ;;  %v1415_v44 = vshll.u32 %v3593_v48, 16  ;;  %v1413_v26 = vshrl.u32 %v3593_v48, 16  ;;  %v1849_v31 = vrot.slane %v1847_v20, 7  ;;  %v1076_v47 = vmul.f32 %v1056_v51, %v3326_v13  ;;  %v959_v13 = vld [vmem:[%s3070_s22 + $0x78] sm:$0x3] }
  0xda   : > { %v1410_v45 = vrot.slane %v1408_v61, 1 }
  0xdb   : > { %1925 = vrot.lane.b32.xlu1 %v1910_v18, %s2921_s11  ;;  %v1417_v29 = vrot.slane %v1415_v44, 1  ;;  %v3648_v44 = vor.u32 %v1850_v35, %v1849_v31  ;;  %v1103_v16 = vmul.f32 %v3161_v33, %v1076_v47  ;;  %v3688_v31 = vld [vmem:[%s4853_s6] ss:$0 sm:$0xff] }
  0xdc   : > { %v3634_v4 = vor.u32 %v1410_v45, %v1406_v12  ;;  %v785_v12 = vld [vmem:[%s3065_s15 + $0x90] sm:$0xff]  ;;  %v786_v45 = vld [vmem:[%s3065_s15 + $0x98] sm:$0x3] }
  0xdd   : > { %1946 = vrot.lane.b32.xlu0 %v1824_v14, %s2922_s20  ;;  %v1836_v14 = vshll.u32 %v3298_v55, 16  ;;  %v3631_v9 = vor.u32 %v1417_v29, %v1413_v26  ;;  %v1917_v26 = vrot.slane %v1850_v35, 1 }
  0xde   : > { %4925 = vst [vmem:[#allocation19_spill] sm:$0xff] %v3634_v4 }
  0xdf   : > { %1948 = vrot.lane.b32.xlu1 %v1831_v36, %s2922_s20  ;;  %v3609_v38 = vor.u32 %v1836_v14, %v1835_v39  ;;  %4924 = vst [vmem:[#allocation18_spill] sm:$0xff] %v3631_v9  ;;  %v1913_v42 = vrot.slane %v1836_v14, 1  ;;  %v958_v14 = vld [vmem:[%s3070_s22 + $0x70] sm:$0xff]  ;;  %v3691_v51 = vor.u32 %v1917_v26, %v1847_v20  ;;  %v3712_v26 = vpop.permute.xlu1 %564 }
  0xe1   : > { %1981 = vrot.lane.b32.xlu0 %v1910_v18, %s2923_s21  ;;  %v997_v18 = vadd.f32 %v3060_v32, %v977_v57  ;;  %v1840_v32 = vshrl.u32 %v3358_v1, 16  ;;  %v1843_v57 = vshll.u32 %v3358_v1, 16 }
  0xe3   : > { %1983 = vrot.lane.b32.xlu1 %v3595_v11, %s2923_s21  ;;  %v1037_v19 = vmul.f32 0.01, %v997_v18  ;;  %vm1017_vm0 = vcmp.ge.f32.partialorder %v997_v18, 0.0  ;;  %v1842_v8 = vrot.slane %v1840_v32, 7  ;;  %v1915_v25 = vrot.slane %v1843_v57, 1 }
  0xe5   : > { %2004 = vrot.lane.b32.xlu0 %v1831_v36, %s2924_s23  ;;  %v1057_v39 = vsel %vm1017_vm0, %v997_v18, %v1037_v19  ;;  %v3650_v59 = vor.u32 %v1843_v57, %v1842_v8  ;;  %v3673_v18 = vld [vmem:[%s4852_s5] ss:$0 sm:$0xff]  ;;  %v3695_v57 = vor.u32 %v1915_v25, %v1840_v32  ;;  %vm1533_vm0 = vcmask 39936  }
  0xe6   : > { %v1077_v60 = vmul.f32 %v1057_v39, %v3324_v22  ;;  %v3660_v22 = vor.u32 %v1913_v42, %v1833_v24  ;;  %v979_v24 = vmul.f32 %v3673_v18, %v959_v13  ;;  %v978_v29 = vmul.f32 %v3673_v18, %v958_v14  ;;  %v783_v19 = vld [vmem:[%s3065_s15 + $0x80] sm:$0xff] }
  0xe7   : > { %2006 = vrot.lane.b32.xlu1 %v3609_v38, %s2924_s23  ;;  %v803_v47 = vmul.f32 %v3673_v18, %v783_v19  ;;  %v804_v42 = vmul.f32 %v3673_v18, %v784_v10 }
  0xe8   : > { %v999_v39 = vadd.f32 %v3688_v31, %v979_v24  ;;  %v998_v35 = vadd.f32 %v3688_v31, %v978_v29 }
  0xe9   : > { %1799 = vrot.lane.b32.xlu0 %v3624_v43, %s2920_s10  ;;  %v823_v24 = vadd.f32 %v3688_v31, %v803_v47  ;;  %v824_v29 = vadd.f32 %v3688_v31, %v804_v42 }
  0xea   : > { %vm1019_vm2 = vcmp.ge.f32.partialorder %v999_v39, 0.0  ;;  %v1039_v32 = vmul.f32 0.01, %v999_v39  ;;  %vm1018_vm3 = vcmp.ge.f32.partialorder %v998_v35, 0.0 }
  0xeb   : > { %1801 = vrot.lane.b32.xlu1 %v3620_v0, %s2920_s10  ;;  %v864_v47 = vmul.f32 0.01, %v824_v29  ;;  %vm843_vm6 = vcmp.ge.f32.partialorder %v823_v24, 0.0  ;;  %vm844_vm7 = vcmp.ge.f32.partialorder %v824_v29, 0.0 }
  0xed   : > { %1803 = vrot.lane.b32.xlu0 %v3634_v4, %s2920_s10 }
  0xef   : > { %1805 = vrot.lane.b32.xlu1 %v3631_v9, %s2920_s10 }
  0xf1   : > { %1871 = vrot.lane.b32.xlu0 %v1831_v36, %s2919_s18  ;;  %v1104_v36 = vmul.f32 %v3161_v33, %v1077_v60  ;;  %v805_v60 = vmul.f32 %v3673_v18, %v785_v12 }
  0xf3   : > { %1873 = vrot.lane.b32.xlu1 %v3609_v38, %s2919_s18  ;;  %v3668_v61 = vpack.c.bf16 %v1104_v36, %v1103_v16  ;;  %v1038_v36 = vmul.f32 0.01, %v998_v35  ;;  %v3707_v16 = vpop.permute.xlu0 %560  ;;  %v825_v13 = vadd.f32 %v3688_v31, %v805_v60 }
  0xf5   : > { %1875 = vrot.lane.b32.xlu0 %v3650_v59, %s2919_s18  ;;  %v4878_v8 = vshrl.u32 %v3668_v61, 16  ;;  %v1857_v25 = vshll.u32 %v3668_v61, 16  ;;  %v1058_v19 = vsel %vm1018_vm3, %v998_v35, %v1038_v36  ;;  %v865_v10 = vmul.f32 0.01, %v825_v13  ;;  %v3730_v35 = vpop.permute.xlu1 %575 }
  0xf6   : > { %vm845_vm4 = vcmp.ge.f32.partialorder %v825_v13, 0.0  ;;  %4927 = vst [vmem:[#allocation21_spill] sm:$0xff] %v3730_v35  ;;  %vm1584_vm3 = vcmask 162816  }
  0xf7   : > { %1877 = vrot.lane.b32.xlu1 %v3648_v44, %s2919_s18  ;;  %v1856_v20 = vrot.slane %v4878_v8, 7  ;;  %v3726_v42 = vpop.permute.xlu0 %571  ;;  %v884_v8 = vsel %vm844_vm7, %v824_v29, %v864_v47  ;;  %vm4904_vm7 = vcmask 326656  }
  0xf8   : > { %4926 = vst [vmem:[#allocation20_spill] sm:$0xff] %v3726_v42 }
  0xf9   : > { %2039 = vrot.lane.b32.xlu0 %v3595_v11, %s2925_s24  ;;  %v3720_v12 = vor.u32 %v1857_v25, %v1856_v20  ;;  %v885_v20 = vsel %vm845_vm4, %v825_v13, %v865_v10  ;;  %vm1601_vm4 = vcmask 203776  }
  0xfb   : > { %2041 = vrot.lane.b32.xlu1 %v3660_v22, %s2925_s24 }
  0xfd   : > { %1927 = vrot.lane.b32.xlu0 %v3595_v11, %s2921_s11  ;;  %v806_v11 = vmul.f32 %v3673_v18, %v786_v45  ;;  %v1059_v45 = vsel %vm1019_vm2, %v999_v39, %v1039_v32  ;;  %v1078_v39 = vmul.f32 %v1058_v19, %v3362_v49  ;;  %vm1567_vm2 = vcmask 121856  }
  0xff   : > { %1929 = vrot.lane.b32.xlu1 %v3660_v22, %s2921_s11  ;;  %v826_v14 = vadd.f32 %v3688_v31, %v806_v11  ;;  %v863_v11 = vmul.f32 0.01, %v823_v24  ;;  %v1105_v48 = vmul.f32 %v3161_v33, %v1078_v39 }
 0x101   : > { %1931 = vrot.lane.b32.xlu0 %v3695_v57, %s2921_s11  ;;  %v866_v60 = vmul.f32 0.01, %v826_v14  ;;  %vm846_vm5 = vcmp.ge.f32.partialorder %v826_v14, 0.0  ;;  %v883_v36 = vsel %vm843_vm6, %v823_v24, %v863_v11  ;;  %vm1635_vm6 = vcmask 285696  }
 0x102   : > { %v903_v13 = vmul.f32 %v883_v36, %v3707_v16 }
 0x103   : > { %1933 = vrot.lane.b32.xlu1 %v3691_v51, %s2921_s11  ;;  %v886_v32 = vsel %vm846_vm5, %v826_v14, %v866_v60  ;;  %v904_v14 = vmul.f32 %v884_v8, %v3712_v26  ;;  %v1919_v60 = vrot.slane %v1857_v25, 1  ;;  %v4929_v25 = vshrl.u32 %v3668_v61, 16 }
 0x104   : > { %v906_v49 = vmul.f32 %v886_v32, %v3730_v35  ;;  %v930_v11 = vmul.f32 %v3464_v34, %v903_v13  ;;  %vm1618_vm5 = vcmask 244736  }
 0x105   : > { %1950 = vrot.lane.b32.xlu0 %v3609_v38, %s2922_s20  ;;  %v1079_v38 = vmul.f32 %v1059_v45, %v3360_v41  ;;  %v905_v41 = vmul.f32 %v885_v20, %v3726_v42  ;;  %v931_v8 = vmul.f32 %v3464_v34, %v904_v14  ;;  %v960_v14 = vld [vmem:[%s3070_s22 + $0x80] sm:$0xff] }
 0x106   : > { %v933_v19 = vmul.f32 %v3464_v34, %v906_v49 }
 0x107   : > { %1952 = vrot.lane.b32.xlu1 %v3650_v59, %s2922_s20  ;;  %v1106_v9 = vmul.f32 %v3161_v33, %v1079_v38  ;;  %v932_v29 = vmul.f32 %v3464_v34, %v905_v41  ;;  %v3770_v38 = vor.u32 %v1919_v60, %v4929_v25  ;;  %v3773_v20 = vpack.c.bf16 %v931_v8, %v930_v11 }
 0x109   : > { %1954 = vrot.lane.b32.xlu0 %v3648_v44, %s2922_s20  ;;  %4930 = vst [vmem:[#allocation23_spill] sm:$0xff] %v3773_v20  ;;  %v1479_v13 = vshll.u32 %v3773_v20, 16 }
 0x10b   : > { %1956 = vrot.lane.b32.xlu1 %v3720_v12, %s2922_s20  ;;  %v1481_v4 = vrot.slane %v1479_v13, 1 }
 0x10d   : > { %1967 = vrot.lane.b32.xlu0 %v3298_v55, %s2917_s16  ;;  %v3744_v24 = vpop.permute.xlu0 %1891  ;;  %v3750_v55 = vpack.c.bf16 %v1106_v9, %v1105_v48  ;;  %v3764_v48 = vpack.c.bf16 %v933_v19, %v932_v29  ;;  %v961_v29 = vld [vmem:[%s3070_s22 + $0x88] sm:$0x3] }
 0x10f   : > { %1969 = vrot.lane.b32.xlu1 %v3358_v1, %s2917_s16  ;;  %4928 = vst [vmem:[#allocation22_spill] sm:$0xff] %v3764_v48  ;;  %v4883_v39 = vshrl.u32 %v3750_v55, 16  ;;  %v1791_v41 = vshll.u32 %v3764_v48, 16  ;;  %v1864_v19 = vshll.u32 %v3750_v55, 16  ;;  %v1789_v8 = vshrl.u32 %v3764_v48, 16 }
 0x111   : > { %v3740_v45 = vpop.permute.xlu1 %1893  ;;  %1971 = vrot.lane.b32.xlu0 %v3352_v62, %s2917_s16  ;;  %v3758_v47 = vpop.permute.xlu0 %1963  ;;  %v1863_v36 = vrot.slane %v4883_v39, 7  ;;  %v1793_v25 = vrot.slane %v1791_v41, 1  ;;  %v980_v39 = vmul.f32 %v3673_v18, %v960_v14 }
 0x113   : > { %1973 = vrot.lane.b32.xlu1 %v3668_v61, %s2917_s16  ;;  %v3798_v11 = vor.u32 %v1864_v19, %v1863_v36  ;;  %v1794_v36 = vor.u32 %v1793_v25, %v1789_v8  ;;  %v1000_v41 = vadd.f32 %v3688_v31, %v980_v39  ;;  %v962_v39 = vld [vmem:[%s3070_s22 + $0x90] sm:$0xff]  ;;  %v963_v8 = vld [vmem:[%s3070_s22 + $0x98] sm:$0x3]  ;;  %s2927_s22 = smov 60  }
 0x115   : > { %v3754_v10 = vpop.permute.xlu1 %1965  ;;  %1985 = vrot.lane.b32.xlu0 %v3660_v22, %s2923_s21  ;;  %v3775_v32 = vpop.permute.xlu0 %2021  ;;  %vm1020_vm8 = vcmp.ge.f32.partialorder %v1000_v41, 0.0 }
 0x117   : > { %1987 = vrot.lane.b32.xlu1 %v3695_v57, %s2923_s21 }
 0x119   : > { %v3766_v9 = vpop.permute.xlu1 %2023  ;;  %1989 = vrot.lane.b32.xlu0 %v3691_v51, %s2923_s21  ;;  %v3786_v49 = vpop.permute.xlu0 %1895 }
 0x11a   : > { %4932 = vst [vmem:[#allocation25_spill] sm:$0xff] %v3786_v49  ;;  %v981_v49 = vmul.f32 %v3673_v18, %v961_v29 }
 0x11b   : > { %1991 = vrot.lane.b32.xlu1 %v3770_v38, %s2923_s21 }
 0x11c   : > { %v1001_v14 = vadd.f32 %v3688_v31, %v981_v49 }
 0x11d   : > { %v3781_v22 = vpop.permute.xlu1 %1897  ;;  %2008 = vrot.lane.b32.xlu0 %v3650_v59, %s2924_s23 }
 0x11e   : > { %4931 = vst [vmem:[#allocation24_spill] sm:$0xff] %v3781_v22  ;;  %v3803_v22 = vpop.permute.xlu0 %1899  ;;  %vm1021_vm9 = vcmp.ge.f32.partialorder %v1001_v14, 0.0 }
 0x11f   : > { %2010 = vrot.lane.b32.xlu1 %v3648_v44, %s2924_s23  ;;  %4934 = vst [vmem:[#allocation27_spill] sm:$0xff] %v3803_v22  ;;  %v1477_v44 = vshrl.u32 %v3773_v20, 16  ;;  %v1040_v20 = vmul.f32 0.01, %v1000_v41 }
 0x121   : > { %v3796_v60 = vpop.permute.xlu1 %1901  ;;  %2012 = vrot.lane.b32.xlu0 %v3720_v12, %s2924_s23  ;;  %v3816_v48 = vor.u32 %v1481_v4, %v1477_v44  ;;  %v1060_v49 = vsel %vm1020_vm8, %v1000_v41, %v1040_v20  ;;  %v982_v44 = vmul.f32 %v3673_v18, %v962_v39  ;;  %vm1669_vm8 = vcmask 367616  }
 0x122   : > { %4933 = vst [vmem:[#allocation26_spill] sm:$0xff] %v3796_v60  ;;  %v3814_v29 = vpop.permute.xlu0 %1209  ;;  %v1041_v60 = vmul.f32 0.01, %v1001_v14 }
 0x123   : > { %2014 = vrot.lane.b32.xlu1 %v3798_v11, %s2924_s23  ;;  %4936 = vst [vmem:[#allocation29_spill] sm:$0xff] %v3814_v29  ;;  %4937 = vst [vmem:[#allocation30_spill] sm:$0xff] %v3816_v48  ;;  %v1002_v20 = vadd.f32 %v3688_v31, %v982_v44 }
 0x124   : > { %v1061_v25 = vsel %vm1021_vm9, %v1001_v14, %v1041_v60  ;;  %vm1686_vm9 = vcmask 408576  }
 0x125   : > { %v3810_v59 = vpop.permute.xlu1 %1211  ;;  %1807 = vrot.lane.b32.xlu0 %v3816_v48, %s2920_s10  ;;  %vm1022_vm10 = vcmp.ge.f32.partialorder %v1002_v20, 0.0 }
 0x126   : > { %4935 = vst [vmem:[#allocation28_spill] sm:$0xff] %v3810_v59  ;;  %v3823_v22 = vpop.permute.xlu0 %1213 }
 0x127   : > { %1809 = vrot.lane.b32.xlu1 %v1794_v36, %s2920_s10  ;;  %4939 = vst [vmem:[#allocation32_spill] sm:$0xff] %v3823_v22  ;;  %v983_v36 = vmul.f32 %v3673_v18, %v963_v8  ;;  %v1921_v8 = vrot.slane %v1864_v19, 1  ;;  %v767_v22 = vld [vmem:[%s3065_s15] sm:$0xff]  ;;  %s2931_s10 = smov 75  }
 0x129   : > { %v3821_v13 = vpop.permute.xlu1 %1215  ;;  %2025 = vrot.lane.b32.xlu0 %v3358_v1, %s2918_s17  ;;  %v1081_v1 = vmul.f32 %v1061_v25, %v3712_v26  ;;  %v1003_v60 = vadd.f32 %v3688_v31, %v983_v36  ;;  %v1042_v25 = vmul.f32 0.01, %v1002_v20 }
 0x12a   : > { %4938 = vst [vmem:[#allocation31_spill] sm:$0xff] %v3821_v13  ;;  %v3835_v48 = vpop.permute.xlu0 %1217 }
 0x12b   : > { %2027 = vrot.lane.b32.xlu1 %v3352_v62, %s2918_s17  ;;  %4941 = vst [vmem:[#allocation34_spill] sm:$0xff] %v3835_v48  ;;  %v1080_v62 = vmul.f32 %v1060_v49, %v3707_v16  ;;  %v1108_v39 = vmul.f32 %v3161_v33, %v1081_v1  ;;  %vm1023_vm11 = vcmp.ge.f32.partialorder %v1003_v60, 0.0  ;;  %v1062_v1 = vsel %vm1022_vm10, %v1002_v20, %v1042_v25 }
 0x12c   : > { %vm2420_vm10 = vcmask 1042432  }
 0x12d   : > { %v3831_v4 = vpop.permute.xlu1 %1219  ;;  %2029 = vrot.lane.b32.xlu0 %v3668_v61, %s2918_s17  ;;  %v1107_v14 = vmul.f32 %v3161_v33, %v1080_v62  ;;  %v4947_v62 = vshrl.u32 %v3750_v55, 16 }
 0x12e   : > { %4940 = vst [vmem:[#allocation33_spill] sm:$0xff] %v3831_v4  ;;  %v3847_v41 = vpop.permute.xlu0 %1221  ;;  %v770_v4 = vld [vmem:[%s3065_s15 + $0x18] sm:$0x3] }
 0x12f   : > { %2031 = vrot.lane.b32.xlu1 %v3750_v55, %s2918_s17  ;;  %4943 = vst [vmem:[#allocation36_spill] sm:$0xff] %v3847_v41  ;;  %v1922_v19 = vor.u32 %v1921_v8, %v4947_v62 }
 0x131   : > { %v3843_v59 = vpop.permute.xlu1 %1223  ;;  %1879 = vrot.lane.b32.xlu0 %v3720_v12, %s2919_s18  ;;  %v1119_v12 = vpack.c.bf16 %v1108_v39, %v1107_v14 }
 0x132   : > { %4942 = vst [vmem:[#allocation35_spill] sm:$0xff] %v3843_v59  ;;  %v1043_v59 = vmul.f32 0.01, %v1003_v60  ;;  %v3857_v44 = vpop.permute.xlu0 %1177 }
 0x133   : > { %1881 = vrot.lane.b32.xlu1 %v3798_v11, %s2919_s18  ;;  %4945 = vst [vmem:[#allocation38_spill] sm:$0xff] %v3857_v44  ;;  %v1940_v14 = vshrl.u32 %v1119_v12, 16 }
 0x134   : > { %v1063_v41 = vsel %vm1023_vm11, %v1003_v60, %v1043_v59  ;;  %vm2421_vm11 = vcmask 1043456  }
 0x135   : > { %v3855_v49 = vpop.permute.xlu1 %1179  ;;  %2043 = vrot.lane.b32.xlu0 %v3695_v57, %s2925_s24  ;;  %v1942_v8 = vrot.slane %v1940_v14, 7 }
 0x136   : > { %4944 = vst [vmem:[#allocation37_spill] sm:$0xff] %v3855_v49  ;;  %v3867_v29 = vpop.permute.xlu0 %1181  ;;  %v1083_v49 = vmul.f32 %v1063_v41, %v3730_v35  ;;  %v1943_v41 = vshll.u32 %v1119_v12, 16 }
 0x137   : > { %2045 = vrot.lane.b32.xlu1 %v3691_v51, %s2925_s24  ;;  %4948 = vst [vmem:[#allocation40_spill] sm:$0xff] %v3867_v29  ;;  %v1082_v51 = vmul.f32 %v1062_v1, %v3726_v42  ;;  %v787_v29 = vmul.f32 %v3673_v18, %v767_v22 }
 0x138   : > { %v1110_v20 = vmul.f32 %v3161_v33, %v1083_v49  ;;  %v1945_v44 = vor.u32 %v1943_v41, %v1942_v8  ;;  %v1979_v49 = vrot.slane %v1943_v41, 1 }
 0x139   : > { %v3863_v36 = vpop.permute.xlu1 %1183  ;;  %2047 = vrot.lane.b32.xlu0 %v3770_v38, %s2925_s24  ;;  %v1109_v59 = vmul.f32 %v3161_v33, %v1082_v51  ;;  %v807_v35 = vadd.f32 %v3688_v31, %v787_v29 }
 0x13a   : > { %4946 = vst [vmem:[#allocation39_spill] sm:$0xff] %v3863_v36  ;;  %v3876_v39 = vpop.permute.xlu0 %1185 }
 0x13b   : > { %2049 = vrot.lane.b32.xlu1 %v1922_v19, %s2925_s24  ;;  %4950 = vst [vmem:[#allocation42_spill] sm:$0xff] %v3876_v39  ;;  %v1120_v62 = vpack.c.bf16 %v1110_v20, %v1109_v59  ;;  %v1980_v59 = vor.u32 %v1979_v49, %v1940_v14  ;;  %v769_v39 = vld [vmem:[%s3065_s15 + $0x10] sm:$0xff]  ;;  %vm827_vm15 = vcmp.ge.f32.partialorder %v807_v35, 0.0 }
 0x13d   : > { %v3874_v57 = vpop.permute.xlu1 %1187  ;;  %1903 = vrot.lane.b32.xlu0 %v3668_v61, %s2916_s14  ;;  %v1998_v51 = vshrl.u32 %v1120_v62, 16  ;;  %v2001_v8 = vshll.u32 %v1120_v62, 16 }
 0x13e   : > { %4949 = vst [vmem:[#allocation41_spill] sm:$0xff] %v3874_v57  ;;  %v3886_v25 = vpop.permute.xlu0 %1189  ;;  %v790_v57 = vmul.f32 %v3673_v18, %v770_v4 }
 0x13f   : > { %1905 = vrot.lane.b32.xlu1 %v3750_v55, %s2916_s14  ;;  %4952 = vst [vmem:[#allocation44_spill] sm:$0xff] %v3886_v25  ;;  %v2000_v20 = vrot.slane %v1998_v51, 7  ;;  %v2037_v49 = vrot.slane %v2001_v8, 1 }
 0x140   : > { %v810_v36 = vadd.f32 %v3688_v31, %v790_v57  ;;  %v847_v57 = vmul.f32 0.01, %v807_v35 }
 0x141   : > { %v3884_v60 = vpop.permute.xlu1 %1191  ;;  %1935 = vrot.lane.b32.xlu0 %v3770_v38, %s2921_s11 }
 0x142   : > { %4951 = vst [vmem:[#allocation43_spill] sm:$0xff] %v3884_v60  ;;  %v3893_v61 = vpop.permute.xlu0 %1795  ;;  %v2003_v60 = vor.u32 %v2001_v8, %v2000_v20  ;;  %vm830_vm12 = vcmp.ge.f32.partialorder %v810_v36, 0.0 }
 0x143   : > { %1937 = vrot.lane.b32.xlu1 %v1922_v19, %s2921_s11 }
 0x145   : > { %v3891_v1 = vpop.permute.xlu1 %1797  ;;  %1958 = vrot.lane.b32.xlu0 %v3798_v11, %s2922_s20 }
 0x147   : > { %1960 = vrot.lane.b32.xlu1 %v1945_v44, %s2922_s20  ;;  %v3900_v25 = vpop.permute.xlu0 %1867 }
 0x149   : > { %v3898_v33 = vpop.permute.xlu1 %1869  ;;  %1975 = vrot.lane.b32.xlu0 %v3750_v55, %s2917_s16  ;;  %v768_v55 = vld [vmem:[%s3065_s15 + $0x8] sm:$0x3]  ;;  %s2926_s15 = smov 55  }
 0x14a   : > { %v788_v20 = vmul.f32 %v3673_v18, %v768_v55 }
 0x14b   : > { %1977 = vrot.lane.b32.xlu1 %v1119_v12, %s2917_s16  ;;  %v3907_v11 = vpop.permute.xlu0 %1923 }
 0x14d   : > { %v3905_v38 = vpop.permute.xlu1 %1925  ;;  %1993 = vrot.lane.b32.xlu0 %v1922_v19, %s2923_s21  ;;  %v789_v19 = vmul.f32 %v3673_v18, %v769_v39  ;;  %v808_v39 = vadd.f32 %v3688_v31, %v788_v20 }
 0x14f   : > { %1995 = vrot.lane.b32.xlu1 %v1980_v59, %s2923_s21  ;;  %v3913_v48 = vpop.permute.xlu0 %1946  ;;  %v809_v8 = vadd.f32 %v3688_v31, %v789_v19  ;;  %vm828_vm14 = vcmp.ge.f32.partialorder %v808_v39, 0.0 }
 0x151   : > { %v3911_v41 = vpop.permute.xlu1 %1948  ;;  %2016 = vrot.lane.b32.xlu0 %v1945_v44, %s2924_s23  ;;  %v2038_v44 = vor.u32 %v2037_v49, %v1998_v51  ;;  %v848_v51 = vmul.f32 0.01, %v808_v39  ;;  %vm829_vm13 = vcmp.ge.f32.partialorder %v809_v8, 0.0 }
 0x153   : > { %2018 = vrot.lane.b32.xlu1 %v2003_v60, %s2924_s23  ;;  %v3925_v13 = vpop.permute.xlu0 %1981  ;;  %v868_v20 = vsel %vm828_vm14, %v808_v39, %v848_v51 }
 0x155   : > { %v3921_v14 = vpop.permute.xlu1 %1983  ;;  %2033 = vrot.lane.b32.xlu0 %v1119_v12, %s2918_s17  ;;  %v850_v12 = vmul.f32 0.01, %v810_v36 }
 0x157   : > { %2035 = vrot.lane.b32.xlu1 %v1120_v62, %s2918_s17  ;;  %v3935_v4 = vpop.permute.xlu0 %2004  ;;  %v849_v62 = vmul.f32 0.01, %v809_v8 }
 0x159   : > { %v3931_v60 = vpop.permute.xlu1 %2006  ;;  %2051 = vrot.lane.b32.xlu0 %v1980_v59, %s2925_s24  ;;  %v870_v59 = vsel %vm830_vm12, %v810_v36, %v850_v12  ;;  %v869_v49 = vsel %vm829_vm13, %v809_v8, %v849_v62 }
 0x15b   : > { %2053 = vrot.lane.b32.xlu1 %v2038_v44, %s2925_s24  ;;  %v3943_v55 = vpop.permute.xlu0 %1799  ;;  %v867_v44 = vsel %vm827_vm15, %v807_v35, %v847_v57  ;;  %v4956_v35 = vrot.slane %v3350_v56, 1 }
 0x15c   : > { %4954 = vst [vmem:[#allocation46_spill] sm:$0xff] %v3943_v55  ;;  %v890_v55 = vmul.f32 %v870_v59, %v3216_v23  ;;  %v887_v36 = vmul.f32 %v867_v44, %v3199_v6 }
 0x15d   : > { %v3941_v22 = vpop.permute.xlu1 %1801  ;;  %1226 = vrot.lane.b32.xlu0 %v3350_v56, %s2916_s14 }
 0x15e   : > { %4953 = vst [vmem:[#allocation45_spill] sm:$0xff] %v3941_v22  ;;  %v889_v22 = vmul.f32 %v869_v49, %v3220_v28 }
 0x15f   : > { %1228 = vrot.lane.b32.xlu1 %v3384_v17, %s2916_s14  ;;  %v3951_v19 = vpop.permute.xlu0 %1803 }
 0x160   : > { %v916_v23 = vmul.f32 %v3464_v34, %v889_v22 }
 0x161   : > { %v3949_v29 = vpop.permute.xlu1 %1805  ;;  %1249 = vrot.lane.b32.xlu0 %v3480_v40, %s2921_s11  ;;  %v917_v40 = vmul.f32 %v3464_v34, %v890_v55 }
 0x162   : > { %4955 = vst [vmem:[#allocation47_spill] sm:$0xff] %v3949_v29  ;;  %v888_v29 = vmul.f32 %v868_v20, %v3197_v3  ;;  %v914_v3 = vmul.f32 %v3464_v34, %v887_v36 }
 0x163   : > { %1251 = vrot.lane.b32.xlu1 %v3503_v27, %s2921_s11  ;;  %v3963_v8 = vpop.permute.xlu0 %1871  ;;  %v3982_v12 = vpack.c.bf16 %v917_v40, %v916_v23 }
 0x164   : > { %v915_v39 = vmul.f32 %v3464_v34, %v888_v29 }
 0x165   : > { %v3959_v42 = vpop.permute.xlu1 %1873  ;;  %1266 = vrot.lane.b32.xlu0 %v4956_v35, %s2922_s20  ;;  %v1373_v51 = vshll.u32 %v3982_v12, 16 }
 0x166   : > { %v934_v22 = vpack.c.bf16 %v915_v39, %v914_v3 }
 0x167   : > { %1268 = vrot.lane.b32.xlu1 %v3419_v63, %s2922_s20  ;;  %v3976_v6 = vpop.permute.xlu0 %1875  ;;  %v1375_v49 = vrot.slane %v1373_v51, 1 }
 0x168   : > { %v1366_v29 = vshll.u32 %v934_v22, 16  ;;  %v1364_v36 = vshrl.u32 %v934_v22, 16 }
 0x169   : > { %v3972_v28 = vpop.permute.xlu1 %1877  ;;  %1283 = vrot.lane.b32.xlu0 %v3384_v17, %s2917_s16 }
 0x16a   : > { %v1368_v44 = vrot.slane %v1366_v29, 1 }
 0x16b   : > { %1285 = vrot.lane.b32.xlu1 %v3378_v52, %s2917_s16  ;;  %v3986_v55 = vpop.permute.xlu0 %2039 }
 0x16d   : > { %v3984_v62 = vpop.permute.xlu1 %2041  ;;  %1306 = vrot.lane.b32.xlu0 %v3503_v27, %s2923_s21  ;;  %v1371_v27 = vshrl.u32 %v3982_v12, 16 }
 0x16f   : > { %1308 = vrot.lane.b32.xlu1 %v3499_v37, %s2923_s21  ;;  %v3995_v57 = vpop.permute.xlu0 %1927  ;;  %v1376_v40 = vor.u32 %v1375_v49, %v1371_v27 }
 0x171   : > { %v3992_v34 = vpop.permute.xlu1 %1929  ;;  %1323 = vrot.lane.b32.xlu0 %v3419_v63, %s2924_s23  ;;  %v1369_v63 = vor.u32 %v1368_v44, %v1364_v36  ;;  %v4894_v44 = vrot.slane %v3982_v12, 1  ;;  %v1435_v36 = vrot.slane %v934_v22, 1 }
 0x173   : > { %1325 = vrot.lane.b32.xlu1 %v3406_v54, %s2924_s23  ;;  %v4003_v20 = vpop.permute.xlu0 %1931 }
 0x174   : > { %4958 = vst [vmem:[#allocation49_spill] sm:$0xff] %v4003_v20 }
 0x175   : > { %v4001_v59 = vpop.permute.xlu1 %1933  ;;  %1347 = vrot.lane.b32.xlu0 %v934_v22, %s2918_s17 }
 0x176   : > { %4957 = vst [vmem:[#allocation48_spill] sm:$0xff] %v4001_v59 }
 0x177   : > { %1349 = vrot.lane.b32.xlu1 %v3982_v12, %s2918_s17  ;;  %v4011_v23 = vpop.permute.xlu0 %1950 }
 0x179   : > { %v4009_v35 = vpop.permute.xlu1 %1952  ;;  %1419 = vrot.lane.b32.xlu0 %v1369_v63, %s2925_s24 }
 0x17b   : > { %1421 = vrot.lane.b32.xlu1 %v1376_v40, %s2925_s24  ;;  %v4017_v3 = vpop.permute.xlu0 %1954 }
 0x17c   : > { %4960 = vst [vmem:[#allocation51_spill] sm:$0xff] %v4017_v3 }
 0x17d   : > { %v4015_v39 = vpop.permute.xlu1 %1956  ;;  %1230 = vrot.lane.b32.xlu0 %v3378_v52, %s2916_s14 }
 0x17e   : > { %4959 = vst [vmem:[#allocation50_spill] sm:$0xff] %v4015_v39 }
 0x17f   : > { %1232 = vrot.lane.b32.xlu1 %v3430_v7, %s2916_s14  ;;  %v4025_v29 = vpop.permute.xlu0 %1967 }
 0x181   : > { %v4023_v51 = vpop.permute.xlu1 %1969  ;;  %1234 = vrot.lane.b32.xlu0 %v3422_v58, %s2916_s14 }
 0x183   : > { %1236 = vrot.lane.b32.xlu1 %v3443_v5, %s2916_s14  ;;  %v4034_v27 = vpop.permute.xlu0 %1971 }
 0x184   : > { %4962 = vst [vmem:[#allocation53_spill] sm:$0xff] %v4034_v27  ;;  %v4968_v27 = vld [vmem:[#allocation14_spill] sm:$0xff] }
 0x185   : > { %v4031_v49 = vpop.permute.xlu1 %1973  ;;  %1443 = vrot.lane.b32.xlu0 %v1435_v36, %s2926_s15  ;;  %v4897_v59 = vrot.slane %v4968_v27, 1 }
 0x186   : > { %4961 = vst [vmem:[#allocation52_spill] sm:$0xff] %v4031_v49 }
 0x187   : > { %1445 = vrot.lane.b32.xlu1 %v4894_v44, %s2926_s15  ;;  %v4042_v56 = vpop.permute.xlu0 %1985 }
 0x188   : > { %4963 = vst [vmem:[#allocation54_spill] sm:$0xff] %v4042_v56 }
 0x189   : > { %v4040_v63 = vpop.permute.xlu1 %1987  ;;  %1253 = vrot.lane.b32.xlu0 %v3499_v37, %s2921_s11 }
 0x18b   : > { %1255 = vrot.lane.b32.xlu1 %v3523_v2, %s2921_s11  ;;  %v4050_v22 = vpop.permute.xlu0 %1989 }
 0x18c   : > { %4965 = vst [vmem:[#allocation56_spill] sm:$0xff] %v4050_v22 }
 0x18d   : > { %v4048_v49 = vpop.permute.xlu1 %1991  ;;  %1257 = vrot.lane.b32.xlu0 %v3519_v50, %s2921_s11 }
 0x18e   : > { %4964 = vst [vmem:[#allocation55_spill] sm:$0xff] %v4048_v49  ;;  %v4971_v49 = vld [vmem:[#allocation10_spill] sm:$0xff] }
 0x18f   : > { %1259 = vrot.lane.b32.xlu1 %v3538_v15, %s2921_s11  ;;  %v4058_v44 = vpop.permute.xlu0 %2008 }
 0x190   : > { %4967 = vst [vmem:[#allocation58_spill] sm:$0xff] %v4058_v44  ;;  %v4895_v44 = vmov 0  }
 0x191   : > { %v4056_v36 = vpop.permute.xlu1 %2010  ;;  %1460 = vrot.lane.b32.xlu0 %v3982_v12, %s2927_s22  ;;  %2427 = vmatprep.subr.bf16.mxu0 %v4895_v44 }
 0x192   : > { %4966 = vst [vmem:[#allocation57_spill] sm:$0xff] %v4056_v36  ;;  %2783 = vmatprep.subr.bf16.mxu1 %v4895_v44  ;;  %v4974_v36 = vld [vmem:[#allocation12_spill] sm:$0xff] }
 0x193   : > { %1462 = vrot.lane.b32.xlu1 %v4968_v27, %s2927_s22  ;;  %v4066_v22 = vpop.permute.xlu0 %2012 }
 0x194   : > { %4970 = vst [vmem:[#allocation59_spill] sm:$0xff] %v4066_v22  ;;  %v2864_v22 = vld [vmem:[%s4850_s3] sm:$0xff]  }
 0x195   : > { %v4064_v37 = vpop.permute.xlu1 %2014  ;;  %1270 = vrot.lane.b32.xlu0 %v3406_v54, %s2922_s20  ;;  %2428 = vmatpush1.bf16.msra.mxu0 %v2864_v22 }
 0x196   : > { %4969 = vst [vmem:[#allocation14_spill] sm:$0xff] %v4064_v37  ;;  %v4975_v37 = vld [vmem:[#allocation8_spill] sm:$0xff]  ;;  %2792 = vmatpush1.bf16.msra.mxu1 %v2864_v22  ;;  %2429 = vmatprep.subr.bf16.mxu0 %v4895_v44 }
 0x197   : > { %1272 = vrot.lane.b32.xlu1 %v4971_v49, %s2922_s20  ;;  %v4076_v3 = vpop.permute.xlu0 %1807  ;;  %2784 = vmatprep.subr.bf16.mxu1 %v4895_v44 }
 0x198   : > { %4973 = vst [vmem:[#allocation60_spill] sm:$0xff] %v4076_v3  ;;  %v2865_v3 = vld [vmem:[%s4850_s3 + $0x8] sm:$0xff]  }
 0x199   : > { %v4072_v39 = vpop.permute.xlu1 %1809  ;;  %1274 = vrot.lane.b32.xlu0 %v4975_v37, %s2922_s20  ;;  %2430 = vmatpush1.bf16.msra.mxu0 %v2865_v3 }
 0x19a   : > { %4972 = vst [vmem:[#allocation10_spill] sm:$0xff] %v4072_v39  ;;  %2793 = vmatpush1.bf16.msra.mxu1 %v2865_v3  ;;  %2431 = vmatprep.subr.bf16.mxu0 %v4895_v44 }
 0x19b   : > { %1276 = vrot.lane.b32.xlu1 %v4974_v36, %s2922_s20  ;;  %v4087_v39 = vpop.permute.xlu0 %2025  ;;  %2785 = vmatprep.subr.bf16.mxu1 %v4895_v44 }
 0x19c   : > { %4977 = vst [vmem:[#allocation8_spill] sm:$0xff] %v4087_v39  ;;  %v2866_v39 = vld [vmem:[%s4850_s3 + $0x10] sm:$0xff]  }
 0x19d   : > { %v4085_v54 = vpop.permute.xlu1 %2027  ;;  %1483 = vrot.lane.b32.xlu0 %v1376_v40, %s2929_s26  ;;  %2432 = vmatpush1.bf16.msra.mxu0 %v2866_v39 }
 0x19e   : > { %4976 = vst [vmem:[#allocation12_spill] sm:$0xff] %v4085_v54  ;;  %2794 = vmatpush1.bf16.msra.mxu1 %v2866_v39  ;;  %2433 = vmatprep.subr.bf16.mxu0 %v4895_v44  ;;  %v4983_v54 = vld [vmem:[#allocation7_spill] sm:$0xff]  ;;  %v2056_v39 = vsel %vm1533_vm0, %v4968_v27, %v3893_v61  ;;  %v4984_v61 = vmov 0  }
 0x19f   : > { %1485 = vrot.lane.b32.xlu1 %v3554_v46, %s2929_s26  ;;  %v4099_v22 = vpop.permute.xlu0 %2029  ;;  %2786 = vmatprep.subr.bf16.mxu1 %v4895_v44 }
 0x1a0   : > { %4979 = vst [vmem:[#allocation62_spill] sm:$0xff] %v4099_v22  ;;  %v4982_v22 = vld [vmem:[#allocation13_spill] sm:$0xff] }
 0x1a1   : > { %v4097_v56 = vpop.permute.xlu1 %2031  ;;  %1287 = vrot.lane.b32.xlu0 %v3430_v7, %s2917_s16 }
 0x1a2   : > { %4978 = vst [vmem:[#allocation61_spill] sm:$0xff] %v4097_v56  ;;  %v2058_v56 = vsel %vm1533_vm0, %v4982_v22, %v3891_v1  ;;  %v2072_v1 = vsel %vm1550_vm1, %v2056_v39, %v3900_v25  ;;  %v2868_v25 = vld [vmem:[%s4850_s3 + $0x20] sm:$0xff]   ;;  %v4985_v39 = vrot.slane %v3982_v12, 1 }
 0x1a3   : > { %1289 = vrot.lane.b32.xlu1 %v3422_v58, %s2917_s16  ;;  %v4112_v3 = vpop.permute.xlu0 %1879 }
 0x1a4   : > { %4981 = vst [vmem:[#allocation64_spill] sm:$0xff] %v4112_v3  ;;  %v2074_v3 = vsel %vm1550_vm1, %v2058_v56, %v3898_v33  ;;  %v2088_v33 = vsel %vm1567_vm2, %v2072_v1, %v3744_v24 }
 0x1a5   : > { %v4110_v40 = vpop.permute.xlu1 %1881  ;;  %1291 = vrot.lane.b32.xlu0 %v3443_v5, %s2917_s16  ;;  %v2090_v56 = vsel %vm1567_vm2, %v2074_v3, %v3740_v45  ;;  %v2104_v45 = vsel %vm1584_vm3, %v2088_v33, %v3907_v11 }
 0x1a6   : > { %4980 = vst [vmem:[#allocation63_spill] sm:$0xff] %v4110_v40  ;;  %v2867_v40 = vld [vmem:[%s4850_s3 + $0x18] sm:$0xff]   ;;  %v2120_v24 = vsel %vm1601_vm4, %v2104_v45, %v3913_v48 }
 0x1a7   : > { %1293 = vrot.lane.b32.xlu1 %v4983_v54, %s2917_s16  ;;  %2434 = vmatpush1.bf16.msra.mxu0 %v2867_v40  ;;  %v4136_v20 = vpop.permute.xlu0 %2043  ;;  %v2136_v48 = vsel %vm1618_vm5, %v2120_v24, %v3758_v47  ;;  %v4986_v47 = vld [vmem:[#allocation15_spill] sm:$0xff]  ;;  %v2932_v24 = vmov 65535  }
 0x1a8   : > { %2795 = vmatpush1.bf16.msra.mxu1 %v2867_v40  ;;  %2435 = vmatprep.subr.bf16.mxu0 %v4984_v61  ;;  %v2106_v40 = vsel %vm1584_vm3, %v2090_v56, %v3905_v38  ;;  %v2869_v38 = vld [vmem:[%s4850_s3 + $0x28] sm:$0xff]  }
 0x1a9   : > { %v4133_v44 = vpop.permute.xlu1 %2045  ;;  %2787 = vmatprep.subr.bf16.mxu1 %v4984_v61  ;;  %1500 = vrot.lane.b32.xlu0 %v4985_v39, %s2930_s19  ;;  %v2122_v3 = vsel %vm1601_vm4, %v2106_v40, %v3911_v41  ;;  %v596_v40 = vld [vmem:[%s3043_s25 + $0x88] sm:$0x3] }
 0x1aa   : > { %v2138_v11 = vsel %vm1618_vm5, %v2122_v3, %v3754_v10  ;;  %v2872_v3 = vld [vmem:[%s4850_s3 + $0x40] ss:$0 sps:$4 sm:$0xff]  }
 0x1ab   : > { %1502 = vrot.lane.b32.xlu1 %v4897_v59, %s2930_s19  ;;  %2436 = vmatpush1.bf16.msra.mxu0 %v2868_v25  ;;  %v4163_v1 = vpop.permute.xlu0 %2047  ;;  %v2154_v41 = vsel %vm1635_vm6, %v2138_v11, %v3921_v14 }
 0x1ac   : > { %2796 = vmatpush1.bf16.msra.mxu1 %v2868_v25  ;;  %2437 = vmatprep.subr.bf16.mxu0 %v4984_v61  ;;  %v2170_v10 = vsel %vm4904_vm7, %v2154_v41, %v3931_v60 }
 0x1ad   : > { %v4159_v59 = vpop.permute.xlu1 %2049  ;;  %2788 = vmatprep.subr.bf16.mxu1 %v4984_v61  ;;  %1310 = vrot.lane.b32.xlu0 %v3523_v2, %s2923_s21  ;;  %v2186_v14 = vsel %vm1669_vm8, %v2170_v10, %v3766_v9  ;;  %v2871_v9 = vld [vmem:[%s4850_s3 + $0x38] sm:$0xff]  }
 0x1ae   : > { %v2202_v25 = vsel %vm1686_vm9, %v2186_v14, %v3984_v62  ;;  %v4987_v14 = vld [vmem:[#allocation11_spill] sm:$0xff] }
 0x1af   : > { %1312 = vrot.lane.b32.xlu1 %v3519_v50, %s2923_s21  ;;  %2438 = vmatpush1.bf16.msra.mxu0 %v2869_v38  ;;  %v2152_v50 = vsel %vm1635_vm6, %v2136_v48, %v3925_v13  ;;  %v4186_v56 = vpop.permute.xlu0 %1903  ;;  %v2870_v13 = vld [vmem:[%s4850_s3 + $0x30] sm:$0xff]  }
 0x1b0   : > { %2797 = vmatpush1.bf16.msra.mxu1 %v2869_v38  ;;  %2439 = vmatprep.subr.bf16.mxu0 %v4984_v61  ;;  %v2168_v2 = vsel %vm4904_vm7, %v2152_v50, %v3935_v4  ;;  %v2422_v38 = vsel %vm2420_vm10, 4294967295, %v2932_v24  ;;  %v622_v50 = vmul.f32 %v3673_v18, %v596_v40  ;;  %vm1703_vm10 = vcmask 449536  }
 0x1b1   : > { %v4180_v12 = vpop.permute.xlu1 %1905  ;;  %2789 = vmatprep.subr.bf16.mxu1 %v4984_v61  ;;  %1314 = vrot.lane.b32.xlu0 %v3538_v15, %s2923_s21  ;;  %v2184_v4 = vsel %vm1669_vm8, %v2168_v2, %v3775_v32  ;;  %v2223_v32 = vshll.u32 %v2202_v25, 16  ;;  %v2423_v41 = vsel %vm2421_vm11, %v2422_v38, 0  ;;  %vm1720_vm11 = vcmask 490496  }
 0x1b2   : > { %v2200_v15 = vsel %vm1686_vm9, %v2184_v4, %v3986_v55  ;;  %v595_v55 = vld [vmem:[%s3043_s25 + $0x80] sm:$0xff]  ;;  %v2425_v2 = vand.u32 %v2872_v3, %v2423_v41  ;;  %v648_v40 = vadd.f32 %v3688_v31, %v622_v50 }
 0x1b3   : > { %1316 = vrot.lane.b32.xlu1 %v4986_v47, %s2923_s21  ;;  %2440 = vmatpush1.bf16.msra.mxu0 %v2870_v13  ;;  %v4207_v33 = vpop.permute.xlu0 %1935  ;;  %v2217_v39 = vshll.u32 %v2200_v15, 16  ;;  %v2225_v11 = vrot.slane %v2223_v32, 1  ;;  %v2215_v4 = vshrl.u32 %v2200_v15, 16 }
 0x1b4   : > { %2798 = vmatpush1.bf16.msra.mxu1 %v2870_v13  ;;  %2441 = vmatprep.subr.bf16.mxu0 %v4984_v61  ;;  %v2221_v13 = vshrl.u32 %v2202_v25, 16  ;;  %v688_v15 = vmul.f32 0.01, %v648_v40  ;;  %vm668_vm13 = vcmp.ge.f32.partialorder %v648_v40, 0.0 }
 0x1b5   : > { %v4201_v60 = vpop.permute.xlu1 %1937  ;;  %2790 = vmatprep.subr.bf16.mxu1 %v4984_v61  ;;  %1517 = vrot.lane.b32.xlu0 %v4968_v27, %s2931_s10 }
 0x1b7   : > { %1519 = vrot.lane.b32.xlu1 %v4982_v22, %s2931_s10  ;;  %2442 = vmatpush1.bf16.msra.mxu0 %v2871_v9  ;;  %v4223_v45 = vpop.permute.xlu0 %1958 }
 0x1b8   : > { %2799 = vmatpush1.bf16.msra.mxu1 %v2871_v9  ;;  %2443 = vmatprep.subr.bf16.mxu0 %v4984_v61 }
 0x1b9   : > { %v4220_v62 = vpop.permute.xlu1 %1960  ;;  %2791 = vmatprep.subr.bf16.mxu1 %v4984_v61  ;;  %1327 = vrot.lane.b32.xlu0 %v4971_v49, %s2924_s23  ;;  %v621_v61 = vmul.f32 %v3673_v18, %v595_v55  ;;  %v2226_v49 = vor.u32 %v2225_v11, %v2221_v13  ;;  %v708_v11 = vsel %vm668_vm13, %v648_v40, %v688_v15  ;;  %v4992_v13 = vld [vmem:[#allocation16_spill] sm:$0xff]  ;;  %v4900_v15 = vrot.slane %v4982_v22, 1 }
 0x1ba   : > { %v728_v50 = vmul.f32 %v708_v11, %v3712_v26  ;;  %vm1754_vm13 = vcmask 572416  }
 0x1bb   : > { %1329 = vrot.lane.b32.xlu1 %v4975_v37, %s2924_s23  ;;  %v2219_v37 = vrot.slane %v2217_v39, 1  ;;  %v4239_v10 = vpop.permute.xlu0 %1975  ;;  %2444 = vmatpush1.bf16.msra.mxu0 %v2425_v2  ;;  %v647_v32 = vadd.f32 %v3688_v31, %v621_v61 }
 0x1bc   : > { %2800 = vmatpush1.bf16.msra.mxu1 %v2425_v2 }
 0x1bd   : > { %v4235_v48 = vpop.permute.xlu1 %1977  ;;  %1331 = vrot.lane.b32.xlu0 %v4974_v36, %s2924_s23  ;;  %v2220_v39 = vor.u32 %v2219_v37, %v2215_v4  ;;  %v687_v36 = vmul.f32 0.01, %v647_v32  ;;  %vm667_vm12 = vcmp.ge.f32.partialorder %v647_v32, 0.0  ;;  %v4993_v4 = vld [vmem:[#allocation4_spill] sm:$0xff] }
 0x1bf   : > { %1333 = vrot.lane.b32.xlu1 %v4987_v14, %s2924_s23  ;;  %v4249_v55 = vpop.permute.xlu0 %1993  ;;  %v707_v38 = vsel %vm667_vm12, %v647_v32, %v687_v36  ;;  %v754_v32 = vmul.f32 %v4993_v4, %v728_v50  ;;  %vm1737_vm12 = vcmask 531456  }
 0x1c0   : > { %v727_v61 = vmul.f32 %v707_v38, %v3707_v16 }
 0x1c1   : > { %v4245_v9 = vpop.permute.xlu1 %1995  ;;  %2263 = vrot.lane.b32.xlu0 %v2220_v39, %s2933_s12 }
 0x1c3   : > { %2265 = vrot.lane.b32.xlu1 %v2226_v49, %s2933_s12  ;;  %v4255_v3 = vpop.permute.xlu0 %2016  ;;  %v753_v49 = vmul.f32 %v4993_v4, %v727_v61  ;;  %v4994_v61 = vrot.slane %v4968_v27, 1 }
 0x1c5   : > { %v4253_v25 = vpop.permute.xlu1 %2018  ;;  %1351 = vrot.lane.b32.xlu0 %v4968_v27, %s2918_s17  ;;  %v4289_v16 = vpack.c.bf16 %v754_v32, %v753_v49  ;;  %v4901_v49 = vrot.slane %v3580_v30, 1 }
 0x1c7   : > { %1353 = vrot.lane.b32.xlu1 %v4982_v22, %s2918_s17  ;;  %v4263_v41 = vpop.permute.xlu0 %2033  ;;  %v1245_v38 = vshll.u32 %v4289_v16, 16  ;;  %v1243_v32 = vshrl.u32 %v4289_v16, 16 }
 0x1c8   : > { %4989 = vst [vmem:[#allocation15_spill] sm:$0xff] %v4263_v41 }
 0x1c9   : > { %v4261_v24 = vpop.permute.xlu1 %2035  ;;  %1355 = vrot.lane.b32.xlu0 %v3586_v21, %s2918_s17  ;;  %v1247_v5 = vrot.slane %v1245_v38, 1 }
 0x1ca   : > { %4988 = vst [vmem:[#allocation13_spill] sm:$0xff] %v4261_v24  ;;  %v598_v24 = vld [vmem:[%s3043_s25 + $0x98] sm:$0x3] }
 0x1cb   : > { %1357 = vrot.lane.b32.xlu1 %v3580_v30, %s2918_s17  ;;  %v4273_v2 = vpop.permute.xlu0 %2051 }
 0x1cc   : > { %4991 = vst [vmem:[#allocation65_spill] sm:$0xff] %v4273_v2  ;;  %v4902_v2 = vrot.slane %v3586_v21, 1 }
 0x1cd   : > { %v4271_v37 = vpop.permute.xlu1 %2053  ;;  %1423 = vrot.lane.b32.xlu0 %v3554_v46, %s2925_s24 }
 0x1ce   : > { %4990 = vst [vmem:[#allocation11_spill] sm:$0xff] %v4271_v37  ;;  %v597_v37 = vld [vmem:[%s3043_s25 + $0x90] sm:$0xff]  ;;  %s2747_s25 = sshll.u32 %s5098_s27, 3 }
 0x1cf   : > { %1425 = vrot.lane.b32.xlu1 %v4992_v13, %s2925_s24  ;;  %v4283_v39 = vpop.permute.xlu0 %1226  ;;  %v623_v38 = vmul.f32 %v3673_v18, %v597_v37 }
 0x1d1   : > { %v4281_v40 = vpop.permute.xlu1 %1228  ;;  %1427 = vrot.lane.b32.xlu0 %v3624_v43, %s2925_s24 }
 0x1d3   : > { %1429 = vrot.lane.b32.xlu1 %v3620_v0, %s2925_s24  ;;  %v4293_v46 = vpop.permute.xlu0 %1249 }
 0x1d5   : > { %v4291_v26 = vpop.permute.xlu1 %1251  ;;  %1238 = vrot.lane.b32.xlu0 %v4983_v54, %s2916_s14 }
 0x1d7   : > { %1240 = vrot.lane.b32.xlu1 %v4289_v16, %s2916_s14  ;;  %v4303_v11 = vpop.permute.xlu0 %1266  ;;  %s2748_s14 = sshll.u32 %s5096_s28, 6 }
 0x1d9   : > { %v4299_v36 = vpop.permute.xlu1 %1268  ;;  %1447 = vrot.lane.b32.xlu0 %v4994_v61, %s2926_s15  ;;  %v4328_v61 = vor.u32 %v1247_v5, %v1243_v32 }
 0x1db   : > { %1449 = vrot.lane.b32.xlu1 %v4900_v15, %s2926_s15  ;;  %v4315_v54 = vpop.permute.xlu0 %1283  ;;  %v624_v15 = vmul.f32 %v3673_v18, %v598_v24 }
 0x1dc   : > { %4996 = vst [vmem:[#allocation4_spill] sm:$0xff] %v4315_v54 }
 0x1dd   : > { %v4311_v50 = vpop.permute.xlu1 %1285  ;;  %1451 = vrot.lane.b32.xlu0 %v4902_v2, %s2926_s15  ;;  %v649_v2 = vadd.f32 %v3688_v31, %v623_v38 }
 0x1de   : > { %4995 = vst [vmem:[#allocation16_spill] sm:$0xff] %v4311_v50 }
 0x1df   : > { %1453 = vrot.lane.b32.xlu1 %v4901_v49, %s2926_s15  ;;  %v4332_v54 = vpop.permute.xlu0 %1306  ;;  %v689_v24 = vmul.f32 0.01, %v649_v2  ;;  %vm669_vm14 = vcmp.ge.f32.partialorder %v649_v2, 0.0 }
 0x1e0   : > { %4998 = vst [vmem:[#allocation67_spill] sm:$0xff] %v4332_v54 }
 0x1e1   : > { %v4326_v27 = vpop.permute.xlu1 %1308  ;;  %1261 = vrot.lane.b32.xlu0 %v4986_v47, %s2921_s11  ;;  %v4903_v47 = vrot.slane %v4289_v16, 1 }
 0x1e2   : > { %4997 = vst [vmem:[#allocation66_spill] sm:$0xff] %v4326_v27  ;;  %v650_v27 = vadd.f32 %v3688_v31, %v624_v15  ;;  %v709_v15 = vsel %vm669_vm14, %v649_v2, %v689_v24  ;;  %vm1771_vm14 = vcmask 613376  }
 0x1e3   : > { %1263 = vrot.lane.b32.xlu1 %v4328_v61, %s2921_s11  ;;  %v4342_v5 = vpop.permute.xlu0 %1323 }
 0x1e4   : > { %5000 = vst [vmem:[#allocation69_spill] sm:$0xff] %v4342_v5  ;;  %v690_v37 = vmul.f32 0.01, %v650_v27  ;;  %vm670_vm15 = vcmp.ge.f32.partialorder %v650_v27, 0.0 }
 0x1e5   : > { %v4338_v49 = vpop.permute.xlu1 %1325  ;;  %1464 = vrot.lane.b32.xlu0 %v4982_v22, %s2927_s22 }
 0x1e6   : > { %4999 = vst [vmem:[#allocation68_spill] sm:$0xff] %v4338_v49  ;;  %v710_v38 = vsel %vm670_vm15, %v650_v27, %v690_v37  ;;  %v5005_v49 = vld [vmem:[#allocation21_spill] sm:$0xff]  ;;  %vm2279_vm15 = vcmask 654336  }
 0x1e7   : > { %1466 = vrot.lane.b32.xlu1 %v3586_v21, %s2927_s22  ;;  %v4350_v32 = vpop.permute.xlu0 %1347  ;;  %v730_v54 = vmul.f32 %v710_v38, %v5005_v49  ;;  %v5007_v49 = vld [vmem:[#allocation39_spill] sm:$0xff] }
 0x1e8   : > { %5002 = vst [vmem:[#allocation71_spill] sm:$0xff] %v4350_v32  ;;  %v5004_v32 = vld [vmem:[#allocation20_spill] sm:$0xff] }
 0x1e9   : > { %v4348_v18 = vpop.permute.xlu1 %1349  ;;  %1468 = vrot.lane.b32.xlu0 %v3580_v30, %s2927_s22  ;;  %v756_v27 = vmul.f32 %v4993_v4, %v730_v54 }
 0x1ea   : > { %5001 = vst [vmem:[#allocation70_spill] sm:$0xff] %v4348_v18  ;;  %v729_v18 = vmul.f32 %v709_v15, %v5004_v32  ;;  %v1541_v32 = vsel %vm1533_vm0, %v3378_v52, %v5007_v49  ;;  %v5012_v52 = vld [vmem:[#allocation41_spill] sm:$0xff] }
 0x1eb   : > { %1470 = vrot.lane.b32.xlu1 %v3600_v53, %s2927_s22  ;;  %v4359_v5 = vpop.permute.xlu0 %1419  ;;  %v1545_v38 = vsel %vm1533_vm0, %v3422_v58, %v5012_v52  ;;  %v5017_v52 = vld [vmem:[#allocation46_spill] sm:$0xff] }
 0x1ec   : > { %5003 = vst [vmem:[#allocation72_spill] sm:$0xff] %v4359_v5  ;;  %v755_v2 = vmul.f32 %v4993_v4, %v729_v18  ;;  %v5011_v18 = vld [vmem:[#allocation31_spill] sm:$0xff]  ;;  %v5015_v5 = vld [vmem:[#allocation45_spill] sm:$0xff] }
 0x1ed   : > { %v4356_v31 = vpop.permute.xlu1 %1421  ;;  %1278 = vrot.lane.b32.xlu0 %v4987_v14, %s2922_s20  ;;  %v5006_v14 = vld [vmem:[#allocation19_spill] sm:$0xff]  ;;  %v2062_v58 = vsel %vm1533_vm0, %v3580_v30, %v5015_v5  ;;  %v5019_v5 = vrot.slane %v4982_v22, 1  ;;  %v2064_v22 = vsel %vm1533_vm0, %v3600_v53, %v3951_v19  ;;  %v5024_v19 = vld [vmem:[#allocation25_spill] sm:$0xff] }
 0x1ee   : > { %v4383_v15 = vpack.c.bf16 %v756_v27, %v755_v2  ;;  %v5013_v2 = vld [vmem:[#allocation32_spill] sm:$0xff] }
 0x1ef   : > { %1280 = vrot.lane.b32.xlu1 %v4903_v47, %s2922_s20  ;;  %v1231_v50 = vpop.permute.xlu0 %1230  ;;  %v5014_v47 = vld [vmem:[#allocation42_spill] sm:$0xff] }
 0x1f1   : > { %v1233_v41 = vpop.permute.xlu1 %1232  ;;  %1487 = vrot.lane.b32.xlu0 %v4992_v13, %s2929_s26  ;;  %v5009_v13 = vld [vmem:[#allocation40_spill] sm:$0xff] }
 0x1f2   : > { %v1539_v54 = vsel %vm1533_vm0, %v3384_v17, %v5009_v13  ;;  %v1302_v13 = vshll.u32 %v4383_v15, 16 }
 0x1f3   : > { %1489 = vrot.lane.b32.xlu1 %v3624_v43, %s2929_s26  ;;  %v1235_v37 = vpop.permute.xlu0 %1234  ;;  %v1556_v27 = vsel %vm1550_vm1, %v1539_v54, %v5013_v2 }
 0x1f5   : > { %v1237_v24 = vpop.permute.xlu1 %1236  ;;  %1491 = vrot.lane.b32.xlu0 %v3620_v0, %s2929_s26  ;;  %v1558_v0 = vsel %vm1550_vm1, %v1541_v32, %v5011_v18  ;;  %v1573_v32 = vsel %vm1567_vm2, %v1556_v27, %v1231_v50  ;;  %v2078_v50 = vsel %vm1550_vm1, %v2062_v58, %v3959_v42  ;;  %v1300_v27 = vshrl.u32 %v4383_v15, 16 }
 0x1f6   : > { %v1575_v17 = vsel %vm1567_vm2, %v1558_v0, %v1233_v41  ;;  %v5016_v41 = vrot.slane %v3586_v21, 1  ;;  %v1441_v0 = vrot.slane %v3600_v53, 1 }
 0x1f7   : > { %1493 = vrot.lane.b32.xlu1 %v5006_v14, %s2929_s26  ;;  %v4388_v4 = vpop.permute.xlu0 %1443 }
 0x1f8   : > { %5010 = vst [vmem:[#allocation21_spill] sm:$0xff] %v4388_v4  ;;  %v1543_v4 = vsel %vm1533_vm0, %v3430_v7, %v5014_v47  ;;  %v2060_v7 = vsel %vm1533_vm0, %v3586_v21, %v5017_v52  ;;  %v5018_v47 = vld [vmem:[#allocation33_spill] sm:$0xff]  ;;  %v1304_v52 = vrot.slane %v1302_v13, 1 }
 0x1f9   : > { %v4381_v43 = vpop.permute.xlu1 %1445  ;;  %1295 = vrot.lane.b32.xlu0 %v4289_v16, %s2917_s16  ;;  %v1562_v2 = vsel %vm1550_vm1, %v1545_v38, %v5018_v47  ;;  %v5021_v47 = vld [vmem:[#allocation47_spill] sm:$0xff] }
 0x1fa   : > { %5008 = vst [vmem:[#allocation20_spill] sm:$0xff] %v4381_v43 }
 0x1fb   : > { %1297 = vrot.lane.b32.xlu1 %v4383_v15, %s2917_s16  ;;  %v1254_v18 = vpop.permute.xlu0 %1253  ;;  %s434_s16 = sadd.s32 %s2748_s14, %s2747_s25 }
 0x1fc   : > { %v1590_v54 = vsel %vm1584_vm3, %v1573_v32, %v1254_v18  ;;  %v1579_v18 = vsel %vm1567_vm2, %v1562_v2, %v1237_v24 }
 0x1fd   : > { %v1256_v49 = vpop.permute.xlu1 %1255  ;;  %1504 = vrot.lane.b32.xlu0 %v5019_v5, %s2930_s19  ;;  %v5022_v5 = vld [vmem:[#allocation17_spill] sm:$0xff] }
 0x1fe   : > { %v1592_v43 = vsel %vm1584_vm3, %v1575_v17, %v1256_v49  ;;  %v2076_v17 = vsel %vm1550_vm1, %v2060_v7, %v3963_v8  ;;  %v5020_v49 = vld [vmem:[#allocation34_spill] sm:$0xff]  ;;  %v2066_v8 = vsel %vm1533_vm0, %v5022_v5, %v5021_v47  ;;  %v5023_v7 = vld [vmem:[#allocation24_spill] sm:$0xff] }
 0x1ff   : > { %1506 = vrot.lane.b32.xlu1 %v5016_v41, %s2930_s19  ;;  %v1560_v32 = vsel %vm1550_vm1, %v1543_v4, %v5020_v49  ;;  %v1258_v58 = vpop.permute.xlu0 %1257  ;;  %v2094_v4 = vsel %vm1567_vm2, %v2078_v50, %v5023_v7  ;;  %v2082_v13 = vsel %vm1550_vm1, %v2066_v8, %v3972_v28  ;;  %v2092_v2 = vsel %vm1567_vm2, %v2076_v17, %v5024_v19  ;;  %v5030_v8 = vld [vmem:[#allocation54_spill] sm:$0xff] }
 0x200   : > { %v1577_v42 = vsel %vm1567_vm2, %v1560_v32, %v1235_v37  ;;  %v2080_v37 = vsel %vm1550_vm1, %v2064_v22, %v3976_v6  ;;  %v2110_v49 = vsel %vm1584_vm3, %v2094_v4, %v3992_v34  ;;  %v5025_v50 = vrot.slane %v3580_v30, 1  ;;  %v5027_v22 = vld [vmem:[#allocation26_spill] sm:$0xff]  ;;  %v5031_v4 = vld [vmem:[#allocation57_spill] sm:$0xff] }
 0x201   : > { %v1260_v41 = vpop.permute.xlu1 %1259  ;;  %v1594_v24 = vsel %vm1584_vm3, %v1577_v42, %v1258_v58  ;;  %v2108_v32 = vsel %vm1584_vm3, %v2092_v2, %v3995_v57  ;;  %v5026_v42 = vld [vmem:[#allocation27_spill] sm:$0xff]  ;;  %v2098_v57 = vsel %vm1567_vm2, %v2082_v13, %v5027_v22  ;;  %v5033_v13 = vld [vmem:[#allocation50_spill] sm:$0xff] }
 0x202   : > { %v1596_v38 = vsel %vm1584_vm3, %v1579_v18, %v1260_v41  ;;  %1508 = vrot.lane.b32.xlu0 %v5025_v50, %s2930_s19  ;;  %v2126_v18 = vsel %vm1601_vm4, %v2110_v49, %v4009_v35  ;;  %v1305_v41 = vor.u32 %v1304_v52, %v1300_v27  ;;  %v2124_v28 = vsel %vm1601_vm4, %v2108_v32, %v4011_v23  ;;  %v5028_v23 = vld [vmem:[#allocation49_spill] sm:$0xff]  ;;  %v5034_v2 = vld [vmem:[#allocation58_spill] sm:$0xff]  ;;  %v5035_v50 = vld [vmem:[#allocation12_spill] sm:$0xff] }
 0x203   : > { %1510 = vrot.lane.b32.xlu1 %v1441_v0, %s2930_s19  ;;  %v2142_v17 = vsel %vm1618_vm5, %v2126_v18, %v4023_v51  ;;  %v4467_v34 = vpop.permute.xlu0 %1460  ;;  %v2096_v58 = vsel %vm1567_vm2, %v2080_v37, %v5026_v42  ;;  %v2140_v35 = vsel %vm1618_vm5, %v2124_v28, %v4025_v29  ;;  %v5029_v51 = vld [vmem:[#allocation48_spill] sm:$0xff]  ;;  %v5032_v29 = vld [vmem:[#allocation51_spill] sm:$0xff] }
 0x204   : > { %v2158_v27 = vsel %vm1635_vm6, %v2142_v17, %v4040_v63  ;;  %v2112_v52 = vsel %vm1584_vm3, %v2096_v58, %v5028_v23  ;;  %v2114_v47 = vsel %vm1584_vm3, %v2098_v57, %v5029_v51  ;;  %v2156_v7 = vsel %vm1635_vm6, %v2140_v35, %v5030_v8  ;;  %v5037_v17 = vld [vmem:[#allocation8_spill] sm:$0xff]  ;;  %v5038_v57 = vld [vmem:[#allocation53_spill] sm:$0xff]  ;;  %v5041_v8 = vld [vmem:[#allocation14_spill] sm:$0xff] }
 0x205   : > { %v4461_v6 = vpop.permute.xlu1 %1462  ;;  %v2174_v37 = vsel %vm4904_vm7, %v2158_v27, %v5031_v4  ;;  %v2128_v63 = vsel %vm1601_vm4, %v2112_v52, %v5032_v29  ;;  %v2130_v19 = vsel %vm1601_vm4, %v2114_v47, %v5033_v13  ;;  %v2172_v49 = vsel %vm4904_vm7, %v2156_v7, %v5034_v2  ;;  %v5039_v27 = vld [vmem:[#allocation55_spill] sm:$0xff]  ;;  %v5040_v47 = vld [vmem:[#allocation56_spill] sm:$0xff] }
 0x206   : > { %1318 = vrot.lane.b32.xlu0 %v4328_v61, %s2923_s21  ;;  %v2190_v32 = vsel %vm1669_vm8, %v2174_v37, %v5035_v50  ;;  %v2188_v42 = vsel %vm1669_vm8, %v2172_v49, %v5037_v17  ;;  %v2144_v35 = vsel %vm1618_vm5, %v2128_v63, %v5038_v57  ;;  %v5042_v7 = vld [vmem:[#allocation59_spill] sm:$0xff]  ;;  %v5043_v37 = vld [vmem:[#allocation61_spill] sm:$0xff]  ;;  %v5044_v63 = vld [vmem:[#allocation62_spill] sm:$0xff] }
 0x207   : > { %1320 = vrot.lane.b32.xlu1 %v1305_v41, %s2923_s21  ;;  %v5036_v41 = vld [vmem:[#allocation52_spill] sm:$0xff]  ;;  %v2206_v61 = vsel %vm1686_vm9, %v2190_v32, %v4133_v44  ;;  %v1271_v58 = vpop.permute.xlu0 %1270  ;;  %v2204_v52 = vsel %vm1686_vm9, %v2188_v42, %v4136_v20  ;;  %v2160_v44 = vsel %vm1635_vm6, %v2144_v35, %v5040_v47 }
 0x208   : > { %v2146_v28 = vsel %vm1618_vm5, %v2130_v19, %v5036_v41  ;;  %v1607_v51 = vsel %vm1601_vm4, %v1590_v54, %v1271_v58  ;;  %v2176_v4 = vsel %vm4904_vm7, %v2160_v44, %v5042_v7  ;;  %v2235_v29 = vshll.u32 %v2206_v61, 16 }
 0x209   : > { %v1273_v18 = vpop.permute.xlu1 %1272  ;;  %v2162_v23 = vsel %vm1635_vm6, %v2146_v28, %v5039_v27  ;;  %v2229_v13 = vshll.u32 %v2204_v52, 16  ;;  %v2233_v42 = vshrl.u32 %v2206_v61, 16 }
 0x20a   : > { %v1609_v22 = vsel %vm1601_vm4, %v1592_v43, %v1273_v18  ;;  %v2178_v43 = vsel %vm4904_vm7, %v2162_v23, %v5041_v8  ;;  %1521 = vrot.lane.b32.xlu0 %v3586_v21, %s2931_s10  ;;  %v2237_v32 = vrot.slane %v2235_v29, 1 }
 0x20b   : > { %1523 = vrot.lane.b32.xlu1 %v3580_v30, %s2931_s10  ;;  %v2194_v20 = vsel %vm1669_vm8, %v2178_v43, %v5043_v37  ;;  %v2192_v30 = vsel %vm1669_vm8, %v2176_v4, %v5044_v63  ;;  %v1275_v2 = vpop.permute.xlu0 %1274  ;;  %v2231_v28 = vrot.slane %v2229_v13, 1  ;;  %v1442_v13 = vrot.slane %v5022_v5, 1 }
 0x20c   : > { %v2210_v19 = vsel %vm1686_vm9, %v2194_v20, %v4159_v59  ;;  %v2208_v21 = vsel %vm1686_vm9, %v2192_v30, %v4163_v1  ;;  %v1611_v50 = vsel %vm1601_vm4, %v1594_v24, %v1275_v2  ;;  %v1322_v59 = vrot.slane %v4383_v15, 1  ;;  %v5046_v30 = vld [vmem:[#allocation18_spill] sm:$0xff] }
 0x20d   : > { %v1277_v54 = vpop.permute.xlu1 %1276  ;;  %v2247_v18 = vshll.u32 %v2210_v19, 16  ;;  %v2241_v17 = vshll.u32 %v2208_v21, 16  ;;  %v2227_v1 = vshrl.u32 %v2204_v52, 16  ;;  %v5045_v24 = vrot.slane %v4289_v16, 1  ;;  %v5048_v2 = vld [vmem:[#allocation6_spill] sm:$0xff] }
 0x20e   : > { %v1613_v49 = vsel %vm1601_vm4, %v1596_v38, %v1277_v54  ;;  %1525 = vrot.lane.b32.xlu0 %v3600_v53, %s2931_s10  ;;  %v2238_v58 = vor.u32 %v2237_v32, %v2233_v42  ;;  %v2245_v44 = vshrl.u32 %v2210_v19, 16  ;;  %v2239_v61 = vshrl.u32 %v2208_v21, 16  ;;  %v5047_v19 = vld [vmem:[#allocation38_spill] sm:$0xff]  ;;  %v5049_v21 = vld [vmem:[#allocation37_spill] sm:$0xff] }
 0x20f   : > { %1527 = vrot.lane.b32.xlu1 %v5022_v5, %s2931_s10  ;;  %v4537_v38 = vpop.permute.xlu0 %1483  ;;  %v2249_v57 = vrot.slane %v2247_v18, 1  ;;  %v2232_v27 = vor.u32 %v2231_v28, %v2227_v1  ;;  %v2243_v23 = vrot.slane %v2241_v17, 1  ;;  %v5051_v18 = vld [vmem:[#allocation60_spill] sm:$0xff]  ;;  %v5053_v17 = vld [vmem:[#allocation10_spill] sm:$0xff] }
 0x210   : > { %v5054_v42 = vld [vmem:[#allocation22_spill] sm:$0xff] }
 0x211   : > { %v4534_v41 = vpop.permute.xlu1 %1485  ;;  %v2250_v52 = vor.u32 %v2249_v57, %v2245_v44  ;;  %v2244_v16 = vor.u32 %v2243_v23, %v2239_v61  ;;  %v2070_v1 = vsel %vm1533_vm0, %v5054_v42, %v5053_v17  ;;  %v5056_v57 = vld [vmem:[#allocation63_spill] sm:$0xff]  ;;  %v5066_v17 = vld [vmem:[#allocation68_spill] sm:$0xff] }
 0x212   : > { %1335 = vrot.lane.b32.xlu0 %v5045_v24, %s2924_s23 }
 0x213   : > { %1337 = vrot.lane.b32.xlu1 %v1322_v59, %s2924_s23  ;;  %v1288_v47 = vpop.permute.xlu0 %1287  ;;  %v5052_v59 = vld [vmem:[#allocation23_spill] sm:$0xff] }
 0x214   : > { %v1624_v8 = vsel %vm1618_vm5, %v1607_v51, %v1288_v47  ;;  %v2068_v28 = vsel %vm1533_vm0, %v5052_v59, %v5051_v18  ;;  %v5065_v18 = vld [vmem:[#allocation67_spill] sm:$0xff] }
 0x215   : > { %v1290_v35 = vpop.permute.xlu1 %1289 }
 0x216   : > { %v1626_v15 = vsel %vm1618_vm5, %v1609_v22, %v1290_v35  ;;  %2267 = vrot.lane.b32.xlu0 %v2232_v27, %s2933_s12  ;;  %v2086_v35 = vsel %vm1550_vm1, %v2070_v1, %v5056_v57 }
 0x217   : > { %2269 = vrot.lane.b32.xlu1 %v2238_v58, %s2933_s12  ;;  %v1292_v7 = vpop.permute.xlu0 %1291 }
 0x218   : > { %v1628_v37 = vsel %vm1618_vm5, %v1611_v50, %v1292_v7  ;;  %v5050_v50 = vld [vmem:[#allocation5_spill] sm:$0xff] }
 0x219   : > { %v1294_v43 = vpop.permute.xlu1 %1293  ;;  %v1537_v32 = vsel %vm1533_vm0, %v5050_v50, %v5049_v21  ;;  %v5063_v21 = vld [vmem:[#allocation66_spill] sm:$0xff] }
 0x21a   : > { %v1630_v4 = vsel %vm1618_vm5, %v1613_v49, %v1294_v43  ;;  %2271 = vrot.lane.b32.xlu0 %v2244_v16, %s2933_s12  ;;  %v1535_v49 = vsel %vm1533_vm0, %v5048_v2, %v5047_v19  ;;  %v5057_v43 = vld [vmem:[#allocation29_spill] sm:$0xff]  ;;  %v5058_v16 = vld [vmem:[#allocation28_spill] sm:$0xff] }
 0x21b   : > { %2273 = vrot.lane.b32.xlu1 %v2250_v52, %s2933_s12  ;;  %v4553_v51 = vpop.permute.xlu0 %1500  ;;  %v5061_v19 = vld [vmem:[#allocation13_spill] sm:$0xff] }
 0x21d   : > { %v4551_v22 = vpop.permute.xlu1 %1502 }
 0x21e   : > { %1359 = vrot.lane.b32.xlu0 %v3600_v53, %s2918_s17 }
 0x21f   : > { %1361 = vrot.lane.b32.xlu1 %v5022_v5, %s2918_s17  ;;  %v1311_v29 = vpop.permute.xlu0 %1310  ;;  %s2749_s17 = sshll.u32 %s434_s16, 3 }
 0x220   : > { %v1641_v63 = vsel %vm1635_vm6, %v1624_v8, %v1311_v29  ;;  %v1499_v8 = vrot.slane %v5052_v59, 1 }
 0x221   : > { %v1313_v20 = vpop.permute.xlu1 %1312 }
 0x222   : > { %v1643_v54 = vsel %vm1635_vm6, %v1626_v15, %v1313_v20  ;;  %1431 = vrot.lane.b32.xlu0 %v5006_v14, %s2925_s24  ;;  %v5055_v14 = vld [vmem:[#allocation64_spill] sm:$0xff]  ;;  %v2102_v15 = vsel %vm1567_vm2, %v2086_v35, %v4180_v12  ;;  %v1554_v12 = vsel %vm1550_vm1, %v1537_v32, %v5058_v16  ;;  %v5068_v35 = vld [vmem:[#allocation69_spill] sm:$0xff] }
 0x223   : > { %1433 = vrot.lane.b32.xlu1 %v5046_v30, %s2925_s24  ;;  %v2084_v58 = vsel %vm1550_vm1, %v2068_v28, %v5055_v14  ;;  %v1315_v27 = vpop.permute.xlu0 %1314  ;;  %v2118_v52 = vsel %vm1584_vm3, %v2102_v15, %v4201_v60  ;;  %s4793_s24 = scalar_lea.vmem %s4854_s7, %s2749_s17 }
 0x224   : > { %v2100_v47 = vsel %vm1567_vm2, %v2084_v58, %v4186_v56  ;;  %v1645_v44 = vsel %vm1635_vm6, %v1628_v37, %v1315_v27  ;;  %v1552_v56 = vsel %vm1550_vm1, %v1535_v49, %v5057_v43  ;;  %v5062_v49 = vld [vmem:[#allocation4_spill] sm:$0xff]  ;;  %v5067_v58 = vld [vmem:[#allocation65_spill] sm:$0xff]  ;;  %v5071_v43 = vld [vmem:[#allocation71_spill] sm:$0xff] }
 0x225   : > { %v1317_v24 = vpop.permute.xlu1 %1316  ;;  %v2116_v61 = vsel %vm1584_vm3, %v2100_v47, %v4207_v33  ;;  %v1571_v33 = vsel %vm1567_vm2, %v1554_v12, %v4281_v40  ;;  %v1569_v53 = vsel %vm1567_vm2, %v1552_v56, %v4283_v39  ;;  %v5069_v47 = vld [vmem:[#allocation70_spill] sm:$0xff]  ;;  %v5072_v12 = vld [vmem:[#allocation72_spill] sm:$0xff] }
 0x226   : > { %v1647_v23 = vsel %vm1635_vm6, %v1630_v4, %v1317_v24  ;;  %1455 = vrot.lane.b32.xlu0 %v1441_v0, %s2926_s15  ;;  %v2132_v7 = vsel %vm1601_vm4, %v2116_v61, %v4223_v45  ;;  %v2134_v4 = vsel %vm1601_vm4, %v2118_v52, %v4220_v62  ;;  %v1588_v45 = vsel %vm1584_vm3, %v1571_v33, %v4291_v26  ;;  %v5059_v26 = vld [vmem:[#allocation16_spill] sm:$0xff]  ;;  %v5070_v52 = vld [vmem:[#allocation30_spill] sm:$0xff] }
 0x227   : > { %1457 = vrot.lane.b32.xlu1 %v1442_v13, %s2926_s15  ;;  %v2148_v37 = vsel %vm1618_vm5, %v2132_v7, %v4239_v10  ;;  %v2150_v20 = vsel %vm1618_vm5, %v2134_v4, %v4235_v48  ;;  %v1518_v0 = vpop.permute.xlu0 %1517  ;;  %v1586_v29 = vsel %vm1584_vm3, %v1569_v53, %v4293_v46  ;;  %v1605_v10 = vsel %vm1601_vm4, %v1588_v45, %v4299_v36  ;;  %v5060_v46 = vld [vmem:[#allocation15_spill] sm:$0xff]  ;;  %v5073_v4 = vld [vmem:[#allocation20_spill] sm:$0xff]  ;;  %s2750_s15 = sshll.u32 %s5096_s28, 3 }
 0x228   : > { %v2164_v62 = vsel %vm1635_vm6, %v2148_v37, %v4249_v55  ;;  %v2166_v40 = vsel %vm1635_vm6, %v2150_v20, %v4245_v9  ;;  %v1603_v55 = vsel %vm1601_vm4, %v1586_v29, %v4303_v11  ;;  %v1622_v9 = vsel %vm1618_vm5, %v1605_v10, %v5059_v26  ;;  %v5064_v11 = vld [vmem:[#allocation11_spill] sm:$0xff]  ;;  %v5074_v20 = vld [vmem:[#allocation21_spill] sm:$0xff] }
 0x229   : > { %v1520_v60 = vpop.permute.xlu1 %1519  ;;  %v2180_v48 = vsel %vm4904_vm7, %v2164_v62, %v4255_v3  ;;  %v2182_v39 = vsel %vm4904_vm7, %v2166_v40, %v4253_v25  ;;  %v1620_v3 = vsel %vm1618_vm5, %v1603_v55, %v5062_v49  ;;  %v1639_v25 = vsel %vm1635_vm6, %v1622_v9, %v5063_v21 }
 0x22a   : > { %1472 = vrot.lane.b32.xlu0 %v5022_v5, %s2927_s22  ;;  %v2196_v36 = vsel %vm1669_vm8, %v2180_v48, %v5060_v46  ;;  %v2198_v2 = vsel %vm1669_vm8, %v2182_v39, %v5061_v19  ;;  %v1637_v28 = vsel %vm1635_vm6, %v1620_v3, %v5065_v18  ;;  %v1656_v1 = vsel %vm4904_vm7, %v1639_v25, %v5066_v17 }
 0x22b   : > { %1474 = vrot.lane.b32.xlu1 %v5052_v59, %s2927_s22  ;;  %v2214_v32 = vsel %vm1686_vm9, %v2198_v2, %v5064_v11  ;;  %v1328_v24 = vpop.permute.xlu0 %1327  ;;  %v2212_v57 = vsel %vm1686_vm9, %v2196_v36, %v5067_v58  ;;  %v1654_v27 = vsel %vm4904_vm7, %v1637_v28, %v5068_v35  ;;  %v1673_v15 = vsel %vm1669_vm8, %v1656_v1, %v5069_v47  ;;  %v5076_v58 = vld [vmem:[#allocation7_spill] sm:$0xff]  ;;  %v5078_v47 = vld [vmem:[#allocation9_spill] sm:$0xff]  ;;  %s442_s22 = sadd.s32 %s2750_s15, %s5098_s27 }
 0x22c   : > { %v1658_v61 = vsel %vm4904_vm7, %v1641_v63, %v1328_v24  ;;  %v1671_v56 = vsel %vm1669_vm8, %v1654_v27, %v5071_v43  ;;  %v2259_v16 = vshll.u32 %v2214_v32, 16  ;;  %v2253_v37 = vshll.u32 %v2212_v57, 16  ;;  %v5077_v27 = vld [vmem:[#allocation44_spill] sm:$0xff] }
 0x22d   : > { %v1330_v50 = vpop.permute.xlu1 %1329  ;;  %v1688_v7 = vsel %vm1686_vm9, %v1671_v56, %v5072_v12  ;;  %v5080_v56 = vld [vmem:[#allocation36_spill] sm:$0xff] }
 0x22e   : > { %v1660_v14 = vsel %vm4904_vm7, %v1643_v54, %v1330_v50  ;;  %v1690_v54 = vsel %vm1686_vm9, %v1673_v15, %v4356_v31  ;;  %1495 = vrot.lane.b32.xlu0 %v5046_v30, %s2929_s26  ;;  %v1705_v53 = vsel %vm1703_vm10, %v1688_v7, %v5074_v20  ;;  %v2255_v48 = vrot.slane %v2253_v37, 1 }
 0x22f   : > { %1497 = vrot.lane.b32.xlu1 %v5070_v52, %s2929_s26  ;;  %v1707_v63 = vsel %vm1703_vm10, %v1690_v54, %v5073_v4  ;;  %v1332_v45 = vpop.permute.xlu0 %1331  ;;  %v1722_v30 = vsel %vm1720_vm11, %v1705_v53, %v4467_v34  ;;  %v2261_v34 = vrot.slane %v2259_v16, 1  ;;  %v1547_v15 = vsel %vm1533_vm0, %v5078_v47, %v5077_v27  ;;  %v5079_v52 = vld [vmem:[#allocation35_spill] sm:$0xff]  ;;  %s2751_s26 = sshll.u32 %s442_s22, 1 }
 0x230   : > { %v1724_v31 = vsel %vm1720_vm11, %v1707_v63, %v4461_v6  ;;  %v1662_v29 = vsel %vm4904_vm7, %v1645_v44, %v1332_v45  ;;  %v1739_v10 = vsel %vm1737_vm12, %v1722_v30, %v4537_v38  ;;  %v1564_v54 = vsel %vm1550_vm1, %v1547_v15, %v5080_v56  ;;  %s444_s18 = scalar_lea.vmem %s4855_s8, %s2751_s26 }
 0x231   : > { %v1334_v33 = vpop.permute.xlu1 %1333  ;;  %v1741_v40 = vsel %vm1737_vm12, %v1724_v31, %v4534_v41  ;;  %v1756_v41 = vsel %vm1754_vm13, %v1739_v10, %v4553_v51 }
 0x232   : > { %v1664_v62 = vsel %vm4904_vm7, %v1647_v23, %v1334_v33  ;;  %v1758_v6 = vsel %vm1754_vm13, %v1741_v40, %v4551_v22  ;;  %1512 = vrot.lane.b32.xlu0 %v1442_v13, %s2930_s19  ;;  %vm2407_vm7 = vcmask 56320   ;;  %v2257_v22 = vshrl.u32 %v2214_v32, 16 }
 0x233   : > { %1514 = vrot.lane.b32.xlu1 %v1499_v8, %s2930_s19  ;;  %v1775_v23 = vsel %vm1771_vm14, %v1758_v6, %v1520_v60  ;;  %v1773_v8 = vsel %vm1771_vm14, %v1756_v41, %v1518_v0  ;;  %v2264_v39 = vpop.permute.xlu0 %2263  ;;  %v2251_v13 = vshrl.u32 %v2212_v57, 16 }
 0x234   : > { %v2281_v55 = vsel %vm2279_vm15, %v1773_v8, %v2264_v39  ;;  %v2262_v60 = vor.u32 %v2261_v34, %v2257_v22 }
 0x235   : > { %v2266_v44 = vpop.permute.xlu1 %2265  ;;  %v2256_v26 = vor.u32 %v2255_v48, %v2251_v13 }
 0x236   : > { %v2283_v38 = vsel %vm2279_vm15, %v1775_v23, %v2266_v44  ;;  %v2761_v5 = vcombine.low %v2264_v39, %v2266_v44  ;;  %1529 = vrot.lane.b32.xlu0 %v5052_v59, %s2931_s10 }
 0x237   : > { %1531 = vrot.lane.b32.xlu1 %v5054_v42, %s2931_s10  ;;  %v2760_v51 = vcombine.low %v2281_v55, %v2283_v38  ;;  %v1352_v9 = vpop.permute.xlu0 %1351 }
 0x238   : > { %2777 = vmatprep.mubr.msk.bf16.mxu0 %vm2407_vm7, %v2761_v5  ;;  %v1675_v36 = vsel %vm1669_vm8, %v1658_v61, %v1352_v9 }
 0x239   : > { %v1354_v0 = vpop.permute.xlu1 %1353  ;;  %2460 = vmatmul.mubr.bf16.vlgmr.msra.gmra.mrb[0].mxu0 %v2760_v51 }
 0x23a   : > { %v1677_v46 = vsel %vm1669_vm8, %v1660_v14, %v1354_v0  ;;  %2275 = vrot.lane.b32.xlu0 %v2256_v26, %s2933_s12  ;;  %v5075_v14 = vld [vmem:[#allocation43_spill] sm:$0xff] }
 0x23b   : > { %2277 = vrot.lane.b32.xlu1 %v2262_v60, %s2933_s12  ;;  %v1356_v19 = vpop.permute.xlu0 %1355  ;;  %v1549_v57 = vsel %vm1533_vm0, %v5076_v58, %v5075_v14  ;;  %vm5081_vm0 = vcmask 326656  }
 0x23c   : > { %v1679_v2 = vsel %vm1669_vm8, %v1662_v29, %v1356_v19  ;;  %v1566_v43 = vsel %vm1550_vm1, %v1549_v57, %v5079_v52  ;;  %vm5082_vm1 = vmmov %vm5081_vm0 }
 0x23d   : > { %v1358_v42 = vpop.permute.xlu1 %1357 }
 0x23e   : > { %v1681_v59 = vsel %vm1669_vm8, %v1664_v62, %v1358_v42 }
 0x23f   : > { %v1424_v3 = vpop.permute.xlu0 %1423 }
 0x240   : > { %v1692_v25 = vsel %vm1686_vm9, %v1675_v36, %v1424_v3 }
 0x241   : > { %v1426_v49 = vpop.permute.xlu1 %1425 }
 0x242   : > { %v1694_v21 = vsel %vm1686_vm9, %v1677_v46, %v1426_v49 }
 0x243   : > { %v1428_v11 = vpop.permute.xlu0 %1427 }
 0x244   : > { %v1696_v18 = vsel %vm1686_vm9, %v1679_v2, %v1428_v11 }
 0x245   : > { %v1430_v50 = vpop.permute.xlu1 %1429 }
 0x246   : > { %v1698_v32 = vsel %vm1686_vm9, %v1681_v59, %v1430_v50 }
 0x247   : > { %v1239_v17 = vpop.permute.xlu0 %1238 }
 0x248   : > { %v1581_v7 = vsel %vm1567_vm2, %v1564_v54, %v1239_v17 }
 0x249   : > { %v1241_v28 = vpop.permute.xlu1 %1240 }
 0x24a   : > { %v1583_v16 = vsel %vm1567_vm2, %v1566_v43, %v1241_v28  ;;  %vm2492_vm2 = vcmask 72704  }
 0x24b   : > { %v1448_v24 = vpop.permute.xlu0 %1447 }
 0x24c   : > { %v1709_v26 = vsel %vm1703_vm10, %v1692_v25, %v1448_v24 }
 0x24d   : > { %v1450_v1 = vpop.permute.xlu1 %1449 }
 0x24e   : > { %v1711_v60 = vsel %vm1703_vm10, %v1694_v21, %v1450_v1 }
 0x24f   : > { %v1452_v61 = vpop.permute.xlu0 %1451 }
 0x250   : > { %v1713_v25 = vsel %vm1703_vm10, %v1696_v18, %v1452_v61 }
 0x251   : > { %v1454_v35 = vpop.permute.xlu1 %1453 }
 0x252   : > { %v1715_v2 = vsel %vm1703_vm10, %v1698_v32, %v1454_v35 }
 0x253   : > { %v1262_v4 = vpop.permute.xlu0 %1261 }
 0x254   : > { %v1598_v33 = vsel %vm1584_vm3, %v1581_v7, %v1262_v4 }
 0x255   : > { %v1264_v12 = vpop.permute.xlu1 %1263 }
 0x256   : > { %v1600_v63 = vsel %vm1584_vm3, %v1583_v16, %v1264_v12  ;;  %vm2551_vm3 = vcmask 1040384  }
 0x257   : > { %v1465_v20 = vpop.permute.xlu0 %1464 }
 0x258   : > { %v1726_v36 = vsel %vm1720_vm11, %v1709_v26, %v1465_v20 }
 0x259   : > { %v1467_v37 = vpop.permute.xlu1 %1466 }
 0x25a   : > { %v1728_v9 = vsel %vm1720_vm11, %v1711_v60, %v1467_v37 }
 0x25b   : > { %v1469_v31 = vpop.permute.xlu0 %1468 }
 0x25c   : > { %v1730_v1 = vsel %vm1720_vm11, %v1713_v25, %v1469_v31 }
 0x25d   : > { %v1471_v53 = vpop.permute.xlu1 %1470 }
 0x25e   : > { %v1732_v50 = vsel %vm1720_vm11, %v1715_v2, %v1471_v53 }
 0x25f   : > { %v1279_v62 = vpop.permute.xlu0 %1278 }
 0x260   : > { %v4728_v40 = vsel %vm1601_vm4, %v1598_v33, %v1279_v62 }
 0x261   : > { %v1281_v45 = vpop.permute.xlu1 %1280 }
 0x262   : > { %v4725_v30 = vsel %vm1601_vm4, %v1600_v63, %v1281_v45  ;;  %vm2553_vm4 = vcmask 66560  }
 0x263   : > { %v1488_v10 = vpop.permute.xlu0 %1487 }
 0x264   : > { %v1743_v19 = vsel %vm1737_vm12, %v1726_v36, %v1488_v10 }
 0x265   : > { %v1490_v29 = vpop.permute.xlu1 %1489 }
 0x266   : > { %v1745_v42 = vsel %vm1737_vm12, %v1728_v9, %v1490_v29 }
 0x267   : > { %v1492_v34 = vpop.permute.xlu0 %1491 }
 0x268   : > { %v1747_v58 = vsel %vm1737_vm12, %v1730_v1, %v1492_v34 }
 0x269   : > { %v1494_v6 = vpop.permute.xlu1 %1493 }
 0x26a   : > { %v1749_v24 = vsel %vm1737_vm12, %v1732_v50, %v1494_v6 }
 0x26b   : > { %v1296_v23 = vpop.permute.xlu0 %1295 }
 0x26c   : > { %v1632_v62 = vsel %vm1618_vm5, %v4728_v40, %v1296_v23 }
 0x26d   : > { %v1298_v41 = vpop.permute.xlu1 %1297 }
 0x26e   : > { %v1634_v45 = vsel %vm1618_vm5, %v4725_v30, %v1298_v41 }
 0x26f   : > { %v1505_v48 = vpop.permute.xlu0 %1504 }
 0x270   : > { %v1760_v49 = vsel %vm1754_vm13, %v1743_v19, %v1505_v48 }
 0x271   : > { %v1507_v44 = vpop.permute.xlu1 %1506 }
 0x272   : > { %v1762_v59 = vsel %vm1754_vm13, %v1745_v42, %v1507_v44 }
 0x274   : > { %v1509_v39 = vpop.permute.xlu0 %1508 }
 0x275   : > { %v1511_v8 = vpop.permute.xlu1 %1510  ;;  %v1764_v18 = vsel %vm1754_vm13, %v1747_v58, %v1509_v39 }
 0x276   : > { %v1766_v57 = vsel %vm1754_vm13, %v1749_v24, %v1511_v8 }
 0x278   : > { %v1319_v22 = vpop.permute.xlu0 %1318 }
 0x279   : > { %v1321_v38 = vpop.permute.xlu1 %1320  ;;  %v1649_v6 = vsel %vm1635_vm6, %v1632_v62, %v1319_v22 }
 0x27a   : > { %v1651_v29 = vsel %vm1635_vm6, %v1634_v45, %v1321_v38 }
 0x27c   : > { %v1522_v5 = vpop.permute.xlu0 %1521 }
 0x27d   : > { %v1524_v55 = vpop.permute.xlu1 %1523  ;;  %v1777_v11 = vsel %vm1771_vm14, %v1760_v49, %v1522_v5  ;;  %v2759_v49 = vld [vmem:[%s4851_s4] ss:$0 sm:$0xff] }
 0x27e   : > { %v1779_v3 = vsel %vm1771_vm14, %v1762_v59, %v1524_v55 }
 0x280   : > { %v1526_v51 = vpop.permute.xlu0 %1525 }
 0x281   : > { %v1528_v13 = vpop.permute.xlu1 %1527  ;;  %v1781_v15 = vsel %vm1771_vm14, %v1764_v18, %v1526_v51 }
 0x282   : > { %v1783_v27 = vsel %vm1771_vm14, %v1766_v57, %v1528_v13 }
 0x284   : > { %v1336_v46 = vpop.permute.xlu0 %1335 }
 0x285   : > { %v1338_v0 = vpop.permute.xlu1 %1337  ;;  %v1666_v48 = vsel %vm5082_vm1, %v1649_v6, %v1336_v46 }
 0x286   : > { %v1668_v34 = vsel %vm5081_vm0, %v1651_v29, %v1338_v0 }
 0x288   : > { %v2268_v28 = vpop.permute.xlu0 %2267 }
 0x289   : > { %v2270_v21 = vpop.permute.xlu1 %2269  ;;  %v2285_v32 = vsel %vm2279_vm15, %v1777_v11, %v2268_v28 }
 0x28a   : > { %v2287_v17 = vsel %vm2279_vm15, %v1779_v3, %v2270_v21  ;;  %v2763_v14 = vcombine.low %v2268_v28, %v2270_v21 }
 0x28b   : > { %v2762_v35 = vcombine.low %v2285_v32, %v2287_v17 }
 0x28c   : > { %2778 = vmatprep.mubr.msk.bf16.mxu0 %vm2407_vm7, %v2763_v14  ;;  %v2272_v61 = vpop.permute.xlu0 %2271 }
 0x28d   : > { %v2274_v47 = vpop.permute.xlu1 %2273  ;;  %2468 = vmatmul.mubr.bf16.gmra.mrb[4].mxu0 %v2762_v35  ;;  %v2289_v43 = vsel %vm2279_vm15, %v1781_v15, %v2272_v61 }
 0x28e   : > { %v2291_v52 = vsel %vm2279_vm15, %v1783_v27, %v2274_v47  ;;  %v2765_v56 = vcombine.low %v2272_v61, %v2274_v47 }
 0x28f   : > { %v2764_v54 = vcombine.low %v2289_v43, %v2291_v52 }
 0x290   : > { %2779 = vmatprep.mubr.msk.bf16.mxu1 %vm2407_vm7, %v2765_v56  ;;  %v1360_v12 = vpop.permute.xlu0 %1359 }
 0x291   : > { %v1362_v16 = vpop.permute.xlu1 %1361  ;;  %2476 = vmatmul.mubr.bf16.vlgmr.msra.gmra.mrb[0].mxu1 %v2764_v54  ;;  %v1683_v39 = vsel %vm1669_vm8, %v1666_v48, %v1360_v12 }
 0x292   : > { %v1685_v8 = vsel %vm1669_vm8, %v1668_v34, %v1362_v16 }
 0x294   : > { %v1432_v4 = vpop.permute.xlu0 %1431 }
 0x295   : > { %v1434_v7 = vpop.permute.xlu1 %1433  ;;  %v1700_v30 = vsel %vm1686_vm9, %v1683_v39, %v1432_v4 }
 0x296   : > { %v1702_v55 = vsel %vm1686_vm9, %v1685_v8, %v1434_v7 }
 0x298   : > { %v1456_v33 = vpop.permute.xlu0 %1455 }
 0x299   : > { %v1458_v63 = vpop.permute.xlu1 %1457  ;;  %v1717_v23 = vsel %vm1703_vm10, %v1700_v30, %v1456_v33 }
 0x29a   : > { %v1719_v40 = vsel %vm1703_vm10, %v1702_v55, %v1458_v63 }
 0x29c   : > { %v1473_v20 = vpop.permute.xlu0 %1472 }
 0x29d   : > { %v1475_v37 = vpop.permute.xlu1 %1474  ;;  %v1734_v5 = vsel %vm1720_vm11, %v1717_v23, %v1473_v20 }
 0x29e   : > { %v1736_v38 = vsel %vm1720_vm11, %v1719_v40, %v1475_v37 }
 0x2a0   : > { %v1496_v31 = vpop.permute.xlu0 %1495 }
 0x2a1   : > { %v1498_v53 = vpop.permute.xlu1 %1497  ;;  %v1751_v51 = vsel %vm1737_vm12, %v1734_v5, %v1496_v31 }
 0x2a2   : > { %v1753_v13 = vsel %vm1737_vm12, %v1736_v38, %v1498_v53 }
 0x2a4   : > { %v1513_v44 = vpop.permute.xlu0 %1512 }
 0x2a5   : > { %v1515_v10 = vpop.permute.xlu1 %1514  ;;  %v1768_v0 = vsel %vm1754_vm13, %v1751_v51, %v1513_v44 }
 0x2a6   : > { %v1770_v60 = vsel %vm1754_vm13, %v1753_v13, %v1515_v10 }
 0x2a8   : > { %v1530_v22 = vpop.permute.xlu0 %1529 }
 0x2a9   : > { %v1532_v41 = vpop.permute.xlu1 %1531  ;;  %v1785_v46 = vsel %vm1771_vm14, %v1768_v0, %v1530_v22 }
 0x2aa   : > { %v1787_v26 = vsel %vm1771_vm14, %v1770_v60, %v1532_v41 }
 0x2ac   : > { %v2276_v36 = vpop.permute.xlu0 %2275 }
 0x2ad   : > { %v2278_v9 = vpop.permute.xlu1 %2277  ;;  %v2293_v19 = vsel %vm2279_vm15, %v1785_v46, %v2276_v36 }
 0x2ae   : > { %v2295_v42 = vsel %vm2279_vm15, %v1787_v26, %v2278_v9  ;;  %v2767_v59 = vcombine.low %v2276_v36, %v2278_v9 }
 0x2af   : > { %v2766_v2 = vcombine.low %v2293_v19, %v2295_v42 }
 0x2b0   : > { %2780 = vmatprep.mubr.msk.bf16.mxu1 %vm2407_vm7, %v2767_v59 }
 0x2b1   : > { %2484 = vmatmul.mubr.bf16.gmra.mrb[4].mxu1 %v2766_v2 }
 0x30c   : > { %v2461_v3 = vpop.f32.mrb[0].mxu0 }
 0x30d   : > { %v2462_v21 = vadd.f32 %v2759_v49, %v2461_v3  ;;  %v2463_v25 = vpop.f32.mrb[1].mxu0 }
 0x30e   : > { %v2464_v50 = vpop.f32.mrb[2].mxu0 }
 0x30f   : > { %2493 = vst.msk [vmem:[%s4793_s24] sm:$0xff] %vm2492_vm2, %v2462_v21  ;;  %v2522_v11 = vmul.f32 %v2462_v21, %v2462_v21  ;;  %v2465_v28 = vadd.f32 %v2759_v49, %v2464_v50  ;;  %v2466_v17 = vpop.f32.mrb[3].mxu0  ;;  %v2501_v1 = vsel %vm2492_vm2, %v2462_v21, 0.0 }
 0x311   : > { %2494 = vst.msk [vmem:[%s4793_s24 + $0x8] sm:$0xff] %vm2492_vm2, %v2465_v28  ;;  %v2502_v24 = vsel %vm2492_vm2, %v2465_v28, 0.0  ;;  %v2523_v32 = vmul.f32 %v2465_v28, %v2465_v28  ;;  %v2530_v58 = vsel %vm2492_vm2, %v2522_v11, 0.0 }
 0x312   : > { %v2503_v14 = vadd.f32 %v2502_v24, %v2501_v1 }
 0x313   : > { %v2531_v57 = vsel %vm2492_vm2, %v2523_v32, 0.0 }
 0x314   : > { %v2532_v35 = vadd.f32 %v2531_v57, %v2530_v58 }
 0x360   : > { %v2469_v18 = vpop.f32.mrb[4].mxu0 }
 0x361   : > { %v2470_v27 = vadd.f32 %v2759_v49, %v2469_v18  ;;  %v2471_v47 = vpop.f32.mrb[5].mxu0 }
 0x362   : > { %v2472_v15 = vpop.f32.mrb[6].mxu0 }
 0x363   : > { %2495 = vst.msk [vmem:[%s4793_s24 + $0x10] sm:$0xff] %vm2492_vm2, %v2470_v27  ;;  %v2504_v61 = vsel %vm2492_vm2, %v2470_v27, 0.0  ;;  %v2524_v52 = vmul.f32 %v2470_v27, %v2470_v27  ;;  %v2473_v43 = vadd.f32 %v2759_v49, %v2472_v15  ;;  %v2474_v56 = vpop.f32.mrb[7].mxu0 }
 0x364   : > { %v2505_v54 = vadd.f32 %v2504_v61, %v2503_v14  ;;  %v2477_v16 = vpop.f32.mrb[0].mxu1 }
 0x365   : > { %v2533_v12 = vsel %vm2492_vm2, %v2524_v52, 0.0  ;;  %2496 = vst.msk [vmem:[%s4793_s24 + $0x18] sm:$0xff] %vm2492_vm2, %v2473_v43  ;;  %v2506_v7 = vsel %vm2492_vm2, %v2473_v43, 0.0  ;;  %v2525_v4 = vmul.f32 %v2473_v43, %v2473_v43  ;;  %v2478_v63 = vadd.f32 %v2759_v49, %v2477_v16  ;;  %v2479_v33 = vpop.f32.mrb[1].mxu1 }
 0x366   : > { %v2534_v37 = vadd.f32 %v2533_v12, %v2532_v35  ;;  %v2507_v20 = vadd.f32 %v2506_v7, %v2505_v54  ;;  %v2480_v53 = vpop.f32.mrb[2].mxu1 }
 0x367   : > { %v2535_v31 = vsel %vm2492_vm2, %v2525_v4, 0.0  ;;  %2497 = vst.msk [vmem:[%s4793_s24 + $0x20] sm:$0xff] %vm2492_vm2, %v2478_v63  ;;  %v2508_v45 = vsel %vm2492_vm2, %v2478_v63, 0.0  ;;  %v2526_v62 = vmul.f32 %v2478_v63, %v2478_v63  ;;  %v2481_v29 = vadd.f32 %v2759_v49, %v2480_v53  ;;  %v2482_v10 = vpop.f32.mrb[3].mxu1 }
 0x368   : > { %v2536_v6 = vadd.f32 %v2535_v31, %v2534_v37  ;;  %v2509_v34 = vadd.f32 %v2508_v45, %v2507_v20 }
 0x369   : > { %v2537_v44 = vsel %vm2492_vm2, %v2526_v62, 0.0  ;;  %2498 = vst.msk [vmem:[%s4793_s24 + $0x28] sm:$0xff] %vm2492_vm2, %v2481_v29  ;;  %v2510_v48 = vsel %vm2492_vm2, %v2481_v29, 0.0  ;;  %v2527_v8 = vmul.f32 %v2481_v29, %v2481_v29 }
 0x36a   : > { %v2538_v39 = vadd.f32 %v2537_v44, %v2536_v6  ;;  %v2511_v55 = vadd.f32 %v2510_v48, %v2509_v34 }
 0x36b   : > { %v2539_v30 = vsel %vm2492_vm2, %v2527_v8, 0.0 }
 0x36c   : > { %v2540_v40 = vadd.f32 %v2539_v30, %v2538_v39 }
 0x384   : > { %v2485_v41 = vpop.f32.mrb[4].mxu1 }
 0x385   : > { %v2486_v23 = vadd.f32 %v2759_v49, %v2485_v41  ;;  %v2487_v38 = vpop.f32.mrb[5].mxu1 }
 0x386   : > { %v2488_v22 = vpop.f32.mrb[6].mxu1 }
 0x387   : > { %2499 = vst.msk [vmem:[%s4793_s24 + $0x30] sm:$0xff] %vm2492_vm2, %v2486_v23  ;;  %v2512_v5 = vsel %vm2492_vm2, %v2486_v23, 0.0  ;;  %v2528_v13 = vmul.f32 %v2486_v23, %v2486_v23  ;;  %v2489_v51 = vadd.f32 %v2759_v49, %v2488_v22  ;;  %v2490_v60 = vpop.f32.mrb[7].mxu1 }
 0x388   : > { %v2513_v0 = vadd.f32 %v2512_v5, %v2511_v55 }
 0x389   : > { %v2541_v26 = vsel %vm2492_vm2, %v2528_v13, 0.0  ;;  %2500 = vst.msk [vmem:[%s4793_s24 + $0x38] sm:$0xff] %vm2492_vm2, %v2489_v51  ;;  %v2514_v9 = vsel %vm2492_vm2, %v2489_v51, 0.0  ;;  %v2529_v46 = vmul.f32 %v2489_v51, %v2489_v51 }
 0x38a   : > { %v2542_v36 = vadd.f32 %v2541_v26, %v2540_v40  ;;  %v2515_v42 = vadd.f32 %v2514_v9, %v2513_v0 }
 0x38b   : > { %v2543_v19 = vsel %vm2492_vm2, %v2529_v46, 0.0 }
 0x38c   : > { %v2516_v59 = vrot.slane %v2515_v42, 4  ;;  %v2544_v2 = vadd.f32 %v2543_v19, %v2542_v36 }
 0x38e   : > { %v2517_v3 = vadd.f32 %v2516_v59, %v2515_v42  ;;  %v2545_v21 = vrot.slane %v2544_v2, 4 }
 0x390   : > { %v2518_v49 = vrot.slane %v2517_v3, 2  ;;  %v2546_v25 = vadd.f32 %v2545_v21, %v2544_v2 }
 0x392   : > { %v2519_v50 = vadd.f32 %v2518_v49, %v2517_v3  ;;  %v2547_v11 = vrot.slane %v2546_v25, 2 }
 0x394   : > { %v2520_v28 = vrot.slane %v2519_v50, 1  ;;  %v2548_v17 = vadd.f32 %v2547_v11, %v2546_v25 }
 0x396   : > { %v2549_v1 = vrot.slane %v2548_v17, 1  ;;  %v2521_v24 = vadd.f32 %v2520_v28, %v2519_v50 }
 0x398   : > { %v2550_v32 = vadd.f32 %v2549_v1, %v2548_v17 }
 0x39a   : > { %v2552_v14 = vsel %vm2551_vm3, %v2521_v24, %v2550_v32 }
 0x39b   : > { %2554 = vst.msk [vmem:[%s444_s18] sm:$0x3] %vm2553_vm4, %v2552_v14 }
 0x39c PF: > { %s19_s9 = sadd.s32 1, %s2913_s9   ;;  %s5083_s13 = sld [smem:[#allocation2_spill]] }
 0x39d   : > { %p16_p2 = scmp.ge.s32.totalorder %s19_s9, 18   ;;  %s5084_s12 = sld [smem:[#allocation3_spill]] }
 0x39e   : > { %s5085_s27 = smov %s2905_s29  ;;  %s5086_s28 = smov %s2909_s30 }
 0x39f   :  { %18 = sbr.rel (!%p16_p2) target bundleno = 3 (0x3), region = 96 }
 0x3a2   : > { %s5087_s29 = smov %s5083_s13 }
 0x3a3   : > { %s5088_s30 = smov %s5084_s12 }

// kernel: convblock3d_forward.9
= control target key start
LH: loop header
LB: loop body
LE: loop exit
PB: predicated region body
PF: predicated region fallthrough
CT: control target
= control target key end

     0   :  { %8 = vsyncpa [#allocation3], 0  ;;  %s739_s0 = inlined_call_operand.vmem [shape: f32[2,8,8,8,16], index: 0, kind: input, shape index: {}]   ;;  %s740_s1 = inlined_call_operand.vmem [shape: f32[1,16], index: 1, kind: input, shape index: {}]   ;;  %s741_s2 = inlined_call_operand.vmem [shape: f32[1,16], index: 2, kind: input, shape index: {}]   ;;  %s742_s3 = inlined_call_operand.hbm [shape: f32[2,8,8,8,16], index: 3, kind: output, shape index: {}]  }
   0x1   :  { %10 = vsyncpa [#allocation3 + $0x1], 0  ;;  %s578_s12 = smov 0   ;;  %s580_s13 = smov 0  }
   0x2   :  { %s582_s14 = smov 0   ;;  %s584_s15 = smov 0  }
   0x3   :  { %s586_s16 = smov 0   ;;  %s588_s17 = smov 0  }
   0x4   :  { %s590_s18 = smov 0   ;;  %s592_s19 = smov 0  }
   0x5 LB: > { %s369_s20 = sadd.s32 4294967295, %s553_s19   ;;  %s370_s21 = sadd.s32 4294967294, %s553_s19   ;;  %s553_s19 = sphi %s592_s19, %s16_s19   ;;  %s549_s18 = sphi %s590_s18, %s751_s18   ;;  %s545_s17 = sphi %s588_s17, %s750_s17   ;;  %s541_s16 = sphi %s586_s16, %s749_s16   ;;  %s537_s15 = sphi %s584_s15, %s748_s15   ;;  %s533_s14 = sphi %s582_s14, %s747_s14   ;;  %s529_s13 = sphi %s580_s13, %s746_s13   ;;  %s525_s12 = sphi %s578_s12, %s745_s12  }
   0x6   : > { %s25_s22 = sadd.s32 1, %s545_s17  ;;  %s28_s23 = sadd.s32 1, %s549_s18 }
   0x7   : > { %p26_p0 = scmp.ge.s32.totalorder %s25_s22, 8  ;;  %p117_p1 = scmp.ne.s32.totalorder %s533_s14, %s529_s13 }
   0x8   : > { %p118_p2 = scmp.eq.s32.totalorder %s369_s20, 15  ;;  %p123_p5 = scmp.ne.s32.totalorder %s529_s13, %s525_s12 }
   0x9   : > { %s753_s22 = smov (%p26_p0, %s25_s22), 0  ;;  %s755_s23 = smov (!%p26_p0, %s28_s23), %s549_s18 }
   0xa   : > { %s103_s24 = ssub.s32 %s545_s17, %s753_s22  ;;  %p629_p3 = por %p118_p2, %p117_p1 }
   0xb   : > { %p30_p4 = scmp.ge.s32.totalorder %s755_s23, 2  ;;  %p124_p6 = scmp.eq.s32.totalorder %s370_s21, 15 }
   0xc   : > { %p373_p7 = scmp.ge.s32.totalorder %s553_s19, 1  ;;  %p160_p9 = scmp.lt.s32.totalorder %s553_s19, 17 }
   0xd   : > { %s757_s23 = smov (%p30_p4, %s755_s23), 0  ;;  %p638_p8 = por %p124_p6, %p123_p5 }
   0xe   : > { %s102_s27 = ssub.s32 %s549_s18, %s757_s23  ;;  %s107_s28 = sadd.s32 1, %s533_s14 }
   0xf   : > { %s104_s29 = sor.u32 %s103_s24, %s102_s27  ;;  %p161_p10 = pnand %p373_p7, %p160_p9 }
  0x10   : > { %p105_p11 = scmp.eq.s32.totalorder %s104_s29, 0  ;;  %p188_p12 = scmp.lt.s32.totalorder (!%p161_p10), %s541_s16, 1  ;;  %v378_v0 = vld [vmem:[%s740_s1] ss:$0 sm:$0xff] (!%p161_p10)  ;;  %vm259_vm0 = vcmask (!%p161_p10), 130048  }
  0x11   : > { %164 = sbr.rel (%p161_p10) target bundleno = 61 (0x3d), region = 32  ;;  %p190_p13 = scmp.lt.s32.totalorder (!%p161_p10), %s537_s15, 7  ;;  %v379_v1 = vld [vmem:[%s741_s2] ss:$0 sm:$0xff] (!%p161_p10) }
  0x12   : > { %s647_s30 = scalar_select %p105_p11, %s533_s14, %s107_s28  }
  0x13   : > { %s185_s9 = sand.u32 (!%p161_p10), 1, %s529_s13  }
  0x14   : > { %s687_s21 = scalar_lea.sflag (!%p161_p10), [#allocation3], %s185_s9 }
  0x18   : > { %s189_s4 = scalar_select %p188_p12, %s541_s16, 1 }
  0x19   : > { %s191_s5 = scalar_select %p190_p13, %s537_s15, 7 }
  0x1a   : > { %s376_s6 = sshll.u32 %s189_s4, 6  ;;  %s665_s4 = sshll.u32 %s185_s9, 6 }
  0x1b   : > { %s375_s7 = sshll.u32 %s191_s5, 3  ;;  %s381_s5 = sshll.u32 %s537_s15, 3 }
  0x1c   : > { %s194_s8 = sadd.s32 %s376_s6, %s375_s7  ;;  %s382_s6 = sshll.u32 %s541_s16, 6 }
  0x1d   : > { %s377_s10 = sshll.u32 %s194_s8, 3  ;;  %s281_s7 = sadd.s32 %s382_s6, %s381_s5 }
  0x1e   : > { %s196_s27 = scalar_lea.vmem %s739_s0, %s377_s10  ;;  %s187_s15 = scalar_lea.vmem [#allocation2], %s665_s4 }
  0x1f   : > { %v197_v2 = vld [vmem:[%s196_s27] sm:$0xff]  ;;  %v198_v3 = vld [vmem:[%s196_s27 + $0x8] sm:$0xff]  ;;  %v199_v4 = vld [vmem:[%s196_s27 + $0x10] sm:$0xff]  ;;  %s284_s16 = sshll.u32 %s187_s15, 4  ;;  %s383_s8 = sshll.u32 %s281_s7, 7  ;;  %s675_s16 = int_to_ptr.vmem [resolvable:$true] %s284_s16 }
  0x20   : > { %v212_v5 = vmul.f32 %v378_v0, %v197_v2  ;;  %v213_v6 = vmul.f32 %v378_v0, %v198_v3  ;;  %v214_v7 = vmul.f32 %v378_v0, %v199_v4  ;;  %v200_v8 = vld [vmem:[%s196_s27 + $0x18] sm:$0xff]  ;;  %v201_v9 = vld [vmem:[%s196_s27 + $0x20] sm:$0xff]  ;;  %v202_v10 = vld [vmem:[%s196_s27 + $0x28] sm:$0xff]  ;;  %s681_s20 = scalar_lea.hbm %s742_s3, %s383_s8  ;;  %s459_s24 = scalar_lea.vmem %s675_s16, 1024 }
  0x21   : > { %v215_v11 = vmul.f32 %v378_v0, %v200_v8  ;;  %v216_v12 = vmul.f32 %v378_v0, %v201_v9  ;;  %v217_v13 = vmul.f32 %v378_v0, %v202_v10  ;;  %v203_v14 = vld [vmem:[%s196_s27 + $0x30] sm:$0xff]  ;;  %v204_v15 = vld [vmem:[%s196_s27 + $0x38] sm:$0xff]  ;;  %p460_p0 = scmp.ne.s32.totalorder %s675_s16, %s459_s24  ;;  %s555_s27 = smov [#allocation2]  }
  0x22   : > { %v227_v16 = vadd.f32 %v379_v1, %v212_v5  ;;  %v228_v17 = vadd.f32 %v379_v1, %v213_v6  ;;  %v229_v18 = vadd.f32 %v379_v1, %v214_v7  ;;  %v218_v19 = vmul.f32 %v378_v0, %v203_v14  ;;  %s463_s28 = sshll.u32 %s555_s27, 4  ;;  %s464_s28 = int_to_ptr.vmem [resolvable:$false] %s463_s28 }
  0x23   : > { %v230_v20 = vadd.f32 %v379_v1, %v215_v11  ;;  %v231_v21 = vadd.f32 %v379_v1, %v216_v12  ;;  %v232_v22 = vadd.f32 %v379_v1, %v217_v13  ;;  %v219_v23 = vmul.f32 %v378_v0, %v204_v15  ;;  %p461_p1 = pnand %p460_p0, %p629_p3  ;;  %s465_s29 = scalar_lea.vmem %s464_s28, 2048 }
  0x24   : > { %vm235_vm1 = vcmp.ge.f32.partialorder %v227_v16, 0.0  ;;  %v243_v24 = vmul.f32 0.01, %v227_v16  ;;  %vm236_vm2 = vcmp.ge.f32.partialorder %v228_v17, 0.0  ;;  %v244_v25 = vmul.f32 0.01, %v228_v17  ;;  %p466_p4 = scmp.lt.s32.totalorder %s675_s16, %s464_s28  ;;  %p467_p5 = scmp.lt.s32.totalorder %s465_s29, %s459_s24 }
  0x25   : > { %vm237_vm3 = vcmp.ge.f32.partialorder %v229_v18, 0.0  ;;  %v245_v26 = vmul.f32 0.01, %v229_v18  ;;  %vm238_vm4 = vcmp.ge.f32.partialorder %v230_v20, 0.0  ;;  %v246_v27 = vmul.f32 0.01, %v230_v20  ;;  %p462_p2 = pneg %p461_p1 }
  0x26   : > { %v251_v28 = vsel %vm235_vm1, %v227_v16, %v243_v24  ;;  %v252_v29 = vsel %vm236_vm2, %v228_v17, %v244_v25  ;;  %vm239_vm5 = vcmp.ge.f32.partialorder %v231_v21, 0.0  ;;  %v247_v30 = vmul.f32 0.01, %v231_v21  ;;  %p468_p6 = por %p467_p5, %p466_p4 }
  0x27   : > { %260 = vst.msk [vmem:[%s187_s15] sm:$0xff] %vm259_vm0, %v251_v28  ;;  %261 = vst.msk [vmem:[%s187_s15 + $0x8] sm:$0xff] %vm259_vm0, %v252_v29  ;;  %v253_v31 = vsel %vm237_vm3, %v229_v18, %v245_v26  ;;  %v254_v32 = vsel %vm238_vm4, %v230_v20, %v246_v27  ;;  %vm240_vm6 = vcmp.ge.f32.partialorder %v232_v22, 0.0  ;;  %v248_v33 = vmul.f32 0.01, %v232_v22 }
  0x28   : > { %262 = vst.msk [vmem:[%s187_s15 + $0x10] sm:$0xff] %vm259_vm0, %v253_v31  ;;  %263 = vst.msk [vmem:[%s187_s15 + $0x18] sm:$0xff] %vm259_vm0, %v254_v32  ;;  %v255_v34 = vsel %vm239_vm5, %v231_v21, %v247_v30  ;;  %v233_v35 = vadd.f32 %v379_v1, %v218_v19  ;;  %v234_v36 = vadd.f32 %v379_v1, %v219_v23  ;;  %p469_p7 = pnand %p468_p6, %p462_p2 }
  0x29   : > { %264 = vst.msk [vmem:[%s187_s15 + $0x20] sm:$0xff] %vm259_vm0, %v255_v34  ;;  %v256_v37 = vsel %vm240_vm6, %v232_v22, %v248_v33 }
  0x2a   : > { %265 = vst.msk [vmem:[%s187_s15 + $0x28] sm:$0xff] %vm259_vm0, %v256_v37  ;;  %vm241_vm7 = vcmp.ge.f32.partialorder %v233_v35, 0.0  ;;  %v249_v38 = vmul.f32 0.01, %v233_v35  ;;  %vm242_vm8 = vcmp.ge.f32.partialorder %v234_v36, 0.0 }
  0x2b   : > { %v250_v39 = vmul.f32 0.01, %v234_v36 }
  0x2c   : > { %v257_v40 = vsel %vm241_vm7, %v233_v35, %v249_v38 }
  0x2d   : > { %v258_v41 = vsel %vm242_vm8, %v234_v36, %v250_v39  ;;  %266 = vst.msk [vmem:[%s187_s15 + $0x30] sm:$0xff] %vm259_vm0, %v257_v40 }
  0x2e   : > { %267 = vst.msk [vmem:[%s187_s15 + $0x38] sm:$0xff] %vm259_vm0, %v258_v41 }
  0x2f   : > { %472 = shalt.err (!%p469_p7)
}
  0x30   : > { %s473_s9 = scalar_lea.hbm %s681_s20, 1024  ;;  %s477_s6 = scalar_lea.hbm %s742_s3, 16384 }
  0x31   : > { %p474_p9 = scmp.ne.s32.totalorder %s681_s20, %s473_s9  ;;  %p478_p12 = scmp.lt.u32.totalorder %s681_s20, %s742_s3 }
  0x32   : > { %p479_p13 = scmp.lt.u32.totalorder %s477_s6, %s473_s9  ;;  %p481_p1 = scmp.lt.u32.totalorder %s473_s9, %s681_s20 }
  0x33   : > { %p475_p10 = pnand %p474_p9, %p629_p3 }
  0x34   : > { %p480_p0 = por %p479_p13, %p478_p12 }
  0x35   : > { %p476_p11 = pneg %p475_p10 }
  0x36   : > { %p482_p2 = por %p481_p1, %p480_p0 }
  0x38   : > { %p483_p4 = pnand %p482_p2, %p476_p11 }
  0x3a   : > { %486 = shalt.err (!%p483_p4)
}
  0x3b   : > { %s556_s8 = smov 128   ;;  %s557_s10 = smov 8  }
  0x3c   : > { %386 = dma.vmem_to_hbm [thread:$0]  (%p629_p3), %s675_s16, 1024, %s681_s20, %s687_s21, %s556_s8, %s556_s8, %s557_s10  }
  0x3d PF: > { %p392_p5 = scmp.ge.s32.totalorder %s553_s19, 2  ;;  %s299_s11 = sand.u32 1, %s525_s12  }
  0x3e   : > { %s300_s24 = scalar_lea.sflag [#allocation3], %s299_s11 }
  0x3f   : > { %p389_p6 = pnand %p392_p5, %p638_p8 }
  0x41   : > { %520 = dma.done.wait (!%p389_p6), %s300_s24, 1024  }
  0x42   : > { %522 = vsyncadd (!%p389_p6), %s300_s24, 4294966272  ;;  %s16_s19 = sadd.s32 1, %s553_s19   ;;  %s745_s12 = smov %s529_s13 }
  0x43   : > { %p13_p7 = scmp.ge.s32.totalorder %s16_s19, 18   ;;  %s746_s13 = smov %s533_s14 }
  0x44   : > { %s747_s14 = smov %s647_s30  ;;  %s748_s15 = smov %s545_s17 }
  0x45   : > { %s749_s16 = smov %s549_s18  ;;  %s750_s17 = smov %s753_s22 }
  0x46   : > { %s751_s18 = smov %s757_s23  ;;  %15 = sbr.rel (!%p13_p7) target bundleno = 5 (0x5), region = 67 }
  0x4d   :  { %305 = vsyncpa [#allocation3], 1 }
  0x4e   :  { %307 = vsyncpa [#allocation3 + $0x1], 1 }

// kernel: convblock3d_forward.8
= control target key start
LH: loop header
LB: loop body
LE: loop exit
PB: predicated region body
PF: predicated region fallthrough
CT: control target
= control target key end

     0   :  { %s1392_s25 = smov 0   ;;  %s1394_s26 = smov 0   ;;  %s1695_s0 = inlined_call_operand.vmem [shape: f32[2,8,8,8,16], index: 0, kind: input, shape index: {}]   ;;  %s1696_s1 = inlined_call_operand.vmem [shape: f32[2,8,8,8,2], index: 1, kind: input, shape index: {}]   ;;  %s1697_s2 = inlined_call_operand.vmem [shape: f32[2,8,8,8,5], index: 2, kind: input, shape index: {}]   ;;  %s1698_s3 = inlined_call_operand.vmem [shape: f32[2,8,8,8,9], index: 3, kind: input, shape index: {}]   ;;  %s1699_s4 = inlined_call_operand.vmem [shape: f32[1,16], index: 4, kind: input, shape index: {}]   ;;  %s1700_s5 = inlined_call_operand.vmem [shape: f32[1,16], index: 5, kind: input, shape index: {}]   ;;  %s1701_s6 = inlined_call_operand.vmem [shape: f32[1,2], index: 6, kind: input, shape index: {}]   ;;  %s1702_s7 = inlined_call_operand.vmem [shape: f32[1,2], index: 7, kind: input, shape index: {}]   ;;  %s1703_s8 = inlined_call_operand.vmem [shape: f32[1,5], index: 8, kind: input, shape index: {}]   ;;  %s1704_s9 = inlined_call_operand.vmem [shape: f32[1,5], index: 9, kind: input, shape index: {}]   ;;  %s1705_s10 = inlined_call_operand.vmem [shape: f32[1,9], index: 10, kind: input, shape index: {}]   ;;  %s1706_s11 = inlined_call_operand.vmem [shape: f32[1,9], index: 11, kind: input, shape index: {}]   ;;  %s1707_s12 = inlined_call_operand.vmem [shape: f32[2,8,8,8,16], index: 12, kind: output, shape index: {0}]   ;;  %s1708_s13 = inlined_call_operand.vmem [shape: f32[2,8,2,16], index: 13, kind: output, shape index: {1}]  }
   0x1   :  { %s1396_s27 = smov 0   ;;  %s1398_s28 = smov 0  }
   0x2   :  { %s1400_s29 = smov 0  }
   0x3 LB: > { %s33_s30 = sadd.s32 1, %s1310_s27  ;;  %s36_s14 = sadd.s32 1, %s1314_s28  ;;  %s1318_s29 = sphi %s1400_s29, %s24_s29   ;;  %s1314_s28 = sphi %s1398_s28, %s1714_s28   ;;  %s1310_s27 = sphi %s1396_s27, %s1713_s27   ;;  %s1306_s26 = sphi %s1394_s26, %s1712_s26   ;;  %s1302_s25 = sphi %s1392_s25, %s1711_s25  }
   0x4   : > { %p34_p0 = scmp.ge.s32.totalorder %s33_s30, 8  ;;  %p1210_p1 = scmp.ge.s32.totalorder %s1318_s29, 1 }
   0x5   : > { %p460_p2 = scmp.lt.s32.totalorder %s1318_s29, 17 }
   0x6   : > { %s1716_s30 = smov (%p34_p0, %s33_s30), 0  ;;  %s1718_s14 = smov (!%p34_p0, %s36_s14), %s1314_s28 }
   0x7   : > { %p461_p3 = pnand %p1210_p1, %p460_p2  ;;  %p38_p4 = scmp.ge.s32.totalorder %s1718_s14, 2 }
   0x8   : > { %p547_p5 = scmp.lt.s32.totalorder (!%p461_p3), %s1306_s26, 1  ;;  %p549_p6 = scmp.lt.s32.totalorder (!%p461_p3), %s1302_s25, 7  ;;  %v1433_v0 = vld [vmem:[%s1703_s8] ss:$0 sm:$0xff] (!%p461_p3) }
   0x9   : > { %s1720_s14 = smov (%p38_p4, %s1718_s14), 0  ;;  %464 = sbr.rel (%p461_p3) target bundleno = 195 (0xc3), region = 68 }
   0xa   : > { %1709 = sst [smem:[#allocation2_spill]] %s1720_s14  ;;  %v1438_v1 = vld [vmem:[%s1705_s10] ss:$0 sm:$0xff] (!%p461_p3)  ;;  %s1320_s23 = smov (!%p461_p3), 2  }
   0xb   : > { %v1449_v2 = vld [vmem:[%s1704_s9] ss:$0 sm:$0xff] (!%p461_p3)  ;;  %s1321_s24 = smov (!%p461_p3), 7  }
   0xc   : > { %v1460_v3 = vld [vmem:[%s1706_s11] ss:$0 sm:$0xff] (!%p461_p3) }
  0x10   : > { %s1722_s26 = smov (!%p547_p5, %s1306_s26), 1  ;;  %s1724_s25 = smov (!%p549_p6, %s1302_s25), 7 }
  0x11   : > { %s1212_s15 = sshll.u32 %s1722_s26, 6  ;;  %s1211_s16 = sshll.u32 %s1724_s25, 3 }
  0x12   : > { %s553_s17 = sadd.s32 %s1212_s15, %s1211_s16 }
  0x13   : > { %s1428_s18 = sshll.u32 %s553_s17, 3 }
  0x14   : > { %s1444_s14 = scalar_lea.vmem %s1697_s2, %s1428_s18  ;;  %s1455_s20 = scalar_lea.vmem %s1698_s3, %s1428_s18 }
  0x15   : > { %v724_v4 = vld [vmem:[%s1444_s14] sm:$0xff]  ;;  %v725_v6 = vld [vmem:[%s1444_s14 + $0x8] sm:$0xff]  ;;  %v726_v11 = vld [vmem:[%s1444_s14 + $0x10] sm:$0xff]  ;;  %s1534_s16 = scalar_lea.vmem %s1696_s1, %s1428_s18  ;;  %s1593_s22 = scalar_lea.vmem %s1707_s12, %s1428_s18 }
  0x16   : > { %v786_v5 = vld [vmem:[%s1455_s20] sm:$0xff]  ;;  %v739_v7 = vmul.f32 %v1433_v0, %v724_v4  ;;  %v740_v9 = vmul.f32 %v1433_v0, %v725_v6  ;;  %v787_v10 = vld [vmem:[%s1455_s20 + $0x8] sm:$0xff]  ;;  %v788_v12 = vld [vmem:[%s1455_s20 + $0x10] sm:$0xff]  ;;  %v741_v14 = vmul.f32 %v1433_v0, %v726_v11 }
  0x17   : > { %v801_v8 = vmul.f32 %v1438_v1, %v786_v5  ;;  %v802_v13 = vmul.f32 %v1438_v1, %v787_v10  ;;  %v803_v15 = vmul.f32 %v1438_v1, %v788_v12  ;;  %v727_v16 = vld [vmem:[%s1444_s14 + $0x18] sm:$0xff]  ;;  %v728_v26 = vld [vmem:[%s1444_s14 + $0x20] sm:$0xff]  ;;  %v729_v37 = vld [vmem:[%s1444_s14 + $0x28] sm:$0xff] }
  0x18   : > { %v789_v17 = vld [vmem:[%s1455_s20 + $0x18] sm:$0xff]  ;;  %v754_v18 = vadd.f32 %v1449_v2, %v739_v7  ;;  %v755_v20 = vadd.f32 %v1449_v2, %v740_v9  ;;  %v742_v21 = vmul.f32 %v1433_v0, %v727_v16  ;;  %v756_v23 = vadd.f32 %v1449_v2, %v741_v14  ;;  %v790_v33 = vld [vmem:[%s1455_s20 + $0x20] sm:$0xff]  ;;  %v791_v38 = vld [vmem:[%s1455_s20 + $0x28] sm:$0xff] }
  0x19   : > { %v816_v19 = vadd.f32 %v1460_v3, %v801_v8  ;;  %v817_v22 = vadd.f32 %v1460_v3, %v802_v13  ;;  %v818_v24 = vadd.f32 %v1460_v3, %v803_v15  ;;  %v804_v25 = vmul.f32 %v1438_v1, %v789_v17  ;;  %v730_v52 = vld [vmem:[%s1444_s14 + $0x30] sm:$0xff]  ;;  %v731_v62 = vld [vmem:[%s1444_s14 + $0x38] sm:$0xff]  ;;  %s1226_s14 = sshll.u32 %s1722_s26, 3 }
  0x1a   : > { %vm762_vm0 = vcmp.ge.f32.partialorder %v754_v18, 0.0  ;;  %v770_v27 = vmul.f32 0.01, %v754_v18  ;;  %vm763_vm2 = vcmp.ge.f32.partialorder %v755_v20, 0.0  ;;  %v771_v29 = vmul.f32 0.01, %v755_v20  ;;  %s1522_s15 = sadd.s32 %s1226_s14, %s1724_s25 }
  0x1b   : > { %vm824_vm1 = vcmp.ge.f32.partialorder %v816_v19, 0.0  ;;  %v832_v28 = vmul.f32 0.01, %v816_v19  ;;  %vm825_vm3 = vcmp.ge.f32.partialorder %v817_v22, 0.0  ;;  %v833_v30 = vmul.f32 0.01, %v817_v22 }
  0x1c   : > { %v778_v31 = vsel %vm762_vm0, %v754_v18, %v770_v27  ;;  %v779_v34 = vsel %vm763_vm2, %v755_v20, %v771_v29  ;;  %v772_v36 = vmul.f32 0.01, %v756_v23  ;;  %v834_v39 = vmul.f32 0.01, %v818_v24  ;;  %v792_v53 = vld [vmem:[%s1455_s20 + $0x30] sm:$0xff]  ;;  %v793_v63 = vld [vmem:[%s1455_s20 + $0x38] sm:$0xff]  ;;  %s1540_s20 = scalar_lea.vmem %s1695_s0, %s1428_s18 }
  0x1d   : > { %v840_v32 = vsel %vm824_vm1, %v816_v19, %v832_v28  ;;  %856 = vrot.lane.b32.xlu0 %v778_v31, %s1320_s23  ;;  %v841_v35 = vsel %vm825_vm3, %v817_v22, %v833_v30  ;;  %v757_v40 = vadd.f32 %v1449_v2, %v742_v21  ;;  %v819_v41 = vadd.f32 %v1460_v3, %v804_v25  ;;  %v1545_v20 = vld [vmem:[%s1701_s6] ss:$0 sm:$0xff]  ;;  %v601_v29 = vld [vmem:[%s1540_s20 + $0x8] sm:$0xff]  ;;  %s1227_s18 = sshll.u32 %s1522_s15, 1 }
  0x1e   : > { %888 = vrot.lane.b32.xlu1 %v840_v32, %s1321_s24  ;;  %v743_v42 = vmul.f32 %v1433_v0, %v728_v26  ;;  %vm764_vm4 = vcmp.ge.f32.partialorder %v756_v23, 0.0  ;;  %vm826_vm5 = vcmp.ge.f32.partialorder %v818_v24, 0.0  ;;  %v805_v43 = vmul.f32 %v1438_v1, %v790_v33  ;;  %v662_v21 = vld [vmem:[%s1534_s16] sm:$0xff]  ;;  %v663_v26 = vld [vmem:[%s1534_s16 + $0x8] sm:$0xff]  ;;  %v664_v32 = vld [vmem:[%s1534_s16 + $0x10] sm:$0xff] }
  0x1f   : > { %v773_v44 = vmul.f32 0.01, %v757_v40  ;;  %v744_v45 = vmul.f32 %v1433_v0, %v729_v37  ;;  %v806_v46 = vmul.f32 %v1438_v1, %v791_v38  ;;  %vm765_vm6 = vcmp.ge.f32.partialorder %v757_v40, 0.0  ;;  %v1551_v22 = vld [vmem:[%s1699_s4] ss:$0 sm:$0xff] }
  0x20   : > { %v835_v47 = vmul.f32 0.01, %v819_v41  ;;  %v758_v48 = vadd.f32 %v1449_v2, %v743_v42  ;;  %v820_v49 = vadd.f32 %v1460_v3, %v805_v43  ;;  %v780_v50 = vsel %vm764_vm4, %v756_v23, %v772_v36  ;;  %v600_v23 = vld [vmem:[%s1540_s20] sm:$0xff]  ;;  %v602_v36 = vld [vmem:[%s1540_s20 + $0x10] sm:$0xff]  ;;  %v603_v43 = vld [vmem:[%s1540_s20 + $0x18] sm:$0xff] }
  0x21   : > { %858 = vrot.lane.b32.xlu0 %v779_v34, %s1320_s23  ;;  %v842_v51 = vsel %vm826_vm5, %v818_v24, %v834_v39  ;;  %vm827_vm7 = vcmp.ge.f32.partialorder %v819_v41, 0.0  ;;  %v781_v54 = vsel %vm765_vm6, %v757_v40, %v773_v44  ;;  %v759_v55 = vadd.f32 %v1449_v2, %v744_v45  ;;  %v1558_v25 = vld [vmem:[%s1702_s7] ss:$0 sm:$0xff]  ;;  %v665_v39 = vld [vmem:[%s1534_s16 + $0x18] sm:$0xff] }
  0x22   : > { %890 = vrot.lane.b32.xlu1 %v841_v35, %s1321_s24  ;;  %v843_v56 = vsel %vm827_vm7, %v819_v41, %v835_v47  ;;  %v774_v57 = vmul.f32 0.01, %v758_v48  ;;  %v836_v58 = vmul.f32 0.01, %v820_v49  ;;  %v821_v59 = vadd.f32 %v1460_v3, %v806_v46  ;;  %v1565_v28 = vld [vmem:[%s1700_s5] ss:$0 sm:$0xff] }
  0x23   : > { %vm766_vm8 = vcmp.ge.f32.partialorder %v758_v48, 0.0  ;;  %vm828_vm9 = vcmp.ge.f32.partialorder %v820_v49, 0.0  ;;  %v745_v60 = vmul.f32 %v1433_v0, %v730_v52  ;;  %v807_v61 = vmul.f32 %v1438_v1, %v792_v53  ;;  %v666_v46 = vld [vmem:[%s1534_s16 + $0x20] sm:$0xff] }
  0x24   : > { %vm767_vm10 = vcmp.ge.f32.partialorder %v759_v55, 0.0  ;;  %v775_v4 = vmul.f32 0.01, %v759_v55  ;;  %v782_v5 = vsel %vm766_vm8, %v758_v48, %v774_v57  ;;  %v844_v6 = vsel %vm828_vm9, %v820_v49, %v836_v58 }
  0x25   : > { %860 = vrot.lane.b32.xlu0 %v780_v50, %s1320_s23  ;;  %vm829_vm11 = vcmp.ge.f32.partialorder %v821_v59, 0.0  ;;  %v837_v7 = vmul.f32 0.01, %v821_v59  ;;  %v760_v8 = vadd.f32 %v1449_v2, %v745_v60  ;;  %v822_v9 = vadd.f32 %v1460_v3, %v807_v61  ;;  %v604_v50 = vld [vmem:[%s1540_s20 + $0x20] sm:$0xff] }
  0x26   : > { %892 = vrot.lane.b32.xlu1 %v842_v51, %s1321_s24  ;;  %v746_v10 = vmul.f32 %v1433_v0, %v731_v62  ;;  %v808_v11 = vmul.f32 %v1438_v1, %v793_v63  ;;  %v783_v12 = vsel %vm767_vm10, %v759_v55, %v775_v4  ;;  %v677_v24 = vmul.f32 %v1545_v20, %v662_v21 }
  0x27   : > { %v845_v13 = vsel %vm829_vm11, %v821_v59, %v837_v7  ;;  %v776_v14 = vmul.f32 0.01, %v760_v8  ;;  %v838_v15 = vmul.f32 0.01, %v822_v9  ;;  %vm768_vm12 = vcmp.ge.f32.partialorder %v760_v8, 0.0 }
  0x28   : > { %v761_v16 = vadd.f32 %v1449_v2, %v746_v10  ;;  %v823_v17 = vadd.f32 %v1460_v3, %v808_v11  ;;  %vm830_vm13 = vcmp.ge.f32.partialorder %v822_v9, 0.0  ;;  %v615_v27 = vmul.f32 %v1551_v22, %v600_v23 }
  0x29   : > { %862 = vrot.lane.b32.xlu0 %v781_v54, %s1320_s23  ;;  %v784_v0 = vsel %vm768_vm12, %v760_v8, %v776_v14  ;;  %v846_v1 = vsel %vm830_vm13, %v822_v9, %v838_v15  ;;  %v692_v30 = vadd.f32 %v1558_v25, %v677_v24  ;;  %v678_v31 = vmul.f32 %v1545_v20, %v663_v26 }
  0x2a   : > { %894 = vrot.lane.b32.xlu1 %v843_v56, %s1321_s24  ;;  %v777_v18 = vmul.f32 0.01, %v761_v16  ;;  %v839_v19 = vmul.f32 0.01, %v823_v17  ;;  %vm769_vm14 = vcmp.ge.f32.partialorder %v761_v16, 0.0  ;;  %vm831_vm15 = vcmp.ge.f32.partialorder %v823_v17, 0.0 }
  0x2b   : > { %v630_v33 = vadd.f32 %v1565_v28, %v615_v27  ;;  %v616_v34 = vmul.f32 %v1551_v22, %v601_v29  ;;  %v679_v35 = vmul.f32 %v1545_v20, %v664_v32  ;;  %v708_v37 = vmul.f32 0.01, %v692_v30 }
  0x2c   : > { %v785_v2 = vsel %vm769_vm14, %v761_v16, %v777_v18  ;;  %v847_v3 = vsel %vm831_vm15, %v823_v17, %v839_v19  ;;  %v693_v38 = vadd.f32 %v1558_v25, %v678_v31  ;;  %vm700_vm0 = vcmp.ge.f32.partialorder %v692_v30, 0.0  ;;  %v606_v16 = vld [vmem:[%s1540_s20 + $0x30] sm:$0xff]  ;;  %v669_v31 = vld [vmem:[%s1534_s16 + $0x38] sm:$0xff] }
  0x2d   : > { %864 = vrot.lane.b32.xlu0 %v782_v5, %s1320_s23  ;;  %v646_v40 = vmul.f32 0.01, %v630_v33  ;;  %v631_v41 = vadd.f32 %v1565_v28, %v616_v34  ;;  %v617_v42 = vmul.f32 %v1551_v22, %v602_v36  ;;  %vm638_vm1 = vcmp.ge.f32.partialorder %v630_v33, 0.0  ;;  %v667_v5 = vld [vmem:[%s1534_s16 + $0x28] sm:$0xff] }
  0x2e   : > { %896 = vrot.lane.b32.xlu1 %v844_v6, %s1321_s24  ;;  %v694_v44 = vadd.f32 %v1558_v25, %v679_v35  ;;  %v680_v45 = vmul.f32 %v1545_v20, %v665_v39  ;;  %vm912_vm2 = vcmask 15360   ;;  %v716_v47 = vsel %vm700_vm0, %v692_v30, %v708_v37  ;;  %v605_v6 = vld [vmem:[%s1540_s20 + $0x28] sm:$0xff] }
  0x2f   : > { %v709_v48 = vmul.f32 0.01, %v693_v38  ;;  %vm921_vm3 = vcmask 56320   ;;  %vm938_vm4 = vcmask 130048   ;;  %vm701_vm5 = vcmp.ge.f32.partialorder %v693_v38, 0.0 }
  0x30   : > { %v618_v49 = vmul.f32 %v1551_v22, %v603_v43  ;;  %v654_v53 = vsel %vm638_vm1, %v630_v33, %v646_v40  ;;  %v647_v54 = vmul.f32 0.01, %v631_v41  ;;  %v632_v55 = vadd.f32 %v1565_v28, %v617_v42 }
  0x31   : > { %866 = vrot.lane.b32.xlu0 %v783_v12, %s1320_s23  ;;  %v681_v56 = vmul.f32 %v1545_v20, %v666_v46  ;;  %vm639_vm6 = vcmp.ge.f32.partialorder %v631_v41, 0.0  ;;  %v710_v58 = vmul.f32 0.01, %v694_v44  ;;  %v695_v59 = vadd.f32 %v1558_v25, %v680_v45  ;;  %v668_v12 = vld [vmem:[%s1534_s16 + $0x30] sm:$0xff]  ;;  %v607_v45 = vld [vmem:[%s1540_s20 + $0x38] sm:$0xff] }
  0x32   : > { %898 = vrot.lane.b32.xlu1 %v845_v13, %s1321_s24  ;;  %v717_v61 = vsel %vm701_vm5, %v693_v38, %v709_v48  ;;  %vm702_vm7 = vcmp.ge.f32.partialorder %v694_v44, 0.0  ;;  %v619_v62 = vmul.f32 %v1551_v22, %v604_v50  ;;  %v633_v4 = vadd.f32 %v1565_v28, %v618_v49 }
  0x33   : > { %v655_v9 = vsel %vm639_vm6, %v631_v41, %v647_v54  ;;  %vm640_vm8 = vcmp.ge.f32.partialorder %v632_v55, 0.0  ;;  %v648_v10 = vmul.f32 0.01, %v632_v55  ;;  %v696_v11 = vadd.f32 %v1558_v25, %v681_v56 }
  0x34   : > { %v718_v14 = vsel %vm702_vm7, %v694_v44, %v710_v58  ;;  %vm703_vm9 = vcmp.ge.f32.partialorder %v695_v59, 0.0  ;;  %v711_v15 = vmul.f32 0.01, %v695_v59  ;;  %v620_v18 = vmul.f32 %v1551_v22, %v605_v6 }
  0x35   : > { %868 = vrot.lane.b32.xlu0 %v784_v0, %s1320_s23  ;;  %v634_v0 = vadd.f32 %v1565_v28, %v619_v62  ;;  %v656_v23 = vsel %vm640_vm8, %v632_v55, %v648_v10  ;;  %vm641_vm10 = vcmp.ge.f32.partialorder %v633_v4, 0.0  ;;  %v649_v24 = vmul.f32 0.01, %v633_v4 }
  0x36   : > { %900 = vrot.lane.b32.xlu1 %v846_v1, %s1321_s24  ;;  %v682_v1 = vmul.f32 %v1545_v20, %v667_v5  ;;  %v621_v26 = vmul.f32 %v1551_v22, %v606_v16  ;;  %v719_v29 = vsel %vm703_vm9, %v695_v59, %v711_v15  ;;  %vm704_vm11 = vcmp.ge.f32.partialorder %v696_v11, 0.0 }
  0x37   : > { %v712_v30 = vmul.f32 0.01, %v696_v11  ;;  %v650_v33 = vmul.f32 0.01, %v634_v0  ;;  %v635_v35 = vadd.f32 %v1565_v28, %v620_v18  ;;  %vm642_vm12 = vcmp.ge.f32.partialorder %v634_v0, 0.0 }
  0x38   : > { %v697_v34 = vadd.f32 %v1558_v25, %v682_v1  ;;  %v657_v40 = vsel %vm641_vm10, %v633_v4, %v649_v24  ;;  %v636_v41 = vadd.f32 %v1565_v28, %v621_v26  ;;  %v684_v42 = vmul.f32 %v1545_v20, %v669_v31 }
  0x39   : > { %870 = vrot.lane.b32.xlu0 %v785_v2, %s1320_s23  ;;  %v683_v2 = vmul.f32 %v1545_v20, %v668_v12  ;;  %v720_v44 = vsel %vm704_vm11, %v696_v11, %v712_v30  ;;  %v651_v49 = vmul.f32 0.01, %v635_v35  ;;  %vm643_vm14 = vcmp.ge.f32.partialorder %v635_v35, 0.0  ;;  %s599_s23 = scalar_lea.vmem %s1708_s13, %s1227_s18 }
  0x3a   : > { %902 = vrot.lane.b32.xlu1 %v847_v3, %s1321_s24  ;;  %v713_v48 = vmul.f32 0.01, %v697_v34  ;;  %vm705_vm13 = vcmp.ge.f32.partialorder %v697_v34, 0.0  ;;  %v652_v20 = vmul.f32 0.01, %v636_v41  ;;  %v699_v54 = vadd.f32 %v1558_v25, %v684_v42 }
  0x3b   : > { %v698_v37 = vadd.f32 %v1558_v25, %v683_v2  ;;  %v622_v55 = vmul.f32 %v1551_v22, %v607_v45  ;;  %vm644_vm0 = vcmp.ge.f32.partialorder %v636_v41, 0.0 }
  0x3c   : > { %vm707_vm1 = vcmp.ge.f32.partialorder %v699_v54, 0.0  ;;  %v715_v16 = vmul.f32 0.01, %v699_v54 }
  0x3d   : > { %vm706_vm15 = vcmp.ge.f32.partialorder %v698_v37, 0.0 }
  0x8f   : > { %v857_v51 = vpop.permute.xlu0 %856 }
  0x90   : > { %v889_v52 = vpop.permute.xlu1 %888  ;;  %v913_v57 = vsel %vm912_vm2, %v716_v47, %v857_v51  ;;  %v658_v47 = vsel %vm642_vm12, %v634_v0, %v650_v33  ;;  %v714_v51 = vmul.f32 0.01, %v698_v37 }
  0x91   : > { %v922_v60 = vsel %vm921_vm3, %v913_v57, %v889_v52 }
  0x92   : > { %v1597_v63 = vadd.f32 %v922_v60, %v654_v53  ;;  %v721_v60 = vsel %vm705_vm13, %v697_v34, %v713_v48  ;;  %v722_v5 = vsel %vm706_vm15, %v698_v37, %v714_v51 }
  0x93   : > { %v859_v7 = vpop.permute.xlu0 %858 }
  0x94   : > { %v891_v8 = vpop.permute.xlu1 %890  ;;  %939 = vst.msk [vmem:[%s1593_s22] sm:$0xff] %vm938_vm4, %v1597_v63  ;;  %v914_v13 = vsel %vm912_vm2, %v717_v61, %v859_v7  ;;  %v968_v58 = vmul.f32 %v1597_v63, %v1597_v63  ;;  %v659_v61 = vsel %vm643_vm14, %v635_v35, %v651_v49  ;;  %v947_v22 = vsel %vm938_vm4, %v1597_v63, 0.0 }
  0x95   : > { %v923_v17 = vsel %vm921_vm3, %v914_v13, %v891_v8  ;;  %v660_v8 = vsel %vm644_vm0, %v636_v41, %v652_v20 }
  0x96   : > { %v931_v19 = vadd.f32 %v923_v17, %v655_v9  ;;  %v637_v9 = vadd.f32 %v1565_v28, %v622_v55 }
  0x97   : > { %v861_v3 = vpop.permute.xlu0 %860 }
  0x98   : > { %v893_v21 = vpop.permute.xlu1 %892  ;;  %940 = vst.msk [vmem:[%s1593_s22 + $0x8] sm:$0xff] %vm938_vm4, %v931_v19  ;;  %v915_v27 = vsel %vm912_vm2, %v718_v14, %v861_v3  ;;  %v969_v56 = vmul.f32 %v931_v19, %v931_v19  ;;  %v948_v62 = vsel %vm938_vm4, %v931_v19, 0.0  ;;  %v976_v14 = vsel %vm938_vm4, %v968_v58, 0.0 }
  0x99   : > { %v924_v32 = vsel %vm921_vm3, %v915_v27, %v893_v21  ;;  %v949_v15 = vadd.f32 %v948_v62, %v947_v22  ;;  %vm645_vm5 = vcmp.ge.f32.partialorder %v637_v9, 0.0  ;;  %v653_v21 = vmul.f32 0.01, %v637_v9 }
  0x9a   : > { %v932_v36 = vadd.f32 %v924_v32, %v656_v23  ;;  %v977_v10 = vsel %vm938_vm4, %v969_v56, 0.0  ;;  %v723_v32 = vsel %vm707_vm1, %v699_v54, %v715_v16 }
  0x9b   : > { %v863_v38 = vpop.permute.xlu0 %862  ;;  %v978_v18 = vadd.f32 %v977_v10, %v976_v14 }
  0x9c   : > { %v895_v39 = vpop.permute.xlu1 %894  ;;  %941 = vst.msk [vmem:[%s1593_s22 + $0x10] sm:$0xff] %vm938_vm4, %v932_v36  ;;  %v916_v43 = vsel %vm912_vm2, %v719_v29, %v863_v38  ;;  %v970_v4 = vmul.f32 %v932_v36, %v932_v36  ;;  %v950_v11 = vsel %vm938_vm4, %v932_v36, 0.0 }
  0x9d   : > { %v925_v46 = vsel %vm921_vm3, %v916_v43, %v895_v39  ;;  %v951_v19 = vadd.f32 %v950_v11, %v949_v15 }
  0x9e   : > { %v933_v50 = vadd.f32 %v925_v46, %v657_v40  ;;  %v979_v17 = vsel %vm938_vm4, %v970_v4, 0.0  ;;  %v661_v40 = vsel %vm645_vm5, %v637_v9, %v653_v21 }
  0x9f   : > { %v865_v52 = vpop.permute.xlu0 %864  ;;  %v980_v29 = vadd.f32 %v979_v17, %v978_v18 }
  0xa0   : > { %v897_v53 = vpop.permute.xlu1 %896  ;;  %942 = vst.msk [vmem:[%s1593_s22 + $0x18] sm:$0xff] %vm938_vm4, %v933_v50  ;;  %v917_v57 = vsel %vm912_vm2, %v720_v44, %v865_v52  ;;  %v971_v12 = vmul.f32 %v933_v50, %v933_v50  ;;  %v952_v28 = vsel %vm938_vm4, %v933_v50, 0.0 }
  0xa1   : > { %v926_v59 = vsel %vm921_vm3, %v917_v57, %v897_v53  ;;  %v953_v30 = vadd.f32 %v952_v28, %v951_v19 }
  0xa2   : > { %v934_v25 = vadd.f32 %v926_v59, %v658_v47  ;;  %v981_v23 = vsel %vm938_vm4, %v971_v12, 0.0 }
  0xa3   : > { %v867_v6 = vpop.permute.xlu0 %866  ;;  %v982_v36 = vadd.f32 %v981_v23, %v980_v29 }
  0xa4   : > { %v899_v7 = vpop.permute.xlu1 %898  ;;  %943 = vst.msk [vmem:[%s1593_s22 + $0x20] sm:$0xff] %vm938_vm4, %v934_v25  ;;  %v918_v13 = vsel %vm912_vm2, %v721_v60, %v867_v6  ;;  %v972_v0 = vmul.f32 %v934_v25, %v934_v25  ;;  %v954_v24 = vsel %vm938_vm4, %v934_v25, 0.0 }
  0xa5   : > { %v927_v63 = vsel %vm921_vm3, %v918_v13, %v899_v7  ;;  %v955_v37 = vadd.f32 %v954_v24, %v953_v30 }
  0xa6   : > { %v935_v1 = vadd.f32 %v927_v63, %v659_v61  ;;  %v983_v33 = vsel %vm938_vm4, %v972_v0, 0.0 }
  0xa7   : > { %v869_v2 = vpop.permute.xlu0 %868  ;;  %v984_v45 = vadd.f32 %v983_v33, %v982_v36 }
  0xa8   : > { %v901_v3 = vpop.permute.xlu1 %900  ;;  %944 = vst.msk [vmem:[%s1593_s22 + $0x28] sm:$0xff] %vm938_vm4, %v935_v1  ;;  %v973_v26 = vmul.f32 %v935_v1, %v935_v1  ;;  %v919_v27 = vsel %vm912_vm2, %v722_v5, %v869_v2  ;;  %v956_v34 = vsel %vm938_vm4, %v935_v1, 0.0 }
  0xa9   : > { %v928_v31 = vsel %vm921_vm3, %v919_v27, %v901_v3  ;;  %v957_v46 = vadd.f32 %v956_v34, %v955_v37 }
  0xaa   : > { %v936_v35 = vadd.f32 %v928_v31, %v660_v8  ;;  %v985_v41 = vsel %vm938_vm4, %v973_v26, 0.0 }
  0xab   : > { %v871_v38 = vpop.permute.xlu0 %870  ;;  %v986_v50 = vadd.f32 %v985_v41, %v984_v45 }
  0xac   : > { %v903_v39 = vpop.permute.xlu1 %902  ;;  %945 = vst.msk [vmem:[%s1593_s22 + $0x30] sm:$0xff] %vm938_vm4, %v936_v35  ;;  %v958_v42 = vsel %vm938_vm4, %v936_v35, 0.0  ;;  %v974_v43 = vmul.f32 %v936_v35, %v936_v35  ;;  %v920_v44 = vsel %vm912_vm2, %v723_v32, %v871_v38  ;;  %vm997_vm2 = vcmask 1040384  }
  0xad   : > { %v929_v47 = vsel %vm921_vm3, %v920_v44, %v903_v39  ;;  %v959_v51 = vadd.f32 %v958_v42, %v957_v46  ;;  %vm999_vm3 = vcmask 123904  }
  0xae   : > { %v987_v48 = vsel %vm938_vm4, %v974_v43, 0.0  ;;  %v937_v49 = vadd.f32 %v929_v47, %v661_v40 }
  0xaf   : > { %v988_v20 = vadd.f32 %v987_v48, %v986_v50 }
  0xb0   : > { %946 = vst.msk [vmem:[%s1593_s22 + $0x38] sm:$0xff] %vm938_vm4, %v937_v49  ;;  %v960_v52 = vsel %vm938_vm4, %v937_v49, 0.0  ;;  %v975_v53 = vmul.f32 %v937_v49, %v937_v49 }
  0xb1   : > { %v961_v54 = vadd.f32 %v960_v52, %v959_v51 }
  0xb2   : > { %v989_v55 = vsel %vm938_vm4, %v975_v53, 0.0 }
  0xb3   : > { %v962_v56 = vrot.slane %v961_v54, 4  ;;  %v990_v57 = vadd.f32 %v989_v55, %v988_v20 }
  0xb5   : > { %v963_v58 = vadd.f32 %v962_v56, %v961_v54  ;;  %v991_v59 = vrot.slane %v990_v57, 4 }
  0xb7   : > { %v964_v60 = vrot.slane %v963_v58, 2  ;;  %v992_v61 = vadd.f32 %v991_v59, %v990_v57 }
  0xb9   : > { %v965_v62 = vadd.f32 %v964_v60, %v963_v58  ;;  %v993_v4 = vrot.slane %v992_v61, 2 }
  0xbb   : > { %v966_v25 = vrot.slane %v965_v62, 1  ;;  %v994_v5 = vadd.f32 %v993_v4, %v992_v61 }
  0xbd   : > { %v995_v22 = vrot.slane %v994_v5, 1  ;;  %v967_v6 = vadd.f32 %v966_v25, %v965_v62 }
  0xbf   : > { %v996_v7 = vadd.f32 %v995_v22, %v994_v5 }
  0xc1   : > { %v998_v8 = vsel %vm997_vm2, %v967_v6, %v996_v7 }
  0xc2   : > { %1000 = vst.msk [vmem:[%s599_s23] sm:$0x3] %vm999_vm3, %v998_v8 }
  0xc3 PF: > { %s24_s29 = sadd.s32 1, %s1318_s29   ;;  %s1710_s24 = sld [smem:[#allocation2_spill]] }
  0xc4   : > { %p21_p7 = scmp.ge.s32.totalorder %s24_s29, 18   ;;  %s1711_s25 = smov %s1310_s27 }
  0xc5   : > { %s1712_s26 = smov %s1314_s28  ;;  %s1713_s27 = smov %s1716_s30 }
  0xc6   :  { %23 = sbr.rel (!%p21_p7) target bundleno = 3 (0x3), region = 119 }
  0xc9   : > { %s1714_s28 = smov %s1710_s24 }

</bundles_post_ra>
